<compile_context>
chip_gen: v7x
topology: tpu7x:2x2x1
jax: 0.10.0
libtpu: 0.0.40
codegen_flags: <defaults>
</compile_context>

<pallas_src>
import jax
import jax.numpy as jnp
from jax.experimental import pallas as pl
from jax.experimental.pallas import tpu as pltpu


# ----------------------------- kernel helpers ------------------------------

def _mish(x):
    # mish(x) = x * tanh(softplus(x))
    # tanh(softplus(x)) = ((1 + e^x)^2 - 1) / ((1 + e^x)^2 + 1)   (single exp)
    # Clamp the exp argument at 20: for x > 20 the ratio is 1.0 in f32, which
    # matches PyTorch's thresholded softplus (mish(x) ~= x there).
    e = jnp.exp(jnp.minimum(x, 20.0))
    n = (1.0 + e) * (1.0 + e)
    return x * (n - 1.0) * pl.reciprocal(n + 1.0, approx=True)


def _layernorm(x, gamma, beta, eps=1e-5):
    # One-pass form: sum and sum-of-squares reductions are independent, so the
    # two XLU reductions can overlap instead of forming a dependent chain.
    mean = jnp.mean(x, axis=-1, keepdims=True)
    mean_sq = jnp.mean(x * x, axis=-1, keepdims=True)
    var = mean_sq - mean * mean
    return (x - mean) * jax.lax.rsqrt(var + eps) * gamma + beta


def _round_up(n, m):
    return ((n + m - 1) // m) * m


# --------------------------------- kernel ----------------------------------

def cite_mish_kernel(
    x_ref,
    w1_ref, w2_ref, b2_ref, g1_ref, be1_ref,      # layer_seq_256 (b1 folded into b2)
    w3_ref, w4_ref, b4_ref, g2_ref, be2_ref,      # layer_seq_64  (b3 folded into b4)
    w5_ref, w6_ref, b6_ref, g3_ref, be3_ref,      # layer_seq_8   (b5 folded into b6)
    whA_ref, whB_ref, whC_ref, bh_ref,            # head (row-split, col-padded)
    out_ref,
):
    # x arrives in f32; cast to bf16 on the VPU (free) for the MXU.
    x = x_ref[...].astype(jnp.bfloat16)

    # ----- layer_seq_256: Linear(F,256) -> Linear(256,128) -> LN(128) -> Mish
    h = jnp.dot(x, w1_ref[...], preferred_element_type=jnp.float32)
    h = jnp.dot(h.astype(jnp.bfloat16), w2_ref[...],
                preferred_element_type=jnp.float32) + b2_ref[...]
    x256 = _mish(_layernorm(h, g1_ref[...], be1_ref[...]))
    x256_b = x256.astype(jnp.bfloat16)

    # ----- layer_seq_64: Linear(128,64) -> Linear(64,32) -> LN(32) -> Mish
    h = jnp.dot(x256_b, w3_ref[...], preferred_element_type=jnp.float32)
    h = jnp.dot(h.astype(jnp.bfloat16), w4_ref[...],
                preferred_element_type=jnp.float32) + b4_ref[...]
    x64 = _mish(_layernorm(h, g2_ref[...], be2_ref[...]))
    x64_b = x64.astype(jnp.bfloat16)

    # ----- layer_seq_8: Linear(32,16) -> Linear(16,8) -> LN(8) -> Mish
    h = jnp.dot(x64_b, w5_ref[...], preferred_element_type=jnp.float32)
    h = jnp.dot(h.astype(jnp.bfloat16), w6_ref[...],
                preferred_element_type=jnp.float32) + b6_ref[...]
    x8 = _mish(_layernorm(h, g3_ref[...], be3_ref[...]))
    x8_b = x8.astype(jnp.bfloat16)

    # ----- head: Linear(128 + 32 + 8, out_pad); concat expressed as a split
    # matmul over pre-split head weight slabs (no lane concat, no slicing).
    out = (
        jnp.dot(x256_b, whA_ref[...], preferred_element_type=jnp.float32)
        + jnp.dot(x64_b, whB_ref[...], preferred_element_type=jnp.float32)
        + jnp.dot(x8_b, whC_ref[...], preferred_element_type=jnp.float32)
        + bh_ref[...]
    )
    # bf16 store halves the dominant HBM-writeback traffic; wrapper upcasts.
    out_ref[...] = out.astype(out_ref.dtype)


# -------------------------------- wrapper -----------------------------------

def _pick_batch_tile(B):
    """Tile the batch so that (a) the per-grid-step overhead is amortized over
    >=256 rows, (b) tiles are capped at 1024 rows, and (c) large batches give
    at least 2 tiles so both v7x TensorCores get work."""
    return max(256, min(1024, _round_up(pl.cdiv(B, 2), 256)))


def cite_model_mish_forward(x, params, *, batch_tile=None):
    """Fused CiteModel_mish forward. Returns (B, 140) float32."""
    B, F = x.shape
    out_dim = params["bh"].shape[-1]                 # 140
    out_pad = _round_up(out_dim, 128)                # 256 (lane-dense stores)

    if batch_tile is None:
        batch_tile = _pick_batch_tile(B)

    def b16(a):
        return a.astype(jnp.bfloat16)

    # Fold the first bias of each Linear pair into the second one (exact):
    #   (x@w1 + b1)@w2 + b2 == (x@w1)@w2 + (b1@w2 + b2)
    b2f = params["b1"] @ params["w2"] + params["b2"]
    b4f = params["b3"] @ params["w4"] + params["b4"]
    b6f = params["b5"] @ params["w6"] + params["b6"]

    # Head weight: pad to out_pad lanes and split by input block (128/32/8).
    wh = jnp.pad(params["wh"], ((0, 0), (0, out_pad - out_dim)))
    bh = jnp.pad(params["bh"], ((0, 0), (0, out_pad - out_dim)))

    pargs = [
        b16(params["w1"]), b16(params["w2"]), b2f, params["g1"], params["be1"],
        b16(params["w3"]), b16(params["w4"]), b4f, params["g2"], params["be2"],
        b16(params["w5"]), b16(params["w6"]), b6f, params["g3"], params["be3"],
        b16(wh[0:128, :]), b16(wh[128:160, :]), b16(wh[160:168, :]), bh,
    ]

    # Pad the batch to a tile multiple only when needed; x stays f32 (the
    # bf16 cast happens inside the kernel, on the VPU, for free).
    n_tiles = pl.cdiv(B, batch_tile)
    B_pad = n_tiles * batch_tile
    x_in = x if B_pad == B else jnp.pad(x, ((0, B_pad - B), (0, 0)))

    # Full-array blocks for every parameter (constant index_map -> loaded once).
    def full_spec(a):
        return pl.BlockSpec(a.shape, lambda i, nd=a.ndim: (0,) * nd)

    in_specs = [pl.BlockSpec((batch_tile, F), lambda i: (i, 0))]
    in_specs += [full_spec(a) for a in pargs]
    out_specs = pl.BlockSpec((batch_tile, out_pad), lambda i: (i, 0))

    # Advisory cost estimate for XLA scheduling around the fused call.
    flops = 2 * B_pad * (F * 256 + 256 * 128 + 128 * 64 + 64 * 32
                         + 32 * 16 + 16 * 8 + (128 + 32 + 8) * out_pad)
    transcendentals = B_pad * ((128 + 32 + 8) * 2 + 3)   # mish exp+recip, LN rsqrt
    bytes_accessed = int(x_in.size) * 4 + B_pad * out_pad * 2 + sum(
        int(a.size) * a.dtype.itemsize for a in pargs)

    out = pl.pallas_call(
        cite_mish_kernel,
        out_shape=jax.ShapeDtypeStruct((B_pad, out_pad), jnp.bfloat16),
        grid_spec=pltpu.PrefetchScalarGridSpec(
            num_scalar_prefetch=0,
            grid=(n_tiles,),
            in_specs=in_specs,
            out_specs=out_specs,
        ),
        compiler_params=pltpu.CompilerParams(
            dimension_semantics=("parallel",),   # batch tiles split across TCs (v7x)
        ),
        cost_estimate=pl.CostEstimate(
            flops=flops,
            transcendentals=transcendentals,
            bytes_accessed=bytes_accessed,
        ),
    )(x_in, *pargs)

    # Upcast + slice back to the module's (B, 140) float32 output.
    return out[:B, :out_dim].astype(jnp.float32)


# ------------------------- deterministic param init -------------------------

def init_params(key, feature_num):
    def linear(key, fan_in, fan_out):
        kw, kb = jax.random.split(key)
        bound = 1.0 / jnp.sqrt(fan_in)
        w = jax.random.uniform(kw, (fan_in, fan_out), jnp.float32, -bound, bound)
        b = jax.random.uniform(kb, (1, fan_out), jnp.float32, -bound, bound)
        return w, b

    keys = jax.random.split(key, 7)
    p = {}
    p["w1"], p["b1"] = linear(keys[0], feature_num, 256)
    p["w2"], p["b2"] = linear(keys[1], 256, 128)
    p["g1"], p["be1"] = jnp.ones((1, 128), jnp.float32), jnp.zeros((1, 128), jnp.float32)
    p["w3"], p["b3"] = linear(keys[2], 128, 64)
    p["w4"], p["b4"] = linear(keys[3], 64, 32)
    p["g2"], p["be2"] = jnp.ones((1, 32), jnp.float32), jnp.zeros((1, 32), jnp.float32)
    p["w5"], p["b5"] = linear(keys[4], 32, 16)
    p["w6"], p["b6"] = linear(keys[5], 16, 8)
    p["g3"], p["be3"] = jnp.ones((1, 8), jnp.float32), jnp.zeros((1, 8), jnp.float32)
    p["wh"], p["bh"] = linear(keys[6], 128 + 32 + 8, 140)
    return p


# --------------------------- pure-JAX reference -----------------------------

def reference_forward(x, p):
    def mish(v):
        return v * jnp.tanh(jnp.logaddexp(v, 0.0))

    def ln(v, g, b, eps=1e-5):
        m = jnp.mean(v, -1, keepdims=True)
        var = jnp.mean(jnp.square(v - m), -1, keepdims=True)
        return (v - m) * jax.lax.rsqrt(var + eps) * g + b

    h = x @ p["w1"] + p["b1"]
    h = h @ p["w2"] + p["b2"]
    x256 = mish(ln(h, p["g1"], p["be1"]))
    h = x256 @ p["w3"] + p["b3"]
    h = h @ p["w4"] + p["b4"]
    x64 = mish(ln(h, p["g2"], p["be2"]))
    h = x64 @ p["w5"] + p["b5"]
    h = h @ p["w6"] + p["b6"]
    x8 = mish(ln(h, p["g3"], p["be3"]))
    cat = jnp.concatenate([x256, x64, x8], axis=1)
    return cat @ p["wh"] + p["bh"]


# ----------------------------------- main ------------------------------------

if __name__ == "__main__":
    key = jax.random.PRNGKey(0)
    k_x, k_p, k_x2 = jax.random.split(key, 3)

    feature_num = 32
    params = init_params(k_p, feature_num)

    # --- small-batch path (single 256-row tile, B padded 8 -> 256) ---
    batch = 8
    x = jax.random.normal(k_x, (batch, feature_num), jnp.float32)
    out = jax.block_until_ready(cite_model_mish_forward(x, params))
    ref = reference_forward(x, params)
    assert out.shape == (batch, 140)
    # bf16 MXU operands + bf16 output store + approx reciprocal in Mish ->
    # loosened tolerance vs. the pure-f32 reference.
    max_err = float(jnp.max(jnp.abs(out - ref)))
    assert jnp.allclose(out, ref, atol=5e-2, rtol=5e-2), f"max abs err {max_err}"

    # --- multi-tile + padding path (B not a multiple of the tile) ---
    batch2 = 260
    x2 = jax.random.normal(k_x2, (batch2, feature_num), jnp.float32)
    out2 = jax.block_until_ready(cite_model_mish_forward(x2, params))
    ref2 = reference_forward(x2, params)
    assert out2.shape == (batch2, 140)
    max_err2 = float(jnp.max(jnp.abs(out2 - ref2)))
    assert jnp.allclose(out2, ref2, atol=5e-2, rtol=5e-2), f"max abs err {max_err2}"

    print("KERNEL_OK")
</pallas_src>

<mosaic_0001>
module attributes {stable_mosaic.version = 11 : i64} {
  func.func @cite_mish_kernel(%arg0: i32, %arg1: memref<256x32xf32, #tpu.memory_space<vmem>>, %arg2: memref<32x256xbf16, #tpu.memory_space<vmem>>, %arg3: memref<256x128xbf16, #tpu.memory_space<vmem>>, %arg4: memref<1x128xf32, #tpu.memory_space<vmem>>, %arg5: memref<1x128xf32, #tpu.memory_space<vmem>>, %arg6: memref<1x128xf32, #tpu.memory_space<vmem>>, %arg7: memref<128x64xbf16, #tpu.memory_space<vmem>>, %arg8: memref<64x32xbf16, #tpu.memory_space<vmem>>, %arg9: memref<1x32xf32, #tpu.memory_space<vmem>>, %arg10: memref<1x32xf32, #tpu.memory_space<vmem>>, %arg11: memref<1x32xf32, #tpu.memory_space<vmem>>, %arg12: memref<32x16xbf16, #tpu.memory_space<vmem>>, %arg13: memref<16x8xbf16, #tpu.memory_space<vmem>>, %arg14: memref<1x8xf32, #tpu.memory_space<vmem>>, %arg15: memref<1x8xf32, #tpu.memory_space<vmem>>, %arg16: memref<1x8xf32, #tpu.memory_space<vmem>>, %arg17: memref<128x256xbf16, #tpu.memory_space<vmem>>, %arg18: memref<32x256xbf16, #tpu.memory_space<vmem>>, %arg19: memref<8x256xbf16, #tpu.memory_space<vmem>>, %arg20: memref<1x256xf32, #tpu.memory_space<vmem>>, %arg21: memref<256x256xbf16, #tpu.memory_space<vmem>>) attributes {dimension_semantics = [#tpu.dimension_semantics<parallel>], iteration_bounds = array<i64: 1>, scalar_prefetch = 0 : i64, scratch_operands = 0 : i64, tpu.core_type = #tpu.core_type<tc>, window_params = [{transform_indices = @transform_0, window_bounds = array<i64: 256, 32>}, {pipeline_mode = #tpu.pipeline_mode<synchronous>, transform_indices = @transform_1, window_bounds = array<i64: 32, 256>}, {pipeline_mode = #tpu.pipeline_mode<synchronous>, transform_indices = @transform_2, window_bounds = array<i64: 256, 128>}, {pipeline_mode = #tpu.pipeline_mode<synchronous>, transform_indices = @transform_3, window_bounds = array<i64: 1, 128>}, {pipeline_mode = #tpu.pipeline_mode<synchronous>, transform_indices = @transform_4, window_bounds = array<i64: 1, 128>}, {pipeline_mode = #tpu.pipeline_mode<synchronous>, transform_indices = @transform_5, window_bounds = array<i64: 1, 128>}, {pipeline_mode = #tpu.pipeline_mode<synchronous>, transform_indices = @transform_6, window_bounds = array<i64: 128, 64>}, {pipeline_mode = #tpu.pipeline_mode<synchronous>, transform_indices = @transform_7, window_bounds = array<i64: 64, 32>}, {pipeline_mode = #tpu.pipeline_mode<synchronous>, transform_indices = @transform_8, window_bounds = array<i64: 1, 32>}, {pipeline_mode = #tpu.pipeline_mode<synchronous>, transform_indices = @transform_9, window_bounds = array<i64: 1, 32>}, {pipeline_mode = #tpu.pipeline_mode<synchronous>, transform_indices = @transform_10, window_bounds = array<i64: 1, 32>}, {pipeline_mode = #tpu.pipeline_mode<synchronous>, transform_indices = @transform_11, window_bounds = array<i64: 32, 16>}, {pipeline_mode = #tpu.pipeline_mode<synchronous>, transform_indices = @transform_12, window_bounds = array<i64: 16, 8>}, {pipeline_mode = #tpu.pipeline_mode<synchronous>, transform_indices = @transform_13, window_bounds = array<i64: 1, 8>}, {pipeline_mode = #tpu.pipeline_mode<synchronous>, transform_indices = @transform_14, window_bounds = array<i64: 1, 8>}, {pipeline_mode = #tpu.pipeline_mode<synchronous>, transform_indices = @transform_15, window_bounds = array<i64: 1, 8>}, {pipeline_mode = #tpu.pipeline_mode<synchronous>, transform_indices = @transform_16, window_bounds = array<i64: 128, 256>}, {pipeline_mode = #tpu.pipeline_mode<synchronous>, transform_indices = @transform_17, window_bounds = array<i64: 32, 256>}, {pipeline_mode = #tpu.pipeline_mode<synchronous>, transform_indices = @transform_18, window_bounds = array<i64: 8, 256>}, {pipeline_mode = #tpu.pipeline_mode<synchronous>, transform_indices = @transform_19, window_bounds = array<i64: 1, 256>}, {transform_indices = @transform_20, window_bounds = array<i64: 256, 256>}]} {
    %c0 = arith.constant 0 : index
    %c0_0 = arith.constant 0 : index
    %0 = vector.load %arg1[%c0, %c0_0] : memref<256x32xf32, #tpu.memory_space<vmem>>, vector<256x32xf32>
    %1 = arith.truncf %0 : vector<256x32xf32> to vector<256x32xbf16>
    %c0_1 = arith.constant 0 : index
    %c0_2 = arith.constant 0 : index
    %2 = vector.load %arg2[%c0_1, %c0_2] : memref<32x256xbf16, #tpu.memory_space<vmem>>, vector<32x256xbf16>
    %cst = arith.constant dense<0.000000e+00> : vector<256x256xf32>
    %3 = tpu.matmul %1, %2, %cst {dimension_numbers = #tpu.dot_dimension_numbers<[1], [0], [0], [1], [0, 0, 1, 1], [], []>} : vector<256x32xbf16>, vector<32x256xbf16>, vector<256x256xf32> -> vector<256x256xf32>
    %4 = arith.truncf %3 : vector<256x256xf32> to vector<256x256xbf16>
    %c0_3 = arith.constant 0 : index
    %c0_4 = arith.constant 0 : index
    %5 = vector.load %arg3[%c0_3, %c0_4] : memref<256x128xbf16, #tpu.memory_space<vmem>>, vector<256x128xbf16>
    %cst_5 = arith.constant dense<0.000000e+00> : vector<256x128xf32>
    %6 = tpu.matmul %4, %5, %cst_5 {dimension_numbers = #tpu.dot_dimension_numbers<[1], [0], [0], [1], [0, 0, 1, 1], [], []>} : vector<256x256xbf16>, vector<256x128xbf16>, vector<256x128xf32> -> vector<256x128xf32>
    %c0_6 = arith.constant 0 : index
    %c0_7 = arith.constant 0 : index
    %7 = vector.load %arg4[%c0_6, %c0_7] : memref<1x128xf32, #tpu.memory_space<vmem>>, vector<1x128xf32>
    %8 = vector.broadcast %7 : vector<1x128xf32> to vector<256x128xf32>
    %9 = arith.addf %6, %8 : vector<256x128xf32>
    %c0_8 = arith.constant 0 : index
    %c0_9 = arith.constant 0 : index
    %10 = vector.load %arg5[%c0_8, %c0_9] : memref<1x128xf32, #tpu.memory_space<vmem>>, vector<1x128xf32>
    %c0_10 = arith.constant 0 : index
    %c0_11 = arith.constant 0 : index
    %11 = vector.load %arg6[%c0_10, %c0_11] : memref<1x128xf32, #tpu.memory_space<vmem>>, vector<1x128xf32>
    %cst_12 = arith.constant dense<0.000000e+00> : vector<256xf32>
    %12 = vector.multi_reduction <add>, %9, %cst_12 [1] : vector<256x128xf32> to vector<256xf32>
    %13 = vector.shape_cast %12 : vector<256xf32> to vector<256x1xf32>
    %cst_13 = arith.constant 1.280000e+02 : f32
    %14 = vector.broadcast %cst_13 : f32 to vector<256x1xf32>
    %15 = arith.divf %13, %14 : vector<256x1xf32>
    %16 = arith.mulf %9, %9 : vector<256x128xf32>
    %cst_14 = arith.constant dense<0.000000e+00> : vector<256xf32>
    %17 = vector.multi_reduction <add>, %16, %cst_14 [1] : vector<256x128xf32> to vector<256xf32>
    %18 = vector.shape_cast %17 : vector<256xf32> to vector<256x1xf32>
    %cst_15 = arith.constant 1.280000e+02 : f32
    %19 = vector.broadcast %cst_15 : f32 to vector<256x1xf32>
    %20 = arith.divf %18, %19 : vector<256x1xf32>
    %21 = arith.mulf %15, %15 : vector<256x1xf32>
    %22 = arith.subf %20, %21 : vector<256x1xf32>
    %23 = vector.broadcast %15 : vector<256x1xf32> to vector<256x128xf32>
    %24 = arith.subf %9, %23 : vector<256x128xf32>
    %cst_16 = arith.constant 9.99999974E-6 : f32
    %25 = vector.broadcast %cst_16 : f32 to vector<256x1xf32>
    %26 = arith.addf %22, %25 : vector<256x1xf32>
    %27 = math.rsqrt %26 : vector<256x1xf32>
    %28 = vector.broadcast %27 : vector<256x1xf32> to vector<256x128xf32>
    %29 = arith.mulf %24, %28 : vector<256x128xf32>
    %30 = vector.broadcast %10 : vector<1x128xf32> to vector<256x128xf32>
    %31 = arith.mulf %29, %30 : vector<256x128xf32>
    %32 = vector.broadcast %11 : vector<1x128xf32> to vector<256x128xf32>
    %33 = arith.addf %31, %32 : vector<256x128xf32>
    %cst_17 = arith.constant 2.000000e+01 : f32
    %34 = vector.broadcast %cst_17 : f32 to vector<256x128xf32>
    %35 = arith.minimumf %33, %34 : vector<256x128xf32>
    %36 = math.exp %35 : vector<256x128xf32>
    %cst_18 = arith.constant 1.000000e+00 : f32
    %37 = vector.broadcast %cst_18 : f32 to vector<256x128xf32>
    %38 = arith.addf %37, %36 : vector<256x128xf32>
    %cst_19 = arith.constant 1.000000e+00 : f32
    %39 = vector.broadcast %cst_19 : f32 to vector<256x128xf32>
    %40 = arith.addf %39, %36 : vector<256x128xf32>
    %41 = arith.mulf %38, %40 : vector<256x128xf32>
    %cst_20 = arith.constant 1.000000e+00 : f32
    %42 = vector.broadcast %cst_20 : f32 to vector<256x128xf32>
    %43 = arith.subf %41, %42 : vector<256x128xf32>
    %44 = arith.mulf %33, %43 : vector<256x128xf32>
    %cst_21 = arith.constant 1.000000e+00 : f32
    %45 = vector.broadcast %cst_21 : f32 to vector<256x128xf32>
    %46 = arith.addf %41, %45 : vector<256x128xf32>
    %47 = tpu.reciprocal %46 {approx = true} : vector<256x128xf32> -> vector<256x128xf32>
    %48 = arith.mulf %44, %47 : vector<256x128xf32>
    %49 = arith.truncf %48 : vector<256x128xf32> to vector<256x128xbf16>
    %c0_22 = arith.constant 0 : index
    %c0_23 = arith.constant 0 : index
    %50 = vector.load %arg7[%c0_22, %c0_23] : memref<128x64xbf16, #tpu.memory_space<vmem>>, vector<128x64xbf16>
    %cst_24 = arith.constant dense<0.000000e+00> : vector<256x64xf32>
    %51 = tpu.matmul %49, %50, %cst_24 {dimension_numbers = #tpu.dot_dimension_numbers<[1], [0], [0], [1], [0, 0, 1, 1], [], []>} : vector<256x128xbf16>, vector<128x64xbf16>, vector<256x64xf32> -> vector<256x64xf32>
    %52 = arith.truncf %51 : vector<256x64xf32> to vector<256x64xbf16>
    %c0_25 = arith.constant 0 : index
    %c0_26 = arith.constant 0 : index
    %53 = vector.load %arg8[%c0_25, %c0_26] : memref<64x32xbf16, #tpu.memory_space<vmem>>, vector<64x32xbf16>
    %cst_27 = arith.constant dense<0.000000e+00> : vector<256x32xf32>
    %54 = tpu.matmul %52, %53, %cst_27 {dimension_numbers = #tpu.dot_dimension_numbers<[1], [0], [0], [1], [0, 0, 1, 1], [], []>} : vector<256x64xbf16>, vector<64x32xbf16>, vector<256x32xf32> -> vector<256x32xf32>
    %c0_28 = arith.constant 0 : index
    %c0_29 = arith.constant 0 : index
    %55 = vector.load %arg9[%c0_28, %c0_29] : memref<1x32xf32, #tpu.memory_space<vmem>>, vector<1x32xf32>
    %56 = vector.broadcast %55 : vector<1x32xf32> to vector<256x32xf32>
    %57 = arith.addf %54, %56 : vector<256x32xf32>
    %c0_30 = arith.constant 0 : index
    %c0_31 = arith.constant 0 : index
    %58 = vector.load %arg10[%c0_30, %c0_31] : memref<1x32xf32, #tpu.memory_space<vmem>>, vector<1x32xf32>
    %c0_32 = arith.constant 0 : index
    %c0_33 = arith.constant 0 : index
    %59 = vector.load %arg11[%c0_32, %c0_33] : memref<1x32xf32, #tpu.memory_space<vmem>>, vector<1x32xf32>
    %cst_34 = arith.constant dense<0.000000e+00> : vector<256xf32>
    %60 = vector.multi_reduction <add>, %57, %cst_34 [1] : vector<256x32xf32> to vector<256xf32>
    %61 = vector.shape_cast %60 : vector<256xf32> to vector<256x1xf32>
    %cst_35 = arith.constant 3.200000e+01 : f32
    %62 = vector.broadcast %cst_35 : f32 to vector<256x1xf32>
    %63 = arith.divf %61, %62 : vector<256x1xf32>
    %64 = arith.mulf %57, %57 : vector<256x32xf32>
    %cst_36 = arith.constant dense<0.000000e+00> : vector<256xf32>
    %65 = vector.multi_reduction <add>, %64, %cst_36 [1] : vector<256x32xf32> to vector<256xf32>
    %66 = vector.shape_cast %65 : vector<256xf32> to vector<256x1xf32>
    %cst_37 = arith.constant 3.200000e+01 : f32
    %67 = vector.broadcast %cst_37 : f32 to vector<256x1xf32>
    %68 = arith.divf %66, %67 : vector<256x1xf32>
    %69 = arith.mulf %63, %63 : vector<256x1xf32>
    %70 = arith.subf %68, %69 : vector<256x1xf32>
    %71 = vector.broadcast %63 : vector<256x1xf32> to vector<256x32xf32>
    %72 = arith.subf %57, %71 : vector<256x32xf32>
    %cst_38 = arith.constant 9.99999974E-6 : f32
    %73 = vector.broadcast %cst_38 : f32 to vector<256x1xf32>
    %74 = arith.addf %70, %73 : vector<256x1xf32>
    %75 = math.rsqrt %74 : vector<256x1xf32>
    %76 = vector.broadcast %75 : vector<256x1xf32> to vector<256x32xf32>
    %77 = arith.mulf %72, %76 : vector<256x32xf32>
    %78 = vector.broadcast %58 : vector<1x32xf32> to vector<256x32xf32>
    %79 = arith.mulf %77, %78 : vector<256x32xf32>
    %80 = vector.broadcast %59 : vector<1x32xf32> to vector<256x32xf32>
    %81 = arith.addf %79, %80 : vector<256x32xf32>
    %cst_39 = arith.constant 2.000000e+01 : f32
    %82 = vector.broadcast %cst_39 : f32 to vector<256x32xf32>
    %83 = arith.minimumf %81, %82 : vector<256x32xf32>
    %84 = math.exp %83 : vector<256x32xf32>
    %cst_40 = arith.constant 1.000000e+00 : f32
    %85 = vector.broadcast %cst_40 : f32 to vector<256x32xf32>
    %86 = arith.addf %85, %84 : vector<256x32xf32>
    %cst_41 = arith.constant 1.000000e+00 : f32
    %87 = vector.broadcast %cst_41 : f32 to vector<256x32xf32>
    %88 = arith.addf %87, %84 : vector<256x32xf32>
    %89 = arith.mulf %86, %88 : vector<256x32xf32>
    %cst_42 = arith.constant 1.000000e+00 : f32
    %90 = vector.broadcast %cst_42 : f32 to vector<256x32xf32>
    %91 = arith.subf %89, %90 : vector<256x32xf32>
    %92 = arith.mulf %81, %91 : vector<256x32xf32>
    %cst_43 = arith.constant 1.000000e+00 : f32
    %93 = vector.broadcast %cst_43 : f32 to vector<256x32xf32>
    %94 = arith.addf %89, %93 : vector<256x32xf32>
    %95 = tpu.reciprocal %94 {approx = true} : vector<256x32xf32> -> vector<256x32xf32>
    %96 = arith.mulf %92, %95 : vector<256x32xf32>
    %97 = arith.truncf %96 : vector<256x32xf32> to vector<256x32xbf16>
    %c0_44 = arith.constant 0 : index
    %c0_45 = arith.constant 0 : index
    %98 = vector.load %arg12[%c0_44, %c0_45] : memref<32x16xbf16, #tpu.memory_space<vmem>>, vector<32x16xbf16>
    %cst_46 = arith.constant dense<0.000000e+00> : vector<256x16xf32>
    %99 = tpu.matmul %97, %98, %cst_46 {dimension_numbers = #tpu.dot_dimension_numbers<[1], [0], [0], [1], [0, 0, 1, 1], [], []>} : vector<256x32xbf16>, vector<32x16xbf16>, vector<256x16xf32> -> vector<256x16xf32>
    %100 = arith.truncf %99 : vector<256x16xf32> to vector<256x16xbf16>
    %c0_47 = arith.constant 0 : index
    %c0_48 = arith.constant 0 : index
    %101 = vector.load %arg13[%c0_47, %c0_48] : memref<16x8xbf16, #tpu.memory_space<vmem>>, vector<16x8xbf16>
    %cst_49 = arith.constant dense<0.000000e+00> : vector<256x8xf32>
    %102 = tpu.matmul %100, %101, %cst_49 {dimension_numbers = #tpu.dot_dimension_numbers<[1], [0], [0], [1], [0, 0, 1, 1], [], []>} : vector<256x16xbf16>, vector<16x8xbf16>, vector<256x8xf32> -> vector<256x8xf32>
    %c0_50 = arith.constant 0 : index
    %c0_51 = arith.constant 0 : index
    %103 = vector.load %arg14[%c0_50, %c0_51] : memref<1x8xf32, #tpu.memory_space<vmem>>, vector<1x8xf32>
    %104 = vector.broadcast %103 : vector<1x8xf32> to vector<256x8xf32>
    %105 = arith.addf %102, %104 : vector<256x8xf32>
    %c0_52 = arith.constant 0 : index
    %c0_53 = arith.constant 0 : index
    %106 = vector.load %arg15[%c0_52, %c0_53] : memref<1x8xf32, #tpu.memory_space<vmem>>, vector<1x8xf32>
    %c0_54 = arith.constant 0 : index
    %c0_55 = arith.constant 0 : index
    %107 = vector.load %arg16[%c0_54, %c0_55] : memref<1x8xf32, #tpu.memory_space<vmem>>, vector<1x8xf32>
    %cst_56 = arith.constant dense<0.000000e+00> : vector<256xf32>
    %108 = vector.multi_reduction <add>, %105, %cst_56 [1] : vector<256x8xf32> to vector<256xf32>
    %109 = vector.shape_cast %108 : vector<256xf32> to vector<256x1xf32>
    %cst_57 = arith.constant 8.000000e+00 : f32
    %110 = vector.broadcast %cst_57 : f32 to vector<256x1xf32>
    %111 = arith.divf %109, %110 : vector<256x1xf32>
    %112 = arith.mulf %105, %105 : vector<256x8xf32>
    %cst_58 = arith.constant dense<0.000000e+00> : vector<256xf32>
    %113 = vector.multi_reduction <add>, %112, %cst_58 [1] : vector<256x8xf32> to vector<256xf32>
    %114 = vector.shape_cast %113 : vector<256xf32> to vector<256x1xf32>
    %cst_59 = arith.constant 8.000000e+00 : f32
    %115 = vector.broadcast %cst_59 : f32 to vector<256x1xf32>
    %116 = arith.divf %114, %115 : vector<256x1xf32>
    %117 = arith.mulf %111, %111 : vector<256x1xf32>
    %118 = arith.subf %116, %117 : vector<256x1xf32>
    %119 = vector.broadcast %111 : vector<256x1xf32> to vector<256x8xf32>
    %120 = arith.subf %105, %119 : vector<256x8xf32>
    %cst_60 = arith.constant 9.99999974E-6 : f32
    %121 = vector.broadcast %cst_60 : f32 to vector<256x1xf32>
    %122 = arith.addf %118, %121 : vector<256x1xf32>
    %123 = math.rsqrt %122 : vector<256x1xf32>
    %124 = vector.broadcast %123 : vector<256x1xf32> to vector<256x8xf32>
    %125 = arith.mulf %120, %124 : vector<256x8xf32>
    %126 = vector.broadcast %106 : vector<1x8xf32> to vector<256x8xf32>
    %127 = arith.mulf %125, %126 : vector<256x8xf32>
    %128 = vector.broadcast %107 : vector<1x8xf32> to vector<256x8xf32>
    %129 = arith.addf %127, %128 : vector<256x8xf32>
    %cst_61 = arith.constant 2.000000e+01 : f32
    %130 = vector.broadcast %cst_61 : f32 to vector<256x8xf32>
    %131 = arith.minimumf %129, %130 : vector<256x8xf32>
    %132 = math.exp %131 : vector<256x8xf32>
    %cst_62 = arith.constant 1.000000e+00 : f32
    %133 = vector.broadcast %cst_62 : f32 to vector<256x8xf32>
    %134 = arith.addf %133, %132 : vector<256x8xf32>
    %cst_63 = arith.constant 1.000000e+00 : f32
    %135 = vector.broadcast %cst_63 : f32 to vector<256x8xf32>
    %136 = arith.addf %135, %132 : vector<256x8xf32>
    %137 = arith.mulf %134, %136 : vector<256x8xf32>
    %cst_64 = arith.constant 1.000000e+00 : f32
    %138 = vector.broadcast %cst_64 : f32 to vector<256x8xf32>
    %139 = arith.subf %137, %138 : vector<256x8xf32>
    %140 = arith.mulf %129, %139 : vector<256x8xf32>
    %cst_65 = arith.constant 1.000000e+00 : f32
    %141 = vector.broadcast %cst_65 : f32 to vector<256x8xf32>
    %142 = arith.addf %137, %141 : vector<256x8xf32>
    %143 = tpu.reciprocal %142 {approx = true} : vector<256x8xf32> -> vector<256x8xf32>
    %144 = arith.mulf %140, %143 : vector<256x8xf32>
    %145 = arith.truncf %144 : vector<256x8xf32> to vector<256x8xbf16>
    %c0_66 = arith.constant 0 : index
    %c0_67 = arith.constant 0 : index
    %146 = vector.load %arg17[%c0_66, %c0_67] : memref<128x256xbf16, #tpu.memory_space<vmem>>, vector<128x256xbf16>
    %cst_68 = arith.constant dense<0.000000e+00> : vector<256x256xf32>
    %147 = tpu.matmul %49, %146, %cst_68 {dimension_numbers = #tpu.dot_dimension_numbers<[1], [0], [0], [1], [0, 0, 1, 1], [], []>} : vector<256x128xbf16>, vector<128x256xbf16>, vector<256x256xf32> -> vector<256x256xf32>
    %c0_69 = arith.constant 0 : index
    %c0_70 = arith.constant 0 : index
    %148 = vector.load %arg18[%c0_69, %c0_70] : memref<32x256xbf16, #tpu.memory_space<vmem>>, vector<32x256xbf16>
    %cst_71 = arith.constant dense<0.000000e+00> : vector<256x256xf32>
    %149 = tpu.matmul %97, %148, %cst_71 {dimension_numbers = #tpu.dot_dimension_numbers<[1], [0], [0], [1], [0, 0, 1, 1], [], []>} : vector<256x32xbf16>, vector<32x256xbf16>, vector<256x256xf32> -> vector<256x256xf32>
    %150 = arith.addf %147, %149 : vector<256x256xf32>
    %c0_72 = arith.constant 0 : index
    %c0_73 = arith.constant 0 : index
    %151 = vector.load %arg19[%c0_72, %c0_73] : memref<8x256xbf16, #tpu.memory_space<vmem>>, vector<8x256xbf16>
    %cst_74 = arith.constant dense<0.000000e+00> : vector<256x256xf32>
    %152 = tpu.matmul %145, %151, %cst_74 {dimension_numbers = #tpu.dot_dimension_numbers<[1], [0], [0], [1], [0, 0, 1, 1], [], []>} : vector<256x8xbf16>, vector<8x256xbf16>, vector<256x256xf32> -> vector<256x256xf32>
    %153 = arith.addf %150, %152 : vector<256x256xf32>
    %c0_75 = arith.constant 0 : index
    %c0_76 = arith.constant 0 : index
    %154 = vector.load %arg20[%c0_75, %c0_76] : memref<1x256xf32, #tpu.memory_space<vmem>>, vector<1x256xf32>
    %155 = vector.broadcast %154 : vector<1x256xf32> to vector<256x256xf32>
    %156 = arith.addf %153, %155 : vector<256x256xf32>
    %157 = arith.truncf %156 : vector<256x256xf32> to vector<256x256xbf16>
    %c0_77 = arith.constant 0 : index
    %c0_78 = arith.constant 0 : index
    %158 = vector.load %arg21[%c0_77, %c0_78] : memref<256x256xbf16, #tpu.memory_space<vmem>>, vector<256x256xbf16>
    tpu.vector_store %arg21[%c0_77, %c0_78], %157 {strides = array<i32>} : memref<256x256xbf16, #tpu.memory_space<vmem>>, vector<256x256xbf16>,
    return
  }
  func.func @transform_0(%arg0: i32) -> (i32, i32) {
    %c0_i32 = arith.constant 0 : i32
    %c0_i32_0 = arith.constant 0 : i32
    return %arg0, %c0_i32 : i32, i32
  }
  func.func @transform_1(%arg0: i32) -> (i32, i32) {
    %c0_i32 = arith.constant 0 : i32
    %c0_i32_0 = arith.constant 0 : i32
    %c0_i32_1 = arith.constant 0 : i32
    return %c0_i32, %c0_i32_0 : i32, i32
  }
  func.func @transform_2(%arg0: i32) -> (i32, i32) {
    %c0_i32 = arith.constant 0 : i32
    %c0_i32_0 = arith.constant 0 : i32
    %c0_i32_1 = arith.constant 0 : i32
    return %c0_i32, %c0_i32_0 : i32, i32
  }
  func.func @transform_3(%arg0: i32) -> (i32, i32) {
    %c0_i32 = arith.constant 0 : i32
    %c0_i32_0 = arith.constant 0 : i32
    %c0_i32_1 = arith.constant 0 : i32
    return %c0_i32, %c0_i32_0 : i32, i32
  }
  func.func @transform_4(%arg0: i32) -> (i32, i32) {
    %c0_i32 = arith.constant 0 : i32
    %c0_i32_0 = arith.constant 0 : i32
    %c0_i32_1 = arith.constant 0 : i32
    return %c0_i32, %c0_i32_0 : i32, i32
  }
  func.func @transform_5(%arg0: i32) -> (i32, i32) {
    %c0_i32 = arith.constant 0 : i32
    %c0_i32_0 = arith.constant 0 : i32
    %c0_i32_1 = arith.constant 0 : i32
    return %c0_i32, %c0_i32_0 : i32, i32
  }
  func.func @transform_6(%arg0: i32) -> (i32, i32) {
    %c0_i32 = arith.constant 0 : i32
    %c0_i32_0 = arith.constant 0 : i32
    %c0_i32_1 = arith.constant 0 : i32
    return %c0_i32, %c0_i32_0 : i32, i32
  }
  func.func @transform_7(%arg0: i32) -> (i32, i32) {
    %c0_i32 = arith.constant 0 : i32
    %c0_i32_0 = arith.constant 0 : i32
    %c0_i32_1 = arith.constant 0 : i32
    return %c0_i32, %c0_i32_0 : i32, i32
  }
  func.func @transform_8(%arg0: i32) -> (i32, i32) {
    %c0_i32 = arith.constant 0 : i32
    %c0_i32_0 = arith.constant 0 : i32
    %c0_i32_1 = arith.constant 0 : i32
    return %c0_i32, %c0_i32_0 : i32, i32
  }
  func.func @transform_9(%arg0: i32) -> (i32, i32) {
    %c0_i32 = arith.constant 0 : i32
    %c0_i32_0 = arith.constant 0 : i32
    %c0_i32_1 = arith.constant 0 : i32
    return %c0_i32, %c0_i32_0 : i32, i32
  }
  func.func @transform_10(%arg0: i32) -> (i32, i32) {
    %c0_i32 = arith.constant 0 : i32
    %c0_i32_0 = arith.constant 0 : i32
    %c0_i32_1 = arith.constant 0 : i32
    return %c0_i32, %c0_i32_0 : i32, i32
  }
  func.func @transform_11(%arg0: i32) -> (i32, i32) {
    %c0_i32 = arith.constant 0 : i32
    %c0_i32_0 = arith.constant 0 : i32
    %c0_i32_1 = arith.constant 0 : i32
    return %c0_i32, %c0_i32_0 : i32, i32
  }
  func.func @transform_12(%arg0: i32) -> (i32, i32) {
    %c0_i32 = arith.constant 0 : i32
    %c0_i32_0 = arith.constant 0 : i32
    %c0_i32_1 = arith.constant 0 : i32
    return %c0_i32, %c0_i32_0 : i32, i32
  }
  func.func @transform_13(%arg0: i32) -> (i32, i32) {
    %c0_i32 = arith.constant 0 : i32
    %c0_i32_0 = arith.constant 0 : i32
    %c0_i32_1 = arith.constant 0 : i32
    return %c0_i32, %c0_i32_0 : i32, i32
  }
  func.func @transform_14(%arg0: i32) -> (i32, i32) {
    %c0_i32 = arith.constant 0 : i32
    %c0_i32_0 = arith.constant 0 : i32
    %c0_i32_1 = arith.constant 0 : i32
    return %c0_i32, %c0_i32_0 : i32, i32
  }
  func.func @transform_15(%arg0: i32) -> (i32, i32) {
    %c0_i32 = arith.constant 0 : i32
    %c0_i32_0 = arith.constant 0 : i32
    %c0_i32_1 = arith.constant 0 : i32
    return %c0_i32, %c0_i32_0 : i32, i32
  }
  func.func @transform_16(%arg0: i32) -> (i32, i32) {
    %c0_i32 = arith.constant 0 : i32
    %c0_i32_0 = arith.constant 0 : i32
    %c0_i32_1 = arith.constant 0 : i32
    return %c0_i32, %c0_i32_0 : i32, i32
  }
  func.func @transform_17(%arg0: i32) -> (i32, i32) {
    %c0_i32 = arith.constant 0 : i32
    %c0_i32_0 = arith.constant 0 : i32
    %c0_i32_1 = arith.constant 0 : i32
    return %c0_i32, %c0_i32_0 : i32, i32
  }
  func.func @transform_18(%arg0: i32) -> (i32, i32) {
    %c0_i32 = arith.constant 0 : i32
    %c0_i32_0 = arith.constant 0 : i32
    %c0_i32_1 = arith.constant 0 : i32
    return %c0_i32, %c0_i32_0 : i32, i32
  }
  func.func @transform_19(%arg0: i32) -> (i32, i32) {
    %c0_i32 = arith.constant 0 : i32
    %c0_i32_0 = arith.constant 0 : i32
    %c0_i32_1 = arith.constant 0 : i32
    return %c0_i32, %c0_i32_0 : i32, i32
  }
  func.func @transform_20(%arg0: i32) -> (i32, i32) {
    %c0_i32 = arith.constant 0 : i32
    %c0_i32_0 = arith.constant 0 : i32
    return %arg0, %c0_i32 : i32, i32
  }
}

</mosaic_0001>

<bundles_post_ra>
// kernel: tpu_custom_call.1
= control target key start
LH: loop header
LB: loop body
LE: loop exit
PB: predicated region body
PF: predicated region fallthrough
CT: control target
= control target key end

     0   :  { %s10007_s0 = inlined_call_operand.vmem [shape: f32[256,32], index: 0, kind: input, shape index: {}]   ;;  %s10008_s1 = inlined_call_operand.vmem [shape: bf16[32,256], index: 1, kind: input, shape index: {}]   ;;  %s10009_s2 = inlined_call_operand.vmem [shape: bf16[256,128], index: 2, kind: input, shape index: {}]   ;;  %s10010_s3 = inlined_call_operand.vmem [shape: f32[1,128], index: 3, kind: input, shape index: {}]   ;;  %s10011_s4 = inlined_call_operand.vmem [shape: f32[1,128], index: 4, kind: input, shape index: {}]   ;;  %s10012_s5 = inlined_call_operand.vmem [shape: f32[1,128], index: 5, kind: input, shape index: {}]   ;;  %s10013_s6 = inlined_call_operand.vmem [shape: bf16[128,64], index: 6, kind: input, shape index: {}]   ;;  %s10014_s7 = inlined_call_operand.vmem [shape: bf16[64,32], index: 7, kind: input, shape index: {}]   ;;  %s10015_s8 = inlined_call_operand.vmem [shape: f32[1,32], index: 8, kind: input, shape index: {}]   ;;  %s10016_s9 = inlined_call_operand.vmem [shape: f32[1,32], index: 9, kind: input, shape index: {}]   ;;  %s10017_s10 = inlined_call_operand.vmem [shape: f32[1,32], index: 10, kind: input, shape index: {}]   ;;  %s10018_s11 = inlined_call_operand.vmem [shape: bf16[32,16], index: 11, kind: input, shape index: {}]   ;;  %s10019_s12 = inlined_call_operand.vmem [shape: bf16[16,8], index: 12, kind: input, shape index: {}]   ;;  %s10020_s13 = inlined_call_operand.vmem [shape: f32[1,8], index: 13, kind: input, shape index: {}]   ;;  %s10021_s14 = inlined_call_operand.vmem [shape: f32[1,8], index: 14, kind: input, shape index: {}]   ;;  %s10022_s15 = inlined_call_operand.vmem [shape: f32[1,8], index: 15, kind: input, shape index: {}]   ;;  %s10023_s16 = inlined_call_operand.vmem [shape: bf16[128,256], index: 16, kind: input, shape index: {}]   ;;  %s10024_s17 = inlined_call_operand.vmem [shape: bf16[32,256], index: 17, kind: input, shape index: {}]   ;;  %s10025_s18 = inlined_call_operand.vmem [shape: bf16[8,256], index: 18, kind: input, shape index: {}]   ;;  %s10026_s19 = inlined_call_operand.vmem [shape: f32[1,256], index: 19, kind: input, shape index: {}]   ;;  %s10027_s20 = inlined_call_operand.hbm [shape: bf16[256,256], index: 20, kind: output, shape index: {}]  }
   0x1   :  { %10060 = sst [smem:[#allocation55_spill]] %s10007_s0 }
   0x2   :  { %10061 = sst [smem:[#allocation56_spill]] %s10008_s1 }
   0x3   :  { %10062 = sst [smem:[#allocation57_spill]] %s10009_s2 }
   0x4   :  { %10063 = sst [smem:[#allocation58_spill]] %s10010_s3 }
   0x5   :  { %10064 = sst [smem:[#allocation59_spill]] %s10011_s4 }
   0x6   :  { %s10065_s23 = sld [smem:[#allocation56_spill]]  ;;  %v10032_v2 = vmov 0   ;;  %s10066_s29 = sld [smem:[#allocation55_spill]]  ;;  %vm139_vm0 = vcmask 261120  }
   0x7   :  { %220 = vmatprep.mubr.bf16.mxu0 %v10032_v2  ;;  %300 = vmatprep.mubr.bf16.mxu1 %v10032_v2  ;;  %s10067_s21 = sld [smem:[#allocation57_spill]] }
   0xc   :  { %v6235_v0 = vld [vmem:[%s10065_s23 + $0x4] ss:$8 sps:$4 sm:$0xff]   ;;  %v6237_v1 = vld [vmem:[%s10065_s23] ss:$8 sps:$4 sm:$0xff]   ;;  %v6238_v3 = vld [vmem:[%s10065_s23 + $0x14] ss:$8 sps:$4 sm:$0xff]  }
   0xd   :  { %188 = vmatprep.subr.bf16.mxu0 %v6235_v0  ;;  %6099 = vmatprep.subr.bf16.mxu1 %v6235_v0  ;;  %v6240_v4 = vld [vmem:[%s10065_s23 + $0x10] ss:$8 sps:$4 sm:$0xff]   ;;  %v67_v5 = vld [vmem:[%s10066_s29] sm:$0xff]  ;;  %v68_v6 = vld [vmem:[%s10066_s29 + $0x8] sm:$0xff] }
   0xe   :  { %189 = vmatpush1.bf16.msra.mxu0 %v6237_v1  ;;  %6101 = vmatpush1.bf16.msra.mxu1 %v6237_v1  ;;  %v99_v7 = vpack.c.bf16 %v68_v6, %v67_v5  ;;  %v83_v8 = vld [vmem:[%s10066_s29 + $0x80] sm:$0xff]  ;;  %v84_v9 = vld [vmem:[%s10066_s29 + $0x88] sm:$0xff]  ;;  %v69_v11 = vld [vmem:[%s10066_s29 + $0x10] sm:$0xff] }
   0xf   :  { %190 = vmatprep.subr.bf16.mxu0 %v6238_v3  ;;  %6100 = vmatprep.subr.bf16.mxu1 %v6238_v3  ;;  %v107_v10 = vpack.c.bf16 %v84_v9, %v83_v8  ;;  %v70_v12 = vld [vmem:[%s10066_s29 + $0x18] sm:$0xff]  ;;  %v85_v13 = vld [vmem:[%s10066_s29 + $0x90] sm:$0xff]  ;;  %v6241_v16 = vld [vmem:[%s10067_s21 + $0x40] sm:$0xff]  }
  0x10   :  { %v86_v14 = vld [vmem:[%s10066_s29 + $0x98] sm:$0xff]  ;;  %v100_v15 = vpack.c.bf16 %v70_v12, %v69_v11  ;;  %v6242_v18 = vld [vmem:[%s10067_s21] sm:$0xff]   ;;  %v6243_v19 = vld [vmem:[%s10067_s21 + $0x48] sm:$0xff]  }
  0x11   :  { %v108_v17 = vpack.c.bf16 %v86_v14, %v85_v13  ;;  %v71_v20 = vld [vmem:[%s10066_s29 + $0x20] sm:$0xff]  ;;  %v72_v21 = vld [vmem:[%s10066_s29 + $0x28] sm:$0xff]  ;;  %v6245_v23 = vld [vmem:[%s10067_s21 + $0x50] sm:$0xff]  }
  0x12   :  { %191 = vmatpush1.bf16.msra.mxu0 %v6240_v4  ;;  %6102 = vmatpush1.bf16.msra.mxu1 %v6240_v4  ;;  %v6244_v22 = vld [vmem:[%s10067_s21 + $0x8] sm:$0xff]   ;;  %v87_v24 = vld [vmem:[%s10066_s29 + $0xa0] sm:$0xff]  ;;  %v6246_v26 = vld [vmem:[%s10067_s21 + $0x10] sm:$0xff]   ;;  %v101_v27 = vpack.c.bf16 %v72_v21, %v71_v20 }
  0x13   :  { %5750 = vmatprep.subr.bf16.mxu1 %v6241_v16  ;;  %v88_v25 = vld [vmem:[%s10066_s29 + $0xa8] sm:$0xff]  ;;  %v6247_v28 = vld [vmem:[%s10067_s21 + $0x58] sm:$0xff]   ;;  %v73_v30 = vld [vmem:[%s10066_s29 + $0x30] sm:$0xff] }
  0x14   :  { %v109_v29 = vpack.c.bf16 %v88_v25, %v87_v24  ;;  %v74_v31 = vld [vmem:[%s10066_s29 + $0x38] sm:$0xff]  ;;  %v89_v33 = vld [vmem:[%s10066_s29 + $0xb0] sm:$0xff]  ;;  %v6249_v34 = vld [vmem:[%s10067_s21 + $0x60] sm:$0xff]  }
  0x15   :  { %5431 = vmatmul.mubr.msk.bf16.vlgmr.msra.gmra.mrb[0].mxu0 %vm139_vm0, %v99_v7  ;;  %5439 = vmatmul.mubr.msk.bf16.vlgmr.msra.gmra.mrb[0].mxu1 %vm139_vm0, %v107_v10  ;;  %v6248_v32 = vld [vmem:[%s10067_s21 + $0x18] sm:$0xff]   ;;  %v6250_v36 = vld [vmem:[%s10067_s21 + $0x20] sm:$0xff]   ;;  %v6251_v37 = vld [vmem:[%s10067_s21 + $0x68] sm:$0xff]   ;;  %v102_v38 = vpack.c.bf16 %v74_v31, %v73_v30 }
  0x16   :  { %230 = vmatprep.mubr.bf16.mxu0 %v10032_v2  ;;  %310 = vmatprep.mubr.bf16.mxu1 %v10032_v2  ;;  %v90_v35 = vld [vmem:[%s10066_s29 + $0xb8] sm:$0xff]  ;;  %v6252_v40 = vld [vmem:[%s10067_s21 + $0x28] sm:$0xff]   ;;  %v6253_v41 = vld [vmem:[%s10067_s21 + $0x70] sm:$0xff]  }
  0x17   :  { %5751 = vmatpush3.bf16.msra.mxu1 %v6242_v18  ;;  %v110_v39 = vpack.c.bf16 %v90_v35, %v89_v33  ;;  %v75_v42 = vld [vmem:[%s10066_s29 + $0x40] sm:$0xff]  ;;  %v76_v43 = vld [vmem:[%s10066_s29 + $0x48] sm:$0xff]  ;;  %v6254_v46 = vld [vmem:[%s10067_s21 + $0x30] sm:$0xff]  }
  0x18   :  { %5752 = vmatprep.subr.bf16.mxu1 %v6243_v19  ;;  %v91_v44 = vld [vmem:[%s10066_s29 + $0xc0] sm:$0xff]  ;;  %v92_v45 = vld [vmem:[%s10066_s29 + $0xc8] sm:$0xff]  ;;  %v6255_v47 = vld [vmem:[%s10067_s21 + $0x78] sm:$0xff]   ;;  %v103_v48 = vpack.c.bf16 %v76_v43, %v75_v42 }
  0x19   :  { %v111_v49 = vpack.c.bf16 %v92_v45, %v91_v44  ;;  %v6256_v50 = vld [vmem:[%s10067_s21 + $0x38] sm:$0xff]   ;;  %v77_v51 = vld [vmem:[%s10066_s29 + $0x50] sm:$0xff] }
  0x1a   :  { %v78_v52 = vld [vmem:[%s10066_s29 + $0x58] sm:$0xff]  ;;  %v93_v53 = vld [vmem:[%s10066_s29 + $0xd0] sm:$0xff] }
  0x1b   :  { %5753 = vmatpush3.bf16.msra.mxu1 %v6244_v22  ;;  %v94_v54 = vld [vmem:[%s10066_s29 + $0xd8] sm:$0xff]  ;;  %v104_v55 = vpack.c.bf16 %v78_v52, %v77_v51 }
  0x1c   :  { %5754 = vmatprep.subr.bf16.mxu1 %v6245_v23 }
  0x1d   :  { %5432 = vmatmul.mubr.msk.bf16.gmra.mrb[4].mxu0 %vm139_vm0, %v100_v15  ;;  %5440 = vmatmul.mubr.msk.bf16.gmra.mrb[4].mxu1 %vm139_vm0, %v108_v17 }
  0x1e   :  { %240 = vmatprep.mubr.bf16.mxu0 %v10032_v2  ;;  %320 = vmatprep.mubr.bf16.mxu1 %v10032_v2 }
  0x1f   :  { %5755 = vmatpush3.bf16.msra.mxu1 %v6246_v26 }
  0x20   :  { %5756 = vmatprep.subr.bf16.mxu1 %v6247_v28 }
  0x23   :  { %5757 = vmatpush3.bf16.msra.mxu1 %v6248_v32 }
  0x24   :  { %5758 = vmatprep.subr.bf16.mxu1 %v6249_v34 }
  0x25   :  { %5433 = vmatmul.mubr.msk.bf16.gmra.mrb[8].mxu0 %vm139_vm0, %v101_v27  ;;  %5441 = vmatmul.mubr.msk.bf16.gmra.mrb[8].mxu1 %vm139_vm0, %v109_v29 }
  0x26   :  { %250 = vmatprep.mubr.bf16.mxu0 %v10032_v2  ;;  %330 = vmatprep.mubr.bf16.mxu1 %v10032_v2 }
  0x27   :  { %5759 = vmatpush3.bf16.msra.mxu1 %v6250_v36 }
  0x28   :  { %5760 = vmatprep.subr.bf16.mxu1 %v6251_v37 }
  0x2b   :  { %5761 = vmatpush3.bf16.msra.mxu1 %v6252_v40 }
  0x2c   :  { %5762 = vmatprep.subr.bf16.mxu1 %v6253_v41 }
  0x2d   :  { %5434 = vmatmul.mubr.msk.bf16.gmra.mrb[12].mxu0 %vm139_vm0, %v102_v38  ;;  %5442 = vmatmul.mubr.msk.bf16.gmra.mrb[12].mxu1 %vm139_vm0, %v110_v39 }
  0x2e   :  { %260 = vmatprep.mubr.bf16.mxu0 %v10032_v2  ;;  %340 = vmatprep.mubr.bf16.mxu1 %v10032_v2 }
  0x2f   :  { %5763 = vmatpush3.bf16.msra.mxu1 %v6254_v46 }
  0x30   :  { %5764 = vmatprep.subr.bf16.mxu1 %v6255_v47 }
  0x33   :  { %5765 = vmatpush3.bf16.msra.mxu1 %v6256_v50 }
  0x35   :  { %5435 = vmatmul.mubr.msk.bf16.gmra.mrb[16].mxu0 %vm139_vm0, %v103_v48  ;;  %5443 = vmatmul.mubr.msk.bf16.gmra.mrb[16].mxu1 %vm139_vm0, %v111_v49 }
  0x36   :  { %270 = vmatprep.mubr.bf16.mxu0 %v10032_v2  ;;  %350 = vmatprep.mubr.bf16.mxu1 %v10032_v2 }
  0x37   :  { %25 = vsyncpa [#allocation3], 0  ;;  %v112_v56 = vpack.c.bf16 %v94_v54, %v93_v53  ;;  %v79_v57 = vld [vmem:[%s10066_s29 + $0x60] sm:$0xff]  ;;  %v80_v58 = vld [vmem:[%s10066_s29 + $0x68] sm:$0xff]  ;;  %s10068_s0 = sld [smem:[#allocation58_spill]]  ;;  %s10075_s23 = sld [smem:[#allocation59_spill]] }
  0x38   :  { %v95_v59 = vld [vmem:[%s10066_s29 + $0xe0] sm:$0xff]  ;;  %v96_v60 = vld [vmem:[%s10066_s29 + $0xe8] sm:$0xff]  ;;  %v105_v61 = vpack.c.bf16 %v80_v58, %v79_v57  ;;  %v81_v63 = vld [vmem:[%s10066_s29 + $0x70] sm:$0xff]  ;;  %vm1820_vm1 = vcmask 523264   ;;  %vm3181_vm2 = vcmask 130048   ;;  %vm4847_vm3 = vcmask 1043456  }
  0x39   :  { %v113_v62 = vpack.c.bf16 %v96_v60, %v95_v59  ;;  %v82_v0 = vld [vmem:[%s10066_s29 + $0x78] sm:$0xff]  ;;  %v97_v1 = vld [vmem:[%s10066_s29 + $0xf0] sm:$0xff]  ;;  %vm3393_vm4 = vcmask 64512  }
  0x3a   :  { %v98_v3 = vld [vmem:[%s10066_s29 + $0xf8] sm:$0xff]  ;;  %v106_v4 = vpack.c.bf16 %v82_v0, %v81_v63 }
  0x3b   :  { %v114_v5 = vpack.c.bf16 %v98_v3, %v97_v1 }
  0x3d   :  { %5436 = vmatmul.mubr.msk.bf16.gmra.mrb[20].mxu0 %vm139_vm0, %v104_v55  ;;  %5444 = vmatmul.mubr.msk.bf16.gmra.mrb[20].mxu1 %vm139_vm0, %v112_v56 }
  0x3e   :  { %280 = vmatprep.mubr.bf16.mxu0 %v10032_v2  ;;  %360 = vmatprep.mubr.bf16.mxu1 %v10032_v2 }
  0x45   :  { %5437 = vmatmul.mubr.msk.bf16.gmra.mrb[24].mxu0 %vm139_vm0, %v105_v61  ;;  %5445 = vmatmul.mubr.msk.bf16.gmra.mrb[24].mxu1 %vm139_vm0, %v113_v62 }
  0x46   :  { %290 = vmatprep.mubr.bf16.mxu0 %v10032_v2  ;;  %370 = vmatprep.mubr.bf16.mxu1 %v10032_v2 }
  0x4d   :  { %5438 = vmatmul.mubr.msk.bf16.gmra.mrb[28].mxu0 %vm139_vm0, %v106_v4  ;;  %5446 = vmatmul.mubr.msk.bf16.gmra.mrb[28].mxu1 %vm139_vm0, %v114_v5 }
  0xe8   :  { %v222_v6 = vpop.f32.mrb[0].mxu0  ;;  %v7207_v8 = vpop.f32.mrb[0].mxu1 }
  0xe9   :  { %v224_v7 = vpop.f32.mrb[1].mxu0  ;;  %v7209_v10 = vpop.f32.mrb[1].mxu1 }
  0xea   :  { %v226_v9 = vpop.f32.mrb[2].mxu0  ;;  %v7211_v13 = vpop.f32.mrb[2].mxu1 }
  0xeb   :  { %v381_v11 = vpack.c.bf16 %v226_v9, %v222_v6  ;;  %v228_v12 = vpop.f32.mrb[3].mxu0  ;;  %v397_v15 = vpack.c.bf16 %v7211_v13, %v7207_v8  ;;  %v7215_v16 = vpop.f32.mrb[3].mxu1 }
  0xec   :  { %v382_v14 = vpack.c.bf16 %v228_v12, %v224_v7  ;;  %v398_v17 = vpack.c.bf16 %v7215_v16, %v7209_v10  ;;  %v7285_v10 = vld [vmem:[%s10068_s0] ss:$0 sm:$0xff] }
  0xee   :  { %580 = vmatprep.mubr.bf16.mxu1 %v382_v14 }
  0xef   :  { %581 = vmatmul.mubr.bf16.vlgmr.msra.gmra.mrb[32].mxu1 %v381_v11 }
  0xf0   :  { %v232_v18 = vpop.f32.mrb[4].mxu0  ;;  %v7219_v20 = vpop.f32.mrb[4].mxu1 }
  0xf1   :  { %v234_v19 = vpop.f32.mrb[5].mxu0  ;;  %v7221_v22 = vpop.f32.mrb[5].mxu1 }
  0xf2   :  { %v236_v21 = vpop.f32.mrb[6].mxu0  ;;  %v7223_v25 = vpop.f32.mrb[6].mxu1 }
  0xf3   :  { %v383_v23 = vpack.c.bf16 %v236_v21, %v232_v18  ;;  %v238_v24 = vpop.f32.mrb[7].mxu0  ;;  %v399_v27 = vpack.c.bf16 %v7223_v25, %v7219_v20  ;;  %v7227_v28 = vpop.f32.mrb[7].mxu1 }
  0xf4   :  { %v384_v26 = vpack.c.bf16 %v238_v24, %v234_v19  ;;  %v400_v29 = vpack.c.bf16 %v7227_v28, %v7221_v22 }
  0xf6   :  { %588 = vmatprep.mubr.bf16.mxu1 %v384_v26 }
  0xf7   :  { %589 = vmatmul.mubr.bf16.gmra.mrb[36].mxu1 %v383_v23 }
  0xf8   :  { %v242_v30 = vpop.f32.mrb[8].mxu0  ;;  %v7231_v32 = vpop.f32.mrb[8].mxu1 }
  0xf9   :  { %v244_v31 = vpop.f32.mrb[9].mxu0  ;;  %v7233_v34 = vpop.f32.mrb[9].mxu1 }
  0xfa   :  { %v246_v33 = vpop.f32.mrb[10].mxu0  ;;  %v7235_v37 = vpop.f32.mrb[10].mxu1 }
  0xfb   :  { %v385_v35 = vpack.c.bf16 %v246_v33, %v242_v30  ;;  %v248_v36 = vpop.f32.mrb[11].mxu0  ;;  %v401_v39 = vpack.c.bf16 %v7235_v37, %v7231_v32  ;;  %v7239_v40 = vpop.f32.mrb[11].mxu1 }
  0xfc   :  { %v386_v38 = vpack.c.bf16 %v248_v36, %v244_v31  ;;  %v402_v41 = vpack.c.bf16 %v7239_v40, %v7233_v34 }
  0xfe   :  { %596 = vmatprep.mubr.bf16.mxu1 %v386_v38 }
  0xff   :  { %597 = vmatmul.mubr.bf16.gmra.mrb[40].mxu1 %v385_v35 }
 0x100   :  { %v252_v42 = vpop.f32.mrb[12].mxu0  ;;  %v7243_v44 = vpop.f32.mrb[12].mxu1 }
 0x101   :  { %v254_v43 = vpop.f32.mrb[13].mxu0  ;;  %v7245_v46 = vpop.f32.mrb[13].mxu1 }
 0x102   :  { %v256_v45 = vpop.f32.mrb[14].mxu0  ;;  %v7247_v49 = vpop.f32.mrb[14].mxu1 }
 0x103   :  { %v387_v47 = vpack.c.bf16 %v256_v45, %v252_v42  ;;  %v258_v48 = vpop.f32.mrb[15].mxu0  ;;  %v403_v51 = vpack.c.bf16 %v7247_v49, %v7243_v44  ;;  %v7251_v52 = vpop.f32.mrb[15].mxu1 }
 0x104   :  { %v388_v50 = vpack.c.bf16 %v258_v48, %v254_v43  ;;  %v404_v53 = vpack.c.bf16 %v7251_v52, %v7245_v46 }
 0x106   :  { %604 = vmatprep.mubr.bf16.mxu1 %v388_v50 }
 0x107   :  { %605 = vmatmul.mubr.bf16.gmra.mrb[44].mxu1 %v387_v47 }
 0x108   :  { %v262_v54 = vpop.f32.mrb[16].mxu0  ;;  %v7255_v56 = vpop.f32.mrb[16].mxu1 }
 0x109   :  { %v264_v55 = vpop.f32.mrb[17].mxu0  ;;  %v344_v58 = vpop.f32.mrb[17].mxu1 }
 0x10a   :  { %v266_v57 = vpop.f32.mrb[18].mxu0  ;;  %v346_v61 = vpop.f32.mrb[18].mxu1 }
 0x10b   :  { %v389_v59 = vpack.c.bf16 %v266_v57, %v262_v54  ;;  %v268_v60 = vpop.f32.mrb[19].mxu0  ;;  %v405_v63 = vpack.c.bf16 %v346_v61, %v7255_v56  ;;  %v348_v0 = vpop.f32.mrb[19].mxu1 }
 0x10c   :  { %v390_v62 = vpack.c.bf16 %v268_v60, %v264_v55  ;;  %v406_v1 = vpack.c.bf16 %v348_v0, %v344_v58 }
 0x10e   :  { %612 = vmatprep.mubr.bf16.mxu1 %v390_v62 }
 0x10f   :  { %613 = vmatmul.mubr.bf16.gmra.mrb[48].mxu1 %v389_v59 }
 0x110   :  { %v272_v3 = vpop.f32.mrb[20].mxu0  ;;  %v352_v5 = vpop.f32.mrb[20].mxu1 }
 0x111   :  { %v274_v4 = vpop.f32.mrb[21].mxu0  ;;  %v354_v7 = vpop.f32.mrb[21].mxu1 }
 0x112   :  { %v276_v6 = vpop.f32.mrb[22].mxu0  ;;  %v356_v12 = vpop.f32.mrb[22].mxu1 }
 0x113   :  { %v391_v9 = vpack.c.bf16 %v276_v6, %v272_v3  ;;  %v278_v11 = vpop.f32.mrb[23].mxu0  ;;  %v407_v18 = vpack.c.bf16 %v356_v12, %v352_v5  ;;  %v358_v19 = vpop.f32.mrb[23].mxu1 }
 0x114   :  { %v392_v14 = vpack.c.bf16 %v278_v11, %v274_v4  ;;  %v408_v21 = vpack.c.bf16 %v358_v19, %v354_v7 }
 0x116   :  { %620 = vmatprep.mubr.bf16.mxu1 %v392_v14 }
 0x117   :  { %621 = vmatmul.mubr.bf16.gmra.mrb[52].mxu1 %v391_v9 }
 0x118   :  { %v282_v23 = vpop.f32.mrb[24].mxu0  ;;  %v362_v26 = vpop.f32.mrb[24].mxu1 }
 0x119   :  { %v284_v24 = vpop.f32.mrb[25].mxu0  ;;  %v364_v31 = vpop.f32.mrb[25].mxu1 }
 0x11a   :  { %v286_v30 = vpop.f32.mrb[26].mxu0  ;;  %v366_v36 = vpop.f32.mrb[26].mxu1 }
 0x11b   :  { %v393_v33 = vpack.c.bf16 %v286_v30, %v282_v23  ;;  %v288_v35 = vpop.f32.mrb[27].mxu0  ;;  %v409_v42 = vpack.c.bf16 %v366_v36, %v362_v26  ;;  %v368_v43 = vpop.f32.mrb[27].mxu1 }
 0x11c   :  { %v394_v38 = vpack.c.bf16 %v288_v35, %v284_v24  ;;  %v410_v45 = vpack.c.bf16 %v368_v43, %v364_v31 }
 0x11e   :  { %628 = vmatprep.mubr.bf16.mxu1 %v394_v38 }
 0x11f   :  { %629 = vmatmul.mubr.bf16.gmra.mrb[56].mxu1 %v393_v33 }
 0x120   :  { %v292_v47 = vpop.f32.mrb[28].mxu0  ;;  %v372_v50 = vpop.f32.mrb[28].mxu1 }
 0x121   :  { %v294_v48 = vpop.f32.mrb[29].mxu0  ;;  %v374_v55 = vpop.f32.mrb[29].mxu1 }
 0x122   :  { %v296_v54 = vpop.f32.mrb[30].mxu0  ;;  %v376_v58 = vpop.f32.mrb[30].mxu1 }
 0x123   :  { %v395_v56 = vpack.c.bf16 %v296_v54, %v292_v47  ;;  %v298_v57 = vpop.f32.mrb[31].mxu0  ;;  %v411_v60 = vpack.c.bf16 %v376_v58, %v372_v50  ;;  %v378_v61 = vpop.f32.mrb[31].mxu1 }
 0x124   :  { %v396_v59 = vpack.c.bf16 %v298_v57, %v294_v48  ;;  %v412_v62 = vpack.c.bf16 %v378_v61, %v374_v55 }
 0x126   :  { %636 = vmatprep.mubr.bf16.mxu1 %v396_v59 }
 0x127   :  { %637 = vmatmul.mubr.bf16.gmra.mrb[60].mxu1 %v395_v56 }
 0x128   :  { %644 = vmatprep.mubr.bf16.mxu1 %v398_v17 }
 0x12f   :  { %645 = vmatmul.mubr.bf16.gmra.mrb[64].mxu1 %v397_v15 }
 0x130   :  { %652 = vmatprep.mubr.bf16.mxu1 %v400_v29 }
 0x137   :  { %653 = vmatmul.mubr.bf16.gmra.mrb[68].mxu1 %v399_v27 }
 0x138   :  { %660 = vmatprep.mubr.bf16.mxu1 %v402_v41 }
 0x13f   :  { %661 = vmatmul.mubr.bf16.gmra.mrb[72].mxu1 %v401_v39 }
 0x140   :  { %668 = vmatprep.mubr.bf16.mxu1 %v404_v53 }
 0x147   :  { %669 = vmatmul.mubr.bf16.gmra.mrb[76].mxu1 %v403_v51 }
 0x148   :  { %676 = vmatprep.mubr.bf16.mxu1 %v406_v1 }
 0x14f   :  { %677 = vmatmul.mubr.bf16.gmra.mrb[80].mxu1 %v405_v63 }
 0x150   :  { %684 = vmatprep.mubr.bf16.mxu1 %v408_v21 }
 0x157   :  { %685 = vmatmul.mubr.bf16.gmra.mrb[84].mxu1 %v407_v18 }
 0x158   :  { %692 = vmatprep.mubr.bf16.mxu1 %v410_v45 }
 0x15f   :  { %693 = vmatmul.mubr.bf16.gmra.mrb[88].mxu1 %v409_v42 }
 0x160   :  { %700 = vmatprep.mubr.bf16.mxu1 %v412_v62 }
 0x167   :  { %701 = vmatmul.mubr.bf16.gmra.mrb[92].mxu1 %v411_v60 }
 0x1c2   :  { %v5766_v8 = vpop.f32.mrb[32].mxu1 }
 0x1c3   :  { %v5767_v13 = vpop.f32.mrb[33].mxu1 }
 0x1c4   :  { %v5768_v15 = vadd.f32 %v5767_v13, %v5766_v8  ;;  %v5769_v16 = vpop.f32.mrb[34].mxu1 }
 0x1c5   :  { %v5770_v17 = vpop.f32.mrb[35].mxu1 }
 0x1c6   :  { %v7288_v20 = vadd.f32 %v5768_v15, %v7285_v10  ;;  %v5771_v22 = vadd.f32 %v5770_v17, %v5769_v16 }
 0x1c8   :  { %v7291_v25 = vadd.f32 %v5771_v22, %v7285_v10  ;;  %711 = vadd.xlane.f32.xlu0 %v7288_v20  ;;  %v808_v41 = vmul.f32 %v7288_v20, %v7288_v20  ;;  %v6257_v22 = vld [vmem:[%s10013_s6] sm:$0xff]  }
 0x1c9   :  { %5941 = vmatprep.subr.bf16.mxu0 %v6257_v22 }
 0x1ca   :  { %v5772_v27 = vpop.f32.mrb[36].mxu1  ;;  %v809_v28 = vmul.f32 %v7291_v25, %v7291_v25  ;;  %5942 = vmatpush3.bf16.msra.mxu0 %v6257_v22 }
 0x1cb   :  { %v5773_v29 = vpop.f32.mrb[37].mxu1 }
 0x1cc   :  { %v5774_v32 = vadd.f32 %v5773_v29, %v5772_v27  ;;  %842 = vadd.xlane.f32.xlu1 %v809_v28  ;;  %713 = vadd.xlane.f32.xlu0 %v7291_v25  ;;  %v5775_v34 = vpop.f32.mrb[38].mxu1  ;;  %v6258_v27 = vld [vmem:[%s10013_s6 + $0x8] sm:$0xff]  }
 0x1cd   :  { %v5776_v37 = vpop.f32.mrb[39].mxu1  ;;  %5943 = vmatprep.subr.bf16.mxu0 %v6258_v27 }
 0x1ce   :  { %v7298_v39 = vadd.f32 %v5774_v32, %v7285_v10  ;;  %v5777_v40 = vadd.f32 %v5776_v37, %v5775_v34  ;;  %v6259_v37 = vld [vmem:[%s10013_s6 + $0x10] sm:$0xff]   ;;  %5944 = vmatpush3.bf16.msra.mxu0 %v6258_v27 }
 0x1cf   :  { %5945 = vmatprep.subr.bf16.mxu0 %v6259_v37 }
 0x1d0   :  { %840 = vadd.xlane.f32.xlu0 %v808_v41  ;;  %715 = vadd.xlane.f32.xlu1 %v7298_v39  ;;  %v7304_v44 = vadd.f32 %v5777_v40, %v7285_v10  ;;  %v810_v49 = vmul.f32 %v7298_v39, %v7298_v39 }
 0x1d2   :  { %v5778_v46 = vpop.f32.mrb[40].mxu1  ;;  %v811_v3 = vmul.f32 %v7304_v44, %v7304_v44  ;;  %5946 = vmatpush3.bf16.msra.mxu0 %v6259_v37 }
 0x1d3   :  { %v5779_v51 = vpop.f32.mrb[41].mxu1 }
 0x1d4   :  { %v5780_v52 = vadd.f32 %v5779_v51, %v5778_v46  ;;  %717 = vadd.xlane.f32.xlu1 %v7304_v44  ;;  %844 = vadd.xlane.f32.xlu0 %v810_v49  ;;  %v5781_v53 = vpop.f32.mrb[42].mxu1 }
 0x1d5   :  { %v5782_v63 = vpop.f32.mrb[43].mxu1 }
 0x1d6   :  { %v7310_v0 = vadd.f32 %v5780_v52, %v7285_v10  ;;  %v5783_v1 = vadd.f32 %v5782_v63, %v5781_v53  ;;  %v6260_v53 = vld [vmem:[%s10013_s6 + $0x18] sm:$0xff]  }
 0x1d7   :  { %5947 = vmatprep.subr.bf16.mxu0 %v6260_v53 }
 0x1d8   :  { %846 = vadd.xlane.f32.xlu1 %v811_v3  ;;  %719 = vadd.xlane.f32.xlu0 %v7310_v0  ;;  %v7316_v4 = vadd.f32 %v5783_v1, %v7285_v10  ;;  %v812_v6 = vmul.f32 %v7310_v0, %v7310_v0 }
 0x1d9   :  { %5948 = vmatpush3.bf16.msra.mxu0 %v6260_v53 }
 0x1da   :  { %v5784_v5 = vpop.f32.mrb[44].mxu1  ;;  %v813_v19 = vmul.f32 %v7316_v4, %v7316_v4 }
 0x1db   :  { %v5785_v7 = vpop.f32.mrb[45].mxu1 }
 0x1dc   :  { %v5786_v9 = vadd.f32 %v5785_v7, %v5784_v5  ;;  %721 = vadd.xlane.f32.xlu1 %v7316_v4  ;;  %848 = vadd.xlane.f32.xlu0 %v812_v6  ;;  %v5787_v11 = vpop.f32.mrb[46].mxu1 }
 0x1dd   :  { %v5788_v12 = vpop.f32.mrb[47].mxu1 }
 0x1de   :  { %v7322_v14 = vadd.f32 %v5786_v9, %v7285_v10  ;;  %v5789_v18 = vadd.f32 %v5788_v12, %v5787_v11  ;;  %v6261_v9 = vld [vmem:[%s10013_s6 + $0x20] sm:$0xff]  }
 0x1df   :  { %5949 = vmatprep.subr.bf16.mxu0 %v6261_v9 }
 0x1e0   :  { %850 = vadd.xlane.f32.xlu1 %v813_v19  ;;  %723 = vadd.xlane.f32.xlu0 %v7322_v14  ;;  %v7328_v21 = vadd.f32 %v5789_v18, %v7285_v10  ;;  %v814_v24 = vmul.f32 %v7322_v14, %v7322_v14 }
 0x1e1   :  { %5950 = vmatpush3.bf16.msra.mxu0 %v6261_v9 }
 0x1e2   :  { %v5790_v23 = vpop.f32.mrb[48].mxu1  ;;  %v815_v38 = vmul.f32 %v7328_v21, %v7328_v21 }
 0x1e3   :  { %v5791_v26 = vpop.f32.mrb[49].mxu1 }
 0x1e4   :  { %v5792_v30 = vadd.f32 %v5791_v26, %v5790_v23  ;;  %725 = vadd.xlane.f32.xlu1 %v7328_v21  ;;  %852 = vadd.xlane.f32.xlu0 %v814_v24  ;;  %v5793_v31 = vpop.f32.mrb[50].mxu1 }
 0x1e5   :  { %v5794_v33 = vpop.f32.mrb[51].mxu1 }
 0x1e6   :  { %v7334_v35 = vadd.f32 %v5792_v30, %v7285_v10  ;;  %v5795_v36 = vadd.f32 %v5794_v33, %v5793_v31 }
 0x1e8   :  { %854 = vadd.xlane.f32.xlu1 %v815_v38  ;;  %727 = vadd.xlane.f32.xlu0 %v7334_v35  ;;  %v7340_v42 = vadd.f32 %v5795_v36, %v7285_v10  ;;  %v816_v45 = vmul.f32 %v7334_v35, %v7334_v35  ;;  %v6262_v36 = vld [vmem:[%s10013_s6 + $0x28] sm:$0xff]  }
 0x1e9   :  { %5951 = vmatprep.subr.bf16.mxu0 %v6262_v36 }
 0x1ea   :  { %v5796_v43 = vpop.f32.mrb[52].mxu1  ;;  %v817_v57 = vmul.f32 %v7340_v42, %v7340_v42  ;;  %5952 = vmatpush3.bf16.msra.mxu0 %v6262_v36 }
 0x1eb   :  { %v5797_v47 = vpop.f32.mrb[53].mxu1 }
 0x1ec   :  { %v5798_v48 = vadd.f32 %v5797_v47, %v5796_v43  ;;  %729 = vadd.xlane.f32.xlu1 %v7340_v42  ;;  %856 = vadd.xlane.f32.xlu0 %v816_v45  ;;  %v5799_v50 = vpop.f32.mrb[54].mxu1 }
 0x1ed   :  { %v5800_v54 = vpop.f32.mrb[55].mxu1 }
 0x1ee   :  { %v7346_v55 = vadd.f32 %v5798_v48, %v7285_v10  ;;  %v5801_v56 = vadd.f32 %v5800_v54, %v5799_v50 }
 0x1f0   :  { %858 = vadd.xlane.f32.xlu1 %v817_v57  ;;  %731 = vadd.xlane.f32.xlu0 %v7346_v55  ;;  %v7352_v58 = vadd.f32 %v5801_v56, %v7285_v10  ;;  %v818_v60 = vmul.f32 %v7346_v55, %v7346_v55 }
 0x1f2   :  { %v5802_v59 = vpop.f32.mrb[56].mxu1  ;;  %v819_v17 = vmul.f32 %v7352_v58, %v7352_v58 }
 0x1f3   :  { %v5803_v61 = vpop.f32.mrb[57].mxu1 }
 0x1f4   :  { %v5804_v62 = vadd.f32 %v5803_v61, %v5802_v59  ;;  %733 = vadd.xlane.f32.xlu1 %v7352_v58  ;;  %860 = vadd.xlane.f32.xlu0 %v818_v60  ;;  %v5805_v8 = vpop.f32.mrb[58].mxu1  ;;  %v6263_v60 = vld [vmem:[%s10013_s6 + $0x30] sm:$0xff]  }
 0x1f5   :  { %v5806_v13 = vpop.f32.mrb[59].mxu1  ;;  %5953 = vmatprep.subr.bf16.mxu0 %v6263_v60 }
 0x1f6   :  { %v7358_v15 = vadd.f32 %v5804_v62, %v7285_v10  ;;  %v5807_v16 = vadd.f32 %v5806_v13, %v5805_v8  ;;  %5954 = vmatpush3.bf16.msra.mxu0 %v6263_v60 }
 0x1f8   :  { %862 = vadd.xlane.f32.xlu1 %v819_v17  ;;  %735 = vadd.xlane.f32.xlu0 %v7358_v15  ;;  %v7370_v28 = vadd.f32 %v5807_v16, %v7285_v10  ;;  %v820_v32 = vmul.f32 %v7358_v15, %v7358_v15 }
 0x1fa   :  { %v5808_v29 = vpop.f32.mrb[60].mxu1  ;;  %v821_v52 = vmul.f32 %v7370_v28, %v7370_v28 }
 0x1fb   :  { %v5809_v34 = vpop.f32.mrb[61].mxu1 }
 0x1fc   :  { %v5810_v40 = vadd.f32 %v5809_v34, %v5808_v29  ;;  %737 = vadd.xlane.f32.xlu1 %v7370_v28  ;;  %864 = vadd.xlane.f32.xlu0 %v820_v32  ;;  %v5811_v41 = vpop.f32.mrb[62].mxu1  ;;  %v6264_v29 = vld [vmem:[%s10013_s6 + $0x38] sm:$0xff]  }
 0x1fd   :  { %v5812_v46 = vpop.f32.mrb[63].mxu1  ;;  %5955 = vmatprep.subr.bf16.mxu0 %v6264_v29 }
 0x1fe   :  { %v7379_v49 = vadd.f32 %v5810_v40, %v7285_v10  ;;  %v5813_v51 = vadd.f32 %v5812_v46, %v5811_v41  ;;  %5956 = vmatpush3.bf16.msra.mxu0 %v6264_v29 }
 0x200   :  { %866 = vadd.xlane.f32.xlu1 %v821_v52  ;;  %739 = vadd.xlane.f32.xlu0 %v7379_v49  ;;  %v7388_v63 = vadd.f32 %v5813_v51, %v7285_v10  ;;  %v822_v3 = vmul.f32 %v7379_v49, %v7379_v49 }
 0x202   :  { %v5814_v1 = vpop.f32.mrb[64].mxu1  ;;  %v823_v19 = vmul.f32 %v7388_v63, %v7388_v63 }
 0x203   :  { %v5815_v5 = vpop.f32.mrb[65].mxu1 }
 0x204   :  { %v5816_v6 = vadd.f32 %v5815_v5, %v5814_v1  ;;  %v5817_v7 = vpop.f32.mrb[66].mxu1  ;;  %741 = vadd.xlane.f32.xlu1 %v7388_v63  ;;  %868 = vadd.xlane.f32.xlu0 %v822_v3 }
 0x205   :  { %v5818_v11 = vpop.f32.mrb[67].mxu1 }
 0x206   :  { %v7397_v12 = vadd.f32 %v5816_v6, %v7285_v10  ;;  %v5819_v18 = vadd.f32 %v5818_v11, %v5817_v7 }
 0x208   :  { %870 = vadd.xlane.f32.xlu1 %v823_v19  ;;  %743 = vadd.xlane.f32.xlu0 %v7397_v12  ;;  %v7403_v23 = vadd.f32 %v5819_v18, %v7285_v10  ;;  %v824_v26 = vmul.f32 %v7397_v12, %v7397_v12 }
 0x20a   :  { %v5820_v24 = vpop.f32.mrb[68].mxu1  ;;  %v825_v47 = vmul.f32 %v7403_v23, %v7403_v23 }
 0x20b   :  { %v5821_v30 = vpop.f32.mrb[69].mxu1 }
 0x20c   :  { %v5822_v31 = vadd.f32 %v5821_v30, %v5820_v24  ;;  %v5823_v33 = vpop.f32.mrb[70].mxu1  ;;  %745 = vadd.xlane.f32.xlu1 %v7403_v23  ;;  %872 = vadd.xlane.f32.xlu0 %v824_v26 }
 0x20d   :  { %v5824_v38 = vpop.f32.mrb[71].mxu1 }
 0x20e   :  { %v7412_v43 = vadd.f32 %v5822_v31, %v7285_v10  ;;  %v5825_v45 = vadd.f32 %v5824_v38, %v5823_v33 }
 0x210   :  { %874 = vadd.xlane.f32.xlu1 %v825_v47  ;;  %747 = vadd.xlane.f32.xlu0 %v7412_v43  ;;  %v7418_v48 = vadd.f32 %v5825_v45, %v7285_v10  ;;  %v826_v54 = vmul.f32 %v7412_v43, %v7412_v43 }
 0x212   :  { %v5826_v50 = vpop.f32.mrb[72].mxu1  ;;  %v827_v13 = vmul.f32 %v7418_v48, %v7418_v48 }
 0x213   :  { %v5827_v56 = vpop.f32.mrb[73].mxu1 }
 0x214   :  { %v5828_v57 = vadd.f32 %v5827_v56, %v5826_v50  ;;  %v5829_v59 = vpop.f32.mrb[74].mxu1  ;;  %749 = vadd.xlane.f32.xlu1 %v7418_v48  ;;  %876 = vadd.xlane.f32.xlu0 %v826_v54 }
 0x215   :  { %v5830_v61 = vpop.f32.mrb[75].mxu1 }
 0x216   :  { %v7427_v62 = vadd.f32 %v5828_v57, %v7285_v10  ;;  %v5831_v8 = vadd.f32 %v5830_v61, %v5829_v59 }
 0x218   :  { %878 = vadd.xlane.f32.xlu1 %v827_v13  ;;  %751 = vadd.xlane.f32.xlu0 %v7427_v62  ;;  %v7433_v16 = vadd.f32 %v5831_v8, %v7285_v10  ;;  %v828_v22 = vmul.f32 %v7427_v62, %v7427_v62 }
 0x21a   :  { %v5832_v17 = vpop.f32.mrb[76].mxu1  ;;  %v829_v46 = vmul.f32 %v7433_v16, %v7433_v16 }
 0x21b   :  { %v5833_v27 = vpop.f32.mrb[77].mxu1 }
 0x21c   :  { %v5834_v32 = vadd.f32 %v5833_v27, %v5832_v17  ;;  %v5835_v34 = vpop.f32.mrb[78].mxu1  ;;  %753 = vadd.xlane.f32.xlu1 %v7433_v16  ;;  %880 = vadd.xlane.f32.xlu0 %v828_v22 }
 0x21d   :  { %v5836_v37 = vpop.f32.mrb[79].mxu1 }
 0x21e   :  { %v7442_v40 = vadd.f32 %v5834_v32, %v7285_v10  ;;  %v5837_v41 = vadd.f32 %v5836_v37, %v5835_v34 }
 0x220   :  { %882 = vadd.xlane.f32.xlu1 %v829_v46  ;;  %755 = vadd.xlane.f32.xlu0 %v7442_v40  ;;  %v7448_v51 = vadd.f32 %v5837_v41, %v7285_v10  ;;  %v830_v53 = vmul.f32 %v7442_v40, %v7442_v40 }
 0x222   :  { %v5838_v52 = vpop.f32.mrb[80].mxu1  ;;  %v831_v11 = vmul.f32 %v7448_v51, %v7448_v51 }
 0x223   :  { %v5839_v1 = vpop.f32.mrb[81].mxu1 }
 0x224   :  { %v5840_v3 = vadd.f32 %v5839_v1, %v5838_v52  ;;  %v5841_v5 = vpop.f32.mrb[82].mxu1  ;;  %757 = vadd.xlane.f32.xlu1 %v7448_v51  ;;  %884 = vadd.xlane.f32.xlu0 %v830_v53 }
 0x225   :  { %v5842_v6 = vpop.f32.mrb[83].mxu1 }
 0x226   :  { %v7454_v7 = vadd.f32 %v5840_v3, %v7285_v10  ;;  %v5843_v9 = vadd.f32 %v5842_v6, %v5841_v5 }
 0x228   :  { %886 = vadd.xlane.f32.xlu1 %v831_v11  ;;  %759 = vadd.xlane.f32.xlu0 %v7454_v7  ;;  %v7460_v18 = vadd.f32 %v5843_v9, %v7285_v10  ;;  %v832_v24 = vmul.f32 %v7454_v7, %v7454_v7 }
 0x22a   :  { %v5844_v19 = vpop.f32.mrb[84].mxu1  ;;  %v833_v45 = vmul.f32 %v7460_v18, %v7460_v18 }
 0x22b   :  { %v5845_v26 = vpop.f32.mrb[85].mxu1 }
 0x22c   :  { %v5846_v30 = vadd.f32 %v5845_v26, %v5844_v19  ;;  %v5847_v31 = vpop.f32.mrb[86].mxu1  ;;  %761 = vadd.xlane.f32.xlu1 %v7460_v18  ;;  %888 = vadd.xlane.f32.xlu0 %v832_v24 }
 0x22d   :  { %v5848_v33 = vpop.f32.mrb[87].mxu1 }
 0x22e   :  { %v7466_v36 = vadd.f32 %v5846_v30, %v7285_v10  ;;  %v5849_v38 = vadd.f32 %v5848_v33, %v5847_v31 }
 0x230   :  { %10069 = vst [vmem:[#allocation5_spill] sm:$0xff] %v7466_v36  ;;  %890 = vadd.xlane.f32.xlu1 %v833_v45  ;;  %763 = vadd.xlane.f32.xlu0 %v7466_v36  ;;  %v7472_v47 = vadd.f32 %v5849_v38, %v7285_v10  ;;  %v834_v54 = vmul.f32 %v7466_v36, %v7466_v36 }
 0x232   :  { %10070 = vst [vmem:[#allocation6_spill] sm:$0xff] %v7472_v47  ;;  %v5850_v50 = vpop.f32.mrb[88].mxu1  ;;  %v835_v13 = vmul.f32 %v7472_v47, %v7472_v47 }
 0x233   :  { %v5851_v56 = vpop.f32.mrb[89].mxu1 }
 0x234   :  { %v5852_v57 = vadd.f32 %v5851_v56, %v5850_v50  ;;  %v5853_v59 = vpop.f32.mrb[90].mxu1  ;;  %765 = vadd.xlane.f32.xlu1 %v7472_v47  ;;  %892 = vadd.xlane.f32.xlu0 %v834_v54 }
 0x235   :  { %v5854_v60 = vpop.f32.mrb[91].mxu1 }
 0x236   :  { %v7478_v61 = vadd.f32 %v5852_v57, %v7285_v10  ;;  %v5855_v8 = vadd.f32 %v5854_v60, %v5853_v59 }
 0x238   :  { %10071 = vst [vmem:[#allocation7_spill] sm:$0xff] %v7478_v61  ;;  %894 = vadd.xlane.f32.xlu1 %v835_v13  ;;  %767 = vadd.xlane.f32.xlu0 %v7478_v61  ;;  %v7484_v17 = vadd.f32 %v5855_v8, %v7285_v10  ;;  %v836_v27 = vmul.f32 %v7478_v61, %v7478_v61 }
 0x23a   :  { %10072 = vst [vmem:[#allocation8_spill] sm:$0xff] %v7484_v17  ;;  %v5856_v22 = vpop.f32.mrb[92].mxu1  ;;  %v837_v52 = vmul.f32 %v7484_v17, %v7484_v17 }
 0x23b   :  { %v5857_v29 = vpop.f32.mrb[93].mxu1 }
 0x23c   :  { %v5858_v32 = vadd.f32 %v5857_v29, %v5856_v22  ;;  %v5859_v34 = vpop.f32.mrb[94].mxu1  ;;  %769 = vadd.xlane.f32.xlu1 %v7484_v17  ;;  %896 = vadd.xlane.f32.xlu0 %v836_v27 }
 0x23d   :  { %v5860_v37 = vpop.f32.mrb[95].mxu1 }
 0x23e   :  { %v7490_v41 = vadd.f32 %v5858_v32, %v7285_v10  ;;  %v5861_v46 = vadd.f32 %v5860_v37, %v5859_v34 }
 0x240   :  { %10073 = vst [vmem:[#allocation9_spill] sm:$0xff] %v7490_v41  ;;  %898 = vadd.xlane.f32.xlu1 %v837_v52  ;;  %771 = vadd.xlane.f32.xlu0 %v7490_v41  ;;  %v7496_v53 = vadd.f32 %v5861_v46, %v7285_v10  ;;  %v838_v1 = vmul.f32 %v7490_v41, %v7490_v41 }
 0x242   :  { %10074 = vst [vmem:[#allocation10_spill] sm:$0xff] %v7496_v53  ;;  %v839_v3 = vmul.f32 %v7496_v53, %v7496_v53 }
 0x244   :  { %773 = vadd.xlane.f32.xlu1 %v7496_v53  ;;  %900 = vadd.xlane.f32.xlu0 %v838_v1 }
 0x248   :  { %902 = vadd.xlane.f32.xlu1 %v839_v3 }
 0x255   :  { %v712_v5 = vpop.xlane.xlu0 %711 }
 0x256   :  { %v776_v11 = vmul.f32 0.0078125, %v712_v5 }
 0x258   :  { %v936_v31 = vmul.f32 %v776_v11, %v776_v11 }
 0x259   :  { %v843_v6 = vpop.xlane.xlu1 %842  ;;  %v714_v9 = vpop.xlane.xlu0 %713 }
 0x25a   :  { %v777_v19 = vmul.f32 0.0078125, %v714_v9  ;;  %v905_v24 = vmul.f32 0.0078125, %v843_v6 }
 0x25c   :  { %v937_v26 = vmul.f32 %v777_v19, %v777_v19 }
 0x25d   :  { %v841_v30 = vpop.xlane.xlu0 %840  ;;  %v716_v10 = vpop.xlane.xlu1 %715 }
 0x25e   :  { %v969_v33 = vsub.f32 %v905_v24, %v937_v26  ;;  %v904_v38 = vmul.f32 0.0078125, %v841_v30  ;;  %v778_v45 = vmul.f32 0.0078125, %v716_v10  ;;  %v1001_v26 = vsub.f32 %v7291_v25, %v777_v19  ;;  %v7517_v10 = vld [vmem:[%s10075_s23] ss:$0 sm:$0xff] }
 0x260   :  { %v1033_v50 = vadd.f32 1e-05, %v969_v33  ;;  %v968_v54 = vsub.f32 %v904_v38, %v936_v31  ;;  %v938_v56 = vmul.f32 %v778_v45, %v778_v45  ;;  %v1000_v33 = vsub.f32 %v7288_v20, %v776_v11 }
 0x261   :  { %v718_v57 = vpop.xlane.xlu1 %717  ;;  %v845_v59 = vpop.xlane.xlu0 %844 }
 0x262   :  { %6304 = vrsqrt.f32 %v1033_v50  ;;  %v1032_v60 = vadd.f32 1e-05, %v968_v54  ;;  %v7503_v8 = vmul.f32 0.0078125, %v718_v57  ;;  %v906_v13 = vmul.f32 0.0078125, %v845_v59  ;;  %v7523_v57 = vld [vmem:[%s10012_s5] ss:$0 sm:$0xff] }
 0x264   :  { %6306 = vrsqrt.f32 %v1032_v60  ;;  %v970_v22 = vsub.f32 %v906_v13, %v938_v56  ;;  %v939_v32 = vmul.f32 %v7503_v8, %v7503_v8 }
 0x265   :  { %v847_v27 = vpop.xlane.xlu1 %846  ;;  %v720_v29 = vpop.xlane.xlu0 %719 }
 0x266   :  { %v1034_v34 = vadd.f32 1e-05, %v970_v22  ;;  %v907_v37 = vmul.f32 0.0078125, %v847_v27  ;;  %v7507_v46 = vmul.f32 0.0078125, %v720_v29  ;;  %v1002_v27 = vsub.f32 %v7298_v39, %v778_v45 }
 0x268   :  { %6308 = vrsqrt.f32 %v1034_v34  ;;  %v971_v52 = vsub.f32 %v907_v37, %v939_v32  ;;  %v940_v6 = vmul.f32 %v7507_v46, %v7507_v46 }
 0x269   :  { %v722_v1 = vpop.xlane.xlu1 %721  ;;  %v849_v3 = vpop.xlane.xlu0 %848 }
 0x26a   :  { %v1035_v5 = vadd.f32 1e-05, %v971_v52  ;;  %v7511_v9 = vmul.f32 0.0078125, %v722_v1  ;;  %v908_v24 = vmul.f32 0.0078125, %v849_v3 }
 0x26c   :  { %v6305_v30 = vpop.eup %6304  ;;  %6310 = vrsqrt.f32 %v1035_v5  ;;  %v972_v31 = vsub.f32 %v908_v24, %v940_v6  ;;  %v941_v25 = vmul.f32 %v7511_v9, %v7511_v9 }
 0x26d   :  { %v1097_v38 = vmul.f32 %v6305_v30, %v1001_v26  ;;  %v851_v50 = vpop.xlane.xlu1 %850  ;;  %v724_v54 = vpop.xlane.xlu0 %723  ;;  %v1003_v30 = vsub.f32 %v7304_v44, %v7503_v8  ;;  %v1004_v44 = vsub.f32 %v7310_v0, %v7507_v46 }
 0x26e   :  { %v6307_v56 = vpop.eup %6306  ;;  %v1036_v19 = vadd.f32 1e-05, %v972_v31  ;;  %v909_v59 = vmul.f32 0.0078125, %v851_v50  ;;  %v7527_v60 = vmul.f32 0.0078125, %v724_v54 }
 0x26f   :  { %v1135_v13 = vmul.f32 %v7517_v10, %v1097_v38  ;;  %v1096_v22 = vmul.f32 %v6307_v56, %v1000_v33 }
 0x270   :  { %6312 = vrsqrt.f32 %v1036_v19  ;;  %v973_v20 = vsub.f32 %v909_v59, %v941_v25  ;;  %v942_v1 = vmul.f32 %v7527_v60, %v7527_v60 }
 0x271   :  { %v7531_v11 = vadd.f32 %v7523_v57, %v1135_v13  ;;  %v726_v29 = vpop.xlane.xlu1 %725  ;;  %v853_v32 = vpop.xlane.xlu0 %852  ;;  %v1134_v34 = vmul.f32 %v7517_v10, %v1096_v22 }
 0x272   :  { %v6309_v37 = vpop.eup %6308  ;;  %v1037_v52 = vadd.f32 1e-05, %v973_v20  ;;  %v7537_v3 = vmul.f32 0.0078125, %v726_v29  ;;  %v910_v5 = vmul.f32 0.0078125, %v853_v32 }
 0x273   :  { %v1205_v6 = vmin.f32 %v7531_v11, 20.0  ;;  %v1098_v24 = vmul.f32 %v6309_v37, %v1002_v27  ;;  %v7541_v26 = vadd.f32 %v7523_v57, %v1134_v34 }
 0x274   :  { %6314 = vrsqrt.f32 %v1037_v52  ;;  %v974_v39 = vsub.f32 %v910_v5, %v942_v1  ;;  %v943_v56 = vmul.f32 %v7537_v3, %v7537_v3 }
 0x275   :  { %v1238_v45 = vmul.f32 1.442695, %v1205_v6  ;;  %v1136_v31 = vmul.f32 %v7517_v10, %v1098_v24  ;;  %v855_v33 = vpop.xlane.xlu1 %854  ;;  %v728_v38 = vpop.xlane.xlu0 %727  ;;  %v1204_v50 = vmin.f32 %v7541_v26, 20.0  ;;  %v1005_v24 = vsub.f32 %v7316_v4, %v7511_v9 }
 0x276   :  { %v6311_v54 = vpop.eup %6310  ;;  %v1038_v25 = vadd.f32 1e-05, %v974_v39  ;;  %v911_v19 = vmul.f32 0.0078125, %v855_v33  ;;  %v7555_v27 = vmul.f32 0.0078125, %v728_v38 }
 0x277   :  { %6316 = vpow2.f32 %v1238_v45  ;;  %v1099_v59 = vmul.f32 %v6311_v54, %v1003_v30  ;;  %v1236_v13 = vmul.f32 1.442695, %v1204_v50  ;;  %v7550_v22 = vadd.f32 %v7523_v57, %v1136_v31 }
 0x278   :  { %6318 = vrsqrt.f32 %v1038_v25  ;;  %v975_v8 = vsub.f32 %v911_v19, %v943_v56  ;;  %v944_v39 = vmul.f32 %v7555_v27, %v7555_v27 }
 0x279   :  { %v1137_v20 = vmul.f32 %v7517_v10, %v1099_v59  ;;  %v730_v29 = vpop.xlane.xlu1 %729  ;;  %v857_v32 = vpop.xlane.xlu0 %856  ;;  %6320 = vpow2.f32 %v1236_v13  ;;  %v1206_v34 = vmin.f32 %v7550_v22, 20.0  ;;  %v1006_v59 = vsub.f32 %v7322_v14, %v7527_v60 }
 0x27a   :  { %v6313_v37 = vpop.eup %6312  ;;  %v1039_v52 = vadd.f32 1e-05, %v975_v8  ;;  %v7558_v1 = vmul.f32 0.0078125, %v730_v29  ;;  %v912_v5 = vmul.f32 0.0078125, %v857_v32  ;;  %v1007_v8 = vsub.f32 %v7328_v21, %v7537_v3 }
 0x27b   :  { %v7561_v6 = vadd.f32 %v7523_v57, %v1137_v20  ;;  %v1240_v0 = vmul.f32 1.442695, %v1206_v34  ;;  %v1100_v46 = vmul.f32 %v6313_v37, %v1004_v44 }
 0x27c   :  { %v945_v50 = vmul.f32 %v7558_v1, %v7558_v1  ;;  %v976_v25 = vsub.f32 %v912_v5, %v944_v39 }
 0x27d   :  { %v859_v45 = vpop.xlane.xlu1 %858  ;;  %v732_v30 = vpop.xlane.xlu0 %731  ;;  %v1207_v31 = vmin.f32 %v7561_v6, 20.0  ;;  %6322 = vpow2.f32 %v1240_v0  ;;  %v1138_v33 = vmul.f32 %v7517_v10, %v1100_v46 }
 0x27e   :  { %v6315_v38 = vpop.eup %6314  ;;  %6324 = vrsqrt.f32 %v1039_v52  ;;  %v913_v54 = vmul.f32 0.0078125, %v859_v45  ;;  %v7571_v56 = vmul.f32 0.0078125, %v732_v30  ;;  %v1040_v46 = vadd.f32 1e-05, %v976_v25 }
 0x27f   :  { %v1242_v4 = vmul.f32 1.442695, %v1207_v31  ;;  %v1101_v9 = vmul.f32 %v6315_v38, %v1005_v24  ;;  %v7574_v19 = vadd.f32 %v7523_v57, %v1138_v33 }
 0x280   :  { %v977_v13 = vsub.f32 %v913_v54, %v945_v50  ;;  %v946_v52 = vmul.f32 %v7571_v56, %v7571_v56 }
 0x281   :  { %v6317_v44 = vpop.eup %6316  ;;  %v734_v20 = vpop.xlane.xlu1 %733  ;;  %6326 = vpow2.f32 %v1242_v4  ;;  %v1139_v32 = vmul.f32 %v7517_v10, %v1101_v9  ;;  %v1208_v34 = vmin.f32 %v7574_v19, 20.0 }
 0x282   :  { %v861_v29 = vpop.xlane.xlu0 %860  ;;  %v6319_v37 = vpop.eup %6318  ;;  %v7584_v5 = vmul.f32 0.0078125, %v734_v20  ;;  %v1301_v14 = vadd.f32 1.0, %v6317_v44  ;;  %v1041_v30 = vadd.f32 1e-05, %v977_v13 }
 0x283   :  { %v914_v0 = vmul.f32 0.0078125, %v861_v29  ;;  %v6321_v60 = vpop.eup %6320  ;;  %v7587_v24 = vadd.f32 %v7523_v57, %v1139_v32  ;;  %v1244_v21 = vmul.f32 1.442695, %v1208_v34  ;;  %v1102_v3 = vmul.f32 %v6319_v37, %v1006_v59 }
 0x284   :  { %v1300_v50 = vadd.f32 1.0, %v6321_v60  ;;  %v1333_v54 = vmul.f32 %v1301_v14, %v1301_v14  ;;  %v947_v25 = vmul.f32 %v7584_v5, %v7584_v5 }
 0x285   :  { %v978_v31 = vsub.f32 %v914_v0, %v946_v52  ;;  %v863_v33 = vpop.xlane.xlu1 %862  ;;  %v1209_v4 = vmin.f32 %v7587_v24, 20.0  ;;  %6328 = vpow2.f32 %v1244_v21  ;;  %v1140_v13 = vmul.f32 %v7517_v10, %v1102_v3 }
 0x286   :  { %v736_v38 = vpop.xlane.xlu0 %735  ;;  %v915_v59 = vmul.f32 0.0078125, %v863_v33  ;;  %6330 = vrsqrt.f32 %v1040_v46  ;;  %v1332_v29 = vmul.f32 %v1300_v50, %v1300_v50  ;;  %v1429_v32 = vadd.f32 1.0, %v1333_v54 }
 0x287   :  { %v1042_v9 = vadd.f32 1e-05, %v978_v31  ;;  %v7596_v44 = vmul.f32 0.0078125, %v736_v38  ;;  %v6323_v20 = vpop.eup %6322  ;;  %6332 = vrsqrt.f32 %v1041_v30  ;;  %v1246_v31 = vmul.f32 1.442695, %v1209_v4 }
 0x288   :  { %v6325_v34 = vpop.eup %6324  ;;  %v979_v0 = vsub.f32 %v915_v59, %v947_v25  ;;  %v1428_v46 = vadd.f32 1.0, %v1332_v29  ;;  %v1302_v30 = vadd.f32 1.0, %v6323_v20  ;;  %v5467_v50 = vadd.f32 -1.0, %v1333_v54 }
 0x289   :  { %6334 = vrsqrt.f32 %v1042_v9  ;;  %v948_v14 = vmul.f32 %v7596_v44, %v7596_v44  ;;  %v738_v60 = vpop.xlane.xlu1 %737  ;;  %v1103_v2 = vmul.f32 %v6325_v34, %v1007_v8  ;;  %v7608_v52 = vadd.f32 %v7523_v57, %v1140_v13  ;;  %v6265_v34 = vld [vmem:[%s10014_s7] sm:$0xff]  }
 0x28a   :  { %v865_v21 = vpop.xlane.xlu0 %864  ;;  %v7605_v33 = vmul.f32 0.0078125, %v738_v60  ;;  %6336 = vrcp.f32 %v1429_v32  ;;  %v1043_v25 = vadd.f32 1e-05, %v979_v0  ;;  %v5466_v37 = vadd.f32 -1.0, %v1332_v29  ;;  %5989 = vmatprep.subr.bf16.mxu1 %v6265_v34 }
 0x28b   :  { %v916_v3 = vmul.f32 0.0078125, %v865_v21  ;;  %v6327_v38 = vpop.eup %6326  ;;  %6338 = vrcp.f32 %v1428_v46  ;;  %v1334_v39 = vmul.f32 %v1302_v30, %v1302_v30  ;;  %v1141_v20 = vmul.f32 %v7517_v10, %v1103_v2  ;;  %5990 = vmatpush3.bf16.msra.mxu1 %v6265_v34 }
 0x28c   :  { %v1303_v60 = vadd.f32 1.0, %v6327_v38  ;;  %6340 = vpow2.f32 %v1246_v31  ;;  %v949_v54 = vmul.f32 %v7605_v33, %v7605_v33  ;;  %v1210_v46 = vmin.f32 %v7608_v52, 20.0 }
 0x28d   :  { %v980_v59 = vsub.f32 %v916_v3, %v948_v14  ;;  %v867_v45 = vpop.xlane.xlu1 %866  ;;  %v1430_v14 = vadd.f32 1.0, %v1334_v39  ;;  %v7621_v21 = vadd.f32 %v7523_v57, %v1141_v20  ;;  %6342 = vrsqrt.f32 %v1043_v25 }
 0x28e   :  { %v740_v4 = vpop.xlane.xlu0 %739  ;;  %v917_v32 = vmul.f32 0.0078125, %v867_v45  ;;  %v1335_v29 = vmul.f32 %v1303_v60, %v1303_v60  ;;  %v1396_v31 = vmul.f32 %v5466_v37, %v7541_v26  ;;  %v1397_v45 = vmul.f32 %v5467_v50, %v7531_v11 }
 0x28f   :  { %v1044_v8 = vadd.f32 1e-05, %v980_v59  ;;  %v7615_v13 = vmul.f32 0.0078125, %v740_v4  ;;  %v6329_v0 = vpop.eup %6328  ;;  %v5468_v37 = vadd.f32 -1.0, %v1334_v39  ;;  %v1211_v50 = vmin.f32 %v7621_v21, 20.0 }
 0x290   :  { %v981_v2 = vsub.f32 %v917_v32, %v949_v54  ;;  %v6331_v3 = vpop.eup %6330  ;;  %v1431_v60 = vadd.f32 1.0, %v1335_v29  ;;  %v1304_v26 = vadd.f32 1.0, %v6329_v0  ;;  %v1248_v32 = vmul.f32 1.442695, %v1210_v46 }
 0x291   :  { %6344 = vrsqrt.f32 %v1044_v8  ;;  %v950_v38 = vmul.f32 %v7615_v13, %v7615_v13  ;;  %v742_v59 = vpop.xlane.xlu1 %741  ;;  %v6333_v20 = vpop.eup %6332  ;;  %v5469_v41 = vadd.f32 -1.0, %v1335_v29  ;;  %v1250_v39 = vmul.f32 1.442695, %v1211_v50 }
 0x292   :  { %v869_v4 = vpop.xlane.xlu0 %868  ;;  %v7630_v25 = vmul.f32 0.0078125, %v742_v59  ;;  %6346 = vrcp.f32 %v1430_v14  ;;  %v1045_v30 = vadd.f32 1e-05, %v981_v2  ;;  %v1336_v0 = vmul.f32 %v1304_v26, %v1304_v26 }
 0x293   :  { %v918_v54 = vmul.f32 0.0078125, %v869_v4  ;;  %v6335_v11 = vpop.eup %6334  ;;  %6348 = vrcp.f32 %v1431_v60  ;;  %v10076_v29 = vsub.f32 %v7334_v35, %v7555_v27  ;;  %v1398_v9 = vmul.f32 %v5468_v37, %v7550_v22 }
 0x294   :  { %v6337_v8 = vpop.eup %6336  ;;  %v951_v59 = vmul.f32 %v7630_v25, %v7630_v25  ;;  %6350 = vpow2.f32 %v1248_v32  ;;  %v1432_v36 = vadd.f32 1.0, %v1336_v0  ;;  %v5470_v26 = vadd.f32 -1.0, %v1336_v0 }
 0x295   :  { %v982_v53 = vsub.f32 %v918_v54, %v950_v38  ;;  %v6339_v34 = vpop.eup %6338  ;;  %v871_v4 = vpop.xlane.xlu1 %870  ;;  %v1493_v47 = vmul.f32 %v6337_v8, %v1397_v45  ;;  %6352 = vpow2.f32 %v1250_v39  ;;  %v1104_v38 = vmul.f32 %v6331_v3, %v10076_v29 }
 0x296   :  { %v744_v14 = vpop.xlane.xlu0 %743  ;;  %v919_v17 = vmul.f32 0.0078125, %v871_v4  ;;  %v1492_v46 = vmul.f32 %v6339_v34, %v1396_v31  ;;  %v6341_v2 = vpop.eup %6340  ;;  %6354 = vrsqrt.f32 %v1045_v30  ;;  %v1399_v31 = vmul.f32 %v5469_v41, %v7561_v6 }
 0x297   :  { %v1046_v60 = vadd.f32 1e-05, %v982_v53  ;;  %v7637_v61 = vmul.f32 0.0078125, %v744_v14  ;;  %v1305_v34 = vadd.f32 1.0, %v6341_v2  ;;  %v6343_v45 = vpop.eup %6342  ;;  %v1142_v6 = vmul.f32 %v7517_v10, %v1104_v38 }
 0x298   :  { %v983_v54 = vsub.f32 %v919_v17, %v951_v59  ;;  %v7643_v50 = vpack.c.bf16 %v1493_v47, %v1492_v46  ;;  %v10078_v17 = vsub.f32 %v7340_v42, %v7558_v1  ;;  %v1015_v47 = vsub.f32 %v7388_v63, %v7630_v25 }
 0x299   :  { %6356 = vrsqrt.f32 %v1046_v60  ;;  %v746_v53 = vpop.xlane.xlu1 %745  ;;  %v952_v8 = vmul.f32 %v7637_v61, %v7637_v61  ;;  %v1337_v41 = vmul.f32 %v1305_v34, %v1305_v34  ;;  %v1016_v37 = vsub.f32 %v7397_v12, %v7637_v61  ;;  %v10087_v61 = vld [vmem:[#allocation5_spill] sm:$0xff] }
 0x29a   :  { %10077 = vst [vmem:[#allocation11_spill] sm:$0xff] %v7643_v50  ;;  %v873_v32 = vpop.xlane.xlu0 %872  ;;  %v7648_v4 = vmul.f32 0.0078125, %v746_v53  ;;  %v1105_v22 = vmul.f32 %v6333_v20, %v10078_v17  ;;  %5957 = vmatprep.mubr.bf16.mxu0 %v7643_v50  ;;  %6358 = vrcp.f32 %v1432_v36  ;;  %v1047_v30 = vadd.f32 1e-05, %v983_v54 }
 0x29b   :  { %v920_v35 = vmul.f32 0.0078125, %v873_v32  ;;  %v7653_v27 = vpop.eup %6344  ;;  %v1400_v42 = vmul.f32 %v5470_v26, %v7574_v19  ;;  %v1433_v0 = vadd.f32 1.0, %v1337_v41  ;;  %v10079_v60 = vsub.f32 %v7346_v55, %v7571_v56 }
 0x29c   :  { %v6347_v3 = vpop.eup %6346  ;;  %v1143_v39 = vmul.f32 %v7517_v10, %v1105_v22  ;;  %v10080_v46 = vsub.f32 %v7352_v58, %v7584_v5  ;;  %v953_v29 = vmul.f32 %v7648_v4, %v7648_v4  ;;  %v7674_v32 = vadd.f32 %v7523_v57, %v1142_v6 }
 0x29d   :  { %v984_v59 = vsub.f32 %v920_v35, %v952_v8  ;;  %v6349_v1 = vpop.eup %6348  ;;  %v875_v20 = vpop.xlane.xlu1 %874  ;;  %v1106_v36 = vmul.f32 %v6335_v11, %v10079_v60  ;;  %v1494_v53 = vmul.f32 %v6347_v3, %v1398_v9  ;;  %6360 = vrcp.f32 %v1433_v0 }
 0x29e   :  { %v748_v14 = vpop.xlane.xlu0 %747  ;;  %v1107_v2 = vmul.f32 %v6343_v45, %v10080_v46  ;;  %v921_v38 = vmul.f32 0.0078125, %v875_v20  ;;  %v1495_v19 = vmul.f32 %v6349_v1, %v1399_v31  ;;  %v6351_v26 = vpop.eup %6350  ;;  %v7677_v55 = vadd.f32 %v7523_v57, %v1143_v39 }
 0x29f   :  { %v7671_v54 = vmul.f32 0.0078125, %v748_v14  ;;  %6362 = vrsqrt.f32 %v1047_v30  ;;  %v1048_v56 = vadd.f32 1e-05, %v984_v59  ;;  %v5471_v5 = vadd.f32 -1.0, %v1337_v41  ;;  %v6353_v11 = vpop.eup %6352 }
 0x2a0   :  { %v985_v58 = vsub.f32 %v921_v38, %v953_v29  ;;  %v7681_v45 = vpack.c.bf16 %v1495_v19, %v1494_v53  ;;  %v1306_v9 = vadd.f32 1.0, %v6351_v26  ;;  %v1212_v35 = vmin.f32 %v7674_v32, 20.0  ;;  %v7684_v17 = vpop.eup %6354 }
 0x2a1   :  { %v954_v34 = vmul.f32 %v7671_v54, %v7671_v54  ;;  %v750_v31 = vpop.xlane.xlu1 %749  ;;  %v1307_v30 = vadd.f32 1.0, %v6353_v11  ;;  %v1017_v41 = vsub.f32 %v7403_v23, %v7648_v4  ;;  %v1213_v20 = vmin.f32 %v7677_v55, 20.0 }
 0x2a2   :  { %10081 = vst [vmem:[#allocation12_spill] sm:$0xff] %v7681_v45  ;;  %v877_v8 = vpop.xlane.xlu0 %876  ;;  %v1049_v22 = vadd.f32 1e-05, %v985_v58  ;;  %v7686_v6 = vmul.f32 0.0078125, %v750_v31  ;;  %5958 = vmatmul.mubr.bf16.vlgmr.msra.gmra.mrb[32].mxu0 %v7681_v45  ;;  %v1338_v1 = vmul.f32 %v1306_v9, %v1306_v9  ;;  %v1252_v14 = vmul.f32 1.442695, %v1212_v35 }
 0x2a3   :  { %v922_v3 = vmul.f32 0.0078125, %v877_v8  ;;  %v7688_v59 = vpop.eup %6356  ;;  %6364 = vrsqrt.f32 %v1048_v56  ;;  %v1401_v60 = vmul.f32 %v5471_v5, %v7587_v24  ;;  %v1339_v19 = vmul.f32 %v1307_v30, %v1307_v30 }
 0x2a4   :  { %v6359_v46 = vpop.eup %6358  ;;  %6366 = vrsqrt.f32 %v1049_v22  ;;  %v1434_v26 = vadd.f32 1.0, %v1338_v1  ;;  %v1144_v53 = vmul.f32 %v7517_v10, %v1106_v36  ;;  %v955_v58 = vmul.f32 %v7686_v6, %v7686_v6 }
 0x2a5   :  { %v986_v39 = vsub.f32 %v922_v3, %v954_v34  ;;  %v879_v29 = vpop.xlane.xlu1 %878  ;;  %6368 = vpow2.f32 %v1252_v14  ;;  %v1435_v34 = vadd.f32 1.0, %v1339_v19  ;;  %v1254_v24 = vmul.f32 1.442695, %v1213_v20  ;;  %v6266_v14 = vld [vmem:[%s10014_s7 + $0x8] sm:$0xff]   ;;  %v6267_v20 = vld [vmem:[%s10014_s7 + $0x10] sm:$0xff]  }
 0x2a6   :  { %v752_v38 = vpop.xlane.xlu0 %751  ;;  %v923_v11 = vmul.f32 0.0078125, %v879_v29  ;;  %6370 = vrcp.f32 %v1434_v26  ;;  %v1496_v9 = vmul.f32 %v6359_v46, %v1400_v42  ;;  %v5472_v35 = vadd.f32 -1.0, %v1338_v1  ;;  %5991 = vmatprep.subr.bf16.mxu1 %v6266_v14 }
 0x2a7   :  { %v7700_v31 = vmul.f32 0.0078125, %v752_v38  ;;  %v1050_v5 = vadd.f32 1e-05, %v986_v39  ;;  %v6361_v22 = vpop.eup %6360  ;;  %v5473_v30 = vadd.f32 -1.0, %v1339_v19  ;;  %6372 = vrcp.f32 %v1435_v34  ;;  %5992 = vmatpush3.bf16.msra.mxu1 %v6266_v14 }
 0x2a8   :  { %v987_v8 = vsub.f32 %v923_v11, %v955_v58  ;;  %v1145_v29 = vmul.f32 %v7517_v10, %v1107_v2  ;;  %v7706_v38 = vadd.f32 %v7523_v57, %v1144_v53  ;;  %v1497_v39 = vmul.f32 %v6361_v22, %v1401_v60  ;;  %5993 = vmatprep.subr.bf16.mxu1 %v6267_v20 }
 0x2a9   :  { %v754_v3 = vpop.xlane.xlu1 %753  ;;  %v6363_v42 = vpop.eup %6362  ;;  %v956_v1 = vmul.f32 %v7700_v31, %v7700_v31  ;;  %6374 = vpow2.f32 %v1254_v24  ;;  %v10082_v53 = vsub.f32 %v7358_v15, %v7596_v44  ;;  %v1402_v60 = vmul.f32 %v5472_v35, %v7608_v52  ;;  %v6268_v44 = vld [vmem:[%s10014_s7 + $0x18] sm:$0xff]  }
 0x2aa   :  { %v881_v36 = vpop.xlane.xlu0 %880  ;;  %v7716_v46 = vmul.f32 0.0078125, %v754_v3  ;;  %v7719_v2 = vadd.f32 %v7523_v57, %v1145_v29  ;;  %v1214_v26 = vmin.f32 %v7706_v38, 20.0  ;;  %6376 = vrsqrt.f32 %v1050_v5 }
 0x2ab   :  { %v924_v19 = vmul.f32 0.0078125, %v881_v36  ;;  %v1108_v58 = vmul.f32 %v7653_v27, %v10082_v53  ;;  %v1051_v11 = vadd.f32 1e-05, %v987_v8  ;;  %v7726_v34 = vpack.c.bf16 %v1497_v39, %v1496_v9  ;;  %5994 = vmatpush3.bf16.msra.mxu1 %v6267_v20 }
 0x2ac   :  { %v1215_v36 = vmin.f32 %v7719_v2, 20.0  ;;  %v1256_v29 = vmul.f32 1.442695, %v1214_v26  ;;  %v10084_v56 = vsub.f32 %v7370_v28, %v7605_v33  ;;  %v957_v52 = vmul.f32 %v7716_v46, %v7716_v46  ;;  %5995 = vmatprep.subr.bf16.mxu1 %v6268_v44 }
 0x2ad   :  { %10083 = vst [vmem:[#allocation13_spill] sm:$0xff] %v7726_v34  ;;  %v988_v22 = vsub.f32 %v924_v19, %v956_v1  ;;  %v883_v24 = vpop.xlane.xlu1 %882  ;;  %v7737_v27 = vpop.eup %6364  ;;  %5961 = vmatprep.mubr.bf16.mxu0 %v7726_v34  ;;  %v1146_v9 = vmul.f32 %v7517_v10, %v1108_v58  ;;  %v1403_v39 = vmul.f32 %v5473_v30, %v7621_v21 }
 0x2ae   :  { %v756_v3 = vpop.xlane.xlu0 %755  ;;  %v1109_v15 = vmul.f32 %v7684_v17, %v10084_v56  ;;  %v925_v5 = vmul.f32 0.0078125, %v883_v24  ;;  %v7745_v28 = vpop.eup %6366  ;;  %6378 = vpow2.f32 %v1256_v29  ;;  %v1258_v17 = vmul.f32 1.442695, %v1215_v36 }
 0x2af   :  { %v7742_v8 = vmul.f32 0.0078125, %v756_v3  ;;  %v1052_v33 = vadd.f32 1e-05, %v988_v22  ;;  %v6369_v35 = vpop.eup %6368  ;;  %v7752_v19 = vadd.f32 %v7523_v57, %v1146_v9  ;;  %6380 = vrsqrt.f32 %v1051_v11  ;;  %5996 = vmatpush3.bf16.msra.mxu1 %v6268_v44 }
 0x2b0   :  { %v1147_v56 = vmul.f32 %v7517_v10, %v1109_v15  ;;  %v989_v1 = vsub.f32 %v925_v5, %v957_v52  ;;  %v6371_v26 = vpop.eup %6370  ;;  %v1308_v22 = vadd.f32 1.0, %v6369_v35  ;;  %v10085_v3 = vsub.f32 %v7379_v49, %v7615_v13 }
 0x2b1   :  { %v758_v53 = vpop.xlane.xlu1 %757  ;;  %6382 = vrsqrt.f32 %v1052_v33  ;;  %v958_v21 = vmul.f32 %v7742_v8, %v7742_v8  ;;  %v6373_v11 = vpop.eup %6372  ;;  %v1216_v52 = vmin.f32 %v7752_v19, 20.0  ;;  %v1498_v5 = vmul.f32 %v6371_v26, %v1402_v60 }
 0x2b2   :  { %v885_v58 = vpop.xlane.xlu0 %884  ;;  %v7755_v24 = vadd.f32 %v7523_v57, %v1147_v56  ;;  %v1110_v36 = vmul.f32 %v7688_v59, %v10085_v3  ;;  %v7763_v30 = vmul.f32 0.0078125, %v758_v53  ;;  %v1053_v29 = vadd.f32 1e-05, %v989_v1 }
 0x2b3   :  { %v926_v20 = vmul.f32 0.0078125, %v885_v58  ;;  %v1340_v15 = vmul.f32 %v1308_v22, %v1308_v22  ;;  %6384 = vpow2.f32 %v1258_v17  ;;  %v1499_v9 = vmul.f32 %v6373_v11, %v1403_v39  ;;  %v6375_v59 = vpop.eup %6374 }
 0x2b4   :  { %v1217_v49 = vmin.f32 %v7755_v24, 20.0  ;;  %v1111_v13 = vmul.f32 %v6363_v42, %v1015_v47  ;;  %v959_v33 = vmul.f32 %v7763_v30, %v7763_v30  ;;  %v7772_v58 = vpop.eup %6376  ;;  %v1309_v22 = vadd.f32 1.0, %v6375_v59 }
 0x2b5   :  { %v990_v56 = vsub.f32 %v926_v20, %v958_v21  ;;  %v887_v35 = vpop.xlane.xlu1 %886  ;;  %v5474_v53 = vadd.f32 -1.0, %v1340_v15  ;;  %v1436_v17 = vadd.f32 1.0, %v1340_v15  ;;  %v7774_v60 = vpack.c.bf16 %v1499_v9, %v1498_v5 }
 0x2b6   :  { %v760_v1 = vpop.xlane.xlu0 %759  ;;  %v927_v39 = vmul.f32 0.0078125, %v887_v35  ;;  %6386 = vrsqrt.f32 %v1053_v29  ;;  %v1260_v47 = vmul.f32 1.442695, %v1216_v52  ;;  %v1341_v3 = vmul.f32 %v1309_v22, %v1309_v22 }
 0x2b7   :  { %10086 = vst [vmem:[#allocation14_spill] sm:$0xff] %v7774_v60  ;;  %v7776_v26 = vmul.f32 0.0078125, %v760_v1  ;;  %5962 = vmatmul.mubr.bf16.gmra.mrb[36].mxu0 %v7774_v60  ;;  %6388 = vrcp.f32 %v1436_v17  ;;  %v1054_v20 = vadd.f32 1e-05, %v990_v56  ;;  %v1404_v11 = vmul.f32 %v5474_v53, %v7674_v32 }
 0x2b8   :  { %v991_v44 = vsub.f32 %v927_v39, %v959_v33  ;;  %v6379_v21 = vpop.eup %6378  ;;  %v1148_v29 = vmul.f32 %v7517_v10, %v1110_v36  ;;  %v1149_v9 = vmul.f32 %v7517_v10, %v1111_v13  ;;  %v1437_v59 = vadd.f32 1.0, %v1341_v3 }
 0x2b9   :  { %v762_v15 = vpop.xlane.xlu1 %761  ;;  %v960_v52 = vmul.f32 %v7776_v26, %v7776_v26  ;;  %v1262_v1 = vmul.f32 1.442695, %v1217_v49  ;;  %v7792_v33 = vpop.eup %6380  ;;  %v1310_v39 = vadd.f32 1.0, %v6379_v21  ;;  %6390 = vpow2.f32 %v1260_v47 }
 0x2ba   :  { %v889_v5 = vpop.xlane.xlu0 %888  ;;  %v7790_v35 = vmul.f32 0.0078125, %v762_v15  ;;  %v7795_v32 = vadd.f32 %v7523_v57, %v1148_v29  ;;  %v1055_v36 = vadd.f32 1e-05, %v991_v44  ;;  %v5475_v53 = vadd.f32 -1.0, %v1341_v3 }
 0x2bb   :  { %v928_v17 = vmul.f32 0.0078125, %v889_v5  ;;  %v7797_v56 = vpop.eup %6382  ;;  %6392 = vrcp.f32 %v1437_v59  ;;  %v1342_v21 = vmul.f32 %v1310_v39, %v1310_v39  ;;  %v7804_v47 = vadd.f32 %v7523_v57, %v1149_v9 }
 0x2bc   :  { %v961_v22 = vmul.f32 %v7790_v35, %v7790_v35  ;;  %6394 = vpow2.f32 %v1262_v1  ;;  %v1218_v3 = vmin.f32 %v7795_v32, 20.0 }
 0x2bd   :  { %v6385_v15 = vpop.eup %6384  ;;  %v992_v49 = vsub.f32 %v928_v17, %v960_v52  ;;  %v891_v42 = vpop.xlane.xlu1 %890  ;;  %6396 = vrsqrt.f32 %v1054_v20  ;;  %v1438_v13 = vadd.f32 1.0, %v1342_v21  ;;  %v1112_v52 = vmul.f32 %v7737_v27, %v1016_v37 }
 0x2be   :  { %v764_v5 = vpop.xlane.xlu0 %763  ;;  %v929_v29 = vmul.f32 0.0078125, %v891_v42  ;;  %v1311_v44 = vadd.f32 1.0, %v6385_v15  ;;  %6398 = vrsqrt.f32 %v1055_v36  ;;  %v1405_v42 = vmul.f32 %v5475_v53, %v7677_v55 }
 0x2bf   :  { %v7806_v25 = vmul.f32 0.0078125, %v764_v5  ;;  %v1056_v59 = vadd.f32 1e-05, %v992_v49  ;;  %v5476_v20 = vadd.f32 -1.0, %v1342_v21  ;;  %v1219_v63 = vmin.f32 %v7804_v47, 20.0 }
 0x2c0   :  { %v993_v17 = vsub.f32 %v929_v29, %v961_v22  ;;  %v1343_v39 = vmul.f32 %v1311_v44, %v1311_v44  ;;  %v7813_v9 = vpop.eup %6386  ;;  %v1264_v36 = vmul.f32 1.442695, %v1218_v3  ;;  %6400 = vrcp.f32 %v1438_v13 }
 0x2c1   :  { %v766_v15 = vpop.xlane.xlu1 %765  ;;  %v6389_v14 = vpop.eup %6388  ;;  %v962_v12 = vmul.f32 %v7806_v25, %v7806_v25  ;;  %v1266_v53 = vmul.f32 1.442695, %v1219_v63  ;;  %6402 = vrsqrt.f32 %v1056_v59  ;;  %v1113_v21 = vmul.f32 %v7745_v28, %v1017_v41 }
 0x2c2   :  { %v893_v5 = vpop.xlane.xlu0 %892  ;;  %v1439_v27 = vadd.f32 1.0, %v1343_v39  ;;  %v7823_v22 = vmul.f32 0.0078125, %v766_v15  ;;  %v1057_v49 = vadd.f32 1e-05, %v993_v17  ;;  %v1150_v29 = vmul.f32 %v7517_v10, %v1112_v52 }
 0x2c3   :  { %v930_v55 = vmul.f32 0.0078125, %v893_v5  ;;  %v6391_v44 = vpop.eup %6390  ;;  %v1500_v1 = vmul.f32 %v6389_v14, %v1404_v11  ;;  %v1151_v4 = vmul.f32 %v7517_v10, %v1113_v21  ;;  %v5477_v11 = vadd.f32 -1.0, %v1343_v39 }
 0x2c4   :  { %6404 = vrcp.f32 %v1439_v27  ;;  %v963_v3 = vmul.f32 %v7823_v22, %v7823_v22  ;;  %v1312_v59 = vadd.f32 1.0, %v6391_v44  ;;  %v7836_v41 = vadd.f32 %v7523_v57, %v1150_v29 }
 0x2c5   :  { %v994_v13 = vsub.f32 %v930_v55, %v962_v12  ;;  %v895_v15 = vpop.xlane.xlu1 %894  ;;  %6406 = vpow2.f32 %v1264_v36  ;;  %v6393_v17 = vpop.eup %6392 }
 0x2c6   :  { %v768_v37 = vpop.xlane.xlu0 %767  ;;  %v931_v5 = vmul.f32 0.0078125, %v895_v15  ;;  %6408 = vpow2.f32 %v1266_v53  ;;  %v6395_v28 = vpop.eup %6394  ;;  %v1501_v14 = vmul.f32 %v6393_v17, %v1405_v42  ;;  %v1344_v36 = vmul.f32 %v1312_v59, %v1312_v59  ;;  %v10089_v17 = vld [vmem:[#allocation6_spill] sm:$0xff] }
 0x2c7   :  { %v7832_v63 = vmul.f32 0.0078125, %v768_v37  ;;  %v1058_v23 = vadd.f32 1e-05, %v994_v13  ;;  %6410 = vrsqrt.f32 %v1057_v49  ;;  %v7838_v12 = vpop.eup %6396  ;;  %v1313_v27 = vadd.f32 1.0, %v6395_v28 }
 0x2c8   :  { %v995_v52 = vsub.f32 %v931_v5, %v963_v3  ;;  %v7842_v44 = vpop.eup %6398  ;;  %v7844_v10 = vpack.c.bf16 %v1501_v14, %v1500_v1  ;;  %v1440_v49 = vadd.f32 1.0, %v1344_v36  ;;  %v7849_v3 = vadd.f32 %v7523_v57, %v1151_v4 }
 0x2c9   :  { %6412 = vrsqrt.f32 %v1058_v23  ;;  %v964_v37 = vmul.f32 %v7832_v63, %v7832_v63  ;;  %v770_v55 = vpop.xlane.xlu1 %769  ;;  %v1345_v39 = vmul.f32 %v1313_v27, %v1313_v27  ;;  %v1220_v13 = vmin.f32 %v7836_v41, 20.0 }
 0x2ca   :  { %v897_v53 = vpop.xlane.xlu0 %896  ;;  %10088 = vst [vmem:[#allocation5_spill] sm:$0xff] %v7844_v10  ;;  %v1059_v21 = vadd.f32 1e-05, %v995_v52  ;;  %v7846_v29 = vmul.f32 0.0078125, %v770_v55  ;;  %5965 = vmatprep.mubr.bf16.mxu0 %v7844_v10  ;;  %v1406_v15 = vmul.f32 %v5476_v20, %v7706_v38  ;;  %v1407_v5 = vmul.f32 %v5477_v11, %v7719_v2  ;;  %v6401_v59 = vpop.eup %6400 }
 0x2cb   :  { %v932_v42 = vmul.f32 0.0078125, %v897_v53  ;;  %v5478_v28 = vadd.f32 -1.0, %v1344_v36  ;;  %v1441_v14 = vadd.f32 1.0, %v1345_v39  ;;  %v7857_v4 = vpop.eup %6402  ;;  %v5479_v11 = vadd.f32 -1.0, %v1345_v39 }
 0x2cc   :  { %6414 = vrsqrt.f32 %v1059_v21  ;;  %v965_v27 = vmul.f32 %v7846_v29, %v7846_v29  ;;  %v1268_v53 = vmul.f32 1.442695, %v1220_v13  ;;  %v1502_v21 = vmul.f32 %v6401_v59, %v1406_v15 }
 0x2cd   :  { %v996_v1 = vsub.f32 %v932_v42, %v964_v37  ;;  %6416 = vrcp.f32 %v1440_v49  ;;  %v899_v52 = vpop.xlane.xlu1 %898  ;;  %v1221_v37 = vmin.f32 %v7849_v3, 20.0 }
 0x2ce   :  { %v772_v57 = vpop.xlane.xlu0 %771  ;;  %v933_v38 = vmul.f32 0.0078125, %v899_v52  ;;  %v6405_v2 = vpop.eup %6404  ;;  %6418 = vrcp.f32 %v1441_v14 }
 0x2cf   :  { %v1060_v55 = vadd.f32 1e-05, %v996_v1  ;;  %v7861_v20 = vmul.f32 0.0078125, %v772_v57  ;;  %v6407_v36 = vpop.eup %6406  ;;  %v1503_v42 = vmul.f32 %v6405_v2, %v1407_v5  ;;  %v1270_v57 = vmul.f32 1.442695, %v1221_v37  ;;  %v10092_v2 = vld [vmem:[#allocation7_spill] sm:$0xff] }
 0x2d0   :  { %v997_v49 = vsub.f32 %v933_v38, %v965_v27  ;;  %v6409_v23 = vpop.eup %6408  ;;  %v1314_v1 = vadd.f32 1.0, %v6407_v36  ;;  %v1028_v37 = vsub.f32 %v10092_v2, %v7832_v63 }
 0x2d1   :  { %6420 = vrsqrt.f32 %v1060_v55  ;;  %v966_v0 = vmul.f32 %v7861_v20, %v7861_v20  ;;  %v774_v10 = vpop.xlane.xlu1 %773  ;;  %v7866_v60 = vpop.eup %6410  ;;  %v7868_v39 = vpack.c.bf16 %v1503_v42, %v1502_v21  ;;  %v1315_v15 = vadd.f32 1.0, %v6409_v23 }
 0x2d2   :  { %v901_v52 = vpop.xlane.xlu0 %900  ;;  %6422 = vpow2.f32 %v1268_v53  ;;  %v1061_v14 = vadd.f32 1e-05, %v997_v49  ;;  %v7870_v13 = vmul.f32 0.0078125, %v774_v10  ;;  %v1346_v59 = vmul.f32 %v1314_v1, %v1314_v1 }
 0x2d3   :  { %10090 = vst [vmem:[#allocation6_spill] sm:$0xff] %v7868_v39  ;;  %v7872_v5 = vpop.eup %6412  ;;  %v934_v27 = vmul.f32 0.0078125, %v901_v52  ;;  %6424 = vpow2.f32 %v1270_v57  ;;  %v10091_v55 = vsub.f32 %v7412_v43, %v7671_v54  ;;  %5966 = vmatmul.mubr.bf16.gmra.mrb[40].mxu0 %v7868_v39  ;;  %v1408_v53 = vmul.f32 %v5478_v28, %v7752_v19  ;;  %v7893_v19 = vld [vmem:[%s10075_s23] ss:$0 sm:$0xff] }
 0x2d4   :  { %6426 = vrsqrt.f32 %v1061_v14  ;;  %v1347_v10 = vmul.f32 %v1315_v15, %v1315_v15  ;;  %v5480_v23 = vadd.f32 -1.0, %v1346_v59  ;;  %v1442_v36 = vadd.f32 1.0, %v1346_v59 }
 0x2d5   :  { %v1114_v38 = vmul.f32 %v7772_v58, %v10091_v55  ;;  %v998_v21 = vsub.f32 %v934_v27, %v966_v0  ;;  %v903_v42 = vpop.xlane.xlu1 %902  ;;  %v10093_v49 = vsub.f32 %v7418_v48, %v7686_v6  ;;  %v967_v58 = vmul.f32 %v7870_v13, %v7870_v13  ;;  %v7902_v55 = vld [vmem:[%s10012_s5] ss:$0 sm:$0xff] }
 0x2d6   :  { %v7886_v54 = vpop.eup %6414  ;;  %v1443_v1 = vadd.f32 1.0, %v1347_v10  ;;  %v935_v52 = vmul.f32 0.0078125, %v903_v42  ;;  %v1409_v57 = vmul.f32 %v5479_v11, %v7755_v24  ;;  %6428 = vrcp.f32 %v1442_v36 }
 0x2d7   :  { %v1115_v43 = vmul.f32 %v7792_v33, %v10093_v49  ;;  %v1152_v0 = vmul.f32 %v7893_v19, %v1114_v38  ;;  %v6417_v28 = vpop.eup %6416  ;;  %v1062_v48 = vadd.f32 1e-05, %v998_v21  ;;  %v5481_v33 = vadd.f32 -1.0, %v1347_v10 }
 0x2d8   :  { %v1410_v14 = vmul.f32 %v5480_v23, %v7795_v32  ;;  %6430 = vrcp.f32 %v1443_v1  ;;  %v999_v15 = vsub.f32 %v935_v52, %v967_v58  ;;  %v6419_v59 = vpop.eup %6418  ;;  %v1504_v27 = vmul.f32 %v6417_v28, %v1408_v53 }
 0x2d9   :  { %v1153_v6 = vmul.f32 %v7893_v19, %v1115_v43  ;;  %v7905_v38 = vadd.f32 %v7902_v55, %v1152_v0  ;;  %v10094_v11 = vsub.f32 %v7427_v62, %v7700_v31  ;;  %v1505_v23 = vmul.f32 %v6419_v59, %v1409_v57 }
 0x2da   :  { %6432 = vrsqrt.f32 %v1062_v48  ;;  %v10095_v53 = vsub.f32 %v7433_v16, %v7716_v46  ;;  %v10096_v21 = vsub.f32 %v7442_v40, %v7742_v8  ;;  %v1063_v46 = vadd.f32 1e-05, %v999_v15 }
 0x2db   :  { %v7908_v24 = vadd.f32 %v7902_v55, %v1153_v6  ;;  %v1116_v32 = vmul.f32 %v7797_v56, %v10094_v11  ;;  %v7914_v10 = vpop.eup %6420  ;;  %v1222_v43 = vmin.f32 %v7905_v38, 20.0  ;;  %v10097_v56 = vsub.f32 %v7448_v51, %v7763_v30 }
 0x2dc   :  { %v1117_v36 = vmul.f32 %v7813_v9, %v10095_v53  ;;  %v1118_v42 = vmul.f32 %v7838_v12, %v10096_v21  ;;  %v6423_v49 = vpop.eup %6422  ;;  %v7931_v16 = vpack.c.bf16 %v1505_v23, %v1504_v27  ;;  %v1411_v48 = vmul.f32 %v5481_v33, %v7804_v47 }
 0x2dd   :  { %v1223_v62 = vmin.f32 %v7908_v24, 20.0  ;;  %v1154_v31 = vmul.f32 %v7893_v19, %v1116_v32  ;;  %v1119_v58 = vmul.f32 %v7842_v44, %v10097_v56  ;;  %v1316_v9 = vadd.f32 1.0, %v6423_v49  ;;  %v6425_v8 = vpop.eup %6424 }
 0x2de   :  { %10098 = vst [vmem:[#allocation7_spill] sm:$0xff] %v7931_v16  ;;  %v1155_v40 = vmul.f32 %v7893_v19, %v1117_v36  ;;  %v1272_v12 = vmul.f32 1.442695, %v1222_v43  ;;  %v1156_v0 = vmul.f32 %v7893_v19, %v1118_v42  ;;  %v6427_v28 = vpop.eup %6426  ;;  %5969 = vmatprep.mubr.bf16.mxu0 %v7931_v16  ;;  %v1317_v51 = vadd.f32 1.0, %v6425_v8  ;;  %v10100_v42 = vld [vmem:[#allocation8_spill] sm:$0xff] }
 0x2df   :  { %v1274_v1 = vmul.f32 1.442695, %v1223_v62  ;;  %v7935_v52 = vadd.f32 %v7902_v55, %v1154_v31  ;;  %v1348_v30 = vmul.f32 %v1316_v9, %v1316_v9  ;;  %v1157_v57 = vmul.f32 %v7893_v19, %v1119_v58 }
 0x2e0   :  { %v7940_v44 = vadd.f32 %v7902_v55, %v1155_v40  ;;  %6434 = vpow2.f32 %v1272_v12  ;;  %v7946_v15 = vadd.f32 %v7902_v55, %v1156_v0  ;;  %v1349_v59 = vmul.f32 %v1317_v51, %v1317_v51  ;;  %v6429_v23 = vpop.eup %6428 }
 0x2e1   :  { %v1224_v6 = vmin.f32 %v7935_v52, 20.0  ;;  %v1444_v27 = vadd.f32 1.0, %v1348_v30  ;;  %6436 = vpow2.f32 %v1274_v1  ;;  %v10099_v11 = vsub.f32 %v7454_v7, %v7776_v26 }
 0x2e2   :  { %v1225_v53 = vmin.f32 %v7940_v44, 20.0  ;;  %v7954_v47 = vadd.f32 %v7902_v55, %v1157_v57  ;;  %v1226_v33 = vmin.f32 %v7946_v15, 20.0  ;;  %v6431_v21 = vpop.eup %6430  ;;  %v1029_v49 = vsub.f32 %v10100_v42, %v7846_v29 }
 0x2e3   :  { %v1120_v32 = vmul.f32 %v7857_v4, %v10099_v11  ;;  %v1276_v36 = vmul.f32 1.442695, %v1224_v6  ;;  %v1506_v43 = vmul.f32 %v6429_v23, %v1410_v14  ;;  %6438 = vrsqrt.f32 %v1063_v46 }
 0x2e4   :  { %v1445_v62 = vadd.f32 1.0, %v1349_v59  ;;  %v1507_v31 = vmul.f32 %v6431_v21, %v1411_v48  ;;  %6440 = vrcp.f32 %v1444_v27  ;;  %v1278_v7 = vmul.f32 1.442695, %v1225_v53  ;;  %v7960_v4 = vpop.eup %6432 }
 0x2e5   :  { %v1227_v26 = vmin.f32 %v7954_v47, 20.0  ;;  %v5482_v56 = vadd.f32 -1.0, %v1348_v30  ;;  %v1280_v58 = vmul.f32 1.442695, %v1226_v33  ;;  %v10101_v9 = vsub.f32 %v7460_v18, %v7790_v35 }
 0x2e6   :  { %6442 = vrcp.f32 %v1445_v62  ;;  %v7966_v8 = vpack.c.bf16 %v1507_v31, %v1506_v43  ;;  %v1158_v14 = vmul.f32 %v7893_v19, %v1120_v32  ;;  %v10103_v12 = vsub.f32 %v10087_v61, %v7806_v25 }
 0x2e7   :  { %v1121_v40 = vmul.f32 %v7866_v60, %v10101_v9  ;;  %6444 = vpow2.f32 %v1276_v36  ;;  %v1282_v29 = vmul.f32 1.442695, %v1227_v26  ;;  %v10104_v0 = vsub.f32 %v10089_v17, %v7823_v22 }
 0x2e8   :  { %10102 = vst [vmem:[#allocation8_spill] sm:$0xff] %v7966_v8  ;;  %6446 = vpow2.f32 %v1278_v7  ;;  %v1122_v1 = vmul.f32 %v7872_v5, %v10103_v12  ;;  %5970 = vmatmul.mubr.bf16.gmra.mrb[44].mxu0 %v7966_v8  ;;  %v7980_v60 = vadd.f32 %v7902_v55, %v1158_v14  ;;  %v1124_v35 = vmul.f32 %v7914_v10, %v1028_v37 }
 0x2e9   :  { %v1159_v46 = vmul.f32 %v7893_v19, %v1121_v40  ;;  %v1123_v18 = vmul.f32 %v7886_v54, %v10104_v0  ;;  %6448 = vpow2.f32 %v1280_v58  ;;  %v1125_v51 = vmul.f32 %v6427_v28, %v1029_v49 }
 0x2ea   :  { %6450 = vpow2.f32 %v1282_v29  ;;  %v1160_v61 = vmul.f32 %v7893_v19, %v1122_v1  ;;  %v6435_v17 = vpop.eup %6434  ;;  %v5483_v5 = vadd.f32 -1.0, %v1349_v59  ;;  %v1228_v54 = vmin.f32 %v7980_v60, 20.0 }
 0x2eb   :  { %v7987_v25 = vadd.f32 %v7902_v55, %v1159_v46  ;;  %v1161_v22 = vmul.f32 %v7893_v19, %v1123_v18  ;;  %v1162_v30 = vmul.f32 %v7893_v19, %v1124_v35  ;;  %v1163_v57 = vmul.f32 %v7893_v19, %v1125_v51  ;;  %v6437_v63 = vpop.eup %6436 }
 0x2ec   :  { %v1318_v2 = vadd.f32 1.0, %v6435_v17  ;;  %v7996_v10 = vadd.f32 %v7902_v55, %v1160_v61  ;;  %v1319_v48 = vadd.f32 1.0, %v6437_v63  ;;  %v1284_v6 = vmul.f32 1.442695, %v1228_v54 }
 0x2ed   :  { %v1229_v37 = vmin.f32 %v7987_v25, 20.0  ;;  %v7999_v28 = vadd.f32 %v7902_v55, %v1161_v22  ;;  %v8002_v59 = vadd.f32 %v7902_v55, %v1162_v30  ;;  %v8005_v27 = vadd.f32 %v7902_v55, %v1163_v57  ;;  %v6439_v11 = vpop.eup %6438 }
 0x2ee   :  { %v1350_v32 = vmul.f32 %v1318_v2, %v1318_v2  ;;  %v1230_v53 = vmin.f32 %v7996_v10, 20.0  ;;  %v6441_v33 = vpop.eup %6440  ;;  %v1412_v21 = vmul.f32 %v5482_v56, %v7836_v41  ;;  %v1413_v42 = vmul.f32 %v5483_v5, %v7849_v3  ;;  %v10105_v3 = vld [vmem:[#allocation9_spill] sm:$0xff] }
 0x2ef   :  { %v1286_v23 = vmul.f32 1.442695, %v1229_v37  ;;  %v1231_v36 = vmin.f32 %v7999_v28, 20.0  ;;  %v1351_v49 = vmul.f32 %v1319_v48, %v1319_v48  ;;  %6452 = vpow2.f32 %v1284_v6  ;;  %v10107_v37 = vld [vmem:[#allocation10_spill] sm:$0xff] }
 0x2f0   :  { %v6443_v43 = vpop.eup %6442  ;;  %v1446_v62 = vadd.f32 1.0, %v1350_v32  ;;  %v1232_v31 = vmin.f32 %v8002_v59, 20.0  ;;  %v1233_v7 = vmin.f32 %v8005_v27, 20.0  ;;  %v1508_v58 = vmul.f32 %v6441_v33, %v1412_v21 }
 0x2f1   :  { %6454 = vpow2.f32 %v1286_v23  ;;  %v6445_v26 = vpop.eup %6444  ;;  %v1509_v9 = vmul.f32 %v6443_v43, %v1413_v42  ;;  %v1447_v40 = vadd.f32 1.0, %v1351_v49  ;;  %v1288_v29 = vmul.f32 1.442695, %v1230_v53 }
 0x2f2   :  { %v6447_v14 = vpop.eup %6446  ;;  %6456 = vrcp.f32 %v1446_v62  ;;  %v1320_v46 = vadd.f32 1.0, %v6445_v26  ;;  %v1290_v41 = vmul.f32 1.442695, %v1231_v36  ;;  %v1030_v12 = vsub.f32 %v10105_v3, %v7861_v20 }
 0x2f3   :  { %v6449_v56 = vpop.eup %6448  ;;  %v8015_v1 = vpack.c.bf16 %v1509_v9, %v1508_v58  ;;  %6458 = vrcp.f32 %v1447_v40  ;;  %v1321_v0 = vadd.f32 1.0, %v6447_v14  ;;  %v1292_v61 = vmul.f32 1.442695, %v1232_v31 }
 0x2f4   :  { %v6451_v18 = vpop.eup %6450  ;;  %v1352_v35 = vmul.f32 %v1320_v46, %v1320_v46  ;;  %v1322_v51 = vadd.f32 1.0, %v6449_v56  ;;  %6460 = vpow2.f32 %v1288_v29  ;;  %v1294_v5 = vmul.f32 1.442695, %v1233_v7 }
 0x2f5   :  { %10106 = vst [vmem:[#allocation9_spill] sm:$0xff] %v8015_v1  ;;  %5973 = vmatprep.mubr.bf16.mxu0 %v8015_v1  ;;  %v1353_v22 = vmul.f32 %v1321_v0, %v1321_v0  ;;  %v1323_v17 = vadd.f32 1.0, %v6451_v18  ;;  %6462 = vpow2.f32 %v1290_v41  ;;  %v1126_v20 = vmul.f32 %v7960_v4, %v1030_v12 }
 0x2f6   :  { %v1448_v54 = vadd.f32 1.0, %v1352_v35  ;;  %v1354_v30 = vmul.f32 %v1322_v51, %v1322_v51  ;;  %6464 = vpow2.f32 %v1292_v61  ;;  %v5484_v57 = vadd.f32 -1.0, %v1350_v32 }
 0x2f7   :  { %v1449_v63 = vadd.f32 1.0, %v1353_v22  ;;  %v1355_v2 = vmul.f32 %v1323_v17, %v1323_v17  ;;  %6466 = vpow2.f32 %v1294_v5  ;;  %v1031_v48 = vsub.f32 %v10107_v37, %v7870_v13 }
 0x2f8   :  { %v5485_v6 = vadd.f32 -1.0, %v1351_v49  ;;  %6468 = vrcp.f32 %v1448_v54  ;;  %v1450_v23 = vadd.f32 1.0, %v1354_v30  ;;  %v1414_v43 = vmul.f32 %v5484_v57, %v7905_v38 }
 0x2f9   :  { %v6453_v53 = vpop.eup %6452  ;;  %6470 = vrcp.f32 %v1449_v63  ;;  %v1451_v36 = vadd.f32 1.0, %v1355_v2  ;;  %v1127_v42 = vmul.f32 %v6439_v11, %v1031_v48  ;;  %v1164_v32 = vmul.f32 %v7893_v19, %v1126_v20 }
 0x2fa   :  { %6472 = vrcp.f32 %v1450_v23  ;;  %v1324_v21 = vadd.f32 1.0, %v6453_v53  ;;  %v1415_v31 = vmul.f32 %v5485_v6, %v7908_v24  ;;  %v5486_v13 = vadd.f32 -1.0, %v1352_v35 }
 0x2fb   :  { %v6455_v33 = vpop.eup %6454  ;;  %6474 = vrcp.f32 %v1451_v36  ;;  %v1165_v7 = vmul.f32 %v7893_v19, %v1127_v42  ;;  %v5487_v58 = vadd.f32 -1.0, %v1353_v22  ;;  %v5488_v9 = vadd.f32 -1.0, %v1354_v30 }
 0x2fc   :  { %v1325_v4 = vadd.f32 1.0, %v6455_v33  ;;  %v6457_v62 = vpop.eup %6456  ;;  %v1356_v49 = vmul.f32 %v1324_v21, %v1324_v21  ;;  %v8026_v29 = vadd.f32 %v7902_v55, %v1164_v32  ;;  %v5489_v46 = vadd.f32 -1.0, %v1355_v2 }
 0x2fd   :  { %v6459_v26 = vpop.eup %6458  ;;  %v1510_v38 = vmul.f32 %v6457_v62, %v1414_v43  ;;  %v8029_v24 = vadd.f32 %v7902_v55, %v1165_v7  ;;  %v1416_v35 = vmul.f32 %v5486_v13, %v7935_v52  ;;  %v1417_v22 = vmul.f32 %v5487_v58, %v7940_v44 }
 0x2fe   :  { %v1357_v40 = vmul.f32 %v1325_v4, %v1325_v4  ;;  %v6461_v11 = vpop.eup %6460  ;;  %v1511_v14 = vmul.f32 %v6459_v26, %v1415_v31  ;;  %v1452_v41 = vadd.f32 1.0, %v1356_v49  ;;  %v1234_v19 = vmin.f32 %v8026_v29, 20.0 }
 0x2ff   :  { %v6463_v56 = vpop.eup %6462  ;;  %v1326_v12 = vadd.f32 1.0, %v6461_v11  ;;  %v1418_v55 = vmul.f32 %v5488_v9, %v7946_v15  ;;  %v1419_v30 = vmul.f32 %v5489_v46, %v7954_v47  ;;  %v1235_v37 = vmin.f32 %v8029_v24, 20.0 }
 0x300   :  { %v1453_v3 = vadd.f32 1.0, %v1357_v40  ;;  %v6465_v0 = vpop.eup %6464  ;;  %v8032_v18 = vpack.c.bf16 %v1511_v14, %v1510_v38  ;;  %6476 = vrcp.f32 %v1452_v41  ;;  %v1327_v51 = vadd.f32 1.0, %v6463_v56 }
 0x301   :  { %v6467_v61 = vpop.eup %6466  ;;  %v1358_v17 = vmul.f32 %v1326_v12, %v1326_v12  ;;  %v1328_v5 = vadd.f32 1.0, %v6465_v0  ;;  %v1296_v48 = vmul.f32 1.442695, %v1234_v19  ;;  %v5490_v21 = vadd.f32 -1.0, %v1356_v49 }
 0x302   :  { %10108 = vst [vmem:[#allocation10_spill] sm:$0xff] %v8032_v18  ;;  %6478 = vrcp.f32 %v1453_v3  ;;  %v6469_v54 = vpop.eup %6468  ;;  %5974 = vmatmul.mubr.bf16.gmra.mrb[48].mxu0 %v8032_v18  ;;  %v1359_v20 = vmul.f32 %v1327_v51, %v1327_v51  ;;  %v1329_v57 = vadd.f32 1.0, %v6467_v61  ;;  %v5491_v42 = vadd.f32 -1.0, %v1357_v40 }
 0x303   :  { %v6471_v63 = vpop.eup %6470  ;;  %v1454_v2 = vadd.f32 1.0, %v1358_v17  ;;  %v1360_v52 = vmul.f32 %v1328_v5, %v1328_v5  ;;  %v1512_v44 = vmul.f32 %v6469_v54, %v1416_v35  ;;  %v1298_v31 = vmul.f32 1.442695, %v1235_v37 }
 0x304   :  { %v6473_v6 = vpop.eup %6472  ;;  %v1513_v23 = vmul.f32 %v6471_v63, %v1417_v22  ;;  %v1455_v53 = vadd.f32 1.0, %v1359_v20  ;;  %v1361_v36 = vmul.f32 %v1329_v57, %v1329_v57  ;;  %v1420_v49 = vmul.f32 %v5490_v21, %v7980_v60 }
 0x305   :  { %v6475_v33 = vpop.eup %6474  ;;  %6480 = vrcp.f32 %v1454_v2  ;;  %v1514_v47 = vmul.f32 %v6473_v6, %v1418_v55  ;;  %v1456_v4 = vadd.f32 1.0, %v1360_v52  ;;  %v1421_v7 = vmul.f32 %v5491_v42, %v7987_v25 }
 0x306   :  { %v8040_v15 = vpack.c.bf16 %v1513_v23, %v1512_v44  ;;  %v1515_v43 = vmul.f32 %v6475_v33, %v1419_v30  ;;  %6482 = vrcp.f32 %v1455_v53  ;;  %v1457_v32 = vadd.f32 1.0, %v1361_v36 }
 0x307   :  { %6484 = vpow2.f32 %v1296_v48  ;;  %v5492_v58 = vadd.f32 -1.0, %v1358_v17  ;;  %v5493_v9 = vadd.f32 -1.0, %v1359_v20  ;;  %v5494_v56 = vadd.f32 -1.0, %v1360_v52 }
 0x308   :  { %10109 = vst [vmem:[#allocation15_spill] sm:$0xff] %v8040_v15  ;;  %5977 = vmatprep.mubr.bf16.mxu0 %v8040_v15  ;;  %v8043_v62 = vpack.c.bf16 %v1515_v43, %v1514_v47  ;;  %6486 = vrcp.f32 %v1456_v4  ;;  %v5495_v3 = vadd.f32 -1.0, %v1361_v36 }
 0x309   :  { %6488 = vrcp.f32 %v1457_v32  ;;  %v1422_v46 = vmul.f32 %v5492_v58, %v7996_v10  ;;  %v1423_v41 = vmul.f32 %v5493_v9, %v7999_v28  ;;  %v1424_v51 = vmul.f32 %v5494_v56, %v8002_v59 }
 0x30a   :  { %10110 = vst [vmem:[#allocation16_spill] sm:$0xff] %v8043_v62  ;;  %v6477_v13 = vpop.eup %6476  ;;  %5978 = vmatmul.mubr.bf16.gmra.mrb[52].mxu0 %v8043_v62  ;;  %6490 = vpow2.f32 %v1298_v31  ;;  %v1425_v61 = vmul.f32 %v5495_v3, %v8005_v27 }
 0x30b   :  { %v1516_v40 = vmul.f32 %v6477_v13, %v1420_v49 }
 0x30c   :  { %v6479_v26 = vpop.eup %6478 }
 0x30d   :  { %v1517_v11 = vmul.f32 %v6479_v26, %v1421_v7 }
 0x30f   :  { %v8048_v38 = vpack.c.bf16 %v1517_v11, %v1516_v40  ;;  %v6481_v14 = vpop.eup %6480 }
 0x310   :  { %v6483_v12 = vpop.eup %6482  ;;  %v1518_v60 = vmul.f32 %v6481_v14, %v1422_v46 }
 0x311   :  { %10111 = vst [vmem:[#allocation17_spill] sm:$0xff] %v8048_v38  ;;  %5981 = vmatprep.mubr.bf16.mxu0 %v8048_v38  ;;  %v1519_v25 = vmul.f32 %v6483_v12, %v1423_v41  ;;  %v6485_v19 = vpop.eup %6484 }
 0x312   :  { %v6487_v0 = vpop.eup %6486  ;;  %v1330_v22 = vadd.f32 1.0, %v6485_v19 }
 0x313   :  { %v8053_v35 = vpack.c.bf16 %v1519_v25, %v1518_v60  ;;  %v6489_v17 = vpop.eup %6488  ;;  %v1520_v28 = vmul.f32 %v6487_v0, %v1424_v51 }
 0x314   :  { %v6491_v10 = vpop.eup %6490  ;;  %v1521_v5 = vmul.f32 %v6489_v17, %v1425_v61  ;;  %v1362_v54 = vmul.f32 %v1330_v22, %v1330_v22 }
 0x315   :  { %10112 = vst [vmem:[#allocation18_spill] sm:$0xff] %v8053_v35  ;;  %5982 = vmatmul.mubr.bf16.gmra.mrb[56].mxu0 %v8053_v35  ;;  %v1331_v55 = vadd.f32 1.0, %v6491_v10 }
 0x316   :  { %v8058_v30 = vpack.c.bf16 %v1521_v5, %v1520_v28  ;;  %v1458_v20 = vadd.f32 1.0, %v1362_v54  ;;  %v5496_v59 = vadd.f32 -1.0, %v1362_v54 }
 0x317   :  { %v1363_v57 = vmul.f32 %v1331_v55, %v1331_v55 }
 0x318   :  { %10113 = vst [vmem:[#allocation19_spill] sm:$0xff] %v8058_v30  ;;  %5985 = vmatprep.mubr.bf16.mxu0 %v8058_v30  ;;  %6492 = vrcp.f32 %v1458_v20  ;;  %v1426_v52 = vmul.f32 %v5496_v59, %v8026_v29 }
 0x319   :  { %v1459_v63 = vadd.f32 1.0, %v1363_v57  ;;  %v5497_v27 = vadd.f32 -1.0, %v1363_v57 }
 0x31b   :  { %6494 = vrcp.f32 %v1459_v63  ;;  %v1427_v37 = vmul.f32 %v5497_v27, %v8029_v24 }
 0x322   :  { %v6493_v2 = vpop.eup %6492 }
 0x323   :  { %v1522_v6 = vmul.f32 %v6493_v2, %v1426_v52 }
 0x325   :  { %v6495_v48 = vpop.eup %6494 }
 0x326   :  { %v1523_v44 = vmul.f32 %v6495_v48, %v1427_v37 }
 0x328   :  { %v8063_v23 = vpack.c.bf16 %v1523_v44, %v1522_v6  ;;  %v8085_v6 = vld [vmem:[%s10015_s8] ss:$0 sm:$0xff] }
 0x32a   :  { %10114 = vst [vmem:[#allocation20_spill] sm:$0xff] %v8063_v23  ;;  %5986 = vmatmul.mubr.bf16.gmra.mrb[60].mxu0 %v8063_v23 }
 0x375   :  { %v5959_v53 = vpop.f32.mrb[32].mxu0 }
 0x376   :  { %v1638_v36 = vpop.f32.mrb[33].mxu0 }
 0x377   :  { %v5960_v33 = vpop.f32.mrb[34].mxu0 }
 0x378   :  { %v1766_v21 = vpack.c.bf16 %v5960_v33, %v5959_v53  ;;  %v1641_v42 = vpop.f32.mrb[35].mxu0 }
 0x379   :  { %v1765_v47 = vpack.c.bf16 %v1641_v42, %v1638_v36 }
 0x37b   :  { %5997 = vmatprep.mubr.msk.bf16.mxu1 %vm1820_vm1, %v1765_v47 }
 0x37c   :  { %5998 = vmatmul.mubr.msk.bf16.vlgmr.msra.gmra.mrb[96].mxu1 %vm1820_vm1, %v1766_v21 }
 0x38a   :  { %v5963_v29 = vpop.f32.mrb[36].mxu0 }
 0x38b   :  { %v1654_v24 = vpop.f32.mrb[37].mxu0 }
 0x38c   :  { %v5964_v43 = vpop.f32.mrb[38].mxu0 }
 0x38d   :  { %v1768_v4 = vpack.c.bf16 %v5964_v43, %v5963_v29  ;;  %v1657_v32 = vpop.f32.mrb[39].mxu0 }
 0x38e   :  { %v1767_v31 = vpack.c.bf16 %v1657_v32, %v1654_v24 }
 0x390   :  { %6001 = vmatprep.mubr.msk.bf16.mxu1 %vm1820_vm1, %v1767_v31 }
 0x391   :  { %6002 = vmatmul.mubr.msk.bf16.gmra.mrb[100].mxu1 %vm1820_vm1, %v1768_v4 }
 0x3a6   :  { %v5967_v13 = vpop.f32.mrb[40].mxu0 }
 0x3a7   :  { %v1670_v49 = vpop.f32.mrb[41].mxu0 }
 0x3a8   :  { %v5968_v7 = vpop.f32.mrb[42].mxu0 }
 0x3a9   :  { %v1770_v26 = vpack.c.bf16 %v5968_v7, %v5967_v13  ;;  %v1673_v58 = vpop.f32.mrb[43].mxu0 }
 0x3aa   :  { %v1769_v9 = vpack.c.bf16 %v1673_v58, %v1670_v49 }
 0x3ac   :  { %6005 = vmatprep.mubr.msk.bf16.mxu1 %vm1820_vm1, %v1769_v9 }
 0x3ad   :  { %6006 = vmatmul.mubr.msk.bf16.gmra.mrb[104].mxu1 %vm1820_vm1, %v1770_v26 }
 0x3bb   :  { %v5971_v40 = vpop.f32.mrb[44].mxu0 }
 0x3bc   :  { %v1686_v11 = vpop.f32.mrb[45].mxu0 }
 0x3bd   :  { %v5972_v14 = vpop.f32.mrb[46].mxu0 }
 0x3be   :  { %v1772_v46 = vpack.c.bf16 %v5972_v14, %v5971_v40  ;;  %v1689_v41 = vpop.f32.mrb[47].mxu0 }
 0x3bf   :  { %v1771_v56 = vpack.c.bf16 %v1689_v41, %v1686_v11 }
 0x3c1   :  { %6009 = vmatprep.mubr.msk.bf16.mxu1 %vm1820_vm1, %v1771_v56 }
 0x3c2   :  { %6010 = vmatmul.mubr.msk.bf16.gmra.mrb[108].mxu1 %vm1820_vm1, %v1772_v46 }
 0x3d5   :  { %v5975_v3 = vpop.f32.mrb[48].mxu0 }
 0x3d6   :  { %v1702_v12 = vpop.f32.mrb[49].mxu0 }
 0x3d7   :  { %v5976_v60 = vpop.f32.mrb[50].mxu0 }
 0x3d8   :  { %v1774_v25 = vpack.c.bf16 %v5976_v60, %v5975_v3  ;;  %v1705_v19 = vpop.f32.mrb[51].mxu0 }
 0x3d9   :  { %v1773_v0 = vpack.c.bf16 %v1705_v19, %v1702_v12 }
 0x3db   :  { %6013 = vmatprep.mubr.msk.bf16.mxu1 %vm1820_vm1, %v1773_v0 }
 0x3dc   :  { %6014 = vmatmul.mubr.msk.bf16.gmra.mrb[112].mxu1 %vm1820_vm1, %v1774_v25 }
 0x3dd   :  { %v5979_v51 = vpop.f32.mrb[52].mxu0 }
 0x3de   :  { %v1718_v61 = vpop.f32.mrb[53].mxu0 }
 0x3df   :  { %v5980_v22 = vpop.f32.mrb[54].mxu0 }
 0x3e0   :  { %v1776_v17 = vpack.c.bf16 %v5980_v22, %v5979_v51  ;;  %v1721_v10 = vpop.f32.mrb[55].mxu0 }
 0x3e1   :  { %v1775_v28 = vpack.c.bf16 %v1721_v10, %v1718_v61 }
 0x3e3   :  { %6017 = vmatprep.mubr.msk.bf16.mxu1 %vm1820_vm1, %v1775_v28 }
 0x3e4   :  { %6018 = vmatmul.mubr.msk.bf16.gmra.mrb[116].mxu1 %vm1820_vm1, %v1776_v17 }
 0x3e8   :  { %v5983_v5 = vpop.f32.mrb[56].mxu0 }
 0x3e9   :  { %v1734_v54 = vpop.f32.mrb[57].mxu0 }
 0x3ea   :  { %v5984_v55 = vpop.f32.mrb[58].mxu0 }
 0x3eb   :  { %v1778_v20 = vpack.c.bf16 %v5984_v55, %v5983_v5  ;;  %v1737_v57 = vpop.f32.mrb[59].mxu0 }
 0x3ec   :  { %v1777_v63 = vpack.c.bf16 %v1737_v57, %v1734_v54 }
 0x3ee   :  { %6021 = vmatprep.mubr.msk.bf16.mxu1 %vm1820_vm1, %v1777_v63 }
 0x3ef   :  { %6022 = vmatmul.mubr.msk.bf16.gmra.mrb[120].mxu1 %vm1820_vm1, %v1778_v20  ;;  %v6269_v20 = vld [vmem:[%s10018_s11] sm:$0xff]  }
 0x3f0   :  { %6029 = vmatprep.subr.bf16.mxu0 %v6269_v20 }
 0x3f1   :  { %6030 = vmatpush3.bf16.msra.mxu0 %v6269_v20  ;;  %v6270_v20 = vld [vmem:[%s10018_s11 + $0x8] sm:$0xff]  }
 0x3f2   :  { %6031 = vmatprep.subr.bf16.mxu0 %v6270_v20 }
 0x3f5   :  { %6032 = vmatpush3.bf16.msra.mxu0 %v6270_v20 }
 0x3fd   :  { %v5987_v59 = vpop.f32.mrb[60].mxu0 }
 0x3fe   :  { %v1750_v27 = vpop.f32.mrb[61].mxu0 }
 0x3ff   :  { %v5988_v2 = vpop.f32.mrb[62].mxu0 }
 0x400   :  { %v1780_v52 = vpack.c.bf16 %v5988_v2, %v5987_v59  ;;  %v1753_v37 = vpop.f32.mrb[63].mxu0 }
 0x401   :  { %v1779_v48 = vpack.c.bf16 %v1753_v37, %v1750_v27 }
 0x403   :  { %6025 = vmatprep.mubr.msk.bf16.mxu1 %vm1820_vm1, %v1779_v48 }
 0x404   :  { %6026 = vmatmul.mubr.msk.bf16.gmra.mrb[124].mxu1 %vm1820_vm1, %v1780_v52 }
 0x44f   :  { %v5999_v44 = vpop.f32.mrb[96].mxu1 }
 0x450   :  { %v8088_v53 = vadd.f32 %v5999_v44, %v8085_v6  ;;  %v1903_v36 = vpop.f32.mrb[97].mxu1 }
 0x451   :  { %v6000_v33 = vpop.f32.mrb[98].mxu1  ;;  %v8091_v21 = vadd.f32 %v8085_v6, %v1903_v36 }
 0x452   :  { %v8094_v42 = vadd.f32 %v6000_v33, %v8085_v6  ;;  %v1906_v47 = vpop.f32.mrb[99].mxu1  ;;  %v2038_v29 = vsel %vm139_vm0, %v8088_v53, 0.0  ;;  %v2163_v7 = vmul.f32 %v8088_v53, %v8088_v53 }
 0x453   :  { %2039 = vadd.xlane.f32.xlu0 %v2038_v29  ;;  %v8099_v24 = vadd.f32 %v8085_v6, %v1906_v47  ;;  %v2032_v4 = vsel %vm139_vm0, %v8091_v21, 0.0  ;;  %v2161_v32 = vmul.f32 %v8091_v21, %v8091_v21 }
 0x454   :  { %v2041_v43 = vsel %vm139_vm0, %v8094_v42, 0.0  ;;  %v2164_v58 = vmul.f32 %v8094_v42, %v8094_v42  ;;  %v2199_v9 = vsel %vm139_vm0, %v2163_v7, 0.0 }
 0x455   :  { %2042 = vadd.xlane.f32.xlu1 %v2041_v43  ;;  %v2035_v31 = vsel %vm139_vm0, %v8099_v24, 0.0  ;;  %v2162_v13 = vmul.f32 %v8099_v24, %v8099_v24  ;;  %v2193_v49 = vsel %vm139_vm0, %v2161_v32, 0.0 }
 0x456   :  { %v2202_v40 = vsel %vm139_vm0, %v2164_v58, 0.0 }
 0x457   :  { %2033 = vadd.xlane.f32.xlu0 %v2032_v4  ;;  %v2196_v26 = vsel %vm139_vm0, %v2162_v13, 0.0 }
 0x459   :  { %2036 = vadd.xlane.f32.xlu1 %v2035_v31 }
 0x45b   :  { %2194 = vadd.xlane.f32.xlu0 %v2193_v49 }
 0x45d   :  { %2197 = vadd.xlane.f32.xlu1 %v2196_v26 }
 0x45f   :  { %2200 = vadd.xlane.f32.xlu0 %v2199_v9 }
 0x461   :  { %2203 = vadd.xlane.f32.xlu1 %v2202_v40 }
 0x464   :  { %v6003_v11 = vpop.f32.mrb[100].mxu1 }
 0x465   :  { %v8120_v14 = vadd.f32 %v6003_v11, %v8085_v6  ;;  %v1919_v46 = vpop.f32.mrb[101].mxu1 }
 0x466   :  { %v6004_v41 = vpop.f32.mrb[102].mxu1  ;;  %v8123_v56 = vadd.f32 %v8085_v6, %v1919_v46 }
 0x467   :  { %v8126_v3 = vadd.f32 %v6004_v41, %v8085_v6  ;;  %v1922_v12 = vpop.f32.mrb[103].mxu1  ;;  %v2050_v60 = vsel %vm139_vm0, %v8120_v14, 0.0  ;;  %v2167_v10 = vmul.f32 %v8120_v14, %v8120_v14 }
 0x468   :  { %2051 = vadd.xlane.f32.xlu0 %v2050_v60  ;;  %v8131_v25 = vadd.f32 %v8085_v6, %v1922_v12  ;;  %v2044_v0 = vsel %vm139_vm0, %v8123_v56, 0.0  ;;  %v2165_v51 = vmul.f32 %v8123_v56, %v8123_v56 }
 0x469   :  { %v2053_v19 = vsel %vm139_vm0, %v8126_v3, 0.0  ;;  %v2168_v5 = vmul.f32 %v8126_v3, %v8126_v3  ;;  %v2211_v54 = vsel %vm139_vm0, %v2167_v10, 0.0 }
 0x46a   :  { %2054 = vadd.xlane.f32.xlu1 %v2053_v19  ;;  %v2047_v61 = vsel %vm139_vm0, %v8131_v25, 0.0  ;;  %v2166_v22 = vmul.f32 %v8131_v25, %v8131_v25  ;;  %v2205_v17 = vsel %vm139_vm0, %v2165_v51, 0.0 }
 0x46b   :  { %v2214_v55 = vsel %vm139_vm0, %v2168_v5, 0.0 }
 0x46c   :  { %2045 = vadd.xlane.f32.xlu0 %v2044_v0  ;;  %v2208_v28 = vsel %vm139_vm0, %v2166_v22, 0.0 }
 0x46e   :  { %2048 = vadd.xlane.f32.xlu1 %v2047_v61 }
 0x470   :  { %2206 = vadd.xlane.f32.xlu0 %v2205_v17 }
 0x472   :  { %2209 = vadd.xlane.f32.xlu1 %v2208_v28 }
 0x474   :  { %2212 = vadd.xlane.f32.xlu0 %v2211_v54 }
 0x476   :  { %2215 = vadd.xlane.f32.xlu1 %v2214_v55 }
 0x480   :  { %v6007_v57 = vpop.f32.mrb[104].mxu1 }
 0x481   :  { %v8155_v63 = vadd.f32 %v6007_v57, %v8085_v6  ;;  %v1935_v59 = vpop.f32.mrb[105].mxu1 }
 0x482   :  { %v6008_v27 = vpop.f32.mrb[106].mxu1  ;;  %v8158_v2 = vadd.f32 %v8085_v6, %v1935_v59 }
 0x483   :  { %v8161_v52 = vadd.f32 %v6008_v27, %v8085_v6  ;;  %v1938_v37 = vpop.f32.mrb[107].mxu1  ;;  %v2062_v48 = vsel %vm139_vm0, %v8155_v63, 0.0  ;;  %v2171_v32 = vmul.f32 %v8155_v63, %v8155_v63 }
 0x484   :  { %2063 = vadd.xlane.f32.xlu0 %v2062_v48  ;;  %v8166_v44 = vadd.f32 %v8085_v6, %v1938_v37  ;;  %v2056_v33 = vsel %vm139_vm0, %v8158_v2, 0.0  ;;  %v2169_v47 = vmul.f32 %v8158_v2, %v8158_v2 }
 0x485   :  { %v2065_v36 = vsel %vm139_vm0, %v8161_v52, 0.0  ;;  %v2172_v13 = vmul.f32 %v8161_v52, %v8161_v52  ;;  %v2223_v49 = vsel %vm139_vm0, %v2171_v32, 0.0 }
 0x486   :  { %2066 = vadd.xlane.f32.xlu1 %v2065_v36  ;;  %v2059_v29 = vsel %vm139_vm0, %v8166_v44, 0.0  ;;  %v2170_v43 = vmul.f32 %v8166_v44, %v8166_v44  ;;  %v2217_v4 = vsel %vm139_vm0, %v2169_v47, 0.0 }
 0x487   :  { %v2226_v7 = vsel %vm139_vm0, %v2172_v13, 0.0 }
 0x488   :  { %2057 = vadd.xlane.f32.xlu0 %v2056_v33  ;;  %v2220_v31 = vsel %vm139_vm0, %v2170_v43, 0.0 }
 0x48a   :  { %2060 = vadd.xlane.f32.xlu1 %v2059_v29 }
 0x48c   :  { %2218 = vadd.xlane.f32.xlu0 %v2217_v4 }
 0x48e   :  { %2221 = vadd.xlane.f32.xlu1 %v2220_v31 }
 0x490   :  { %2224 = vadd.xlane.f32.xlu0 %v2223_v49 }
 0x492   :  { %2227 = vadd.xlane.f32.xlu1 %v2226_v7 }
 0x495   :  { %v6011_v26 = vpop.f32.mrb[108].mxu1 }
 0x496   :  { %v8187_v58 = vadd.f32 %v6011_v26, %v8085_v6  ;;  %v1951_v9 = vpop.f32.mrb[109].mxu1 }
 0x497   :  { %v6012_v40 = vpop.f32.mrb[110].mxu1  ;;  %v8190_v11 = vadd.f32 %v8085_v6, %v1951_v9 }
 0x498   :  { %v8193_v46 = vadd.f32 %v6012_v40, %v8085_v6  ;;  %v1954_v41 = vpop.f32.mrb[111].mxu1  ;;  %v2074_v12 = vsel %vm139_vm0, %v8187_v58, 0.0  ;;  %v2175_v10 = vmul.f32 %v8187_v58, %v8187_v58 }
 0x499   :  { %2075 = vadd.xlane.f32.xlu0 %v2074_v12  ;;  %v8198_v60 = vadd.f32 %v8085_v6, %v1954_v41  ;;  %v2068_v0 = vsel %vm139_vm0, %v8190_v11, 0.0  ;;  %v2173_v51 = vmul.f32 %v8190_v11, %v8190_v11 }
 0x49a   :  { %v2077_v19 = vsel %vm139_vm0, %v8193_v46, 0.0  ;;  %v2176_v5 = vmul.f32 %v8193_v46, %v8193_v46  ;;  %v2235_v54 = vsel %vm139_vm0, %v2175_v10, 0.0 }
 0x49b   :  { %2078 = vadd.xlane.f32.xlu1 %v2077_v19  ;;  %v2071_v61 = vsel %vm139_vm0, %v8198_v60, 0.0  ;;  %v2174_v22 = vmul.f32 %v8198_v60, %v8198_v60  ;;  %v2229_v17 = vsel %vm139_vm0, %v2173_v51, 0.0 }
 0x49c   :  { %v2238_v55 = vsel %vm139_vm0, %v2176_v5, 0.0 }
 0x49d   :  { %2069 = vadd.xlane.f32.xlu0 %v2068_v0  ;;  %v2232_v28 = vsel %vm139_vm0, %v2174_v22, 0.0 }
 0x49f   :  { %2072 = vadd.xlane.f32.xlu1 %v2071_v61 }
 0x4a1   :  { %2230 = vadd.xlane.f32.xlu0 %v2229_v17 }
 0x4a3   :  { %2233 = vadd.xlane.f32.xlu1 %v2232_v28 }
 0x4a5   :  { %2236 = vadd.xlane.f32.xlu0 %v2235_v54 }
 0x4a7   :  { %2239 = vadd.xlane.f32.xlu1 %v2238_v55 }
 0x4af   :  { %v6015_v57 = vpop.f32.mrb[112].mxu1 }
 0x4b0   :  { %v8222_v59 = vadd.f32 %v6015_v57, %v8085_v6  ;;  %v1967_v27 = vpop.f32.mrb[113].mxu1 }
 0x4b1   :  { %v6016_v37 = vpop.f32.mrb[114].mxu1  ;;  %v8225_v48 = vadd.f32 %v8085_v6, %v1967_v27 }
 0x4b2   :  { %v8228_v36 = vadd.f32 %v6016_v37, %v8085_v6  ;;  %v1970_v33 = vpop.f32.mrb[115].mxu1  ;;  %v2086_v47 = vsel %vm139_vm0, %v8222_v59, 0.0  ;;  %v2179_v40 = vmul.f32 %v8222_v59, %v8222_v59 }
 0x4b3   :  { %2087 = vadd.xlane.f32.xlu0 %v2086_v47  ;;  %v8233_v29 = vadd.f32 %v8085_v6, %v1970_v33  ;;  %v2080_v4 = vsel %vm139_vm0, %v8225_v48, 0.0  ;;  %v2177_v32 = vmul.f32 %v8225_v48, %v8225_v48 }
 0x4b4   :  { %v2089_v43 = vsel %vm139_vm0, %v8228_v36, 0.0  ;;  %v2180_v0 = vmul.f32 %v8228_v36, %v8228_v36  ;;  %v2247_v51 = vsel %vm139_vm0, %v2179_v40, 0.0 }
 0x4b5   :  { %2090 = vadd.xlane.f32.xlu1 %v2089_v43  ;;  %v2083_v13 = vsel %vm139_vm0, %v8233_v29, 0.0  ;;  %v2178_v49 = vmul.f32 %v8233_v29, %v8233_v29  ;;  %v2241_v9 = vsel %vm139_vm0, %v2177_v32, 0.0 }
 0x4b6   :  { %v2250_v22 = vsel %vm139_vm0, %v2180_v0, 0.0 }
 0x4b7   :  { %2081 = vadd.xlane.f32.xlu0 %v2080_v4  ;;  %v6019_v31 = vpop.f32.mrb[116].mxu1  ;;  %v2244_v12 = vsel %vm139_vm0, %v2178_v49, 0.0 }
 0x4b8   :  { %v1983_v7 = vpop.f32.mrb[117].mxu1  ;;  %v8250_v19 = vadd.f32 %v6019_v31, %v8085_v6 }
 0x4b9   :  { %2084 = vadd.xlane.f32.xlu1 %v2083_v13  ;;  %v6020_v26 = vpop.f32.mrb[118].mxu1  ;;  %v8262_v10 = vadd.f32 %v8085_v6, %v1983_v7 }
 0x4ba   :  { %v1986_v41 = vpop.f32.mrb[119].mxu1  ;;  %v8256_v61 = vadd.f32 %v6020_v26, %v8085_v6  ;;  %v2098_v17 = vsel %vm139_vm0, %v8250_v19, 0.0  ;;  %v2183_v4 = vmul.f32 %v8250_v19, %v8250_v19 }
 0x4bb   :  { %2242 = vadd.xlane.f32.xlu0 %v2241_v9  ;;  %v8267_v55 = vadd.f32 %v8085_v6, %v1986_v41  ;;  %v2092_v27 = vsel %vm139_vm0, %v8262_v10, 0.0  ;;  %v2181_v37 = vmul.f32 %v8262_v10, %v8262_v10 }
 0x4bc   :  { %v2101_v28 = vsel %vm139_vm0, %v8256_v61, 0.0  ;;  %v2184_v13 = vmul.f32 %v8256_v61, %v8256_v61  ;;  %v2259_v49 = vsel %vm139_vm0, %v2183_v4, 0.0 }
 0x4bd   :  { %2245 = vadd.xlane.f32.xlu1 %v2244_v12  ;;  %v2095_v33 = vsel %vm139_vm0, %v8267_v55, 0.0  ;;  %v2182_v47 = vmul.f32 %v8267_v55, %v8267_v55  ;;  %v2253_v43 = vsel %vm139_vm0, %v2181_v37, 0.0 }
 0x4be   :  { %v2262_v26 = vsel %vm139_vm0, %v2184_v13, 0.0 }
 0x4bf   :  { %2248 = vadd.xlane.f32.xlu0 %v2247_v51  ;;  %v2256_v32 = vsel %vm139_vm0, %v2182_v47, 0.0 }
 0x4c1   :  { %2251 = vadd.xlane.f32.xlu1 %v2250_v22 }
 0x4c2   :  { %v6023_v5 = vpop.f32.mrb[120].mxu1 }
 0x4c3   :  { %2099 = vadd.xlane.f32.xlu0 %v2098_v17  ;;  %v1999_v54 = vpop.f32.mrb[121].mxu1  ;;  %v8282_v31 = vadd.f32 %v6023_v5, %v8085_v6 }
 0x4c4   :  { %v6024_v20 = vpop.f32.mrb[122].mxu1  ;;  %v8294_v40 = vadd.f32 %v8085_v6, %v1999_v54 }
 0x4c5   :  { %2102 = vadd.xlane.f32.xlu1 %v2101_v28  ;;  %v2002_v57 = vpop.f32.mrb[123].mxu1  ;;  %v8288_v7 = vadd.f32 %v6024_v20, %v8085_v6  ;;  %v2110_v9 = vsel %vm139_vm0, %v8282_v31, 0.0  ;;  %v2187_v20 = vmul.f32 %v8282_v31, %v8282_v31 }
 0x4c6   :  { %v8299_v12 = vadd.f32 %v8085_v6, %v2002_v57  ;;  %v2104_v0 = vsel %vm139_vm0, %v8294_v40, 0.0  ;;  %v2185_v51 = vmul.f32 %v8294_v40, %v8294_v40 }
 0x4c7   :  { %2093 = vadd.xlane.f32.xlu0 %v2092_v27  ;;  %v2113_v41 = vsel %vm139_vm0, %v8288_v7, 0.0  ;;  %v2188_v47 = vmul.f32 %v8288_v7, %v8288_v7 }
 0x4c8   :  { %v2107_v22 = vsel %vm139_vm0, %v8299_v12, 0.0  ;;  %v2186_v17 = vmul.f32 %v8299_v12, %v8299_v12  ;;  %v2265_v54 = vsel %vm139_vm0, %v2185_v51, 0.0 }
 0x4c9   :  { %2096 = vadd.xlane.f32.xlu1 %v2095_v33 }
 0x4ca   :  { %v2268_v37 = vsel %vm139_vm0, %v2186_v17, 0.0 }
 0x4cb   :  { %2254 = vadd.xlane.f32.xlu0 %v2253_v43  ;;  %v2271_v43 = vsel %vm139_vm0, %v2187_v20, 0.0 }
 0x4cd   :  { %2257 = vadd.xlane.f32.xlu1 %v2256_v32  ;;  %v2274_v32 = vsel %vm139_vm0, %v2188_v47, 0.0 }
 0x4cf   :  { %2260 = vadd.xlane.f32.xlu0 %v2259_v49 }
 0x4d1   :  { %2263 = vadd.xlane.f32.xlu1 %v2262_v26 }
 0x4d3   :  { %2111 = vadd.xlane.f32.xlu0 %v2110_v9 }
 0x4d5   :  { %2114 = vadd.xlane.f32.xlu1 %v2113_v41 }
 0x4d7   :  { %2105 = vadd.xlane.f32.xlu0 %v2104_v0  ;;  %v6027_v28 = vpop.f32.mrb[124].mxu1 }
 0x4d8   :  { %v2015_v5 = vpop.f32.mrb[125].mxu1  ;;  %v8314_v33 = vadd.f32 %v6027_v28, %v8085_v6 }
 0x4d9   :  { %2108 = vadd.xlane.f32.xlu1 %v2107_v22  ;;  %v6028_v57 = vpop.f32.mrb[126].mxu1  ;;  %v8326_v49 = vadd.f32 %v8085_v6, %v2015_v5 }
 0x4da   :  { %v2018_v27 = vpop.f32.mrb[127].mxu1  ;;  %v8320_v4 = vadd.f32 %v6028_v57, %v8085_v6  ;;  %v2122_v13 = vsel %vm139_vm0, %v8314_v33, 0.0  ;;  %v2191_v57 = vmul.f32 %v8314_v33, %v8314_v33 }
 0x4db   :  { %2266 = vadd.xlane.f32.xlu0 %v2265_v54  ;;  %v8331_v41 = vadd.f32 %v8085_v6, %v2018_v27  ;;  %v2116_v51 = vsel %vm139_vm0, %v8326_v49, 0.0  ;;  %v2189_v22 = vmul.f32 %v8326_v49, %v8326_v49 }
 0x4dc   :  { %v2125_v26 = vsel %vm139_vm0, %v8320_v4, 0.0 }
 0x4dd   :  { %2269 = vadd.xlane.f32.xlu1 %v2268_v37  ;;  %v2119_v28 = vsel %vm139_vm0, %v8331_v41, 0.0  ;;  %v2190_v5 = vmul.f32 %v8331_v41, %v8331_v41  ;;  %v2277_v20 = vsel %vm139_vm0, %v2189_v22, 0.0  ;;  %v2192_v37 = vmul.f32 %v8320_v4, %v8320_v4 }
 0x4df   :  { %2272 = vadd.xlane.f32.xlu0 %v2271_v43  ;;  %v2280_v43 = vsel %vm139_vm0, %v2190_v5, 0.0 }
 0x4e0   :  { %v2040_v9 = vpop.xlane.xlu0 %2039 }
 0x4e1   :  { %2275 = vadd.xlane.f32.xlu1 %v2274_v32  ;;  %v2131_v32 = vmul.f32 0.03125, %v2040_v9 }
 0x4e2   :  { %v2043_v0 = vpop.xlane.xlu1 %2042 }
 0x4e3   :  { %2123 = vadd.xlane.f32.xlu0 %v2122_v13  ;;  %v2323_v35 = vmul.f32 %v2131_v32, %v2131_v32 }
 0x4e4   :  { %v2034_v17 = vpop.xlane.xlu0 %2033 }
 0x4e5   :  { %2126 = vadd.xlane.f32.xlu1 %v2125_v26  ;;  %v2129_v54 = vmul.f32 0.03125, %v2034_v17 }
 0x4e6   :  { %v2037_v6 = vpop.xlane.xlu1 %2036 }
 0x4e7   :  { %2117 = vadd.xlane.f32.xlu0 %v2116_v51  ;;  %v2130_v27 = vmul.f32 0.03125, %v2037_v6  ;;  %v2321_v13 = vmul.f32 %v2129_v54, %v2129_v54  ;;  %v2132_v51 = vmul.f32 0.03125, %v2043_v0  ;;  %v2286_v6 = vsel %vm139_vm0, %v2192_v37, 0.0 }
 0x4e8   :  { %v2195_v47 = vpop.xlane.xlu0 %2194 }
 0x4e9   :  { %2120 = vadd.xlane.f32.xlu1 %v2119_v28  ;;  %v2289_v26 = vmul.f32 0.03125, %v2195_v47  ;;  %v2283_v28 = vsel %vm139_vm0, %v2191_v57, 0.0  ;;  %v2322_v22 = vmul.f32 %v2130_v27, %v2130_v27  ;;  %v2324_v9 = vmul.f32 %v2132_v51, %v2132_v51 }
 0x4ea   :  { %v2198_v17 = vpop.xlane.xlu1 %2197 }
 0x4eb   :  { %2278 = vadd.xlane.f32.xlu0 %v2277_v20  ;;  %v2353_v23 = vsub.f32 %v2289_v26, %v2321_v13  ;;  %v2290_v30 = vmul.f32 0.03125, %v2198_v17  ;;  %v2385_v17 = vsub.f32 %v8091_v21, %v2129_v54  ;;  %v8362_v21 = vld [vmem:[%s10017_s10] ss:$0 sm:$0xff] }
 0x4ec   :  { %v2201_v20 = vpop.xlane.xlu0 %2200 }
 0x4ed   :  { %2281 = vadd.xlane.f32.xlu1 %v2280_v43  ;;  %v2417_v38 = vadd.f32 1e-05, %v2353_v23  ;;  %v2354_v62 = vsub.f32 %v2290_v30, %v2322_v22  ;;  %v2291_v15 = vmul.f32 0.03125, %v2201_v20 }
 0x4ee   :  { %v2204_v5 = vpop.xlane.xlu1 %2203 }
 0x4ef   :  { %2284 = vadd.xlane.f32.xlu0 %v2283_v28  ;;  %6496 = vrsqrt.f32 %v2417_v38  ;;  %v2418_v47 = vadd.f32 1e-05, %v2354_v62  ;;  %v2355_v0 = vsub.f32 %v2291_v15, %v2323_v35  ;;  %v2292_v43 = vmul.f32 0.03125, %v2204_v5  ;;  %v8354_v15 = vld [vmem:[%s10016_s9] ss:$0 sm:$0xff] }
 0x4f0   :  { %v2386_v28 = vsub.f32 %v8099_v24, %v2130_v27  ;;  %v2388_v5 = vsub.f32 %v8094_v42, %v2132_v51 }
 0x4f1   :  { %2287 = vadd.xlane.f32.xlu1 %v2286_v6  ;;  %6498 = vrsqrt.f32 %v2418_v47  ;;  %v2419_v57 = vadd.f32 1e-05, %v2355_v0  ;;  %v2356_v18 = vsub.f32 %v2292_v43, %v2324_v9 }
 0x4f3   :  { %6500 = vrsqrt.f32 %v2419_v57  ;;  %v2420_v13 = vadd.f32 1e-05, %v2356_v18  ;;  %v2387_v18 = vsub.f32 %v8088_v53, %v2131_v32 }
 0x4f5   :  { %6502 = vrsqrt.f32 %v2420_v13  ;;  %v2052_v26 = vpop.xlane.xlu0 %2051 }
 0x4f6   :  { %v8364_v27 = vmul.f32 0.03125, %v2052_v26 }
 0x4f7   :  { %v2055_v37 = vpop.xlane.xlu1 %2054 }
 0x4f8   :  { %v8370_v43 = vmul.f32 0.03125, %v2055_v37  ;;  %v2327_v51 = vmul.f32 %v8364_v27, %v8364_v27 }
 0x4f9   :  { %v6497_v23 = vpop.eup %6496  ;;  %v2046_v30 = vpop.xlane.xlu0 %2045 }
 0x4fa   :  { %v2481_v22 = vmul.f32 %v6497_v23, %v2385_v17  ;;  %v8356_v62 = vmul.f32 0.03125, %v2046_v30 }
 0x4fb   :  { %v6499_v38 = vpop.eup %6498  ;;  %v2049_v35 = vpop.xlane.xlu1 %2048 }
 0x4fc   :  { %v2482_v6 = vmul.f32 %v6499_v38, %v2386_v28  ;;  %v2134_v54 = vmul.f32 0.03125, %v2049_v35  ;;  %v2519_v9 = vmul.f32 %v8354_v15, %v2481_v22  ;;  %v2325_v0 = vmul.f32 %v8356_v62, %v8356_v62 }
 0x4fd   :  { %v6501_v24 = vpop.eup %6500  ;;  %v2207_v20 = vpop.xlane.xlu0 %2206 }
 0x4fe   :  { %v2483_v47 = vmul.f32 %v6501_v24, %v2387_v18  ;;  %v2293_v53 = vmul.f32 0.03125, %v2207_v20  ;;  %v2326_v57 = vmul.f32 %v2134_v54, %v2134_v54  ;;  %v2520_v17 = vmul.f32 %v8354_v15, %v2482_v6 }
 0x4ff   :  { %v6503_v32 = vpop.eup %6502  ;;  %v2210_v13 = vpop.xlane.xlu1 %2209  ;;  %v8374_v26 = vadd.f32 %v8362_v21, %v2519_v9  ;;  %v2328_v20 = vmul.f32 %v8370_v43, %v8370_v43 }
 0x500   :  { %v2521_v23 = vmul.f32 %v8354_v15, %v2483_v47  ;;  %v2484_v30 = vmul.f32 %v6503_v32, %v2388_v5  ;;  %v2357_v28 = vsub.f32 %v2293_v53, %v2325_v0  ;;  %v2294_v42 = vmul.f32 0.03125, %v2210_v13 }
 0x501   :  { %v2213_v22 = vpop.xlane.xlu0 %2212  ;;  %v8380_v38 = vadd.f32 %v8362_v21, %v2520_v17  ;;  %v2589_v37 = vmin.f32 %v8374_v26, 20.0 }
 0x502   :  { %v8384_v35 = vadd.f32 %v8362_v21, %v2521_v23  ;;  %v2522_v18 = vmul.f32 %v8354_v15, %v2484_v30  ;;  %v2421_v6 = vadd.f32 1e-05, %v2357_v28  ;;  %v2358_v24 = vsub.f32 %v2294_v42, %v2326_v57 }
 0x503   :  { %v2295_v9 = vmul.f32 0.03125, %v2213_v22  ;;  %v2216_v5 = vpop.xlane.xlu1 %2215  ;;  %v2590_v47 = vmin.f32 %v8380_v38, 20.0  ;;  %v2621_v0 = vmul.f32 1.442695, %v2589_v37 }
 0x504   :  { %v2591_v53 = vmin.f32 %v8384_v35, 20.0  ;;  %v8392_v32 = vadd.f32 %v8362_v21, %v2522_v18  ;;  %6504 = vrsqrt.f32 %v2421_v6  ;;  %v2422_v13 = vadd.f32 1e-05, %v2358_v24 }
 0x505   :  { %v2359_v17 = vsub.f32 %v2295_v9, %v2327_v51  ;;  %v2296_v23 = vmul.f32 0.03125, %v2216_v5  ;;  %6506 = vpow2.f32 %v2621_v0  ;;  %v2623_v30 = vmul.f32 1.442695, %v2590_v47 }
 0x506   :  { %v2625_v57 = vmul.f32 1.442695, %v2591_v53  ;;  %v2592_v28 = vmin.f32 %v8392_v32, 20.0  ;;  %6508 = vrsqrt.f32 %v2422_v13  ;;  %v2389_v18 = vsub.f32 %v8123_v56, %v8356_v62 }
 0x507   :  { %v2423_v42 = vadd.f32 1e-05, %v2359_v17  ;;  %v2360_v22 = vsub.f32 %v2296_v23, %v2328_v20  ;;  %6510 = vpow2.f32 %v2623_v30  ;;  %v2390_v24 = vsub.f32 %v8131_v25, %v2134_v54 }
 0x508   :  { %6512 = vpow2.f32 %v2625_v57  ;;  %v2627_v37 = vmul.f32 1.442695, %v2592_v28 }
 0x509   :  { %v2424_v1 = vadd.f32 1e-05, %v2360_v22 }
 0x50a   :  { %6514 = vpow2.f32 %v2627_v37 }
 0x50b   :  { %6516 = vrsqrt.f32 %v2423_v42 }
 0x50c   :  { %6518 = vrsqrt.f32 %v2424_v1 }
 0x50e   :  { %v6505_v51 = vpop.eup %6504 }
 0x50f   :  { %v6507_v6 = vpop.eup %6506  ;;  %v2485_v9 = vmul.f32 %v6505_v51, %v2389_v18  ;;  %v2391_v18 = vsub.f32 %v8120_v14, %v8364_v27 }
 0x510   :  { %v6509_v5 = vpop.eup %6508  ;;  %v2685_v47 = vadd.f32 1.0, %v6507_v6 }
 0x511   :  { %v6511_v0 = vpop.eup %6510  ;;  %v2486_v53 = vmul.f32 %v6509_v5, %v2390_v24  ;;  %v2064_v20 = vpop.xlane.xlu0 %2063  ;;  %v2523_v57 = vmul.f32 %v8354_v15, %v2485_v9 }
 0x512   :  { %v6513_v13 = vpop.eup %6512  ;;  %v2686_v17 = vadd.f32 1.0, %v6511_v0  ;;  %v2717_v23 = vmul.f32 %v2685_v47, %v2685_v47  ;;  %v8399_v56 = vmul.f32 0.03125, %v2064_v20  ;;  %v2392_v0 = vsub.f32 %v8126_v3, %v8370_v43 }
 0x513   :  { %v2067_v30 = vpop.xlane.xlu1 %2066  ;;  %v2687_v42 = vadd.f32 1.0, %v6513_v13  ;;  %v2524_v37 = vmul.f32 %v8354_v15, %v2486_v53  ;;  %v8409_v47 = vadd.f32 %v8362_v21, %v2523_v57 }
 0x514   :  { %v6515_v28 = vpop.eup %6514  ;;  %v2718_v25 = vmul.f32 %v2686_v17, %v2686_v17  ;;  %v2813_v54 = vadd.f32 1.0, %v2717_v23  ;;  %v8406_v24 = vmul.f32 0.03125, %v2067_v30  ;;  %v2331_v14 = vmul.f32 %v8399_v56, %v8399_v56 }
 0x515   :  { %v6517_v1 = vpop.eup %6516  ;;  %v2688_v62 = vadd.f32 1.0, %v6515_v28  ;;  %v2058_v22 = vpop.xlane.xlu0 %2057  ;;  %v2719_v53 = vmul.f32 %v2687_v42, %v2687_v42  ;;  %v8418_v30 = vadd.f32 %v8362_v21, %v2524_v37 }
 0x516   :  { %v8404_v51 = vmul.f32 0.03125, %v2058_v22  ;;  %v6519_v6 = vpop.eup %6518  ;;  %v2814_v5 = vadd.f32 1.0, %v2718_v25  ;;  %6520 = vrcp.f32 %v2813_v54  ;;  %v2487_v20 = vmul.f32 %v6517_v1, %v2391_v18 }
 0x517   :  { %v2061_v9 = vpop.xlane.xlu1 %2060  ;;  %v2720_v17 = vmul.f32 %v2688_v62, %v2688_v62  ;;  %v2488_v28 = vmul.f32 %v6519_v6, %v2392_v0  ;;  %v5529_v54 = vadd.f32 -1.0, %v2717_v23  ;;  %v2332_v3 = vmul.f32 %v8406_v24, %v8406_v24 }
 0x518   :  { %v8413_v13 = vmul.f32 0.03125, %v2061_v9  ;;  %6522 = vrcp.f32 %v2814_v5  ;;  %v2329_v57 = vmul.f32 %v8404_v51, %v8404_v51  ;;  %v2815_v42 = vadd.f32 1.0, %v2719_v53 }
 0x519   :  { %v2219_v27 = vpop.xlane.xlu0 %2218  ;;  %v2816_v1 = vadd.f32 1.0, %v2720_v17  ;;  %v2593_v18 = vmin.f32 %v8409_v47, 20.0  ;;  %v2594_v6 = vmin.f32 %v8418_v30, 20.0  ;;  %v5530_v0 = vadd.f32 -1.0, %v2718_v25 }
 0x51a   :  { %v2297_v22 = vmul.f32 0.03125, %v2219_v27  ;;  %v2330_v62 = vmul.f32 %v8413_v13, %v8413_v13  ;;  %6524 = vrcp.f32 %v2815_v42  ;;  %v2525_v23 = vmul.f32 %v8354_v15, %v2487_v20 }
 0x51b   :  { %v2222_v43 = vpop.xlane.xlu1 %2221  ;;  %v2629_v27 = vmul.f32 1.442695, %v2593_v18  ;;  %6526 = vrcp.f32 %v2816_v1  ;;  %v2631_v45 = vmul.f32 1.442695, %v2594_v6  ;;  %v2526_v50 = vmul.f32 %v8354_v15, %v2488_v28 }
 0x51c   :  { %v2361_v9 = vsub.f32 %v2297_v22, %v2329_v57  ;;  %v2298_v37 = vmul.f32 0.03125, %v2222_v43  ;;  %v8431_v57 = vadd.f32 %v8362_v21, %v2525_v23  ;;  %v2781_v18 = vmul.f32 %v5529_v54, %v8374_v26 }
 0x51d   :  { %v2225_v5 = vpop.xlane.xlu0 %2224  ;;  %6528 = vpow2.f32 %v2629_v27  ;;  %v8435_v20 = vadd.f32 %v8362_v21, %v2526_v50  ;;  %v2782_v28 = vmul.f32 %v5530_v0, %v8380_v38  ;;  %v5531_v6 = vadd.f32 -1.0, %v2719_v53  ;;  %v6273_v27 = vld [vmem:[%s10023_s16 + $0x4] ss:$8 sps:$4 sm:$0xff]  }
 0x51e   :  { %v2425_v8 = vadd.f32 1e-05, %v2361_v9  ;;  %v2362_v16 = vsub.f32 %v2298_v37, %v2330_v62  ;;  %v2299_v39 = vmul.f32 0.03125, %v2225_v5  ;;  %v2595_v1 = vmin.f32 %v8431_v57, 20.0  ;;  %4600 = vmatprep.subr.bf16.mxu0 %v6273_v27 }
 0x51f   :  { %v2228_v34 = vpop.xlane.xlu1 %2227  ;;  %v2783_v0 = vmul.f32 %v5531_v6, %v8384_v35  ;;  %v2394_v35 = vsub.f32 %v8166_v44, %v8413_v13  ;;  %v6271_v6 = vld [vmem:[%s10023_s16] ss:$8 sps:$4 sm:$0xff]  }
 0x520   :  { %6530 = vrsqrt.f32 %v2425_v8  ;;  %v2426_v22 = vadd.f32 1e-05, %v2362_v16  ;;  %v2363_v43 = vsub.f32 %v2299_v39, %v2331_v14  ;;  %v2300_v25 = vmul.f32 0.03125, %v2228_v34  ;;  %v6521_v42 = vpop.eup %6520 }
 0x521   :  { %6532 = vpow2.f32 %v2631_v45  ;;  %v5532_v8 = vadd.f32 -1.0, %v2720_v17  ;;  %v2596_v39 = vmin.f32 %v8435_v20, 20.0  ;;  %v2633_v34 = vmul.f32 1.442695, %v2595_v1 }
 0x522   :  { %6534 = vrsqrt.f32 %v2426_v22  ;;  %v2427_v62 = vadd.f32 1e-05, %v2363_v43  ;;  %v2364_v9 = vsub.f32 %v2300_v25, %v2332_v3  ;;  %v6523_v37 = vpop.eup %6522  ;;  %v2877_v45 = vmul.f32 %v6521_v42, %v2781_v18 }
 0x523   :  { %v2878_v14 = vmul.f32 %v6523_v37, %v2782_v28  ;;  %v2635_v50 = vmul.f32 1.442695, %v2596_v39  ;;  %v2784_v38 = vmul.f32 %v5532_v8, %v8392_v32  ;;  %v2393_v32 = vsub.f32 %v8158_v2, %v8404_v51 }
 0x524   :  { %6536 = vrsqrt.f32 %v2427_v62  ;;  %v2428_v16 = vadd.f32 1e-05, %v2364_v9  ;;  %v6525_v3 = vpop.eup %6524 }
 0x525   :  { %6538 = vpow2.f32 %v2633_v34  ;;  %v8440_v5 = vpack.c.bf16 %v2878_v14, %v2877_v45  ;;  %v6527_v53 = vpop.eup %6526  ;;  %v2879_v1 = vmul.f32 %v6525_v3, %v2783_v0  ;;  %v6276_v14 = vld [vmem:[%s10023_s16 + $0x14] ss:$8 sps:$4 sm:$0xff]  }
 0x526   :  { %v2076_v26 = vpop.xlane.xlu0 %2075  ;;  %6540 = vrsqrt.f32 %v2428_v16  ;;  %v2880_v43 = vmul.f32 %v6527_v53, %v2784_v38 }
 0x527   :  { %6542 = vpow2.f32 %v2635_v50  ;;  %6033 = vmatprep.mubr.msk.bf16.mxu0 %vm139_vm0, %v8440_v5  ;;  %v6529_v23 = vpop.eup %6528  ;;  %v8453_v42 = vmul.f32 0.03125, %v2076_v26  ;;  %v2395_v26 = vsub.f32 %v8155_v63, %v8399_v56 }
 0x528   :  { %v2079_v54 = vpop.xlane.xlu1 %2078  ;;  %v2689_v62 = vadd.f32 1.0, %v6529_v23  ;;  %v8464_v39 = vpack.c.bf16 %v2880_v43, %v2879_v1 }
 0x529   :  { %v8457_v28 = vmul.f32 0.03125, %v2079_v54  ;;  %v2396_v54 = vsub.f32 %v8161_v52, %v8406_v24  ;;  %v2335_v3 = vmul.f32 %v8453_v42, %v8453_v42  ;;  %v6274_v52 = vld [vmem:[%s10023_s16 + $0x10] ss:$8 sps:$4 sm:$0xff]  }
 0x52a   :  { %v2070_v17 = vpop.xlane.xlu0 %2069  ;;  %v6531_v25 = vpop.eup %6530  ;;  %10115 = vst [vmem:[#allocation21_spill] sm:$0xff] %v8464_v39  ;;  %v2721_v16 = vmul.f32 %v2689_v62, %v2689_v62  ;;  %6034 = vmatmul.mubr.msk.bf16.vlgmr.msra.gmra.mrb[64].mxu0 %vm139_vm0, %v8464_v39 }
 0x52b   :  { %v8449_v22 = vmul.f32 0.03125, %v2070_v17  ;;  %v6533_v9 = vpop.eup %6532  ;;  %v2489_v2 = vmul.f32 %v6531_v25, %v2393_v32  ;;  %v2336_v17 = vmul.f32 %v8457_v28, %v8457_v28  ;;  %4601 = vmatpush1.bf16.msra.mxu0 %v6271_v6 }
 0x52c   :  { %v2073_v18 = vpop.xlane.xlu1 %2072  ;;  %v6535_v8 = vpop.eup %6534  ;;  %v2690_v34 = vadd.f32 1.0, %v6533_v9  ;;  %v2817_v56 = vadd.f32 1.0, %v2721_v16  ;;  %4602 = vmatprep.subr.bf16.mxu0 %v6276_v14 }
 0x52d   :  { %v8459_v37 = vmul.f32 0.03125, %v2073_v18  ;;  %v2490_v45 = vmul.f32 %v6535_v8, %v2394_v35  ;;  %v2333_v44 = vmul.f32 %v8449_v22, %v8449_v22  ;;  %v2527_v32 = vmul.f32 %v8354_v15, %v2489_v2  ;;  %v6277_v2 = vld [vmem:[%s10023_s16 + $0x20] ss:$8 sps:$4 sm:$0xff]  }
 0x52e   :  { %v2231_v51 = vpop.xlane.xlu0 %2230  ;;  %v6537_v50 = vpop.eup %6536  ;;  %v2722_v63 = vmul.f32 %v2690_v34, %v2690_v34  ;;  %6544 = vrcp.f32 %v2817_v56 }
 0x52f   :  { %v2301_v13 = vmul.f32 0.03125, %v2231_v51  ;;  %v6539_v53 = vpop.eup %6538  ;;  %v2334_v0 = vmul.f32 %v8459_v37, %v8459_v37  ;;  %v2528_v18 = vmul.f32 %v8354_v15, %v2490_v45  ;;  %v2491_v62 = vmul.f32 %v6537_v50, %v2395_v26  ;;  %4603 = vmatpush1.bf16.msra.mxu0 %v6274_v52 }
 0x530   :  { %v2234_v38 = vpop.xlane.xlu1 %2233  ;;  %v6541_v24 = vpop.eup %6540  ;;  %v2818_v25 = vadd.f32 1.0, %v2722_v63  ;;  %v2691_v34 = vadd.f32 1.0, %v6539_v53  ;;  %v8492_v26 = vadd.f32 %v8362_v21, %v2527_v32 }
 0x531   :  { %v2365_v27 = vsub.f32 %v2301_v13, %v2333_v44  ;;  %v2302_v23 = vmul.f32 0.03125, %v2234_v38  ;;  %v6543_v1 = vpop.eup %6542  ;;  %v2492_v51 = vmul.f32 %v6541_v24, %v2396_v54  ;;  %v8495_v50 = vadd.f32 %v8362_v21, %v2528_v18  ;;  %v6279_v54 = vld [vmem:[%s10023_s16 + $0x24] ss:$8 sps:$4 sm:$0xff]   ;;  %v6280_v18 = vld [vmem:[%s10023_s16 + $0x30] ss:$8 sps:$4 sm:$0xff]  }
 0x532   :  { %v2237_v43 = vpop.xlane.xlu0 %2236  ;;  %6546 = vrcp.f32 %v2818_v25  ;;  %v2692_v44 = vadd.f32 1.0, %v6543_v1  ;;  %v2723_v45 = vmul.f32 %v2691_v34, %v2691_v34  ;;  %4604 = vmatprep.subr.bf16.mxu0 %v6279_v54  ;;  %v2597_v25 = vmin.f32 %v8492_v26, 20.0 }
 0x533   :  { %v2429_v9 = vadd.f32 1e-05, %v2365_v27  ;;  %v2366_v35 = vsub.f32 %v2302_v23, %v2334_v0  ;;  %v2303_v8 = vmul.f32 0.03125, %v2237_v43  ;;  %v2529_v0 = vmul.f32 %v8354_v15, %v2491_v62  ;;  %4605 = vmatpush1.bf16.msra.mxu0 %v6277_v2 }
 0x534   :  { %v2240_v6 = vpop.xlane.xlu1 %2239  ;;  %v2724_v14 = vmul.f32 %v2692_v44, %v2692_v44  ;;  %v5533_v27 = vadd.f32 -1.0, %v2721_v16  ;;  %v5534_v23 = vadd.f32 -1.0, %v2722_v63  ;;  %v2819_v52 = vadd.f32 1.0, %v2723_v45  ;;  %v6285_v16 = vld [vmem:[%s10023_s16 + $0x44] ss:$8 sps:$4 sm:$0xff]  }
 0x535   :  { %6548 = vrsqrt.f32 %v2429_v9  ;;  %v2430_v13 = vadd.f32 1e-05, %v2366_v35  ;;  %v2367_v38 = vsub.f32 %v2303_v8, %v2335_v3  ;;  %v2304_v39 = vmul.f32 0.03125, %v2240_v6  ;;  %v6282_v3 = vld [vmem:[%s10023_s16 + $0x34] ss:$8 sps:$4 sm:$0xff]  }
 0x536   :  { %v2820_v24 = vadd.f32 1.0, %v2724_v14  ;;  %v2598_v32 = vmin.f32 %v8495_v50, 20.0  ;;  %4606 = vmatprep.subr.bf16.mxu0 %v6282_v3  ;;  %v2637_v63 = vmul.f32 1.442695, %v2597_v25  ;;  %v8514_v1 = vadd.f32 %v8362_v21, %v2529_v0  ;;  %v6283_v6 = vld [vmem:[%s10023_s16 + $0x40] ss:$8 sps:$4 sm:$0xff]  }
 0x537   :  { %6550 = vrsqrt.f32 %v2430_v13  ;;  %v2431_v56 = vadd.f32 1e-05, %v2367_v38  ;;  %v2368_v53 = vsub.f32 %v2304_v39, %v2336_v17  ;;  %v2530_v39 = vmul.f32 %v8354_v15, %v2492_v51  ;;  %4607 = vmatpush1.bf16.msra.mxu0 %v6280_v18 }
 0x538   :  { %v2639_v17 = vmul.f32 1.442695, %v2598_v32  ;;  %v6545_v62 = vpop.eup %6544  ;;  %v2785_v35 = vmul.f32 %v5533_v27, %v8409_v47  ;;  %v2786_v8 = vmul.f32 %v5534_v23, %v8418_v30  ;;  %v2599_v51 = vmin.f32 %v8514_v1, 20.0  ;;  %4608 = vmatprep.subr.bf16.mxu0 %v6285_v16  ;;  %v6288_v47 = vld [vmem:[%s10023_s16 + $0x54] ss:$8 sps:$4 sm:$0xff]  }
 0x539   :  { %6552 = vrsqrt.f32 %v2431_v56  ;;  %v2432_v43 = vadd.f32 1e-05, %v2368_v53  ;;  %v8517_v9 = vadd.f32 %v8362_v21, %v2530_v39  ;;  %v2397_v44 = vsub.f32 %v8190_v11, %v8449_v22 }
 0x53a   :  { %6554 = vrcp.f32 %v2819_v52  ;;  %v2881_v2 = vmul.f32 %v6545_v62, %v2785_v35  ;;  %v2641_v3 = vmul.f32 1.442695, %v2599_v51  ;;  %v2398_v56 = vsub.f32 %v8198_v60, %v8459_v37  ;;  %v6291_v60 = vld [vmem:[%s10023_s16 + $0x64] ss:$8 sps:$4 sm:$0xff]  }
 0x53b   :  { %6556 = vrsqrt.f32 %v2432_v43  ;;  %v2600_v13 = vmin.f32 %v8517_v9, 20.0  ;;  %v5535_v0 = vadd.f32 -1.0, %v2723_v45  ;;  %4609 = vmatpush1.bf16.msra.mxu0 %v6283_v6  ;;  %v6286_v43 = vld [vmem:[%s10023_s16 + $0x50] ss:$8 sps:$4 sm:$0xff]   ;;  %v2399_v39 = vsub.f32 %v8187_v58, %v8453_v42  ;;  %v6289_v58 = vld [vmem:[%s10023_s16 + $0x60] ss:$8 sps:$4 sm:$0xff]  }
 0x53c   :  { %6558 = vrcp.f32 %v2820_v24  ;;  %v6547_v34 = vpop.eup %6546  ;;  %v5536_v24 = vadd.f32 -1.0, %v2724_v14  ;;  %4610 = vmatprep.subr.bf16.mxu0 %v6288_v47  ;;  %v2400_v16 = vsub.f32 %v8193_v46, %v8457_v28 }
 0x53d   :  { %6560 = vpow2.f32 %v2637_v63  ;;  %v2882_v54 = vmul.f32 %v6547_v34, %v2786_v8  ;;  %v2643_v27 = vmul.f32 1.442695, %v2600_v13 }
 0x53e   :  { %6562 = vpow2.f32 %v2639_v17  ;;  %v2787_v17 = vmul.f32 %v5535_v0, %v8431_v57  ;;  %v2788_v51 = vmul.f32 %v5536_v24, %v8435_v20 }
 0x53f   :  { %v6549_v30 = vpop.eup %6548  ;;  %v8535_v52 = vpack.c.bf16 %v2882_v54, %v2881_v2  ;;  %6564 = vpow2.f32 %v2641_v3  ;;  %4611 = vmatpush1.bf16.msra.mxu0 %v6286_v43 }
 0x540   :  { %v2088_v38 = vpop.xlane.xlu0 %2087  ;;  %v2493_v53 = vmul.f32 %v6549_v30, %v2397_v44  ;;  %6566 = vpow2.f32 %v2643_v27  ;;  %4612 = vmatprep.subr.bf16.mxu0 %v6291_v60  ;;  %v6294_v44 = vld [vmem:[%s10023_s16 + $0x74] ss:$8 sps:$4 sm:$0xff]   ;;  %v6292_v60 = vld [vmem:[%s10023_s16 + $0x70] ss:$8 sps:$4 sm:$0xff]  }
 0x541   :  { %v6551_v11 = vpop.eup %6550  ;;  %v8533_v22 = vmul.f32 0.03125, %v2088_v38  ;;  %6037 = vmatprep.mubr.msk.bf16.mxu0 %vm139_vm0, %v8535_v52 }
 0x542   :  { %v2091_v23 = vpop.xlane.xlu1 %2090  ;;  %v2494_v25 = vmul.f32 %v6551_v11, %v2398_v56  ;;  %v2531_v14 = vmul.f32 %v8354_v15, %v2493_v53 }
 0x543   :  { %v8540_v32 = vmul.f32 0.03125, %v2091_v23  ;;  %v6553_v37 = vpop.eup %6552  ;;  %v8557_v35 = vmul.f32 %v8533_v22, %v8533_v22  ;;  %v2403_v42 = vsub.f32 %v8222_v59, %v8533_v22  ;;  %4613 = vmatpush1.bf16.msra.mxu0 %v6289_v58 }
 0x544   :  { %v2082_v45 = vpop.xlane.xlu0 %2081  ;;  %v6555_v18 = vpop.eup %6554  ;;  %v2532_v6 = vmul.f32 %v8354_v15, %v2494_v25  ;;  %v8562_v34 = vadd.f32 %v8362_v21, %v2531_v14  ;;  %v2495_v57 = vmul.f32 %v6553_v37, %v2399_v39  ;;  %4614 = vmatprep.subr.bf16.mxu0 %v6294_v44 }
 0x545   :  { %v8552_v63 = vmul.f32 0.03125, %v2082_v45  ;;  %v6557_v62 = vpop.eup %6556  ;;  %v8571_v28 = vmul.f32 %v8540_v32, %v8540_v32  ;;  %v2883_v38 = vmul.f32 %v6555_v18, %v2787_v17 }
 0x546   :  { %v2085_v8 = vpop.xlane.xlu1 %2084  ;;  %v6559_v46 = vpop.eup %6558  ;;  %v2601_v54 = vmin.f32 %v8562_v34, 20.0  ;;  %v8584_v27 = vadd.f32 %v8362_v21, %v2532_v6  ;;  %v2496_v11 = vmul.f32 %v6557_v62, %v2400_v16 }
 0x547   :  { %v8573_v20 = vmul.f32 0.03125, %v2085_v8  ;;  %v6561_v13 = vpop.eup %6560  ;;  %v2884_v2 = vmul.f32 %v6559_v46, %v2788_v51  ;;  %v2337_v56 = vmul.f32 %v8552_v63, %v8552_v63  ;;  %v2401_v16 = vsub.f32 %v8225_v48, %v8552_v63  ;;  %4615 = vmatpush1.bf16.msra.mxu0 %v6292_v60 }
 0x548   :  { %v2243_v30 = vpop.xlane.xlu0 %2242  ;;  %v6563_v3 = vpop.eup %6562  ;;  %v2693_v0 = vadd.f32 1.0, %v6561_v13  ;;  %v2645_v25 = vmul.f32 1.442695, %v2601_v54  ;;  %v2533_v8 = vmul.f32 %v8354_v15, %v2495_v57  ;;  %v2602_v46 = vmin.f32 %v8584_v27, 20.0 }
 0x549   :  { %v2305_v53 = vmul.f32 0.03125, %v2243_v30  ;;  %v8586_v24 = vpack.c.bf16 %v2884_v2, %v2883_v38  ;;  %v2694_v43 = vadd.f32 1.0, %v6563_v3  ;;  %v2338_v37 = vmul.f32 %v8573_v20, %v8573_v20  ;;  %v6565_v39 = vpop.eup %6564 }
 0x54a   :  { %v2246_v23 = vpop.xlane.xlu1 %2245  ;;  %v2725_v18 = vmul.f32 %v2693_v0, %v2693_v0  ;;  %6568 = vpow2.f32 %v2645_v25  ;;  %v6567_v13 = vpop.eup %6566  ;;  %v2695_v2 = vadd.f32 1.0, %v6565_v39  ;;  %v2534_v54 = vmul.f32 %v8354_v15, %v2496_v11 }
 0x54b   :  { %v2369_v45 = vsub.f32 %v2305_v53, %v2337_v56  ;;  %v2306_v14 = vmul.f32 0.03125, %v2246_v23  ;;  %6038 = vmatmul.mubr.msk.bf16.gmra.mrb[68].mxu0 %vm139_vm0, %v8586_v24  ;;  %v2726_v62 = vmul.f32 %v2694_v43, %v2694_v43  ;;  %v2696_v23 = vadd.f32 1.0, %v6567_v13 }
 0x54c   :  { %v2249_v17 = vpop.xlane.xlu0 %2248  ;;  %v2821_v44 = vadd.f32 1.0, %v2725_v18  ;;  %v5537_v57 = vadd.f32 -1.0, %v2725_v18  ;;  %v8602_v43 = vadd.f32 %v8362_v21, %v2533_v8  ;;  %v2727_v60 = vmul.f32 %v2695_v2, %v2695_v2 }
 0x54d   :  { %v2433_v51 = vadd.f32 1e-05, %v2369_v45  ;;  %v2370_v6 = vsub.f32 %v2306_v14, %v2338_v37  ;;  %v2307_v58 = vmul.f32 0.03125, %v2249_v17  ;;  %v2822_v38 = vadd.f32 1.0, %v2726_v62 }
 0x54e   :  { %v2252_v30 = vpop.xlane.xlu1 %2251  ;;  %v5538_v45 = vadd.f32 -1.0, %v2726_v62  ;;  %v2728_v39 = vmul.f32 %v2696_v23, %v2696_v23  ;;  %v2647_v17 = vmul.f32 1.442695, %v2602_v46 }
 0x54f   :  { %6570 = vrsqrt.f32 %v2433_v51  ;;  %v2434_v3 = vadd.f32 1e-05, %v2370_v6  ;;  %v2371_v56 = vsub.f32 %v2307_v58, %v8557_v35  ;;  %v2308_v53 = vmul.f32 0.03125, %v2252_v30 }
 0x550   :  { %v2100_v0 = vpop.xlane.xlu0 %2099  ;;  %6572 = vrcp.f32 %v2821_v44  ;;  %v2402_v35 = vsub.f32 %v8233_v29, %v8573_v20  ;;  %v2789_v6 = vmul.f32 %v5537_v57, %v8492_v26  ;;  %v2823_v58 = vadd.f32 1.0, %v2727_v60 }
 0x551   :  { %6574 = vrsqrt.f32 %v2434_v3  ;;  %v2435_v25 = vadd.f32 1e-05, %v2371_v56  ;;  %v2372_v37 = vsub.f32 %v2308_v53, %v8571_v28  ;;  %v8605_v14 = vmul.f32 0.03125, %v2100_v0 }
 0x552   :  { %v2103_v11 = vpop.xlane.xlu1 %2102  ;;  %6576 = vrcp.f32 %v2822_v38  ;;  %v8613_v28 = vadd.f32 %v8362_v21, %v2534_v54  ;;  %v2790_v13 = vmul.f32 %v5538_v45, %v8495_v50  ;;  %v2824_v30 = vadd.f32 1.0, %v2728_v39 }
 0x553   :  { %6578 = vrsqrt.f32 %v2435_v25  ;;  %v2436_v18 = vadd.f32 1e-05, %v2372_v37  ;;  %v8609_v51 = vmul.f32 0.03125, %v2103_v11  ;;  %v2603_v44 = vmin.f32 %v8602_v43, 20.0 }
 0x554   :  { %v2094_v8 = vpop.xlane.xlu0 %2093  ;;  %v6569_v29 = vpop.eup %6568  ;;  %v2343_v20 = vmul.f32 %v8605_v14, %v8605_v14  ;;  %v5539_v38 = vadd.f32 -1.0, %v2727_v60  ;;  %v5540_v50 = vadd.f32 -1.0, %v2728_v39  ;;  %v2604_v53 = vmin.f32 %v8613_v28, 20.0 }
 0x555   :  { %v8615_v62 = vmul.f32 0.03125, %v2094_v8  ;;  %6580 = vrsqrt.f32 %v2436_v18  ;;  %v8625_v2 = vmul.f32 %v8609_v51, %v8609_v51  ;;  %v2697_v56 = vadd.f32 1.0, %v6569_v29 }
 0x556   :  { %v2097_v26 = vpop.xlane.xlu1 %2096  ;;  %6582 = vrcp.f32 %v2823_v58  ;;  %v2649_v0 = vmul.f32 1.442695, %v2603_v44  ;;  %v2651_v18 = vmul.f32 1.442695, %v2604_v53  ;;  %v2791_v29 = vmul.f32 %v5539_v38, %v8514_v1 }
 0x557   :  { %v8627_v54 = vmul.f32 0.03125, %v2097_v26  ;;  %6584 = vrcp.f32 %v2824_v30  ;;  %v2341_v25 = vmul.f32 %v8615_v62, %v8615_v62  ;;  %v2729_v39 = vmul.f32 %v2697_v56, %v2697_v56 }
 0x558   :  { %v2255_v3 = vpop.xlane.xlu0 %2254  ;;  %6586 = vpow2.f32 %v2647_v17  ;;  %v2792_v23 = vmul.f32 %v5540_v50, %v8517_v9 }
 0x559   :  { %v6571_v57 = vpop.eup %6570  ;;  %v2309_v37 = vmul.f32 0.03125, %v2255_v3  ;;  %6588 = vpow2.f32 %v2649_v0  ;;  %v2342_v58 = vmul.f32 %v8627_v54, %v8627_v54  ;;  %v2825_v46 = vadd.f32 1.0, %v2729_v39 }
 0x55a   :  { %v6573_v45 = vpop.eup %6572  ;;  %v2497_v11 = vmul.f32 %v6571_v57, %v2401_v16  ;;  %v2258_v60 = vpop.xlane.xlu1 %2257  ;;  %6590 = vpow2.f32 %v2651_v18  ;;  %v5541_v47 = vadd.f32 -1.0, %v2729_v39  ;;  %v2406_v59 = vsub.f32 %v8267_v55, %v8627_v54  ;;  %v8717_v55 = vld [vmem:[%s10017_s10] ss:$0 sm:$0xff] }
 0x55b   :  { %v6575_v8 = vpop.eup %6574  ;;  %v2373_v30 = vsub.f32 %v2309_v37, %v2341_v25  ;;  %v2310_v44 = vmul.f32 0.03125, %v2258_v60  ;;  %v2885_v57 = vmul.f32 %v6573_v45, %v2789_v6  ;;  %6592 = vrcp.f32 %v2825_v46 }
 0x55c   :  { %v6577_v26 = vpop.eup %6576  ;;  %v2498_v3 = vmul.f32 %v6575_v8, %v2402_v35  ;;  %v2261_v17 = vpop.xlane.xlu0 %2260  ;;  %v2535_v25 = vmul.f32 %v8354_v15, %v2497_v11  ;;  %v2405_v45 = vsub.f32 %v8262_v10, %v8615_v62  ;;  %v2793_v18 = vmul.f32 %v5541_v47, %v8562_v34 }
 0x55d   :  { %v6579_v48 = vpop.eup %6578  ;;  %v2437_v63 = vadd.f32 1e-05, %v2373_v30  ;;  %v2374_v16 = vsub.f32 %v2310_v44, %v2342_v58  ;;  %v2311_v56 = vmul.f32 0.03125, %v2261_v17  ;;  %v2886_v53 = vmul.f32 %v6577_v26, %v2790_v13 }
 0x55e   :  { %v2264_v0 = vpop.xlane.xlu1 %2263  ;;  %v2499_v9 = vmul.f32 %v6579_v48, %v2403_v42  ;;  %v2536_v13 = vmul.f32 %v8354_v15, %v2498_v3  ;;  %v8649_v6 = vadd.f32 %v8362_v21, %v2535_v25  ;;  %v10116_v10 = vsub.f32 %v8228_v36, %v8540_v32 }
 0x55f   :  { %6594 = vrsqrt.f32 %v2437_v63  ;;  %v2438_v1 = vadd.f32 1e-05, %v2374_v16  ;;  %v2375_v38 = vsub.f32 %v2311_v56, %v2343_v20  ;;  %v2312_v35 = vmul.f32 0.03125, %v2264_v0  ;;  %v6581_v37 = vpop.eup %6580 }
 0x560   :  { %v2112_v50 = vpop.xlane.xlu0 %2111  ;;  %v8645_v60 = vpack.c.bf16 %v2886_v53, %v2885_v57  ;;  %v6583_v46 = vpop.eup %6582  ;;  %v2605_v8 = vmin.f32 %v8649_v6, 20.0  ;;  %v8665_v62 = vmul.f32 %v6581_v37, %v10116_v10  ;;  %v8668_v44 = vadd.f32 %v8362_v21, %v2536_v13 }
 0x561   :  { %6596 = vrsqrt.f32 %v2438_v1  ;;  %v2439_v20 = vadd.f32 1e-05, %v2375_v38  ;;  %v2376_v11 = vsub.f32 %v2312_v35, %v8625_v2  ;;  %v6585_v39 = vpop.eup %6584  ;;  %v8656_v22 = vmul.f32 0.03125, %v2112_v50 }
 0x562   :  { %v2115_v42 = vpop.xlane.xlu1 %2114  ;;  %6041 = vmatprep.mubr.msk.bf16.mxu0 %vm139_vm0, %v8645_v60  ;;  %v6587_v58 = vpop.eup %6586  ;;  %v2887_v30 = vmul.f32 %v6583_v46, %v2791_v29  ;;  %v2888_v17 = vmul.f32 %v6585_v39, %v2792_v23  ;;  %v8671_v34 = vmul.f32 %v8354_v15, %v2499_v9  ;;  %v2653_v32 = vmul.f32 1.442695, %v2605_v8  ;;  %v6295_v9 = vld [vmem:[%s10019_s12] sm:$0xff]  }
 0x563   :  { %v2440_v2 = vadd.f32 1e-05, %v2376_v11  ;;  %v6589_v26 = vpop.eup %6588  ;;  %6598 = vrsqrt.f32 %v2439_v20  ;;  %v2698_v48 = vadd.f32 1.0, %v6587_v58  ;;  %v8673_v47 = vmul.f32 0.03125, %v2115_v42  ;;  %6065 = vmatprep.subr.bf16.mxu1 %v6295_v9 }
 0x564   :  { %v2106_v3 = vpop.xlane.xlu0 %2105  ;;  %v2699_v36 = vadd.f32 1.0, %v6589_v26  ;;  %v6591_v16 = vpop.eup %6590  ;;  %v2347_v29 = vmul.f32 %v8656_v22, %v8656_v22  ;;  %v8681_v53 = vpack.c.bf16 %v2888_v17, %v2887_v30  ;;  %v2606_v57 = vmin.f32 %v8668_v44, 20.0  ;;  %6066 = vmatpush3.bf16.msra.mxu1 %v6295_v9 }
 0x565   :  { %v8675_v63 = vmul.f32 0.03125, %v2106_v3  ;;  %v2730_v23 = vmul.f32 %v2698_v48, %v2698_v48  ;;  %6600 = vrsqrt.f32 %v2440_v2  ;;  %v2700_v0 = vadd.f32 1.0, %v6591_v16  ;;  %v6593_v25 = vpop.eup %6592 }
 0x566   :  { %v2109_v56 = vpop.xlane.xlu1 %2108  ;;  %6042 = vmatmul.mubr.msk.bf16.gmra.mrb[72].mxu0 %vm139_vm0, %v8681_v53  ;;  %v2731_v37 = vmul.f32 %v2699_v36, %v2699_v36  ;;  %6602 = vpow2.f32 %v2653_v32  ;;  %v2348_v13 = vmul.f32 %v8673_v47, %v8673_v47  ;;  %v2889_v32 = vmul.f32 %v6593_v25, %v2793_v18 }
 0x567   :  { %v8683_v15 = vmul.f32 0.03125, %v2109_v56  ;;  %v5542_v38 = vadd.f32 -1.0, %v2730_v23  ;;  %v2826_v35 = vadd.f32 1.0, %v2730_v23  ;;  %v2345_v20 = vmul.f32 %v8675_v63, %v8675_v63 }
 0x568   :  { %v2267_v1 = vpop.xlane.xlu0 %2266  ;;  %v2409_v39 = vsub.f32 %v8294_v40, %v8675_v63  ;;  %v2732_v58 = vmul.f32 %v2700_v0, %v2700_v0  ;;  %v2827_v3 = vadd.f32 1.0, %v2731_v37  ;;  %v8721_v54 = vadd.f32 %v8717_v55, %v8671_v34 }
 0x569   :  { %v6595_v50 = vpop.eup %6594  ;;  %v2313_v11 = vmul.f32 0.03125, %v2267_v1  ;;  %v2346_v42 = vmul.f32 %v8683_v15, %v8683_v15  ;;  %6604 = vrcp.f32 %v2826_v35  ;;  %v2410_v2 = vsub.f32 %v8299_v12, %v8683_v15 }
 0x56a   :  { %v2270_v8 = vpop.xlane.xlu1 %2269  ;;  %v2501_v17 = vmul.f32 %v6595_v50, %v2405_v45  ;;  %v2794_v36 = vmul.f32 %v5542_v38, %v8584_v27  ;;  %v2828_v16 = vadd.f32 1.0, %v2732_v58  ;;  %v5543_v35 = vadd.f32 -1.0, %v2731_v37  ;;  %v8710_v45 = vld [vmem:[%s10016_s9] ss:$0 sm:$0xff] }
 0x56b   :  { %v6597_v10 = vpop.eup %6596  ;;  %v2377_v30 = vsub.f32 %v2313_v11, %v2345_v20  ;;  %v2314_v26 = vmul.f32 0.03125, %v2270_v8  ;;  %6606 = vrcp.f32 %v2827_v3  ;;  %v2655_v20 = vmul.f32 1.442695, %v2606_v57 }
 0x56c   :  { %v2273_v48 = vpop.xlane.xlu0 %2272  ;;  %v2502_v46 = vmul.f32 %v6597_v10, %v2406_v59  ;;  %v2538_v27 = vmul.f32 %v8710_v45, %v8665_v62  ;;  %v5544_v9 = vadd.f32 -1.0, %v2732_v58  ;;  %v2607_v8 = vmin.f32 %v8721_v54, 20.0 }
 0x56d   :  { %v2441_v56 = vadd.f32 1e-05, %v2377_v30  ;;  %v2378_v23 = vsub.f32 %v2314_v26, %v2346_v42  ;;  %v2315_v1 = vmul.f32 0.03125, %v2273_v48  ;;  %v6599_v0 = vpop.eup %6598  ;;  %v10117_v34 = vsub.f32 %v8250_v19, %v8605_v14 }
 0x56e   :  { %v2276_v21 = vpop.xlane.xlu1 %2275  ;;  %v8724_v59 = vadd.f32 %v8717_v55, %v2538_v27  ;;  %v2539_v26 = vmul.f32 %v8710_v45, %v2501_v17  ;;  %v2796_v19 = vmul.f32 %v5544_v9, %v8613_v28  ;;  %v2540_v27 = vmul.f32 %v8710_v45, %v2502_v46 }
 0x56f   :  { %6608 = vrsqrt.f32 %v2441_v56  ;;  %v2442_v18 = vadd.f32 1e-05, %v2378_v23  ;;  %v2379_v25 = vsub.f32 %v2315_v1, %v2347_v29  ;;  %v2316_v38 = vmul.f32 0.03125, %v2276_v21  ;;  %v6601_v62 = vpop.eup %6600 }
 0x570   :  { %v2124_v37 = vpop.xlane.xlu0 %2123  ;;  %6610 = vrcp.f32 %v2828_v16  ;;  %v2795_v21 = vmul.f32 %v5543_v35, %v8602_v43  ;;  %v6603_v50 = vpop.eup %6602  ;;  %v2608_v58 = vmin.f32 %v8724_v59, 20.0  ;;  %v2503_v10 = vmul.f32 %v6599_v0, %v10117_v34 }
 0x571   :  { %6612 = vrsqrt.f32 %v2442_v18  ;;  %v2443_v57 = vadd.f32 1e-05, %v2379_v25  ;;  %v2380_v29 = vsub.f32 %v2316_v38, %v2348_v13  ;;  %v8727_v11 = vmul.f32 0.03125, %v2124_v37 }
 0x572   :  { %v2127_v42 = vpop.xlane.xlu1 %2126  ;;  %6614 = vpow2.f32 %v2655_v20  ;;  %v2701_v48 = vadd.f32 1.0, %v6603_v50  ;;  %v2657_v16 = vmul.f32 1.442695, %v2607_v8  ;;  %v2659_v56 = vmul.f32 1.442695, %v2608_v58 }
 0x573   :  { %6616 = vrsqrt.f32 %v2443_v57  ;;  %v2444_v30 = vadd.f32 1e-05, %v2380_v29  ;;  %v6605_v13 = vpop.eup %6604  ;;  %v8735_v3 = vmul.f32 0.03125, %v2127_v42  ;;  %v10118_v23 = vsub.f32 %v8256_v61, %v8609_v51 }
 0x574   :  { %v2118_v43 = vpop.xlane.xlu0 %2117  ;;  %v2890_v20 = vmul.f32 %v6605_v13, %v2794_v36  ;;  %v2351_v14 = vmul.f32 %v8727_v11, %v8727_v11  ;;  %v2733_v0 = vmul.f32 %v2701_v48, %v2701_v48  ;;  %6618 = vpow2.f32 %v2657_v16 }
 0x575   :  { %v2504_v1 = vmul.f32 %v6601_v62, %v10118_v23  ;;  %v8740_v35 = vmul.f32 0.03125, %v2118_v43  ;;  %6620 = vrsqrt.f32 %v2444_v30  ;;  %v2415_v18 = vsub.f32 %v8314_v33, %v8727_v11  ;;  %v6607_v51 = vpop.eup %6606 }
 0x576   :  { %v2121_v17 = vpop.xlane.xlu1 %2120  ;;  %v8750_v61 = vpack.c.bf16 %v2890_v20, %v2889_v32  ;;  %v2352_v28 = vmul.f32 %v8735_v3, %v8735_v3  ;;  %v2829_v38 = vadd.f32 1.0, %v2733_v0  ;;  %6622 = vpow2.f32 %v2659_v56 }
 0x577   :  { %v8748_v25 = vmul.f32 0.03125, %v2121_v17  ;;  %v8755_v37 = vadd.f32 %v8717_v55, %v2539_v26  ;;  %v2416_v46 = vsub.f32 %v8320_v4, %v8735_v3  ;;  %v2349_v62 = vmul.f32 %v8740_v35, %v8740_v35 }
 0x578   :  { %v2279_v36 = vpop.xlane.xlu0 %2278  ;;  %6045 = vmatprep.mubr.msk.bf16.mxu0 %vm139_vm0, %v8750_v61  ;;  %v5545_v57 = vadd.f32 -1.0, %v2733_v0  ;;  %v2891_v58 = vmul.f32 %v6607_v51, %v2795_v21  ;;  %v8769_v34 = vadd.f32 %v8717_v55, %v2540_v27  ;;  %6624 = vrcp.f32 %v2829_v38 }
 0x579   :  { %v6609_v9 = vpop.eup %6608  ;;  %v2317_v32 = vmul.f32 0.03125, %v2279_v36  ;;  %v2350_v42 = vmul.f32 %v8748_v25, %v8748_v25  ;;  %v2609_v48 = vmin.f32 %v8755_v37, 20.0  ;;  %v2541_v21 = vmul.f32 %v8710_v45, %v2503_v10 }
 0x57a   :  { %v6611_v29 = vpop.eup %6610  ;;  %v2505_v50 = vmul.f32 %v6609_v9, %v2409_v39  ;;  %v2282_v8 = vpop.xlane.xlu1 %2281  ;;  %v2610_v39 = vmin.f32 %v8769_v34, 20.0  ;;  %v2542_v9 = vmul.f32 %v8710_v45, %v2504_v1  ;;  %v10119_v38 = vsub.f32 %v8282_v31, %v8656_v22 }
 0x57b   :  { %v6613_v30 = vpop.eup %6612  ;;  %v2381_v26 = vsub.f32 %v2317_v32, %v2349_v62  ;;  %v2318_v13 = vmul.f32 0.03125, %v2282_v8  ;;  %v2892_v43 = vmul.f32 %v6611_v29, %v2796_v19  ;;  %v2661_v51 = vmul.f32 1.442695, %v2609_v48 }
 0x57c   :  { %v6615_v16 = vpop.eup %6614  ;;  %v2506_v40 = vmul.f32 %v6613_v30, %v2410_v2  ;;  %v2285_v63 = vpop.xlane.xlu0 %2284  ;;  %v2663_v36 = vmul.f32 1.442695, %v2610_v39  ;;  %v8786_v29 = vadd.f32 %v8717_v55, %v2541_v21  ;;  %v10120_v48 = vsub.f32 %v8288_v7, %v8673_v47 }
 0x57d   :  { %v6617_v56 = vpop.eup %6616  ;;  %v2445_v23 = vadd.f32 1e-05, %v2381_v26  ;;  %v2382_v20 = vsub.f32 %v2318_v13, %v2350_v42  ;;  %v8777_v17 = vpack.c.bf16 %v2892_v43, %v2891_v58  ;;  %v2319_v0 = vmul.f32 0.03125, %v2285_v63 }
 0x57e   :  { %v2288_v19 = vpop.xlane.xlu1 %2287  ;;  %v2702_v27 = vadd.f32 1.0, %v6615_v16  ;;  %v6619_v10 = vpop.eup %6618  ;;  %v2507_v62 = vmul.f32 %v6617_v56, %v10119_v38  ;;  %v2611_v63 = vmin.f32 %v8786_v29, 20.0  ;;  %v2413_v39 = vsub.f32 %v8326_v49, %v8740_v35 }
 0x57f   :  { %6626 = vrsqrt.f32 %v2445_v23  ;;  %v2446_v12 = vadd.f32 1e-05, %v2382_v20  ;;  %6046 = vmatmul.mubr.msk.bf16.gmra.mrb[76].mxu0 %vm139_vm0, %v8777_v17  ;;  %v2383_v15 = vsub.f32 %v2319_v0, %v2351_v14  ;;  %v2320_v2 = vmul.f32 0.03125, %v2288_v19  ;;  %v6621_v42 = vpop.eup %6620 }
 0x580   :  { %v2734_v32 = vmul.f32 %v2702_v27, %v2702_v27  ;;  %6628 = vpow2.f32 %v2661_v51  ;;  %v2703_v58 = vadd.f32 1.0, %v6619_v10  ;;  %v6623_v30 = vpop.eup %6622  ;;  %v8789_v14 = vadd.f32 %v8717_v55, %v2542_v9 }
 0x581   :  { %6630 = vrsqrt.f32 %v2446_v12  ;;  %v2447_v1 = vadd.f32 1e-05, %v2383_v15  ;;  %v2384_v8 = vsub.f32 %v2320_v2, %v2352_v28  ;;  %v2704_v22 = vadd.f32 1.0, %v6623_v30 }
 0x582   :  { %v5546_v26 = vadd.f32 -1.0, %v2734_v32  ;;  %v2830_v13 = vadd.f32 1.0, %v2734_v32  ;;  %6632 = vpow2.f32 %v2663_v36  ;;  %v2735_v43 = vmul.f32 %v2703_v58, %v2703_v58  ;;  %v6625_v23 = vpop.eup %6624 }
 0x583   :  { %6634 = vrsqrt.f32 %v2447_v1  ;;  %v2448_v31 = vadd.f32 1e-05, %v2384_v8  ;;  %v2508_v16 = vmul.f32 %v6621_v42, %v10120_v48  ;;  %v2612_v28 = vmin.f32 %v8789_v14, 20.0 }
 0x584   :  { %6636 = vrcp.f32 %v2830_v13  ;;  %v2414_v21 = vsub.f32 %v8331_v41, %v8748_v25  ;;  %v2736_v56 = vmul.f32 %v2704_v22, %v2704_v22  ;;  %v2797_v20 = vmul.f32 %v5545_v57, %v8649_v6 }
 0x585   :  { %6638 = vrsqrt.f32 %v2448_v31  ;;  %v2831_v0 = vadd.f32 1.0, %v2735_v43  ;;  %v2665_v19 = vmul.f32 1.442695, %v2611_v63  ;;  %v2543_v7 = vmul.f32 %v8710_v45, %v2505_v50 }
 0x586   :  { %v2798_v47 = vmul.f32 %v5546_v26, %v8668_v44  ;;  %v2832_v27 = vadd.f32 1.0, %v2736_v56  ;;  %v2667_v51 = vmul.f32 1.442695, %v2612_v28  ;;  %v2544_v36 = vmul.f32 %v8710_v45, %v2506_v40 }
 0x587   :  { %6640 = vrcp.f32 %v2831_v0  ;;  %v8805_v49 = vadd.f32 %v8717_v55, %v2543_v7  ;;  %v2545_v41 = vmul.f32 %v8710_v45, %v2507_v62  ;;  %v2546_v35 = vmul.f32 %v8710_v45, %v2508_v16 }
 0x588   :  { %v5547_v6 = vadd.f32 -1.0, %v2735_v43  ;;  %v5548_v57 = vadd.f32 -1.0, %v2736_v56  ;;  %6642 = vrcp.f32 %v2832_v27  ;;  %v8810_v50 = vadd.f32 %v8717_v55, %v2544_v36 }
 0x589   :  { %v6627_v25 = vpop.eup %6626  ;;  %6644 = vpow2.f32 %v2665_v19  ;;  %v2613_v40 = vmin.f32 %v8805_v49, 20.0  ;;  %v8814_v12 = vadd.f32 %v8717_v55, %v2545_v41  ;;  %v8818_v38 = vadd.f32 %v8717_v55, %v2546_v35 }
 0x58a   :  { %v6629_v44 = vpop.eup %6628  ;;  %v2509_v9 = vmul.f32 %v6627_v25, %v2413_v39  ;;  %6646 = vpow2.f32 %v2667_v51  ;;  %v2614_v10 = vmin.f32 %v8810_v50, 20.0  ;;  %v2893_v48 = vmul.f32 %v6625_v23, %v2797_v20 }
 0x58b   :  { %v6631_v15 = vpop.eup %6630  ;;  %v2705_v2 = vadd.f32 1.0, %v6629_v44  ;;  %v2669_v42 = vmul.f32 1.442695, %v2613_v40  ;;  %v2615_v1 = vmin.f32 %v8814_v12, 20.0  ;;  %v2616_v31 = vmin.f32 %v8818_v38, 20.0 }
 0x58c   :  { %v6633_v62 = vpop.eup %6632  ;;  %v2510_v32 = vmul.f32 %v6631_v15, %v2414_v21  ;;  %v2547_v8 = vmul.f32 %v8710_v45, %v2509_v9  ;;  %v2671_v13 = vmul.f32 1.442695, %v2614_v10  ;;  %v2799_v39 = vmul.f32 %v5547_v6, %v8721_v54 }
 0x58d   :  { %v6635_v58 = vpop.eup %6634  ;;  %v2706_v30 = vadd.f32 1.0, %v6633_v62  ;;  %v2737_v26 = vmul.f32 %v2705_v2, %v2705_v2  ;;  %6648 = vpow2.f32 %v2669_v42  ;;  %v2673_v19 = vmul.f32 1.442695, %v2615_v1 }
 0x58e   :  { %v6637_v22 = vpop.eup %6636  ;;  %v2511_v43 = vmul.f32 %v6635_v58, %v2415_v18  ;;  %v2548_v16 = vmul.f32 %v8710_v45, %v2510_v32  ;;  %6650 = vpow2.f32 %v2671_v13  ;;  %v8832_v7 = vadd.f32 %v8717_v55, %v2547_v8 }
 0x58f   :  { %v6639_v63 = vpop.eup %6638  ;;  %v2894_v28 = vmul.f32 %v6637_v22, %v2798_v47  ;;  %v2738_v21 = vmul.f32 %v2706_v30, %v2706_v30  ;;  %v2833_v56 = vadd.f32 1.0, %v2737_v26  ;;  %v2800_v11 = vmul.f32 %v5548_v57, %v8724_v59 }
 0x590   :  { %v2512_v0 = vmul.f32 %v6639_v63, %v2416_v46  ;;  %v2675_v23 = vmul.f32 1.442695, %v2616_v31  ;;  %v8838_v54 = vadd.f32 %v8717_v55, %v2548_v16  ;;  %v2617_v47 = vmin.f32 %v8832_v7, 20.0 }
 0x591   :  { %v8834_v33 = vpack.c.bf16 %v2894_v28, %v2893_v48  ;;  %v2834_v18 = vadd.f32 1.0, %v2738_v21  ;;  %v6641_v20 = vpop.eup %6640  ;;  %6652 = vrcp.f32 %v2833_v56  ;;  %v2549_v4 = vmul.f32 %v8710_v45, %v2511_v43 }
 0x592   :  { %v6643_v3 = vpop.eup %6642  ;;  %v2895_v46 = vmul.f32 %v6641_v20, %v2799_v39  ;;  %v2550_v27 = vmul.f32 %v8710_v45, %v2512_v0  ;;  %v2618_v36 = vmin.f32 %v8838_v54, 20.0  ;;  %v2677_v41 = vmul.f32 1.442695, %v2617_v47 }
 0x593   :  { %6049 = vmatprep.mubr.msk.bf16.mxu0 %vm139_vm0, %v8834_v33  ;;  %6654 = vrcp.f32 %v2834_v18  ;;  %v6645_v59 = vpop.eup %6644  ;;  %v2896_v51 = vmul.f32 %v6643_v3, %v2800_v11  ;;  %v8847_v6 = vadd.f32 %v8717_v55, %v2549_v4  ;;  %v5549_v40 = vadd.f32 -1.0, %v2737_v26 }
 0x594   :  { %6656 = vpow2.f32 %v2673_v19  ;;  %v6647_v35 = vpop.eup %6646  ;;  %v2707_v25 = vadd.f32 1.0, %v6645_v59  ;;  %v8850_v57 = vadd.f32 %v8717_v55, %v2550_v27  ;;  %v2679_v45 = vmul.f32 1.442695, %v2618_v36 }
 0x595   :  { %6658 = vpow2.f32 %v2675_v23  ;;  %v8852_v44 = vpack.c.bf16 %v2896_v51, %v2895_v46  ;;  %v2708_v9 = vadd.f32 1.0, %v6647_v35  ;;  %v2619_v2 = vmin.f32 %v8847_v6, 20.0 }
 0x596   :  { %6660 = vpow2.f32 %v2677_v41  ;;  %v2739_v15 = vmul.f32 %v2707_v25, %v2707_v25  ;;  %v5550_v62 = vadd.f32 -1.0, %v2738_v21  ;;  %v2620_v42 = vmin.f32 %v8850_v57, 20.0 }
 0x597   :  { %v6649_v10 = vpop.eup %6648  ;;  %6050 = vmatmul.mubr.msk.bf16.gmra.mrb[80].mxu0 %vm139_vm0, %v8852_v44  ;;  %v2740_v32 = vmul.f32 %v2708_v9, %v2708_v9  ;;  %6662 = vpow2.f32 %v2679_v45  ;;  %v2681_v30 = vmul.f32 1.442695, %v2619_v2  ;;  %v2801_v22 = vmul.f32 %v5549_v40, %v8755_v37 }
 0x598   :  { %v2835_v55 = vadd.f32 1.0, %v2739_v15  ;;  %v2709_v1 = vadd.f32 1.0, %v6649_v10  ;;  %v6651_v8 = vpop.eup %6650  ;;  %v2802_v43 = vmul.f32 %v5550_v62, %v8769_v34  ;;  %v2683_v48 = vmul.f32 1.442695, %v2620_v42 }
 0x599   :  { %v2836_v58 = vadd.f32 1.0, %v2740_v32  ;;  %v2710_v13 = vadd.f32 1.0, %v6651_v8  ;;  %v5551_v37 = vadd.f32 -1.0, %v2739_v15  ;;  %v5552_v34 = vadd.f32 -1.0, %v2740_v32 }
 0x59a   :  { %6664 = vrcp.f32 %v2835_v55  ;;  %v2741_v26 = vmul.f32 %v2709_v1, %v2709_v1 }
 0x59b   :  { %v6653_v31 = vpop.eup %6652  ;;  %6666 = vrcp.f32 %v2836_v58  ;;  %v2742_v63 = vmul.f32 %v2710_v13, %v2710_v13  ;;  %v2803_v35 = vmul.f32 %v5551_v37, %v8786_v29  ;;  %v2804_v25 = vmul.f32 %v5552_v34, %v8789_v14 }
 0x59c   :  { %v2837_v28 = vadd.f32 1.0, %v2741_v26  ;;  %v2897_v21 = vmul.f32 %v6653_v31, %v2801_v22  ;;  %6668 = vpow2.f32 %v2681_v30  ;;  %v5553_v15 = vadd.f32 -1.0, %v2741_v26 }
 0x59d   :  { %v6655_v16 = vpop.eup %6654  ;;  %v2838_v19 = vadd.f32 1.0, %v2742_v63  ;;  %v5554_v2 = vadd.f32 -1.0, %v2742_v63 }
 0x59e   :  { %v6657_v39 = vpop.eup %6656  ;;  %v2898_v56 = vmul.f32 %v6655_v16, %v2802_v43  ;;  %6670 = vrcp.f32 %v2837_v28  ;;  %v2805_v29 = vmul.f32 %v5553_v15, %v8805_v49  ;;  %v10127_v15 = vld [vmem:[#allocation6_spill] sm:$0xff] }
 0x59f   :  { %v6659_v0 = vpop.eup %6658  ;;  %v2711_v23 = vadd.f32 1.0, %v6657_v39  ;;  %6672 = vpow2.f32 %v2683_v48  ;;  %v2806_v14 = vmul.f32 %v5554_v2, %v8810_v50  ;;  %v10128_v2 = vld [vmem:[#allocation7_spill] sm:$0xff] }
 0x5a0   :  { %v6661_v11 = vpop.eup %6660  ;;  %v8860_v18 = vpack.c.bf16 %v2898_v56, %v2897_v21  ;;  %v2712_v20 = vadd.f32 1.0, %v6659_v0  ;;  %6674 = vrcp.f32 %v2838_v19 }
 0x5a1   :  { %v2713_v47 = vadd.f32 1.0, %v6661_v11  ;;  %v6663_v4 = vpop.eup %6662  ;;  %v2743_v3 = vmul.f32 %v2711_v23, %v2711_v23 }
 0x5a2   :  { %6053 = vmatprep.mubr.msk.bf16.mxu0 %vm139_vm0, %v8860_v18  ;;  %v2744_v46 = vmul.f32 %v2712_v20, %v2712_v20  ;;  %v2714_v27 = vadd.f32 1.0, %v6663_v4 }
 0x5a3   :  { %v2745_v59 = vmul.f32 %v2713_v47, %v2713_v47  ;;  %v2839_v51 = vadd.f32 1.0, %v2743_v3  ;;  %v5555_v43 = vadd.f32 -1.0, %v2743_v3 }
 0x5a4   :  { %v2840_v36 = vadd.f32 1.0, %v2744_v46  ;;  %v6665_v41 = vpop.eup %6664  ;;  %v2746_v9 = vmul.f32 %v2714_v27, %v2714_v27  ;;  %v5556_v48 = vadd.f32 -1.0, %v2744_v46 }
 0x5a5   :  { %v2841_v45 = vadd.f32 1.0, %v2745_v59  ;;  %v6667_v40 = vpop.eup %6666  ;;  %6676 = vrcp.f32 %v2839_v51  ;;  %v2899_v10 = vmul.f32 %v6665_v41, %v2803_v35  ;;  %v5557_v39 = vadd.f32 -1.0, %v2745_v59 }
 0x5a6   :  { %v2900_v62 = vmul.f32 %v6667_v40, %v2804_v25  ;;  %6678 = vrcp.f32 %v2840_v36  ;;  %v6669_v32 = vpop.eup %6668  ;;  %v2842_v42 = vadd.f32 1.0, %v2746_v9  ;;  %v5558_v21 = vadd.f32 -1.0, %v2746_v9  ;;  %v10122_v9 = vld [vmem:[#allocation11_spill] sm:$0xff]  ;;  %v10126_v40 = vld [vmem:[#allocation5_spill] sm:$0xff] }
 0x5a7   :  { %6680 = vrcp.f32 %v2841_v45  ;;  %v2715_v8 = vadd.f32 1.0, %v6669_v32  ;;  %v2807_v56 = vmul.f32 %v5555_v43, %v8814_v12  ;;  %v2808_v0 = vmul.f32 %v5556_v48, %v8818_v38  ;;  %v10123_v45 = vld [vmem:[#allocation12_spill] sm:$0xff] }
 0x5a8   :  { %v6671_v55 = vpop.eup %6670  ;;  %v8866_v1 = vpack.c.bf16 %v2900_v62, %v2899_v10  ;;  %6682 = vrcp.f32 %v2842_v42  ;;  %v2809_v37 = vmul.f32 %v5557_v39, %v8832_v7  ;;  %v2810_v34 = vmul.f32 %v5558_v21, %v8838_v54  ;;  %v10129_v10 = vld [vmem:[#allocation8_spill] sm:$0xff] }
 0x5a9   :  { %v6673_v58 = vpop.eup %6672  ;;  %v2747_v26 = vmul.f32 %v2715_v8, %v2715_v8  ;;  %v2901_v31 = vmul.f32 %v6671_v55, %v2805_v29  ;;  %v10121_v25 = vmov 0   ;;  %v10133_v48 = vld [vmem:[#allocation16_spill] sm:$0xff] }
 0x5aa   :  { %v6675_v30 = vpop.eup %6674  ;;  %6054 = vmatmul.mubr.msk.bf16.gmra.mrb[84].mxu0 %vm139_vm0, %v8866_v1  ;;  %v2716_v13 = vadd.f32 1.0, %v6673_v58  ;;  %v10130_v58 = vld [vmem:[#allocation9_spill] sm:$0xff] }
 0x5ab   :  { %v2902_v22 = vmul.f32 %v6675_v30, %v2806_v14  ;;  %v2843_v63 = vadd.f32 1.0, %v2747_v26  ;;  %v5559_v12 = vadd.f32 -1.0, %v2747_v26  ;;  %v10131_v14 = vld [vmem:[#allocation10_spill] sm:$0xff]  ;;  %v10132_v30 = vld [vmem:[#allocation15_spill] sm:$0xff] }
 0x5ac   :  { %v2748_v16 = vmul.f32 %v2716_v13, %v2716_v13  ;;  %v6296_v13 = vld [vmem:[%s10024_s17] ss:$8 sps:$4 sm:$0xff]   ;;  %v6298_v26 = vld [vmem:[%s10024_s17 + $0x4] ss:$8 sps:$4 sm:$0xff]  }
 0x5ad   :  { %v8872_v28 = vpack.c.bf16 %v2902_v22, %v2901_v31  ;;  %6684 = vrcp.f32 %v2843_v63  ;;  %v2811_v7 = vmul.f32 %v5559_v12, %v8847_v6  ;;  %v10124_v6 = vld [vmem:[#allocation13_spill] sm:$0xff]  ;;  %v6301_v31 = vld [vmem:[%s10024_s17 + $0x14] ss:$8 sps:$4 sm:$0xff]   ;;  %4327 = vmatprep.subr.bf16.mxu1 %v6298_v26  ;;  %v6299_v22 = vld [vmem:[%s10024_s17 + $0x10] ss:$8 sps:$4 sm:$0xff]  }
 0x5ae   :  { %v2844_v49 = vadd.f32 1.0, %v2748_v16  ;;  %v5560_v27 = vadd.f32 -1.0, %v2748_v16 }
 0x5af   :  { %v6677_v50 = vpop.eup %6676  ;;  %6057 = vmatprep.mubr.msk.bf16.mxu0 %vm139_vm0, %v8872_v28 }
 0x5b0   :  { %v6679_v19 = vpop.eup %6678  ;;  %6686 = vrcp.f32 %v2844_v49  ;;  %v2903_v23 = vmul.f32 %v6677_v50, %v2807_v56  ;;  %v2812_v54 = vmul.f32 %v5560_v27, %v8850_v57  ;;  %v10125_v57 = vld [vmem:[#allocation14_spill] sm:$0xff]  ;;  %v10134_v50 = vld [vmem:[#allocation17_spill] sm:$0xff] }
 0x5b1   :  { %v6681_v11 = vpop.eup %6680  ;;  %v2904_v20 = vmul.f32 %v6679_v19, %v2808_v0  ;;  %v10135_v56 = vld [vmem:[#allocation18_spill] sm:$0xff]  ;;  %v10136_v0 = vld [vmem:[#allocation19_spill] sm:$0xff] }
 0x5b2   :  { %v6683_v47 = vpop.eup %6682  ;;  %v2905_v3 = vmul.f32 %v6681_v11, %v2809_v37 }
 0x5b3   :  { %v8880_v4 = vpack.c.bf16 %v2904_v20, %v2903_v23  ;;  %v2906_v46 = vmul.f32 %v6683_v47, %v2810_v34  ;;  %v10137_v47 = vld [vmem:[#allocation20_spill] sm:$0xff] }
 0x5b5   :  { %6058 = vmatmul.mubr.msk.bf16.gmra.mrb[88].mxu0 %vm139_vm0, %v8880_v4  ;;  %v8884_v38 = vpack.c.bf16 %v2906_v46, %v2905_v3 }
 0x5b7   :  { %v6685_v59 = vpop.eup %6684  ;;  %6061 = vmatprep.mubr.msk.bf16.mxu0 %vm139_vm0, %v8884_v38 }
 0x5b8   :  { %v2907_v36 = vmul.f32 %v6685_v59, %v2811_v7 }
 0x5ba   :  { %v6687_v51 = vpop.eup %6686 }
 0x5bb   :  { %v2908_v41 = vmul.f32 %v6687_v51, %v2812_v54 }
 0x5bd   :  { %v8890_v35 = vpack.c.bf16 %v2908_v41, %v2907_v36 }
 0x5bf   :  { %6062 = vmatmul.mubr.msk.bf16.gmra.mrb[92].mxu0 %vm139_vm0, %v8890_v35 }
 0x5c0   :  { %4632 = vmatprep.mubr.bf16.mxu0 %v10121_v25 }
 0x5c7   :  { %4633 = vmatmul.mubr.bf16.vlgmr.msra.gmra.mrb[96].mxu0 %v10122_v9 }
 0x5c8   :  { %4642 = vmatprep.mubr.bf16.mxu0 %v10121_v25 }
 0x5cf   :  { %4643 = vmatmul.mubr.bf16.gmra.mrb[100].mxu0 %v10123_v45 }
 0x5d0   :  { %4652 = vmatprep.mubr.bf16.mxu0 %v10121_v25 }
 0x5d7   :  { %4653 = vmatmul.mubr.bf16.gmra.mrb[104].mxu0 %v10124_v6 }
 0x5d8   :  { %4662 = vmatprep.mubr.bf16.mxu0 %v10121_v25 }
 0x5df   :  { %4663 = vmatmul.mubr.bf16.gmra.mrb[108].mxu0 %v10125_v57 }
 0x5e0   :  { %4672 = vmatprep.mubr.bf16.mxu0 %v10121_v25 }
 0x5e7   :  { %4673 = vmatmul.mubr.bf16.gmra.mrb[112].mxu0 %v10126_v40 }
 0x5e8   :  { %4682 = vmatprep.mubr.bf16.mxu0 %v10121_v25 }
 0x5ef   :  { %4683 = vmatmul.mubr.bf16.gmra.mrb[116].mxu0 %v10127_v15 }
 0x5f0   :  { %4692 = vmatprep.mubr.bf16.mxu0 %v10121_v25 }
 0x5f7   :  { %4693 = vmatmul.mubr.bf16.gmra.mrb[120].mxu0 %v10128_v2 }
 0x5f8   :  { %4702 = vmatprep.mubr.bf16.mxu0 %v10121_v25 }
 0x5fd   :  { %v6035_v62 = vpop.f32.mrb[64].mxu0 }
 0x5fe   :  { %v3023_v32 = vpop.f32.mrb[65].mxu0 }
 0x5ff   :  { %4703 = vmatmul.mubr.bf16.gmra.mrb[124].mxu0 %v10129_v10  ;;  %v6036_v42 = vpop.f32.mrb[66].mxu0 }
 0x600   :  { %4712 = vmatprep.mubr.bf16.mxu0 %v10121_v25  ;;  %v3151_v55 = vpack.c.bf16 %v6036_v42, %v6035_v62  ;;  %v3026_v8 = vpop.f32.mrb[67].mxu0 }
 0x601   :  { %v3150_v29 = vpack.c.bf16 %v3026_v8, %v3023_v32 }
 0x603   :  { %6067 = vmatprep.mubr.msk.bf16.mxu1 %vm3181_vm2, %v3150_v29 }
 0x604   :  { %6068 = vmatmul.mubr.msk.bf16.vlgmr.msra.gmra.mrb[128].mxu1 %vm3181_vm2, %v3151_v55 }
 0x605   :  { %4328 = vmatpush1.bf16.msra.mxu1 %v6296_v13 }
 0x606   :  { %4329 = vmatprep.subr.bf16.mxu1 %v6301_v31 }
 0x607   :  { %4713 = vmatmul.mubr.bf16.gmra.mrb[128].mxu0 %v10130_v58 }
 0x608   :  { %4722 = vmatprep.mubr.bf16.mxu0 %v10121_v25 }
 0x609   :  { %4330 = vmatpush1.bf16.msra.mxu1 %v6299_v22  ;;  %v10138_v22 = vld [vmem:[#allocation21_spill] sm:$0xff] }
 0x60f   :  { %4723 = vmatmul.mubr.bf16.gmra.mrb[132].mxu0 %v10131_v14 }
 0x610   :  { %4732 = vmatprep.mubr.bf16.mxu0 %v10121_v25 }
 0x617   :  { %4733 = vmatmul.mubr.bf16.gmra.mrb[136].mxu0 %v10132_v30 }
 0x618   :  { %4742 = vmatprep.mubr.bf16.mxu0 %v10121_v25 }
 0x61e   :  { %v6039_v43 = vpop.f32.mrb[68].mxu0 }
 0x61f   :  { %4743 = vmatmul.mubr.bf16.gmra.mrb[140].mxu0 %v10133_v48  ;;  %v3039_v16 = vpop.f32.mrb[69].mxu0 }
 0x620   :  { %4752 = vmatprep.mubr.bf16.mxu0 %v10121_v25  ;;  %v6040_v63 = vpop.f32.mrb[70].mxu0 }
 0x621   :  { %v3153_v39 = vpack.c.bf16 %v6040_v63, %v6039_v43  ;;  %v3042_v21 = vpop.f32.mrb[71].mxu0 }
 0x622   :  { %v3152_v49 = vpack.c.bf16 %v3042_v21, %v3039_v16 }
 0x624   :  { %6071 = vmatprep.mubr.msk.bf16.mxu1 %vm3181_vm2, %v3152_v49 }
 0x625   :  { %6072 = vmatmul.mubr.msk.bf16.gmra.mrb[132].mxu1 %vm3181_vm2, %v3153_v39 }
 0x627   :  { %4753 = vmatmul.mubr.bf16.gmra.mrb[144].mxu0 %v10134_v50 }
 0x628   :  { %4762 = vmatprep.mubr.bf16.mxu0 %v10121_v25 }
 0x62f   :  { %4763 = vmatmul.mubr.bf16.gmra.mrb[148].mxu0 %v10135_v56 }
 0x630   :  { %4772 = vmatprep.mubr.bf16.mxu0 %v10121_v25 }
 0x637   :  { %4773 = vmatmul.mubr.bf16.gmra.mrb[152].mxu0 %v10136_v0 }
 0x638   :  { %4782 = vmatprep.mubr.bf16.mxu0 %v10121_v25 }
 0x639   :  { %v6043_v19 = vpop.f32.mrb[72].mxu0 }
 0x63a   :  { %v3055_v11 = vpop.f32.mrb[73].mxu0 }
 0x63b   :  { %v6044_v23 = vpop.f32.mrb[74].mxu0 }
 0x63c   :  { %v3155_v20 = vpack.c.bf16 %v6044_v23, %v6043_v19  ;;  %v3058_v37 = vpop.f32.mrb[75].mxu0 }
 0x63d   :  { %v3154_v34 = vpack.c.bf16 %v3058_v37, %v3055_v11 }
 0x63f   :  { %4783 = vmatmul.mubr.bf16.gmra.mrb[156].mxu0 %v10137_v47  ;;  %6075 = vmatprep.mubr.msk.bf16.mxu1 %vm3181_vm2, %v3154_v34 }
 0x640   :  { %4886 = vmatprep.mubr.bf16.mxu0 %v10121_v25  ;;  %6076 = vmatmul.mubr.msk.bf16.gmra.mrb[136].mxu1 %vm3181_vm2, %v3155_v20 }
 0x652   :  { %v6047_v3 = vpop.f32.mrb[76].mxu0 }
 0x653   :  { %v3071_v46 = vpop.f32.mrb[77].mxu0 }
 0x654   :  { %v6048_v12 = vpop.f32.mrb[78].mxu0 }
 0x655   :  { %v3157_v27 = vpack.c.bf16 %v6048_v12, %v6047_v3  ;;  %v3074_v59 = vpop.f32.mrb[79].mxu0 }
 0x656   :  { %v3156_v7 = vpack.c.bf16 %v3074_v59, %v3071_v46 }
 0x658   :  { %6079 = vmatprep.mubr.msk.bf16.mxu1 %vm3181_vm2, %v3156_v7 }
 0x659   :  { %6080 = vmatmul.mubr.msk.bf16.gmra.mrb[140].mxu1 %vm3181_vm2, %v3157_v27 }
 0x66a   :  { %v6051_v54 = vpop.f32.mrb[80].mxu0 }
 0x66b   :  { %v3087_v51 = vpop.f32.mrb[81].mxu0 }
 0x66c   :  { %v6052_v36 = vpop.f32.mrb[82].mxu0 }
 0x66d   :  { %v3159_v41 = vpack.c.bf16 %v6052_v36, %v6051_v54  ;;  %v3090_v9 = vpop.f32.mrb[83].mxu0 }
 0x66e   :  { %v3158_v45 = vpack.c.bf16 %v3090_v9, %v3087_v51 }
 0x670   :  { %6083 = vmatprep.mubr.msk.bf16.mxu1 %vm3181_vm2, %v3158_v45 }
 0x671   :  { %6084 = vmatmul.mubr.msk.bf16.gmra.mrb[144].mxu1 %vm3181_vm2, %v3159_v41 }
 0x67d   :  { %v6055_v6 = vpop.f32.mrb[84].mxu0 }
 0x67e   :  { %v3103_v57 = vpop.f32.mrb[85].mxu0 }
 0x67f   :  { %v6056_v40 = vpop.f32.mrb[86].mxu0 }
 0x680   :  { %v3161_v15 = vpack.c.bf16 %v6056_v40, %v6055_v6  ;;  %v3106_v2 = vpop.f32.mrb[87].mxu0 }
 0x681   :  { %v3160_v10 = vpack.c.bf16 %v3106_v2, %v3103_v57 }
 0x683   :  { %6087 = vmatprep.mubr.msk.bf16.mxu1 %vm3181_vm2, %v3160_v10 }
 0x684   :  { %6088 = vmatmul.mubr.msk.bf16.gmra.mrb[148].mxu1 %vm3181_vm2, %v3161_v15 }
 0x688   :  { %v6059_v62 = vpop.f32.mrb[88].mxu0 }
 0x689   :  { %v3119_v32 = vpop.f32.mrb[89].mxu0 }
 0x68a   :  { %v6060_v42 = vpop.f32.mrb[90].mxu0 }
 0x68b   :  { %v3163_v55 = vpack.c.bf16 %v6060_v42, %v6059_v62  ;;  %v3122_v8 = vpop.f32.mrb[91].mxu0 }
 0x68c   :  { %v3162_v58 = vpack.c.bf16 %v3122_v8, %v3119_v32 }
 0x68e   :  { %6091 = vmatprep.mubr.msk.bf16.mxu1 %vm3181_vm2, %v3162_v58 }
 0x68f   :  { %6092 = vmatmul.mubr.msk.bf16.gmra.mrb[152].mxu1 %vm3181_vm2, %v3163_v55 }
 0x692   :  { %v6063_v29 = vpop.f32.mrb[92].mxu0 }
 0x693   :  { %v3135_v14 = vpop.f32.mrb[93].mxu0 }
 0x694   :  { %v6064_v30 = vpop.f32.mrb[94].mxu0 }
 0x695   :  { %v3165_v13 = vpack.c.bf16 %v6064_v30, %v6063_v29  ;;  %v3138_v26 = vpop.f32.mrb[95].mxu0 }
 0x696   :  { %v3164_v31 = vpack.c.bf16 %v3138_v26, %v3135_v14 }
 0x698   :  { %6095 = vmatprep.mubr.msk.bf16.mxu1 %vm3181_vm2, %v3164_v31 }
 0x699   :  { %6096 = vmatmul.mubr.msk.bf16.gmra.mrb[156].mxu1 %vm3181_vm2, %v3165_v13 }
 0x69a   :  { %4359 = vmatprep.mubr.bf16.mxu1 %v10121_v25 }
 0x6a1   :  { %5635 = vmatmul.mubr.msk.bf16.vlgmr.msra.gmra.mrb[160].mxu1 %vm139_vm0, %v8440_v5  ;;  %v4793_v5 = vld [vmem:[%s10025_s18] sm:$0xff] }
 0x6a2   :  { %4369 = vmatprep.mubr.bf16.mxu1 %v10121_v25 }
 0x6a9   :  { %5636 = vmatmul.mubr.msk.bf16.gmra.mrb[164].mxu1 %vm139_vm0, %v10138_v22 }
 0x6aa   :  { %4379 = vmatprep.mubr.bf16.mxu1 %v10121_v25 }
 0x6b1   :  { %5637 = vmatmul.mubr.msk.bf16.gmra.mrb[168].mxu1 %vm139_vm0, %v8535_v52  ;;  %v5668_v52 = vcombine.high %v4793_v5, %v4793_v5 }
 0x6b2   :  { %4389 = vmatprep.mubr.bf16.mxu1 %v10121_v25 }
 0x6b3   :  { %5669 = vmatprep.subr.msk.bf16.mxu0 %vm4847_vm3, %v5668_v52 }
 0x6b9   :  { %5638 = vmatmul.mubr.msk.bf16.gmra.mrb[172].mxu1 %vm139_vm0, %v8586_v24  ;;  %v5667_v24 = vcombine.low %v4793_v5, %v4793_v5 }
 0x6ba   :  { %4399 = vmatprep.mubr.bf16.mxu1 %v10121_v25 }
 0x6c1   :  { %5639 = vmatmul.mubr.msk.bf16.gmra.mrb[176].mxu1 %vm139_vm0, %v8645_v60  ;;  %v8986_v60 = vld [vmem:[%s10020_s13] ss:$0 sm:$0xff] }
 0x6c2   :  { %4409 = vmatprep.mubr.bf16.mxu1 %v10121_v25 }
 0x6c9   :  { %5640 = vmatmul.mubr.msk.bf16.gmra.mrb[180].mxu1 %vm139_vm0, %v8681_v53 }
 0x6ca   :  { %4419 = vmatprep.mubr.bf16.mxu1 %v10121_v25 }
 0x6d1   :  { %5641 = vmatmul.mubr.msk.bf16.gmra.mrb[184].mxu1 %vm139_vm0, %v8750_v61  ;;  %v4849_v61 = vsel %vm4847_vm3, %v5667_v24, 0 }
 0x6d2   :  { %4429 = vmatprep.mubr.bf16.mxu1 %v10121_v25  ;;  %4855 = vmatpush1.bf16.msra.mxu0 %v4849_v61 }
 0x6d7   :  { %v6069_v53 = vpop.f32.mrb[128].mxu1 }
 0x6d8   :  { %v3264_v43 = vpop.f32.mrb[129].mxu1 }
 0x6d9   :  { %5642 = vmatmul.mubr.msk.bf16.gmra.mrb[188].mxu1 %vm139_vm0, %v8777_v17  ;;  %v8989_v17 = vadd.f32 %v8986_v60, %v3264_v43  ;;  %v6070_v48 = vpop.f32.mrb[130].mxu1 }
 0x6da   :  { %4439 = vmatprep.mubr.bf16.mxu1 %v10121_v25  ;;  %v3267_v16 = vpop.f32.mrb[131].mxu1  ;;  %v9010_v0 = vadd.f32 %v6070_v48, %v8986_v60 }
 0x6db   :  { %v8994_v63 = vadd.f32 %v8986_v60, %v3267_v16  ;;  %v3394_v39 = vsel %vm3393_vm4, %v8989_v17, 0.0  ;;  %v3523_v21 = vmul.f32 %v8989_v17, %v8989_v17 }
 0x6dc   :  { %3395 = vadd.xlane.f32.xlu0 %v3394_v39  ;;  %v3403_v20 = vsel %vm3393_vm4, %v9010_v0, 0.0  ;;  %v3526_v37 = vmul.f32 %v9010_v0, %v9010_v0 }
 0x6dd   :  { %v3397_v49 = vsel %vm3393_vm4, %v8994_v63, 0.0  ;;  %v3524_v50 = vmul.f32 %v8994_v63, %v8994_v63  ;;  %v3555_v56 = vsel %vm3393_vm4, %v3523_v21, 0.0 }
 0x6de   :  { %3398 = vadd.xlane.f32.xlu1 %v3397_v49 }
 0x6df   :  { %v3558_v19 = vsel %vm3393_vm4, %v3524_v50, 0.0 }
 0x6e0   :  { %3556 = vadd.xlane.f32.xlu0 %v3555_v56 }
 0x6e1   :  { %5643 = vmatmul.mubr.msk.bf16.gmra.mrb[192].mxu1 %vm139_vm0, %v8834_v33  ;;  %v9006_v33 = vadd.f32 %v6069_v53, %v8986_v60 }
 0x6e2   :  { %4449 = vmatprep.mubr.bf16.mxu1 %v10121_v25  ;;  %3559 = vadd.xlane.f32.xlu1 %v3558_v19 }
 0x6e3   :  { %v3400_v11 = vsel %vm3393_vm4, %v9006_v33, 0.0  ;;  %v3525_v23 = vmul.f32 %v9006_v33, %v9006_v33 }
 0x6e4   :  { %3401 = vadd.xlane.f32.xlu0 %v3400_v11 }
 0x6e5   :  { %v3561_v34 = vsel %vm3393_vm4, %v3525_v23, 0.0 }
 0x6e6   :  { %3404 = vadd.xlane.f32.xlu1 %v3403_v20 }
 0x6e8   :  { %3562 = vadd.xlane.f32.xlu0 %v3561_v34 }
 0x6e9   :  { %5644 = vmatmul.mubr.msk.bf16.gmra.mrb[196].mxu1 %vm139_vm0, %v8852_v44  ;;  %v3564_v44 = vsel %vm3393_vm4, %v3526_v37, 0.0 }
 0x6ea   :  { %4459 = vmatprep.mubr.bf16.mxu1 %v10121_v25  ;;  %3565 = vadd.xlane.f32.xlu1 %v3564_v44 }
 0x6f1   :  { %5645 = vmatmul.mubr.msk.bf16.gmra.mrb[200].mxu1 %vm139_vm0, %v8860_v18 }
 0x6f2   :  { %4469 = vmatprep.mubr.bf16.mxu1 %v10121_v25 }
 0x6f8   :  { %v6073_v47 = vpop.f32.mrb[132].mxu1 }
 0x6f9   :  { %5646 = vmatmul.mubr.msk.bf16.gmra.mrb[204].mxu1 %vm139_vm0, %v8866_v1  ;;  %v3280_v3 = vpop.f32.mrb[133].mxu1  ;;  %v9047_v51 = vadd.f32 %v6073_v47, %v8986_v60 }
 0x6fa   :  { %4479 = vmatprep.mubr.bf16.mxu1 %v10121_v25  ;;  %v9033_v46 = vadd.f32 %v8986_v60, %v3280_v3  ;;  %v6074_v12 = vpop.f32.mrb[134].mxu1 }
 0x6fb   :  { %v3283_v27 = vpop.f32.mrb[135].mxu1  ;;  %v9054_v41 = vadd.f32 %v6074_v12, %v8986_v60  ;;  %v3412_v45 = vsel %vm3393_vm4, %v9047_v51, 0.0  ;;  %v3529_v6 = vmul.f32 %v9047_v51, %v9047_v51 }
 0x6fc   :  { %v9036_v59 = vadd.f32 %v8986_v60, %v3283_v27  ;;  %v3406_v18 = vsel %vm3393_vm4, %v9033_v46, 0.0  ;;  %v3527_v7 = vmul.f32 %v9033_v46, %v9033_v46 }
 0x6fd   :  { %3407 = vadd.xlane.f32.xlu0 %v3406_v18  ;;  %v3415_v57 = vsel %vm3393_vm4, %v9054_v41, 0.0  ;;  %v3573_v40 = vsel %vm3393_vm4, %v3529_v6, 0.0 }
 0x6fe   :  { %v3409_v1 = vsel %vm3393_vm4, %v9036_v59, 0.0  ;;  %v3528_v54 = vmul.f32 %v9036_v59, %v9036_v59  ;;  %v3567_v36 = vsel %vm3393_vm4, %v3527_v7, 0.0 }
 0x6ff   :  { %3410 = vadd.xlane.f32.xlu1 %v3409_v1 }
 0x700   :  { %v3570_v9 = vsel %vm3393_vm4, %v3528_v54, 0.0 }
 0x701   :  { %5647 = vmatmul.mubr.msk.bf16.gmra.mrb[208].mxu1 %vm139_vm0, %v8872_v28  ;;  %3568 = vadd.xlane.f32.xlu0 %v3567_v36  ;;  %v3530_v28 = vmul.f32 %v9054_v41, %v9054_v41 }
 0x702   :  { %4489 = vmatprep.mubr.bf16.mxu1 %v10121_v25 }
 0x703   :  { %3571 = vadd.xlane.f32.xlu1 %v3570_v9  ;;  %v3576_v15 = vsel %vm3393_vm4, %v3530_v28, 0.0 }
 0x705   :  { %3413 = vadd.xlane.f32.xlu0 %v3412_v45 }
 0x707   :  { %3416 = vadd.xlane.f32.xlu1 %v3415_v57 }
 0x709   :  { %5648 = vmatmul.mubr.msk.bf16.gmra.mrb[212].mxu1 %vm139_vm0, %v8880_v4  ;;  %3574 = vadd.xlane.f32.xlu0 %v3573_v40 }
 0x70a   :  { %4499 = vmatprep.mubr.bf16.mxu1 %v10121_v25 }
 0x70b   :  { %3577 = vadd.xlane.f32.xlu1 %v3576_v15 }
 0x711   :  { %5649 = vmatmul.mubr.msk.bf16.gmra.mrb[216].mxu1 %vm139_vm0, %v8884_v38 }
 0x712   :  { %4509 = vmatprep.mubr.bf16.mxu1 %v10121_v25 }
 0x713   :  { %v6077_v2 = vpop.f32.mrb[136].mxu1 }
 0x714   :  { %v3296_v10 = vpop.f32.mrb[137].mxu1  ;;  %v9090_v29 = vadd.f32 %v6077_v2, %v8986_v60 }
 0x715   :  { %v9074_v62 = vadd.f32 %v8986_v60, %v3296_v10  ;;  %v6078_v32 = vpop.f32.mrb[138].mxu1 }
 0x716   :  { %v3299_v42 = vpop.f32.mrb[139].mxu1  ;;  %v9094_v30 = vadd.f32 %v6078_v32, %v8986_v60  ;;  %v3533_v26 = vmul.f32 %v9090_v29, %v9090_v29 }
 0x717   :  { %v9077_v4 = vadd.f32 %v8986_v60, %v3299_v42  ;;  %v3418_v55 = vsel %vm3393_vm4, %v9074_v62, 0.0  ;;  %v3531_v8 = vmul.f32 %v9074_v62, %v9074_v62 }
 0x718   :  { %3419 = vadd.xlane.f32.xlu0 %v3418_v55  ;;  %v3427_v31 = vsel %vm3393_vm4, %v9094_v30, 0.0  ;;  %v3534_v22 = vmul.f32 %v9094_v30, %v9094_v30  ;;  %v3585_v5 = vsel %vm3393_vm4, %v3533_v26, 0.0 }
 0x719   :  { %5650 = vmatmul.mubr.msk.bf16.gmra.mrb[220].mxu1 %vm139_vm0, %v8890_v35  ;;  %v3421_v38 = vsel %vm3393_vm4, %v9077_v4, 0.0  ;;  %v3532_v58 = vmul.f32 %v9077_v4, %v9077_v4  ;;  %v3579_v14 = vsel %vm3393_vm4, %v3531_v8, 0.0  ;;  %v3424_v35 = vsel %vm3393_vm4, %v9090_v29, 0.0 }
 0x71a   :  { %3422 = vadd.xlane.f32.xlu1 %v3421_v38  ;;  %v3588_v52 = vsel %vm3393_vm4, %v3534_v22, 0.0 }
 0x71b   :  { %v3582_v13 = vsel %vm3393_vm4, %v3532_v58, 0.0 }
 0x71c   :  { %3580 = vadd.xlane.f32.xlu0 %v3579_v14 }
 0x71e   :  { %3583 = vadd.xlane.f32.xlu1 %v3582_v13 }
 0x720   :  { %3425 = vadd.xlane.f32.xlu0 %v3424_v35 }
 0x722   :  { %3428 = vadd.xlane.f32.xlu1 %v3427_v31 }
 0x724   :  { %3586 = vadd.xlane.f32.xlu0 %v3585_v5 }
 0x726   :  { %3589 = vadd.xlane.f32.xlu1 %v3588_v52 }
 0x72c   :  { %v6081_v24 = vpop.f32.mrb[140].mxu1 }
 0x72d   :  { %v3312_v53 = vpop.f32.mrb[141].mxu1  ;;  %v9122_v56 = vadd.f32 %v6081_v24, %v8986_v60 }
 0x72e   :  { %v9108_v61 = vadd.f32 %v8986_v60, %v3312_v53  ;;  %v6082_v43 = vpop.f32.mrb[142].mxu1 }
 0x72f   :  { %v3315_v48 = vpop.f32.mrb[143].mxu1  ;;  %v9126_v11 = vadd.f32 %v6082_v43, %v8986_v60  ;;  %v3436_v20 = vsel %vm3393_vm4, %v9122_v56, 0.0  ;;  %v3537_v37 = vmul.f32 %v9122_v56, %v9122_v56 }
 0x730   :  { %v9111_v16 = vadd.f32 %v8986_v60, %v3315_v48  ;;  %v3430_v39 = vsel %vm3393_vm4, %v9108_v61, 0.0  ;;  %v3535_v21 = vmul.f32 %v9108_v61, %v9108_v61 }
 0x731   :  { %3431 = vadd.xlane.f32.xlu0 %v3430_v39  ;;  %v3439_v34 = vsel %vm3393_vm4, %v9126_v11, 0.0  ;;  %v3538_v44 = vmul.f32 %v9126_v11, %v9126_v11  ;;  %v3597_v47 = vsel %vm3393_vm4, %v3537_v37, 0.0 }
 0x732   :  { %v3433_v49 = vsel %vm3393_vm4, %v9111_v16, 0.0  ;;  %v3536_v50 = vmul.f32 %v9111_v16, %v9111_v16  ;;  %v3591_v19 = vsel %vm3393_vm4, %v3535_v21, 0.0 }
 0x733   :  { %3434 = vadd.xlane.f32.xlu1 %v3433_v49  ;;  %v3600_v3 = vsel %vm3393_vm4, %v3538_v44, 0.0 }
 0x734   :  { %v3594_v23 = vsel %vm3393_vm4, %v3536_v50, 0.0 }
 0x735   :  { %3592 = vadd.xlane.f32.xlu0 %v3591_v19 }
 0x737   :  { %3595 = vadd.xlane.f32.xlu1 %v3594_v23 }
 0x739   :  { %3437 = vadd.xlane.f32.xlu0 %v3436_v20 }
 0x73b   :  { %3440 = vadd.xlane.f32.xlu1 %v3439_v34 }
 0x73d   :  { %3598 = vadd.xlane.f32.xlu0 %v3597_v47 }
 0x73f   :  { %3601 = vadd.xlane.f32.xlu1 %v3600_v3 }
 0x744   :  { %v6085_v12 = vpop.f32.mrb[144].mxu1 }
 0x745   :  { %v3328_v27 = vpop.f32.mrb[145].mxu1  ;;  %v9154_v57 = vadd.f32 %v6085_v12, %v8986_v60 }
 0x746   :  { %v9140_v18 = vadd.f32 %v8986_v60, %v3328_v27  ;;  %v6086_v7 = vpop.f32.mrb[146].mxu1 }
 0x747   :  { %v3331_v1 = vpop.f32.mrb[147].mxu1  ;;  %v9158_v40 = vadd.f32 %v6086_v7, %v8986_v60  ;;  %v3448_v2 = vsel %vm3393_vm4, %v9154_v57, 0.0  ;;  %v3541_v10 = vmul.f32 %v9154_v57, %v9154_v57 }
 0x748   :  { %v9143_v54 = vadd.f32 %v8986_v60, %v3331_v1  ;;  %v3442_v36 = vsel %vm3393_vm4, %v9140_v18, 0.0  ;;  %v3539_v9 = vmul.f32 %v9140_v18, %v9140_v18 }
 0x749   :  { %3443 = vadd.xlane.f32.xlu0 %v3442_v36  ;;  %v3451_v32 = vsel %vm3393_vm4, %v9158_v40, 0.0  ;;  %v3542_v42 = vmul.f32 %v9158_v40, %v9158_v40  ;;  %v3609_v55 = vsel %vm3393_vm4, %v3541_v10, 0.0 }
 0x74a   :  { %v3445_v45 = vsel %vm3393_vm4, %v9143_v54, 0.0  ;;  %v3540_v6 = vmul.f32 %v9143_v54, %v9143_v54  ;;  %v3603_v28 = vsel %vm3393_vm4, %v3539_v9, 0.0 }
 0x74b   :  { %3446 = vadd.xlane.f32.xlu1 %v3445_v45  ;;  %v3612_v8 = vsel %vm3393_vm4, %v3542_v42, 0.0 }
 0x74c   :  { %v3606_v15 = vsel %vm3393_vm4, %v3540_v6, 0.0 }
 0x74d   :  { %3604 = vadd.xlane.f32.xlu0 %v3603_v28 }
 0x74f   :  { %3607 = vadd.xlane.f32.xlu1 %v3606_v15 }
 0x751   :  { %3449 = vadd.xlane.f32.xlu0 %v3448_v2 }
 0x753   :  { %3452 = vadd.xlane.f32.xlu1 %v3451_v32 }
 0x755   :  { %3610 = vadd.xlane.f32.xlu0 %v3609_v55 }
 0x757   :  { %v6089_v38 = vpop.f32.mrb[148].mxu1  ;;  %3613 = vadd.xlane.f32.xlu1 %v3612_v8 }
 0x758   :  { %v3344_v58 = vpop.f32.mrb[149].mxu1  ;;  %v9186_v24 = vadd.f32 %v6089_v38, %v8986_v60 }
 0x759   :  { %v9172_v14 = vadd.f32 %v8986_v60, %v3344_v58  ;;  %v6090_v13 = vpop.f32.mrb[150].mxu1 }
 0x75a   :  { %v3347_v35 = vpop.f32.mrb[151].mxu1  ;;  %v9190_v43 = vadd.f32 %v6090_v13, %v8986_v60  ;;  %v3460_v21 = vsel %vm3393_vm4, %v9186_v24, 0.0  ;;  %v3545_v49 = vmul.f32 %v9186_v24, %v9186_v24 }
 0x75b   :  { %v9175_v26 = vadd.f32 %v8986_v60, %v3347_v35  ;;  %v3454_v31 = vsel %vm3393_vm4, %v9172_v14, 0.0  ;;  %v3543_v22 = vmul.f32 %v9172_v14, %v9172_v14 }
 0x75c   :  { %3455 = vadd.xlane.f32.xlu0 %v3454_v31  ;;  %v3463_v23 = vsel %vm3393_vm4, %v9190_v43, 0.0  ;;  %v3546_v37 = vmul.f32 %v9190_v43, %v9190_v43  ;;  %v3621_v44 = vsel %vm3393_vm4, %v3545_v49, 0.0 }
 0x75d   :  { %v3457_v5 = vsel %vm3393_vm4, %v9175_v26, 0.0  ;;  %v3544_v52 = vmul.f32 %v9175_v26, %v9175_v26  ;;  %v3615_v53 = vsel %vm3393_vm4, %v3543_v22, 0.0 }
 0x75e   :  { %3458 = vadd.xlane.f32.xlu1 %v3457_v5  ;;  %v3624_v3 = vsel %vm3393_vm4, %v3546_v37, 0.0 }
 0x75f   :  { %v3618_v48 = vsel %vm3393_vm4, %v3544_v52, 0.0 }
 0x760   :  { %3616 = vadd.xlane.f32.xlu0 %v3615_v53 }
 0x762   :  { %3619 = vadd.xlane.f32.xlu1 %v3618_v48  ;;  %v6093_v39 = vpop.f32.mrb[152].mxu1 }
 0x763   :  { %v3360_v50 = vpop.f32.mrb[153].mxu1  ;;  %v9222_v6 = vadd.f32 %v6093_v39, %v8986_v60 }
 0x764   :  { %3461 = vadd.xlane.f32.xlu0 %v3460_v21  ;;  %v6094_v19 = vpop.f32.mrb[154].mxu1  ;;  %v9200_v20 = vadd.f32 %v8986_v60, %v3360_v50 }
 0x765   :  { %v3363_v34 = vpop.f32.mrb[155].mxu1  ;;  %v9228_v32 = vadd.f32 %v6094_v19, %v8986_v60  ;;  %v3472_v8 = vsel %vm3393_vm4, %v9222_v6, 0.0  ;;  %v3549_v38 = vmul.f32 %v9222_v6, %v9222_v6 }
 0x766   :  { %3464 = vadd.xlane.f32.xlu1 %v3463_v23  ;;  %v9206_v47 = vadd.f32 %v8986_v60, %v3363_v34  ;;  %v3466_v12 = vsel %vm3393_vm4, %v9200_v20, 0.0  ;;  %v3547_v7 = vmul.f32 %v9200_v20, %v9200_v20 }
 0x767   :  { %v3475_v5 = vsel %vm3393_vm4, %v9228_v32, 0.0  ;;  %v3550_v53 = vmul.f32 %v9228_v32, %v9228_v32  ;;  %v3633_v23 = vsel %vm3393_vm4, %v3549_v38, 0.0 }
 0x768   :  { %3622 = vadd.xlane.f32.xlu0 %v3621_v44  ;;  %v3469_v27 = vsel %vm3393_vm4, %v9206_v47, 0.0  ;;  %v3548_v36 = vmul.f32 %v9206_v47, %v9206_v47  ;;  %v3627_v28 = vsel %vm3393_vm4, %v3547_v7, 0.0 }
 0x769   :  { %v3396_v2 = vpop.xlane.xlu0 %3395  ;;  %v3636_v7 = vsel %vm3393_vm4, %v3550_v53, 0.0 }
 0x76a   :  { %3625 = vadd.xlane.f32.xlu1 %v3624_v3  ;;  %v9225_v10 = vmul.f32 0.125, %v3396_v2  ;;  %v3630_v42 = vsel %vm3393_vm4, %v3548_v36, 0.0 }
 0x76b   :  { %v3399_v55 = vpop.xlane.xlu1 %3398 }
 0x76c   :  { %3467 = vadd.xlane.f32.xlu0 %v3466_v12  ;;  %v9215_v1 = vpop.f32.mrb[156].mxu1  ;;  %v9235_v58 = vmul.f32 0.125, %v3399_v55  ;;  %v3683_v31 = vmul.f32 %v9225_v10, %v9225_v10 }
 0x76d   :  { %v3376_v9 = vpop.f32.mrb[157].mxu1  ;;  %v3557_v13 = vpop.xlane.xlu0 %3556 }
 0x76e   :  { %3470 = vadd.xlane.f32.xlu1 %v3469_v27  ;;  %v9219_v45 = vpop.f32.mrb[158].mxu1  ;;  %v3651_v22 = vmul.f32 0.125, %v3557_v13  ;;  %v9244_v52 = vadd.f32 %v8986_v60, %v3376_v9  ;;  %v3684_v49 = vmul.f32 %v9235_v58, %v9235_v58 }
 0x76f   :  { %v3379_v15 = vpop.f32.mrb[159].mxu1  ;;  %v3560_v39 = vpop.xlane.xlu1 %3559 }
 0x770   :  { %3628 = vadd.xlane.f32.xlu0 %v3627_v28  ;;  %v3715_v50 = vsub.f32 %v3651_v22, %v3683_v31  ;;  %v3652_v19 = vmul.f32 0.125, %v3560_v39  ;;  %v9256_v37 = vadd.f32 %v8986_v60, %v3379_v15  ;;  %v3478_v36 = vsel %vm3393_vm4, %v9244_v52, 0.0 }
 0x771   :  { %v3402_v44 = vpop.xlane.xlu0 %3401  ;;  %v3551_v2 = vmul.f32 %v9244_v52, %v9244_v52 }
 0x772   :  { %3631 = vadd.xlane.f32.xlu1 %v3630_v42  ;;  %v3779_v3 = vadd.f32 1e-05, %v3715_v50  ;;  %v3716_v12 = vsub.f32 %v3652_v19, %v3684_v49  ;;  %v9260_v27 = vmul.f32 0.125, %v3402_v44  ;;  %v3481_v15 = vsel %vm3393_vm4, %v9256_v37, 0.0 }
 0x773   :  { %v3405_v9 = vpop.xlane.xlu1 %3404  ;;  %v3552_v31 = vmul.f32 %v9256_v37, %v9256_v37  ;;  %v9285_v19 = vadd.f32 %v9215_v1, %v8986_v60 }
 0x774   :  { %3473 = vadd.xlane.f32.xlu0 %v3472_v8  ;;  %v9237_v35 = vpop.f32.mrb[160].mxu1  ;;  %6688 = vrsqrt.f32 %v3779_v3  ;;  %v3780_v28 = vadd.f32 1e-05, %v3716_v12  ;;  %v9269_v42 = vmul.f32 0.125, %v3405_v9  ;;  %v3685_v38 = vmul.f32 %v9260_v27, %v9260_v27 }
 0x775   :  { %v9248_v48 = vpop.f32.mrb[161].mxu1  ;;  %v3563_v55 = vpop.xlane.xlu0 %3562  ;;  %v3484_v1 = vsel %vm3393_vm4, %v9285_v19, 0.0 }
 0x776   :  { %3476 = vadd.xlane.f32.xlu1 %v3475_v5  ;;  %v9250_v21 = vpop.f32.mrb[162].mxu1  ;;  %6690 = vrsqrt.f32 %v3780_v28  ;;  %v3653_v13 = vmul.f32 0.125, %v3563_v55  ;;  %v3686_v39 = vmul.f32 %v9269_v42, %v9269_v42  ;;  %v3553_v28 = vmul.f32 %v9285_v19, %v9285_v19 }
 0x777   :  { %v9258_v34 = vpop.f32.mrb[163].mxu1  ;;  %v3566_v5 = vpop.xlane.xlu1 %3565 }
 0x778   :  { %10139 = vst [vmem:[#allocation11_spill] sm:$0xff] %v9258_v34  ;;  %3634 = vadd.xlane.f32.xlu0 %v3633_v23  ;;  %v3717_v49 = vsub.f32 %v3653_v13, %v3685_v38  ;;  %v3654_v50 = vmul.f32 0.125, %v3566_v5  ;;  %v3639_v23 = vsel %vm3393_vm4, %v3551_v2, 0.0 }
 0x77a   :  { %3637 = vadd.xlane.f32.xlu1 %v3636_v7  ;;  %v3781_v3 = vadd.f32 1e-05, %v3717_v49  ;;  %v3718_v12 = vsub.f32 %v3654_v50, %v3686_v39  ;;  %v9292_v7 = vadd.f32 %v9219_v45, %v8986_v60  ;;  %v9306_v60 = vld [vmem:[%s10021_s14] ss:$0 sm:$0xff]  ;;  %v3645_v49 = vsel %vm3393_vm4, %v3553_v28, 0.0 }
 0x77b   :  { %v9321_v39 = vld [vmem:[%s10022_s15] ss:$0 sm:$0xff]  ;;  %v3749_v28 = vsub.f32 %v9006_v33, %v9260_v27 }
 0x77c   :  { %3479 = vadd.xlane.f32.xlu0 %v3478_v36  ;;  %v9271_v8 = vpop.f32.mrb[164].mxu1  ;;  %v3642_v36 = vsel %vm3393_vm4, %v3552_v31, 0.0  ;;  %6692 = vrsqrt.f32 %v3781_v3  ;;  %v3782_v9 = vadd.f32 1e-05, %v3718_v12  ;;  %v3487_v45 = vsel %vm3393_vm4, %v9292_v7, 0.0 }
 0x77d   :  { %10140 = vst [vmem:[#allocation12_spill] sm:$0xff] %v9271_v8  ;;  %v9277_v22 = vpop.f32.mrb[165].mxu1  ;;  %v3554_v38 = vmul.f32 %v9292_v7, %v9292_v7 }
 0x77e   :  { %10141 = vst [vmem:[#allocation13_spill] sm:$0xff] %v9277_v22  ;;  %3482 = vadd.xlane.f32.xlu1 %v3481_v15  ;;  %v9279_v53 = vpop.f32.mrb[166].mxu1  ;;  %v3747_v15 = vsub.f32 %v8989_v17, %v9225_v10  ;;  %v6689_v2 = vpop.eup %6688  ;;  %6694 = vrsqrt.f32 %v3782_v9  ;;  %v3748_v17 = vsub.f32 %v8994_v63, %v9235_v58 }
 0x77f   :  { %10142 = vst [vmem:[#allocation14_spill] sm:$0xff] %v9279_v53  ;;  %v9288_v44 = vpop.f32.mrb[167].mxu1  ;;  %v3648_v63 = vsel %vm3393_vm4, %v3554_v38, 0.0 }
 0x780   :  { %10143 = vst [vmem:[#allocation5_spill] sm:$0xff] %v9288_v44  ;;  %3640 = vadd.xlane.f32.xlu0 %v3639_v23  ;;  %v3843_v10 = vmul.f32 %v6689_v2, %v3747_v15  ;;  %v6691_v31 = vpop.eup %6690 }
 0x781   :  { %v3844_v3 = vmul.f32 %v6691_v31, %v3748_v17 }
 0x782   :  { %3643 = vadd.xlane.f32.xlu1 %v3642_v36  ;;  %v3881_v23 = vmul.f32 %v9306_v60, %v3843_v10 }
 0x783   :  { %v3882_v12 = vmul.f32 %v9306_v60, %v3844_v3 }
 0x784   :  { %3485 = vadd.xlane.f32.xlu0 %v3484_v1  ;;  %v9301_v55 = vpop.f32.mrb[168].mxu1  ;;  %v9329_v58 = vadd.f32 %v9321_v39, %v3881_v23 }
 0x785   :  { %10144 = vst [vmem:[#allocation6_spill] sm:$0xff] %v9301_v55  ;;  %v9312_v13 = vpop.f32.mrb[169].mxu1  ;;  %v9334_v1 = vadd.f32 %v9321_v39, %v3882_v12 }
 0x786   :  { %10145 = vst [vmem:[#allocation7_spill] sm:$0xff] %v9312_v13  ;;  %3488 = vadd.xlane.f32.xlu1 %v3487_v45  ;;  %v9316_v5 = vpop.f32.mrb[170].mxu1  ;;  %v3951_v9 = vmin.f32 %v9329_v58, 20.0  ;;  %v6693_v2 = vpop.eup %6692 }
 0x787   :  { %10146 = vst [vmem:[#allocation8_spill] sm:$0xff] %v9316_v5  ;;  %v9324_v50 = vpop.f32.mrb[171].mxu1  ;;  %v3952_v31 = vmin.f32 %v9334_v1, 20.0  ;;  %v3845_v23 = vmul.f32 %v6693_v2, %v3749_v28 }
 0x788   :  { %10147 = vst [vmem:[#allocation9_spill] sm:$0xff] %v9324_v50  ;;  %3646 = vadd.xlane.f32.xlu0 %v3645_v49  ;;  %v3983_v10 = vmul.f32 1.442695, %v3951_v9  ;;  %v3750_v49 = vsub.f32 %v9010_v0, %v9269_v42  ;;  %v6695_v3 = vpop.eup %6694 }
 0x789   :  { %v3883_v42 = vmul.f32 %v9306_v60, %v3845_v23 }
 0x78a   :  { %3649 = vadd.xlane.f32.xlu1 %v3648_v63  ;;  %v3408_v36 = vpop.xlane.xlu0 %3407  ;;  %6696 = vpow2.f32 %v3983_v10  ;;  %v3846_v9 = vmul.f32 %v6695_v3, %v3750_v49 }
 0x78b   :  { %v9338_v15 = vmul.f32 0.125, %v3408_v36  ;;  %v9360_v5 = vadd.f32 %v9321_v39, %v3883_v42 }
 0x78c   :  { %v9340_v45 = vpop.f32.mrb[172].mxu1  ;;  %v3411_v38 = vpop.xlane.xlu1 %3410 }
 0x78d   :  { %10148 = vst [vmem:[#allocation10_spill] sm:$0xff] %v9340_v45  ;;  %v9342_v17 = vpop.f32.mrb[173].mxu1  ;;  %v3687_v33 = vmul.f32 %v9338_v15, %v9338_v15  ;;  %v9351_v27 = vmul.f32 0.125, %v3411_v38 }
 0x78e   :  { %10149 = vst [vmem:[#allocation15_spill] sm:$0xff] %v9342_v17  ;;  %v9347_v63 = vpop.f32.mrb[174].mxu1  ;;  %v3569_v12 = vpop.xlane.xlu0 %3568  ;;  %v3985_v17 = vmul.f32 1.442695, %v3952_v31 }
 0x78f   :  { %10150 = vst [vmem:[#allocation16_spill] sm:$0xff] %v9347_v63  ;;  %v9353_v36 = vpop.f32.mrb[175].mxu1  ;;  %v3655_v45 = vmul.f32 0.125, %v3569_v12  ;;  %v3688_v50 = vmul.f32 %v9351_v27, %v9351_v27  ;;  %v3884_v63 = vmul.f32 %v9306_v60, %v3846_v9 }
 0x790   :  { %10151 = vst [vmem:[#allocation17_spill] sm:$0xff] %v9353_v36  ;;  %v3572_v0 = vpop.xlane.xlu1 %3571  ;;  %6698 = vpow2.f32 %v3985_v17  ;;  %v3953_v17 = vmin.f32 %v9360_v5, 20.0 }
 0x791   :  { %v3719_v28 = vsub.f32 %v3655_v45, %v3687_v33  ;;  %v3656_v2 = vmul.f32 0.125, %v3572_v0  ;;  %v9365_v49 = vadd.f32 %v9321_v39, %v3884_v63 }
 0x792   :  { %v3414_v38 = vpop.xlane.xlu0 %3413  ;;  %v3987_v42 = vmul.f32 1.442695, %v3953_v17 }
 0x793   :  { %v3783_v36 = vadd.f32 1e-05, %v3719_v28  ;;  %v3720_v10 = vsub.f32 %v3656_v2, %v3688_v50  ;;  %v9362_v31 = vmul.f32 0.125, %v3414_v38  ;;  %v3954_v50 = vmin.f32 %v9365_v49, 20.0 }
 0x794   :  { %v9367_v3 = vpop.f32.mrb[176].mxu1  ;;  %v3417_v12 = vpop.xlane.xlu1 %3416 }
 0x795   :  { %10152 = vst [vmem:[#allocation18_spill] sm:$0xff] %v9367_v3  ;;  %v9370_v45 = vpop.f32.mrb[177].mxu1  ;;  %6700 = vrsqrt.f32 %v3783_v36  ;;  %v3784_v23 = vadd.f32 1e-05, %v3720_v10  ;;  %v9374_v9 = vmul.f32 0.125, %v3417_v12  ;;  %v3689_v63 = vmul.f32 %v9362_v31, %v9362_v31  ;;  %v6697_v36 = vpop.eup %6696 }
 0x796   :  { %10153 = vst [vmem:[#allocation19_spill] sm:$0xff] %v9370_v45  ;;  %v9372_v33 = vpop.f32.mrb[178].mxu1  ;;  %v3575_v0 = vpop.xlane.xlu0 %3574  ;;  %v3989_v45 = vmul.f32 1.442695, %v3954_v50  ;;  %v4047_v3 = vadd.f32 1.0, %v6697_v36 }
 0x797   :  { %10154 = vst [vmem:[#allocation20_spill] sm:$0xff] %v9372_v33  ;;  %v9377_v28 = vpop.f32.mrb[179].mxu1  ;;  %6702 = vrsqrt.f32 %v3784_v23  ;;  %v3657_v2 = vmul.f32 0.125, %v3575_v0  ;;  %v3690_v10 = vmul.f32 %v9374_v9, %v9374_v9 }
 0x798   :  { %10155 = vst [vmem:[#allocation21_spill] sm:$0xff] %v9377_v28  ;;  %v3578_v38 = vpop.xlane.xlu1 %3577  ;;  %6704 = vpow2.f32 %v3987_v42  ;;  %v4079_v28 = vmul.f32 %v4047_v3, %v4047_v3 }
 0x799   :  { %v3721_v12 = vsub.f32 %v3657_v2, %v3689_v63  ;;  %v3658_v33 = vmul.f32 0.125, %v3578_v38  ;;  %6706 = vpow2.f32 %v3989_v45  ;;  %v3751_v63 = vsub.f32 %v9033_v46, %v9338_v15 }
 0x79a   :  { %v6699_v13 = vpop.eup %6698  ;;  %v4175_v50 = vadd.f32 1.0, %v4079_v28 }
 0x79b   :  { %v3785_v17 = vadd.f32 1e-05, %v3721_v12  ;;  %v3722_v55 = vsub.f32 %v3658_v33, %v3690_v10  ;;  %v4048_v23 = vadd.f32 1.0, %v6699_v13  ;;  %v3752_v13 = vsub.f32 %v9036_v59, %v9351_v27 }
 0x79c   :  { %v9383_v44 = vpop.f32.mrb[180].mxu1  ;;  %v5599_v59 = vadd.f32 -1.0, %v4079_v28  ;;  %v3753_v27 = vsub.f32 %v9047_v51, %v9362_v31  ;;  %v3754_v28 = vsub.f32 %v9054_v41, %v9374_v9 }
 0x79d   :  { %10156 = vst [vmem:[#allocation22_spill] sm:$0xff] %v9383_v44  ;;  %v9385_v53 = vpop.f32.mrb[181].mxu1  ;;  %6708 = vrsqrt.f32 %v3785_v17  ;;  %v3786_v0 = vadd.f32 1e-05, %v3722_v55  ;;  %v4080_v42 = vmul.f32 %v4048_v23, %v4048_v23 }
 0x79e   :  { %10157 = vst [vmem:[#allocation23_spill] sm:$0xff] %v9385_v53  ;;  %v9387_v22 = vpop.f32.mrb[182].mxu1 }
 0x79f   :  { %10158 = vst [vmem:[#allocation24_spill] sm:$0xff] %v9387_v22  ;;  %v6701_v8 = vpop.eup %6700  ;;  %v9391_v45 = vpop.f32.mrb[183].mxu1  ;;  %6710 = vrsqrt.f32 %v3786_v0  ;;  %v4176_v3 = vadd.f32 1.0, %v4080_v42 }
 0x7a0   :  { %10159 = vst [vmem:[#allocation25_spill] sm:$0xff] %v9391_v45  ;;  %6712 = vrcp.f32 %v4175_v50  ;;  %v3847_v2 = vmul.f32 %v6701_v8, %v3751_v63 }
 0x7a1   :  { %v6703_v33 = vpop.eup %6702  ;;  %6714 = vrcp.f32 %v4176_v3 }
 0x7a2   :  { %v6705_v38 = vpop.eup %6704  ;;  %v3848_v55 = vmul.f32 %v6703_v33, %v3752_v13  ;;  %v3885_v10 = vmul.f32 %v9306_v60, %v3847_v2  ;;  %v5600_v33 = vadd.f32 -1.0, %v4080_v42  ;;  %v4143_v42 = vmul.f32 %v5599_v59, %v9329_v58 }
 0x7a3   :  { %v4049_v36 = vadd.f32 1.0, %v6705_v38  ;;  %v6707_v12 = vpop.eup %6706 }
 0x7a4   :  { %v9396_v17 = vpop.f32.mrb[184].mxu1  ;;  %v3886_v46 = vmul.f32 %v9306_v60, %v3848_v55  ;;  %v4050_v23 = vadd.f32 1.0, %v6707_v12  ;;  %v9402_v50 = vadd.f32 %v9321_v39, %v3885_v10 }
 0x7a5   :  { %10160 = vst [vmem:[#allocation26_spill] sm:$0xff] %v9396_v17  ;;  %v9399_v15 = vpop.f32.mrb[185].mxu1  ;;  %v4081_v0 = vmul.f32 %v4049_v36, %v4049_v36  ;;  %v3420_v63 = vpop.xlane.xlu0 %3419 }
 0x7a6   :  { %10161 = vst [vmem:[#allocation27_spill] sm:$0xff] %v9399_v15  ;;  %v9404_v8 = vpop.f32.mrb[186].mxu1  ;;  %v9409_v3 = vadd.f32 %v9321_v39, %v3886_v46  ;;  %v9413_v38 = vmul.f32 0.125, %v3420_v63  ;;  %v4082_v55 = vmul.f32 %v4050_v23, %v4050_v23  ;;  %v3955_v12 = vmin.f32 %v9402_v50, 20.0 }
 0x7a7   :  { %10162 = vst [vmem:[#allocation28_spill] sm:$0xff] %v9404_v8  ;;  %v6709_v13 = vpop.eup %6708  ;;  %v9411_v2 = vpop.f32.mrb[187].mxu1  ;;  %v4177_v36 = vadd.f32 1.0, %v4081_v0  ;;  %v4144_v23 = vmul.f32 %v5600_v33, %v9334_v1 }
 0x7a8   :  { %10163 = vst [vmem:[#allocation29_spill] sm:$0xff] %v9411_v2  ;;  %v3423_v10 = vpop.xlane.xlu1 %3422  ;;  %v3956_v51 = vmin.f32 %v9409_v3, 20.0  ;;  %v3849_v8 = vmul.f32 %v6709_v13, %v3753_v27  ;;  %v4178_v17 = vadd.f32 1.0, %v4082_v55  ;;  %v3691_v41 = vmul.f32 %v9413_v38, %v9413_v38 }
 0x7a9   :  { %v6711_v31 = vpop.eup %6710  ;;  %v9419_v46 = vmul.f32 0.125, %v3423_v10  ;;  %v3581_v63 = vpop.xlane.xlu0 %3580  ;;  %6716 = vrcp.f32 %v4177_v36  ;;  %v3991_v58 = vmul.f32 1.442695, %v3955_v12 }
 0x7aa   :  { %v6713_v15 = vpop.eup %6712  ;;  %v3850_v2 = vmul.f32 %v6711_v31, %v3754_v28  ;;  %v3659_v45 = vmul.f32 0.125, %v3581_v63  ;;  %6718 = vrcp.f32 %v4178_v17  ;;  %v3993_v59 = vmul.f32 1.442695, %v3956_v51 }
 0x7ab   :  { %v3692_v9 = vmul.f32 %v9419_v46, %v9419_v46  ;;  %v6715_v22 = vpop.eup %6714  ;;  %v4239_v10 = vmul.f32 %v6713_v15, %v4143_v42  ;;  %v3887_v33 = vmul.f32 %v9306_v60, %v3849_v8  ;;  %6720 = vpow2.f32 %v3991_v58 }
 0x7ac   :  { %v9427_v27 = vpop.f32.mrb[188].mxu1  ;;  %v3584_v13 = vpop.xlane.xlu1 %3583  ;;  %v3723_v36 = vsub.f32 %v3659_v45, %v3691_v41  ;;  %v4240_v1 = vmul.f32 %v6715_v22, %v4144_v23  ;;  %v3888_v63 = vmul.f32 %v9306_v60, %v3850_v2  ;;  %v5601_v42 = vadd.f32 -1.0, %v4081_v0 }
 0x7ad   :  { %10164 = vst [vmem:[#allocation30_spill] sm:$0xff] %v9427_v27  ;;  %v9429_v28 = vpop.f32.mrb[189].mxu1  ;;  %v3660_v31 = vmul.f32 0.125, %v3584_v13  ;;  %v3426_v44 = vpop.xlane.xlu0 %3425  ;;  %6722 = vpow2.f32 %v3993_v59  ;;  %v9440_v22 = vadd.f32 %v9321_v39, %v3887_v33  ;;  %v5602_v2 = vadd.f32 -1.0, %v4082_v55 }
 0x7ae   :  { %v9432_v53 = vpop.f32.mrb[190].mxu1  ;;  %v3787_v27 = vadd.f32 1e-05, %v3723_v36  ;;  %v9437_v17 = vmul.f32 0.125, %v3426_v44  ;;  %v4271_v12 = vpack.c.bf16 %v4240_v1, %v4239_v10  ;;  %v9443_v45 = vadd.f32 %v9321_v39, %v3888_v63 }
 0x7af   :  { %10165 = vst [vmem:[#allocation31_spill] sm:$0xff] %v9432_v53  ;;  %v9435_v34 = vpop.f32.mrb[191].mxu1  ;;  %v3724_v15 = vsub.f32 %v3660_v31, %v3692_v9  ;;  %v3957_v44 = vmin.f32 %v9440_v22, 20.0  ;;  %v4145_v55 = vmul.f32 %v5601_v42, %v9360_v5 }
 0x7b0   :  { %10166 = vst [vmem:[#allocation32_spill] sm:$0xff] %v9435_v34  ;;  %v3429_v51 = vpop.xlane.xlu1 %3428  ;;  %6724 = vrsqrt.f32 %v3787_v27  ;;  %5670 = vmatmul.mubr.msk.bf16.vlgmr.msra.gmra.mrb[96].mxu0 %vm3393_vm4, %v4271_v12  ;;  %v3958_v0 = vmin.f32 %v9443_v45, 20.0  ;;  %v3693_v9 = vmul.f32 %v9437_v17, %v9437_v17 }
 0x7b1   :  { %v3788_v8 = vadd.f32 1e-05, %v3724_v15  ;;  %v9446_v23 = vmul.f32 0.125, %v3429_v51  ;;  %v3587_v41 = vpop.xlane.xlu0 %3586  ;;  %4896 = vmatprep.mubr.bf16.mxu0 %v10121_v25  ;;  %v3995_v59 = vmul.f32 1.442695, %v3957_v44  ;;  %v4146_v15 = vmul.f32 %v5602_v2, %v9365_v49 }
 0x7b2   :  { %v3661_v13 = vmul.f32 0.125, %v3587_v41  ;;  %v3997_v36 = vmul.f32 1.442695, %v3958_v0  ;;  %v3755_v49 = vsub.f32 %v9074_v62, %v9413_v38 }
 0x7b3   :  { %6726 = vrsqrt.f32 %v3788_v8  ;;  %v6717_v10 = vpop.eup %6716  ;;  %v3694_v1 = vmul.f32 %v9446_v23, %v9446_v23 }
 0x7b4   :  { %v9453_v27 = vpop.f32.mrb[192].mxu1  ;;  %v3590_v58 = vpop.xlane.xlu1 %3589  ;;  %v3725_v33 = vsub.f32 %v3661_v13, %v3693_v9  ;;  %v4241_v8 = vmul.f32 %v6717_v10, %v4145_v55  ;;  %6728 = vpow2.f32 %v3995_v59 }
 0x7b5   :  { %10167 = vst [vmem:[#allocation33_spill] sm:$0xff] %v9453_v27  ;;  %v9456_v31 = vpop.f32.mrb[193].mxu1  ;;  %v3662_v63 = vmul.f32 0.125, %v3590_v58  ;;  %v6719_v12 = vpop.eup %6718  ;;  %6730 = vpow2.f32 %v3997_v36  ;;  %v3756_v58 = vsub.f32 %v9077_v4, %v9419_v46 }
 0x7b6   :  { %10168 = vst [vmem:[#allocation34_spill] sm:$0xff] %v9456_v31  ;;  %v9461_v51 = vpop.f32.mrb[194].mxu1  ;;  %v3789_v27 = vadd.f32 1e-05, %v3725_v33  ;;  %v4242_v42 = vmul.f32 %v6719_v12, %v4146_v15  ;;  %v6721_v44 = vpop.eup %6720 }
 0x7b7   :  { %10169 = vst [vmem:[#allocation35_spill] sm:$0xff] %v9461_v51  ;;  %v9463_v41 = vpop.f32.mrb[195].mxu1  ;;  %v3726_v5 = vsub.f32 %v3662_v63, %v3694_v1  ;;  %v4051_v34 = vadd.f32 1.0, %v6721_v44  ;;  %v6723_v9 = vpop.eup %6722 }
 0x7b8   :  { %10170 = vst [vmem:[#allocation36_spill] sm:$0xff] %v9463_v41  ;;  %6732 = vrsqrt.f32 %v3789_v27  ;;  %v4272_v31 = vpack.c.bf16 %v4242_v42, %v4241_v8  ;;  %v4052_v13 = vadd.f32 1.0, %v6723_v9 }
 0x7b9   :  { %v3790_v0 = vadd.f32 1e-05, %v3726_v5  ;;  %v4083_v10 = vmul.f32 %v4051_v34, %v4051_v34 }
 0x7ba   :  { %v6725_v2 = vpop.eup %6724  ;;  %5671 = vmatmul.mubr.msk.bf16.gmra.mrb[100].mxu0 %vm3393_vm4, %v4272_v31  ;;  %v4084_v33 = vmul.f32 %v4052_v13, %v4052_v13 }
 0x7bb   :  { %6734 = vrsqrt.f32 %v3790_v0  ;;  %v3851_v55 = vmul.f32 %v6725_v2, %v3755_v49  ;;  %4906 = vmatprep.mubr.bf16.mxu0 %v10121_v25  ;;  %v4179_v62 = vadd.f32 1.0, %v4083_v10  ;;  %v3757_v49 = vsub.f32 %v9090_v29, %v9437_v17 }
 0x7bc   :  { %v9470_v59 = vpop.f32.mrb[196].mxu1  ;;  %v4180_v46 = vadd.f32 1.0, %v4084_v33 }
 0x7bd   :  { %10171 = vst [vmem:[#allocation37_spill] sm:$0xff] %v9470_v59  ;;  %v6727_v27 = vpop.eup %6726  ;;  %v9473_v36 = vpop.f32.mrb[197].mxu1  ;;  %v3889_v34 = vmul.f32 %v9306_v60, %v3851_v55  ;;  %6736 = vrcp.f32 %v4179_v62 }
 0x7be   :  { %10172 = vst [vmem:[#allocation38_spill] sm:$0xff] %v9473_v36  ;;  %v3432_v1 = vpop.xlane.xlu0 %3431  ;;  %v3852_v38 = vmul.f32 %v6727_v27, %v3756_v58  ;;  %v9475_v63 = vpop.f32.mrb[198].mxu1  ;;  %6738 = vrcp.f32 %v4180_v46 }
 0x7bf   :  { %10173 = vst [vmem:[#allocation39_spill] sm:$0xff] %v9475_v63  ;;  %v9477_v31 = vmul.f32 0.125, %v3432_v1  ;;  %v9480_v15 = vpop.f32.mrb[199].mxu1  ;;  %v6729_v12 = vpop.eup %6728  ;;  %v9486_v9 = vadd.f32 %v9321_v39, %v3889_v34  ;;  %v5603_v1 = vadd.f32 -1.0, %v4083_v10 }
 0x7c0   :  { %10174 = vst [vmem:[#allocation40_spill] sm:$0xff] %v9480_v15  ;;  %v3435_v4 = vpop.xlane.xlu1 %3434  ;;  %v3890_v5 = vmul.f32 %v9306_v60, %v3852_v38  ;;  %v6731_v42 = vpop.eup %6730  ;;  %v4053_v0 = vadd.f32 1.0, %v6729_v12 }
 0x7c1   :  { %v9482_v8 = vmul.f32 0.125, %v3435_v4  ;;  %v3695_v2 = vmul.f32 %v9477_v31, %v9477_v31  ;;  %v4054_v58 = vadd.f32 1.0, %v6731_v42  ;;  %v3959_v4 = vmin.f32 %v9486_v9, 20.0 }
 0x7c2   :  { %v3593_v44 = vpop.xlane.xlu0 %3592  ;;  %v6733_v55 = vpop.eup %6732  ;;  %v4085_v62 = vmul.f32 %v4053_v0, %v4053_v0  ;;  %v9493_v38 = vadd.f32 %v9321_v39, %v3890_v5  ;;  %v3758_v42 = vsub.f32 %v9094_v30, %v9446_v23  ;;  %v5604_v0 = vadd.f32 -1.0, %v4084_v33 }
 0x7c3   :  { %v3663_v13 = vmul.f32 0.125, %v3593_v44  ;;  %v3696_v34 = vmul.f32 %v9482_v8, %v9482_v8  ;;  %v4086_v17 = vmul.f32 %v4054_v58, %v4054_v58  ;;  %v3853_v36 = vmul.f32 %v6733_v55, %v3757_v49 }
 0x7c4   :  { %v3596_v27 = vpop.xlane.xlu1 %3595  ;;  %v9498_v29 = vpop.f32.mrb[200].mxu1  ;;  %v4181_v5 = vadd.f32 1.0, %v4085_v62  ;;  %v3960_v63 = vmin.f32 %v9493_v38, 20.0  ;;  %v3999_v30 = vmul.f32 1.442695, %v3959_v4  ;;  %v4147_v33 = vmul.f32 %v5603_v1, %v9402_v50 }
 0x7c5   :  { %v3727_v46 = vsub.f32 %v3663_v13, %v3695_v2  ;;  %v3664_v12 = vmul.f32 0.125, %v3596_v27  ;;  %10175 = vst [vmem:[#allocation41_spill] sm:$0xff] %v9498_v29  ;;  %v6735_v15 = vpop.eup %6734  ;;  %v9502_v44 = vpop.f32.mrb[201].mxu1  ;;  %v4182_v29 = vadd.f32 1.0, %v4086_v17  ;;  %v4148_v55 = vmul.f32 %v5604_v0, %v9409_v3 }
 0x7c6   :  { %10176 = vst [vmem:[#allocation42_spill] sm:$0xff] %v9502_v44  ;;  %v3438_v10 = vpop.xlane.xlu0 %3437  ;;  %v9505_v51 = vpop.f32.mrb[202].mxu1  ;;  %v3854_v13 = vmul.f32 %v6735_v15, %v3758_v42  ;;  %6740 = vrcp.f32 %v4181_v5  ;;  %v5605_v0 = vadd.f32 -1.0, %v4085_v62 }
 0x7c7   :  { %v3791_v59 = vadd.f32 1e-05, %v3727_v46  ;;  %v3728_v41 = vsub.f32 %v3664_v12, %v3696_v34  ;;  %v9507_v2 = vmul.f32 0.125, %v3438_v10  ;;  %v9509_v58 = vpop.f32.mrb[203].mxu1  ;;  %v6737_v44 = vpop.eup %6736  ;;  %v4001_v34 = vmul.f32 1.442695, %v3960_v63 }
 0x7c8   :  { %v3441_v27 = vpop.xlane.xlu1 %3440  ;;  %v3891_v12 = vmul.f32 %v9306_v60, %v3853_v36  ;;  %v6739_v4 = vpop.eup %6738  ;;  %v3892_v1 = vmul.f32 %v9306_v60, %v3854_v13 }
 0x7c9   :  { %6742 = vrsqrt.f32 %v3791_v59  ;;  %v3792_v23 = vadd.f32 1e-05, %v3728_v41  ;;  %v9512_v53 = vmul.f32 0.125, %v3441_v27  ;;  %v3697_v15 = vmul.f32 %v9507_v2, %v9507_v2 }
 0x7ca   :  { %v3599_v49 = vpop.xlane.xlu0 %3598  ;;  %6744 = vrcp.f32 %v4182_v29  ;;  %v4243_v59 = vmul.f32 %v6737_v44, %v4147_v33  ;;  %v4244_v63 = vmul.f32 %v6739_v4, %v4148_v55  ;;  %v9526_v36 = vadd.f32 %v9321_v39, %v3891_v12 }
 0x7cb   :  { %6746 = vrsqrt.f32 %v3792_v23  ;;  %v3665_v46 = vmul.f32 0.125, %v3599_v49  ;;  %v3698_v41 = vmul.f32 %v9512_v53, %v9512_v53  ;;  %v9529_v5 = vadd.f32 %v9321_v39, %v3892_v1 }
 0x7cc   :  { %v3602_v50 = vpop.xlane.xlu1 %3601  ;;  %6748 = vpow2.f32 %v3999_v30  ;;  %v9521_v29 = vpop.f32.mrb[204].mxu1  ;;  %v4273_v13 = vpack.c.bf16 %v4244_v63, %v4243_v59  ;;  %v5606_v23 = vadd.f32 -1.0, %v4086_v17  ;;  %v3961_v49 = vmin.f32 %v9526_v36, 20.0 }
 0x7cd   :  { %v3729_v42 = vsub.f32 %v3665_v46, %v3697_v15  ;;  %v3666_v3 = vmul.f32 0.125, %v3602_v50  ;;  %6750 = vpow2.f32 %v4001_v34  ;;  %v9523_v10 = vpop.f32.mrb[205].mxu1  ;;  %v3962_v55 = vmin.f32 %v9529_v5, 20.0 }
 0x7ce   :  { %v9531_v30 = vpop.f32.mrb[206].mxu1  ;;  %5672 = vmatmul.mubr.msk.bf16.gmra.mrb[104].mxu0 %vm3393_vm4, %v4273_v13  ;;  %v3759_v15 = vsub.f32 %v9108_v61, %v9477_v31  ;;  %v4003_v46 = vmul.f32 1.442695, %v3961_v49  ;;  %v4149_v17 = vmul.f32 %v5605_v0, %v9440_v22  ;;  %v3760_v59 = vsub.f32 %v9111_v16, %v9482_v8 }
 0x7cf   :  { %v3793_v27 = vadd.f32 1e-05, %v3729_v42  ;;  %v3730_v44 = vsub.f32 %v3666_v3, %v3698_v41  ;;  %v9533_v33 = vpop.f32.mrb[207].mxu1  ;;  %4916 = vmatprep.mubr.bf16.mxu0 %v10121_v25  ;;  %v4005_v12 = vmul.f32 1.442695, %v3962_v55  ;;  %v4150_v41 = vmul.f32 %v5606_v23, %v9443_v45 }
 0x7d0   :  { %v6741_v34 = vpop.eup %6740 }
 0x7d1   :  { %6752 = vrsqrt.f32 %v3793_v27  ;;  %v3794_v62 = vadd.f32 1e-05, %v3730_v44  ;;  %v4245_v61 = vmul.f32 %v6741_v34, %v4149_v17 }
 0x7d3   :  { %v6743_v4 = vpop.eup %6742  ;;  %6754 = vrsqrt.f32 %v3794_v62 }
 0x7d4   :  { %v6745_v50 = vpop.eup %6744  ;;  %v3855_v1 = vmul.f32 %v6743_v4, %v3759_v15  ;;  %6756 = vpow2.f32 %v4003_v46  ;;  %v9545_v3 = vpop.f32.mrb[208].mxu1 }
 0x7d5   :  { %v6747_v42 = vpop.eup %6746  ;;  %10177 = vst [vmem:[#allocation43_spill] sm:$0xff] %v9545_v3  ;;  %v4246_v31 = vmul.f32 %v6745_v50, %v4150_v41  ;;  %6758 = vpow2.f32 %v4005_v12  ;;  %v9547_v44 = vpop.f32.mrb[209].mxu1  ;;  %v3761_v41 = vsub.f32 %v9122_v56, %v9507_v2 }
 0x7d6   :  { %v6749_v63 = vpop.eup %6748  ;;  %v3856_v27 = vmul.f32 %v6747_v42, %v3760_v59  ;;  %10178 = vst [vmem:[#allocation44_spill] sm:$0xff] %v9547_v44  ;;  %v3893_v22 = vmul.f32 %v9306_v60, %v3855_v1  ;;  %v3444_v45 = vpop.xlane.xlu0 %3443 }
 0x7d7   :  { %v6751_v0 = vpop.eup %6750  ;;  %v9550_v13 = vpop.f32.mrb[210].mxu1  ;;  %v4274_v23 = vpack.c.bf16 %v4246_v31, %v4245_v61  ;;  %v4055_v16 = vadd.f32 1.0, %v6749_v63  ;;  %v9552_v8 = vmul.f32 0.125, %v3444_v45 }
 0x7d8   :  { %10179 = vst [vmem:[#allocation45_spill] sm:$0xff] %v9550_v13  ;;  %v9554_v49 = vpop.f32.mrb[211].mxu1  ;;  %v4056_v55 = vadd.f32 1.0, %v6751_v0  ;;  %v3894_v62 = vmul.f32 %v9306_v60, %v3856_v27  ;;  %v9558_v34 = vadd.f32 %v9321_v39, %v3893_v22  ;;  %v3447_v15 = vpop.xlane.xlu1 %3446  ;;  %v3762_v27 = vsub.f32 %v9126_v11, %v9512_v53 }
 0x7d9   :  { %10180 = vst [vmem:[#allocation46_spill] sm:$0xff] %v9554_v49  ;;  %5673 = vmatmul.mubr.msk.bf16.gmra.mrb[108].mxu0 %vm3393_vm4, %v4274_v23  ;;  %v4087_v46 = vmul.f32 %v4055_v16, %v4055_v16  ;;  %v9561_v12 = vmul.f32 0.125, %v3447_v15  ;;  %v3699_v61 = vmul.f32 %v9552_v8, %v9552_v8 }
 0x7da   :  { %4926 = vmatprep.mubr.bf16.mxu0 %v10121_v25  ;;  %v4088_v4 = vmul.f32 %v4056_v55, %v4056_v55  ;;  %v3605_v50 = vpop.xlane.xlu0 %3604  ;;  %v9567_v1 = vadd.f32 %v9321_v39, %v3894_v62  ;;  %v3963_v42 = vmin.f32 %v9558_v34, 20.0 }
 0x7db   :  { %v6753_v17 = vpop.eup %6752  ;;  %v4183_v59 = vadd.f32 1.0, %v4087_v46  ;;  %v3667_v31 = vmul.f32 0.125, %v3605_v50  ;;  %v3700_v23 = vmul.f32 %v9561_v12, %v9561_v12 }
 0x7dc   :  { %v3857_v22 = vmul.f32 %v6753_v17, %v3761_v41  ;;  %v3608_v0 = vpop.xlane.xlu1 %3607  ;;  %v9574_v45 = vpop.f32.mrb[212].mxu1  ;;  %v4184_v56 = vadd.f32 1.0, %v4088_v4  ;;  %v3964_v15 = vmin.f32 %v9567_v1, 20.0  ;;  %v4007_v17 = vmul.f32 1.442695, %v3963_v42 }
 0x7dd   :  { %v6755_v63 = vpop.eup %6754  ;;  %10181 = vst [vmem:[#allocation47_spill] sm:$0xff] %v9574_v45  ;;  %6760 = vrcp.f32 %v4183_v59  ;;  %v3731_v16 = vsub.f32 %v3667_v31, %v3699_v61  ;;  %v3668_v55 = vmul.f32 0.125, %v3608_v0  ;;  %v9578_v62 = vpop.f32.mrb[213].mxu1  ;;  %v5607_v0 = vadd.f32 -1.0, %v4087_v46 }
 0x7de   :  { %v6757_v2 = vpop.eup %6756  ;;  %10182 = vst [vmem:[#allocation48_spill] sm:$0xff] %v9578_v62  ;;  %v3858_v49 = vmul.f32 %v6755_v63, %v3762_v27  ;;  %v3450_v13 = vpop.xlane.xlu0 %3449  ;;  %6762 = vrcp.f32 %v4184_v56  ;;  %v3895_v3 = vmul.f32 %v9306_v60, %v3857_v22  ;;  %v5608_v27 = vadd.f32 -1.0, %v4088_v4 }
 0x7df   :  { %v6759_v50 = vpop.eup %6758  ;;  %v9581_v11 = vpop.f32.mrb[214].mxu1  ;;  %v4057_v53 = vadd.f32 1.0, %v6757_v2  ;;  %v3795_v41 = vadd.f32 1e-05, %v3731_v16  ;;  %v3732_v59 = vsub.f32 %v3668_v55, %v3700_v23  ;;  %v9583_v45 = vmul.f32 0.125, %v3450_v13 }
 0x7e0   :  { %10183 = vst [vmem:[#allocation49_spill] sm:$0xff] %v9581_v11  ;;  %v9585_v44 = vpop.f32.mrb[215].mxu1  ;;  %v4058_v61 = vadd.f32 1.0, %v6759_v50  ;;  %v3453_v31 = vpop.xlane.xlu1 %3452  ;;  %6764 = vpow2.f32 %v4007_v17  ;;  %v4009_v11 = vmul.f32 1.442695, %v3964_v15  ;;  %v3896_v46 = vmul.f32 %v9306_v60, %v3858_v49 }
 0x7e1   :  { %10184 = vst [vmem:[#allocation50_spill] sm:$0xff] %v9585_v44  ;;  %v4089_v62 = vmul.f32 %v4057_v53, %v4057_v53  ;;  %6766 = vrsqrt.f32 %v3795_v41  ;;  %v3796_v63 = vadd.f32 1e-05, %v3732_v59  ;;  %v3701_v42 = vmul.f32 %v9583_v45, %v9583_v45 }
 0x7e2   :  { %v9590_v56 = vmul.f32 0.125, %v3453_v31  ;;  %v3611_v13 = vpop.xlane.xlu0 %3610  ;;  %v4090_v2 = vmul.f32 %v4058_v61, %v4058_v61  ;;  %v9594_v55 = vadd.f32 %v9321_v39, %v3895_v3  ;;  %v4151_v49 = vmul.f32 %v5607_v0, %v9486_v9 }
 0x7e3   :  { %v4185_v23 = vadd.f32 1.0, %v4089_v62  ;;  %6768 = vrsqrt.f32 %v3796_v63  ;;  %v3669_v16 = vmul.f32 0.125, %v3611_v13  ;;  %v9606_v3 = vadd.f32 %v9321_v39, %v3896_v46 }
 0x7e4   :  { %v3702_v22 = vmul.f32 %v9590_v56, %v9590_v56  ;;  %v3614_v4 = vpop.xlane.xlu1 %3613  ;;  %v9598_v15 = vpop.f32.mrb[216].mxu1  ;;  %v4186_v41 = vadd.f32 1.0, %v4090_v2  ;;  %v3965_v31 = vmin.f32 %v9594_v55, 20.0 }
 0x7e5   :  { %10185 = vst [vmem:[#allocation51_spill] sm:$0xff] %v9598_v15  ;;  %v3733_v50 = vsub.f32 %v3669_v16, %v3701_v42  ;;  %v3670_v53 = vmul.f32 0.125, %v3614_v4  ;;  %v9600_v17 = vpop.f32.mrb[217].mxu1  ;;  %6770 = vrcp.f32 %v4185_v23  ;;  %v4152_v42 = vmul.f32 %v5608_v27, %v9493_v38 }
 0x7e6   :  { %10186 = vst [vmem:[#allocation52_spill] sm:$0xff] %v9600_v17  ;;  %v9602_v61 = vpop.f32.mrb[218].mxu1  ;;  %6772 = vpow2.f32 %v4009_v11  ;;  %v3966_v23 = vmin.f32 %v9606_v3, 20.0  ;;  %v4011_v4 = vmul.f32 1.442695, %v3965_v31  ;;  %v3763_v17 = vsub.f32 %v9140_v18, %v9552_v8 }
 0x7e7   :  { %v6761_v59 = vpop.eup %6760  ;;  %10187 = vst [vmem:[#allocation53_spill] sm:$0xff] %v9602_v61  ;;  %v3797_v63 = vadd.f32 1e-05, %v3733_v50  ;;  %v3734_v13 = vsub.f32 %v3670_v53, %v3702_v22  ;;  %v9609_v15 = vpop.f32.mrb[219].mxu1  ;;  %6774 = vrcp.f32 %v4186_v41  ;;  %v5609_v41 = vadd.f32 -1.0, %v4089_v62 }
 0x7e8   :  { %10188 = vst [vmem:[#allocation54_spill] sm:$0xff] %v9609_v15  ;;  %v6763_v16 = vpop.eup %6762  ;;  %v4247_v11 = vmul.f32 %v6761_v59, %v4151_v49  ;;  %v4013_v22 = vmul.f32 1.442695, %v3966_v23  ;;  %v5610_v15 = vadd.f32 -1.0, %v4090_v2  ;;  %v3764_v31 = vsub.f32 %v9143_v54, %v9561_v12 }
 0x7e9   :  { %6776 = vrsqrt.f32 %v3797_v63  ;;  %v3798_v61 = vadd.f32 1e-05, %v3734_v13  ;;  %v3456_v9 = vpop.xlane.xlu0 %3455  ;;  %v4248_v0 = vmul.f32 %v6763_v16, %v4152_v42  ;;  %v3765_v2 = vsub.f32 %v9154_v57, %v9583_v45 }
 0x7ea   :  { %v6765_v46 = vpop.eup %6764  ;;  %v9615_v50 = vmul.f32 0.125, %v3456_v9  ;;  %6778 = vpow2.f32 %v4011_v4  ;;  %v4153_v4 = vmul.f32 %v5609_v41, %v9526_v36 }
 0x7eb   :  { %v6767_v53 = vpop.eup %6766  ;;  %v3459_v38 = vpop.xlane.xlu1 %3458  ;;  %v4275_v27 = vpack.c.bf16 %v4248_v0, %v4247_v11  ;;  %v4059_v44 = vadd.f32 1.0, %v6765_v46  ;;  %6780 = vrsqrt.f32 %v3798_v61 }
 0x7ec   :  { %v3859_v63 = vmul.f32 %v6767_v53, %v3763_v17  ;;  %v9619_v59 = vmul.f32 0.125, %v3459_v38  ;;  %v9621_v49 = vpop.f32.mrb[220].mxu1  ;;  %6782 = vpow2.f32 %v4013_v22  ;;  %v3703_v54 = vmul.f32 %v9615_v50, %v9615_v50 }
 0x7ed   :  { %v6769_v18 = vpop.eup %6768  ;;  %v3617_v8 = vpop.xlane.xlu0 %3616  ;;  %5674 = vmatmul.mubr.msk.bf16.gmra.mrb[112].mxu0 %vm3393_vm4, %v4275_v27  ;;  %v4091_v42 = vmul.f32 %v4059_v44, %v4059_v44  ;;  %v4154_v44 = vmul.f32 %v5610_v15, %v9529_v5 }
 0x7ee   :  { %v9623_v13 = vpop.f32.mrb[221].mxu1  ;;  %v3860_v62 = vmul.f32 %v6769_v18, %v3764_v31  ;;  %v3671_v12 = vmul.f32 0.125, %v3617_v8  ;;  %4936 = vmatprep.mubr.bf16.mxu0 %v10121_v25  ;;  %v3897_v11 = vmul.f32 %v9306_v60, %v3859_v63  ;;  %v3704_v45 = vmul.f32 %v9619_v59, %v9619_v59 }
 0x7ef   :  { %v9630_v17 = vpop.f32.mrb[222].mxu1  ;;  %v6771_v61 = vpop.eup %6770  ;;  %v4187_v9 = vadd.f32 1.0, %v4091_v42  ;;  %v5611_v22 = vadd.f32 -1.0, %v4091_v42  ;;  %v3766_v8 = vsub.f32 %v9158_v40, %v9590_v56  ;;  %v3767_v42 = vsub.f32 %v9172_v14, %v9615_v50 }
 0x7f0   :  { %v3620_v16 = vpop.xlane.xlu1 %3619  ;;  %v9633_v23 = vpop.f32.mrb[223].mxu1  ;;  %v3735_v0 = vsub.f32 %v3671_v12, %v3703_v54  ;;  %v3898_v31 = vmul.f32 %v9306_v60, %v3860_v62  ;;  %v9642_v36 = vadd.f32 %v9321_v39, %v3897_v11  ;;  %v4249_v12 = vmul.f32 %v6771_v61, %v4153_v4 }
 0x7f1   :  { %v6773_v57 = vpop.eup %6772  ;;  %v3672_v46 = vmul.f32 0.125, %v3620_v16  ;;  %v3462_v38 = vpop.xlane.xlu0 %3461  ;;  %6784 = vrcp.f32 %v4187_v9  ;;  %v3768_v60 = vsub.f32 %v9175_v26, %v9619_v59  ;;  %v4155_v11 = vmul.f32 %v5611_v22, %v9558_v34 }
 0x7f2   :  { %v6775_v53 = vpop.eup %6774  ;;  %v4060_v27 = vadd.f32 1.0, %v6773_v57  ;;  %v3799_v5 = vadd.f32 1e-05, %v3735_v0  ;;  %v9644_v41 = vmul.f32 0.125, %v3462_v38  ;;  %v9656_v40 = vadd.f32 %v9321_v39, %v3898_v31 }
 0x7f3   :  { %v3736_v15 = vsub.f32 %v3672_v46, %v3704_v45  ;;  %v4250_v63 = vmul.f32 %v6775_v53, %v4154_v44  ;;  %v6777_v18 = vpop.eup %6776  ;;  %v3967_v14 = vmin.f32 %v9642_v36, 20.0 }
 0x7f4   :  { %v3465_v54 = vpop.xlane.xlu1 %3464  ;;  %v4092_v16 = vmul.f32 %v4060_v27, %v4060_v27  ;;  %v6779_v9 = vpop.eup %6778  ;;  %6786 = vrsqrt.f32 %v3799_v5  ;;  %v3705_v50 = vmul.f32 %v9644_v41, %v9644_v41  ;;  %v3861_v46 = vmul.f32 %v6777_v18, %v3765_v2 }
 0x7f5   :  { %v3800_v62 = vadd.f32 1e-05, %v3736_v15  ;;  %v9653_v57 = vmul.f32 0.125, %v3465_v54  ;;  %v3623_v44 = vpop.xlane.xlu0 %3622  ;;  %v4276_v45 = vpack.c.bf16 %v4250_v63, %v4249_v12  ;;  %v6781_v56 = vpop.eup %6780  ;;  %v4061_v39 = vadd.f32 1.0, %v6779_v9 }
 0x7f6   :  { %v3673_v61 = vmul.f32 0.125, %v3623_v44  ;;  %v4188_v4 = vadd.f32 1.0, %v4092_v16  ;;  %v6783_v0 = vpop.eup %6782  ;;  %v5612_v53 = vadd.f32 -1.0, %v4092_v16  ;;  %v3862_v5 = vmul.f32 %v6781_v56, %v3766_v8 }
 0x7f7   :  { %6788 = vrsqrt.f32 %v3800_v62  ;;  %v3706_v34 = vmul.f32 %v9653_v57, %v9653_v57  ;;  %5675 = vmatmul.mubr.msk.bf16.gmra.mrb[116].mxu0 %vm3393_vm4, %v4276_v45  ;;  %v4062_v31 = vadd.f32 1.0, %v6783_v0  ;;  %v4093_v63 = vmul.f32 %v4061_v39, %v4061_v39 }
 0x7f8   :  { %v3626_v22 = vpop.xlane.xlu1 %3625  ;;  %v3737_v38 = vsub.f32 %v3673_v61, %v3705_v50  ;;  %4946 = vmatprep.mubr.bf16.mxu0 %v10121_v25  ;;  %6790 = vrcp.f32 %v4188_v4  ;;  %v3968_v54 = vmin.f32 %v9656_v40, 20.0  ;;  %v4015_v2 = vmul.f32 1.442695, %v3967_v14  ;;  %v9676_v14 = vld [vmem:[%s10021_s14] ss:$0 sm:$0xff] }
 0x7f9   :  { %v3674_v27 = vmul.f32 0.125, %v3626_v22  ;;  %v3468_v15 = vpop.xlane.xlu0 %3467  ;;  %v4094_v44 = vmul.f32 %v4062_v31, %v4062_v31  ;;  %v3769_v16 = vsub.f32 %v9186_v24, %v9644_v41  ;;  %v3770_v9 = vsub.f32 %v9190_v43, %v9653_v57 }
 0x7fa   :  { %v3801_v18 = vadd.f32 1e-05, %v3737_v38  ;;  %v9666_v62 = vmul.f32 0.125, %v3468_v15  ;;  %v4156_v8 = vmul.f32 %v5612_v53, %v9567_v1  ;;  %6792 = vpow2.f32 %v4015_v2 }
 0x7fb   :  { %v3738_v12 = vsub.f32 %v3674_v27, %v3706_v34  ;;  %v6785_v45 = vpop.eup %6784  ;;  %v4189_v61 = vadd.f32 1.0, %v4093_v63  ;;  %v3899_v4 = vmul.f32 %v9676_v14, %v3861_v46  ;;  %v5613_v34 = vadd.f32 -1.0, %v4093_v63  ;;  %v9691_v63 = vld [vmem:[%s10022_s15] ss:$0 sm:$0xff] }
 0x7fc   :  { %v3471_v50 = vpop.xlane.xlu1 %3470  ;;  %6794 = vrsqrt.f32 %v3801_v18  ;;  %v3707_v24 = vmul.f32 %v9666_v62, %v9666_v62  ;;  %v4017_v22 = vmul.f32 1.442695, %v3968_v54  ;;  %v4190_v39 = vadd.f32 1.0, %v4094_v44 }
 0x7fd   :  { %v3802_v56 = vadd.f32 1e-05, %v3738_v12  ;;  %v9681_v41 = vmul.f32 0.125, %v3471_v50  ;;  %v3629_v0 = vpop.xlane.xlu0 %3628  ;;  %v3900_v38 = vmul.f32 %v9676_v14, %v3862_v5  ;;  %v4251_v2 = vmul.f32 %v6785_v45, %v4155_v11 }
 0x7fe   :  { %v6787_v1 = vpop.eup %6786  ;;  %v3675_v53 = vmul.f32 0.125, %v3629_v0  ;;  %v9694_v5 = vadd.f32 %v9691_v63, %v3899_v4 }
 0x7ff   :  { %6796 = vrsqrt.f32 %v3802_v56  ;;  %v3863_v27 = vmul.f32 %v6787_v1, %v3767_v42  ;;  %v3708_v46 = vmul.f32 %v9681_v41, %v9681_v41  ;;  %v9700_v11 = vadd.f32 %v9691_v63, %v3900_v38 }
 0x800   :  { %v3632_v15 = vpop.xlane.xlu1 %3631  ;;  %v3739_v12 = vsub.f32 %v3675_v53, %v3707_v24  ;;  %6798 = vrcp.f32 %v4189_v61  ;;  %v5614_v53 = vadd.f32 -1.0, %v4094_v44 }
 0x801   :  { %v6789_v18 = vpop.eup %6788  ;;  %v3676_v50 = vmul.f32 0.125, %v3632_v15  ;;  %v3474_v54 = vpop.xlane.xlu0 %3473  ;;  %6800 = vrcp.f32 %v4190_v39  ;;  %v3901_v45 = vmul.f32 %v9676_v14, %v3863_v27  ;;  %v3969_v15 = vmin.f32 %v9694_v5, 20.0 }
 0x802   :  { %v3864_v42 = vmul.f32 %v6789_v18, %v3768_v60  ;;  %v6791_v56 = vpop.eup %6790  ;;  %v3803_v61 = vadd.f32 1e-05, %v3739_v12  ;;  %v9703_v0 = vmul.f32 0.125, %v3474_v54  ;;  %6802 = vpow2.f32 %v4017_v22 }
 0x803   :  { %v3740_v24 = vsub.f32 %v3676_v50, %v3708_v46  ;;  %v4252_v4 = vmul.f32 %v6791_v56, %v4156_v8  ;;  %v3970_v26 = vmin.f32 %v9700_v11, 20.0  ;;  %v4157_v60 = vmul.f32 %v5613_v34, %v9594_v55 }
 0x804   :  { %v3477_v1 = vpop.xlane.xlu1 %3476  ;;  %6804 = vrsqrt.f32 %v3803_v61  ;;  %v3902_v39 = vmul.f32 %v9676_v14, %v3864_v42  ;;  %v6793_v38 = vpop.eup %6792  ;;  %v4019_v12 = vmul.f32 1.442695, %v3969_v15  ;;  %v3709_v44 = vmul.f32 %v9703_v0, %v9703_v0 }
 0x805   :  { %v3804_v59 = vadd.f32 1e-05, %v3740_v24  ;;  %v9709_v27 = vmul.f32 0.125, %v3477_v1  ;;  %v3635_v46 = vpop.xlane.xlu0 %3634  ;;  %v4277_v18 = vpack.c.bf16 %v4252_v4, %v4251_v2  ;;  %v4021_v22 = vmul.f32 1.442695, %v3970_v26 }
 0x806   :  { %v6795_v50 = vpop.eup %6794  ;;  %v3677_v8 = vmul.f32 0.125, %v3635_v46  ;;  %v4063_v54 = vadd.f32 1.0, %v6793_v38  ;;  %v9714_v56 = vadd.f32 %v9691_v63, %v3901_v45  ;;  %6806 = vpow2.f32 %v4019_v12 }
 0x807   :  { %v3865_v61 = vmul.f32 %v6795_v50, %v3769_v16  ;;  %v3710_v34 = vmul.f32 %v9709_v27, %v9709_v27  ;;  %5676 = vmatmul.mubr.msk.bf16.gmra.mrb[120].mxu0 %vm3393_vm4, %v4277_v18  ;;  %6808 = vpow2.f32 %v4021_v22  ;;  %v4158_v15 = vmul.f32 %v5614_v53, %v9606_v3 }
 0x808   :  { %v3638_v42 = vpop.xlane.xlu1 %3637  ;;  %v3741_v24 = vsub.f32 %v3677_v8, %v3709_v44  ;;  %4956 = vmatprep.mubr.bf16.mxu0 %v10121_v25  ;;  %v4095_v4 = vmul.f32 %v4063_v54, %v4063_v54  ;;  %v9726_v26 = vadd.f32 %v9691_v63, %v3902_v39  ;;  %v3971_v38 = vmin.f32 %v9714_v56, 20.0 }
 0x809   :  { %v6797_v2 = vpop.eup %6796  ;;  %v3678_v1 = vmul.f32 0.125, %v3638_v42  ;;  %v3480_v45 = vpop.xlane.xlu0 %3479  ;;  %6810 = vrsqrt.f32 %v3804_v59  ;;  %v3903_v53 = vmul.f32 %v9676_v14, %v3865_v61  ;;  %v3774_v43 = vsub.f32 %v9228_v32, %v9709_v27 }
 0x80a   :  { %v6799_v46 = vpop.eup %6798  ;;  %v3805_v18 = vadd.f32 1e-05, %v3741_v24  ;;  %v9729_v50 = vmul.f32 0.125, %v3480_v45  ;;  %v3866_v22 = vmul.f32 %v6797_v2, %v3770_v9  ;;  %v5615_v54 = vadd.f32 -1.0, %v4095_v4 }
 0x80b   :  { %v3742_v12 = vsub.f32 %v3678_v1, %v3710_v34  ;;  %v6801_v44 = vpop.eup %6800  ;;  %v3972_v3 = vmin.f32 %v9726_v26, 20.0  ;;  %v4253_v16 = vmul.f32 %v6799_v46, %v4157_v60  ;;  %v4191_v59 = vadd.f32 1.0, %v4095_v4 }
 0x80c   :  { %v3483_v8 = vpop.xlane.xlu1 %3482  ;;  %v6803_v39 = vpop.eup %6802  ;;  %6812 = vrsqrt.f32 %v3805_v18  ;;  %v4254_v1 = vmul.f32 %v6801_v44, %v4158_v15  ;;  %v4023_v55 = vmul.f32 1.442695, %v3971_v38  ;;  %v3711_v57 = vmul.f32 %v9729_v50, %v9729_v50 }
 0x80d   :  { %v3806_v42 = vadd.f32 1e-05, %v3742_v12  ;;  %v9736_v24 = vmul.f32 0.125, %v3483_v8  ;;  %v3641_v34 = vpop.xlane.xlu0 %3640  ;;  %v4064_v45 = vadd.f32 1.0, %v6803_v39  ;;  %v3775_v61 = vsub.f32 %v9244_v52, %v9729_v50 }
 0x80e   :  { %v6805_v31 = vpop.eup %6804  ;;  %v3679_v9 = vmul.f32 0.125, %v3641_v34  ;;  %v4278_v4 = vpack.c.bf16 %v4254_v1, %v4253_v16  ;;  %v4025_v15 = vmul.f32 1.442695, %v3972_v3  ;;  %v9748_v27 = vmul.f32 %v5615_v54, %v9642_v36 }
 0x80f   :  { %6814 = vrsqrt.f32 %v3806_v42  ;;  %v3712_v60 = vmul.f32 %v9736_v24, %v9736_v24  ;;  %v4096_v18 = vmul.f32 %v4064_v45, %v4064_v45  ;;  %v3904_v44 = vmul.f32 %v9676_v14, %v3866_v22 }
 0x810   :  { %v3644_v2 = vpop.xlane.xlu1 %3643  ;;  %v3743_v46 = vsub.f32 %v3679_v9, %v3711_v57  ;;  %6816 = vrcp.f32 %v4191_v59  ;;  %v6807_v12 = vpop.eup %6806  ;;  %5677 = vmatmul.mubr.msk.bf16.gmra.mrb[124].mxu0 %vm3393_vm4, %v4278_v4  ;;  %v9752_v8 = vadd.f32 %v9691_v63, %v3903_v53  ;;  %v3776_v54 = vsub.f32 %v9256_v37, %v9736_v24 }
 0x811   :  { %v3680_v38 = vmul.f32 0.125, %v3644_v2  ;;  %v3486_v32 = vpop.xlane.xlu0 %3485  ;;  %6818 = vpow2.f32 %v4023_v55  ;;  %v6809_v39 = vpop.eup %6808  ;;  %4966 = vmatprep.mubr.bf16.mxu0 %v10121_v25  ;;  %v5616_v59 = vadd.f32 -1.0, %v4096_v18  ;;  %v4192_v1 = vadd.f32 1.0, %v4096_v18 }
 0x812   :  { %v3807_v16 = vadd.f32 1e-05, %v3743_v46  ;;  %v9754_v42 = vmul.f32 0.125, %v3486_v32  ;;  %v4065_v45 = vadd.f32 1.0, %v6807_v12  ;;  %v4066_v57 = vadd.f32 1.0, %v6809_v39 }
 0x813   :  { %v3744_v3 = vsub.f32 %v3680_v38, %v3712_v60  ;;  %6820 = vpow2.f32 %v4025_v15  ;;  %v6811_v36 = vpop.eup %6810  ;;  %v10189_v55 = vsub.f32 %v9200_v20, %v9666_v62  ;;  %v9765_v4 = vadd.f32 %v9691_v63, %v3904_v44 }
 0x814   :  { %v3489_v34 = vpop.xlane.xlu1 %3488  ;;  %6822 = vrsqrt.f32 %v3807_v16  ;;  %v4097_v2 = vmul.f32 %v4065_v45, %v4065_v45  ;;  %v3713_v15 = vmul.f32 %v9754_v42, %v9754_v42  ;;  %v4098_v62 = vmul.f32 %v4066_v57, %v4066_v57 }
 0x815   :  { %v3867_v22 = vmul.f32 %v6805_v31, %v10189_v55  ;;  %v3808_v53 = vadd.f32 1e-05, %v3744_v3  ;;  %v9762_v9 = vmul.f32 0.125, %v3489_v34  ;;  %v3647_v60 = vpop.xlane.xlu0 %3646  ;;  %6824 = vrcp.f32 %v4192_v1 }
 0x816   :  { %v6813_v46 = vpop.eup %6812  ;;  %v3681_v20 = vmul.f32 0.125, %v3647_v60  ;;  %v10190_v37 = vsub.f32 %v9206_v47, %v9681_v41  ;;  %v3777_v24 = vsub.f32 %v9285_v19, %v9754_v42  ;;  %v4160_v18 = vmul.f32 %v5616_v59, %v9656_v40 }
 0x817   :  { %6826 = vrsqrt.f32 %v3808_v53  ;;  %v3973_v12 = vmin.f32 %v9752_v8, 20.0  ;;  %v3714_v44 = vmul.f32 %v9762_v9, %v9762_v9  ;;  %v4193_v3 = vadd.f32 1.0, %v4097_v2 }
 0x818   :  { %v3868_v31 = vmul.f32 %v6811_v36, %v10190_v37  ;;  %v3650_v38 = vpop.xlane.xlu1 %3649  ;;  %v3745_v39 = vsub.f32 %v3681_v20, %v3713_v15  ;;  %v10191_v34 = vsub.f32 %v9222_v6, %v9703_v0  ;;  %v4194_v1 = vadd.f32 1.0, %v4098_v62 }
 0x819   :  { %v6815_v32 = vpop.eup %6814  ;;  %v3682_v16 = vmul.f32 0.125, %v3650_v38  ;;  %v3974_v45 = vmin.f32 %v9765_v4, 20.0  ;;  %v5617_v59 = vadd.f32 -1.0, %v4097_v2  ;;  %6828 = vrcp.f32 %v4193_v3 }
 0x81a   :  { %v3869_v47 = vmul.f32 %v6813_v46, %v10191_v34  ;;  %v3870_v41 = vmul.f32 %v6815_v32, %v3774_v43  ;;  %v6817_v57 = vpop.eup %6816  ;;  %v3809_v36 = vadd.f32 1e-05, %v3745_v39  ;;  %v5618_v53 = vadd.f32 -1.0, %v4098_v62 }
 0x81b   :  { %v3746_v40 = vsub.f32 %v3682_v16, %v3714_v44  ;;  %v6819_v55 = vpop.eup %6818  ;;  %6830 = vrcp.f32 %v4194_v1  ;;  %v4027_v60 = vmul.f32 1.442695, %v3973_v12  ;;  %v4029_v15 = vmul.f32 1.442695, %v3974_v45 }
 0x81c   :  { %6832 = vrsqrt.f32 %v3809_v36  ;;  %v4067_v37 = vadd.f32 1.0, %v6819_v55  ;;  %v3905_v6 = vmul.f32 %v9676_v14, %v3867_v22  ;;  %v3906_v43 = vmul.f32 %v9676_v14, %v3868_v31 }
 0x81d   :  { %v3810_v20 = vadd.f32 1e-05, %v3746_v40  ;;  %v6821_v0 = vpop.eup %6820  ;;  %6834 = vpow2.f32 %v4027_v60  ;;  %v3907_v46 = vmul.f32 %v9676_v14, %v3869_v47  ;;  %v3908_v38 = vmul.f32 %v9676_v14, %v3870_v41 }
 0x81e   :  { %v6823_v2 = vpop.eup %6822  ;;  %v4068_v32 = vadd.f32 1.0, %v6821_v0  ;;  %v4099_v62 = vmul.f32 %v4067_v37, %v4067_v37  ;;  %v9787_v12 = vadd.f32 %v9691_v63, %v3905_v6  ;;  %v4255_v39 = vmul.f32 %v6817_v57, %v9748_v27 }
 0x81f   :  { %6836 = vrsqrt.f32 %v3810_v20  ;;  %v6825_v44 = vpop.eup %6824  ;;  %v9791_v22 = vadd.f32 %v9691_v63, %v3906_v43  ;;  %v9794_v31 = vadd.f32 %v9691_v63, %v3907_v46  ;;  %v3871_v3 = vmul.f32 %v6823_v2, %v3775_v61 }
 0x820   :  { %6838 = vpow2.f32 %v4029_v15  ;;  %v4256_v34 = vmul.f32 %v6825_v44, %v4160_v18  ;;  %v4100_v47 = vmul.f32 %v4068_v32, %v4068_v32  ;;  %v4195_v41 = vadd.f32 1.0, %v4099_v62 }
 0x821   :  { %v6827_v16 = vpop.eup %6826  ;;  %v3975_v45 = vmin.f32 %v9787_v12, 20.0  ;;  %v3976_v27 = vmin.f32 %v9791_v22, 20.0  ;;  %v9802_v57 = vadd.f32 %v9691_v63, %v3908_v38  ;;  %v3778_v36 = vsub.f32 %v9292_v7, %v9762_v9 }
 0x822   :  { %v3872_v1 = vmul.f32 %v6827_v16, %v3776_v54  ;;  %v4279_v40 = vpack.c.bf16 %v4256_v34, %v4255_v39  ;;  %v4161_v55 = vmul.f32 %v5617_v59, %v9694_v5  ;;  %v4196_v60 = vadd.f32 1.0, %v4100_v47 }
 0x823   :  { %6840 = vrcp.f32 %v4195_v41  ;;  %v4031_v52 = vmul.f32 1.442695, %v3975_v45  ;;  %v4033_v50 = vmul.f32 1.442695, %v3976_v27  ;;  %v3977_v61 = vmin.f32 %v9794_v31, 20.0  ;;  %v6829_v54 = vpop.eup %6828 }
 0x824   :  { %5678 = vmatmul.mubr.msk.bf16.gmra.mrb[128].mxu0 %vm3393_vm4, %v4279_v40  ;;  %v4162_v18 = vmul.f32 %v5618_v53, %v9700_v11  ;;  %6842 = vrcp.f32 %v4196_v60  ;;  %v3978_v15 = vmin.f32 %v9802_v57, 20.0  ;;  %v3909_v20 = vmul.f32 %v9676_v14, %v3871_v3 }
 0x825   :  { %v6831_v7 = vpop.eup %6830  ;;  %4976 = vmatprep.mubr.bf16.mxu0 %v10121_v25  ;;  %v4257_v5 = vmul.f32 %v6829_v54, %v4161_v55  ;;  %6844 = vpow2.f32 %v4031_v52  ;;  %v4035_v9 = vmul.f32 1.442695, %v3977_v61  ;;  %v3910_v59 = vmul.f32 %v9676_v14, %v3872_v1 }
 0x826   :  { %v6833_v37 = vpop.eup %6832  ;;  %v4258_v6 = vmul.f32 %v6831_v7, %v4162_v18  ;;  %6846 = vpow2.f32 %v4033_v50  ;;  %v4037_v0 = vmul.f32 1.442695, %v3978_v15  ;;  %v9815_v43 = vadd.f32 %v9691_v63, %v3909_v20 }
 0x827   :  { %v6835_v11 = vpop.eup %6834  ;;  %v3873_v53 = vmul.f32 %v6833_v37, %v3777_v24  ;;  %v5619_v46 = vadd.f32 -1.0, %v4099_v62  ;;  %6848 = vpow2.f32 %v4035_v9  ;;  %v9821_v38 = vadd.f32 %v9691_v63, %v3910_v59 }
 0x828   :  { %v4280_v32 = vpack.c.bf16 %v4258_v6, %v4257_v5  ;;  %v4069_v44 = vadd.f32 1.0, %v6835_v11  ;;  %6850 = vpow2.f32 %v4037_v0  ;;  %v3979_v39 = vmin.f32 %v9815_v43, 20.0 }
 0x829   :  { %v6837_v2 = vpop.eup %6836  ;;  %v5620_v34 = vadd.f32 -1.0, %v4100_v47  ;;  %v3980_v41 = vmin.f32 %v9821_v38, 20.0  ;;  %v3911_v1 = vmul.f32 %v9676_v14, %v3873_v53  ;;  %v4163_v40 = vmul.f32 %v5619_v46, %v9714_v56 }
 0x82a   :  { %v6839_v16 = vpop.eup %6838  ;;  %v3874_v3 = vmul.f32 %v6837_v2, %v3778_v36  ;;  %v4101_v42 = vmul.f32 %v4069_v44, %v4069_v44  ;;  %v4039_v24 = vmul.f32 1.442695, %v3979_v39 }
 0x82b   :  { %v4070_v19 = vadd.f32 1.0, %v6839_v16  ;;  %v4041_v62 = vmul.f32 1.442695, %v3980_v41  ;;  %v9828_v27 = vadd.f32 %v9691_v63, %v3911_v1  ;;  %v4164_v60 = vmul.f32 %v5620_v34, %v9726_v26 }
 0x82c   :  { %v3912_v45 = vmul.f32 %v9676_v14, %v3874_v3  ;;  %5679 = vmatmul.mubr.msk.bf16.gmra.mrb[132].mxu0 %vm3393_vm4, %v4280_v32  ;;  %v4197_v36 = vadd.f32 1.0, %v4101_v42  ;;  %6852 = vpow2.f32 %v4039_v24  ;;  %v5621_v32 = vadd.f32 -1.0, %v4101_v42 }
 0x82d   :  { %v4102_v55 = vmul.f32 %v4070_v19, %v4070_v19  ;;  %v6841_v47 = vpop.eup %6840  ;;  %4986 = vmatprep.mubr.bf16.mxu0 %v10121_v25  ;;  %6854 = vpow2.f32 %v4041_v62  ;;  %v3981_v14 = vmin.f32 %v9828_v27, 20.0 }
 0x82e   :  { %v9835_v52 = vadd.f32 %v9691_v63, %v3912_v45  ;;  %v6843_v50 = vpop.eup %6842  ;;  %v4259_v61 = vmul.f32 %v6841_v47, %v4163_v40  ;;  %6856 = vrcp.f32 %v4197_v36  ;;  %v4165_v45 = vmul.f32 %v5621_v32, %v9752_v8 }
 0x82f   :  { %v4198_v54 = vadd.f32 1.0, %v4102_v55  ;;  %v6845_v18 = vpop.eup %6844  ;;  %v4260_v15 = vmul.f32 %v6843_v50, %v4164_v60  ;;  %v4043_v20 = vmul.f32 1.442695, %v3981_v14  ;;  %v5622_v44 = vadd.f32 -1.0, %v4102_v55 }
 0x830   :  { %v3982_v56 = vmin.f32 %v9835_v52, 20.0  ;;  %v6847_v7 = vpop.eup %6846  ;;  %v4071_v5 = vadd.f32 1.0, %v6845_v18 }
 0x831   :  { %6858 = vrcp.f32 %v4198_v54  ;;  %v6849_v9 = vpop.eup %6848  ;;  %v4281_v26 = vpack.c.bf16 %v4260_v15, %v4259_v61  ;;  %v4072_v59 = vadd.f32 1.0, %v6847_v7  ;;  %v4166_v40 = vmul.f32 %v5622_v44, %v9765_v4 }
 0x832   :  { %v4045_v37 = vmul.f32 1.442695, %v3982_v56  ;;  %v6851_v63 = vpop.eup %6850  ;;  %v4103_v6 = vmul.f32 %v4071_v5, %v4071_v5  ;;  %v4073_v0 = vadd.f32 1.0, %v6849_v9  ;;  %6860 = vpow2.f32 %v4043_v20 }
 0x833   :  { %v4104_v11 = vmul.f32 %v4072_v59, %v4072_v59  ;;  %v4074_v53 = vadd.f32 1.0, %v6851_v63 }
 0x834   :  { %6862 = vpow2.f32 %v4045_v37  ;;  %5680 = vmatmul.mubr.msk.bf16.gmra.mrb[136].mxu0 %vm3393_vm4, %v4281_v26  ;;  %v4199_v46 = vadd.f32 1.0, %v4103_v6  ;;  %v4105_v2 = vmul.f32 %v4073_v0, %v4073_v0  ;;  %v5623_v14 = vadd.f32 -1.0, %v4103_v6 }
 0x835   :  { %4996 = vmatprep.mubr.bf16.mxu0 %v10121_v25  ;;  %v4200_v39 = vadd.f32 1.0, %v4104_v11  ;;  %v4106_v16 = vmul.f32 %v4074_v53, %v4074_v53  ;;  %v5624_v50 = vadd.f32 -1.0, %v4104_v11 }
 0x836   :  { %v6853_v3 = vpop.eup %6852  ;;  %6864 = vrcp.f32 %v4199_v46  ;;  %v4201_v1 = vadd.f32 1.0, %v4105_v2  ;;  %v4167_v8 = vmul.f32 %v5623_v14, %v9787_v12  ;;  %v5625_v6 = vadd.f32 -1.0, %v4105_v2 }
 0x837   :  { %v6855_v34 = vpop.eup %6854  ;;  %6866 = vrcp.f32 %v4200_v39  ;;  %v4202_v41 = vadd.f32 1.0, %v4106_v16  ;;  %v4075_v19 = vadd.f32 1.0, %v6853_v3  ;;  %v4168_v4 = vmul.f32 %v5624_v50, %v9791_v22 }
 0x838   :  { %v4076_v24 = vadd.f32 1.0, %v6855_v34  ;;  %v6857_v62 = vpop.eup %6856  ;;  %v5626_v26 = vadd.f32 -1.0, %v4106_v16  ;;  %v4169_v12 = vmul.f32 %v5625_v6, %v9794_v31  ;;  %v5113_v14 = vlaneseq }
 0x839   :  { %6868 = vrcp.f32 %v4202_v41  ;;  %v4261_v42 = vmul.f32 %v6857_v62, %v4165_v45  ;;  %v4107_v61 = vmul.f32 %v4075_v19, %v4075_v19 }
 0x83a   :  { %v4108_v47 = vmul.f32 %v4076_v24, %v4076_v24  ;;  %6870 = vrcp.f32 %v4201_v1  ;;  %v4170_v46 = vmul.f32 %v5626_v26, %v9802_v57  ;;  %v5114_v50 = vshrl.u32 %v5113_v14, 7  ;;  %v10192_v26 = vld [vmem:[#allocation11_spill] sm:$0xff] }
 0x83b   :  { %v6859_v36 = vpop.eup %6858  ;;  %v4203_v7 = vadd.f32 1.0, %v4107_v61  ;;  %v5627_v34 = vadd.f32 -1.0, %v4107_v61 }
 0x83c   :  { %v4262_v55 = vmul.f32 %v6859_v36, %v4166_v40  ;;  %v6861_v60 = vpop.eup %6860  ;;  %v4204_v15 = vadd.f32 1.0, %v4108_v47  ;;  %v5628_v3 = vadd.f32 -1.0, %v4108_v47  ;;  %v5115_v61 = vsub.s32 0, %v5114_v50 }
 0x83d   :  { %v4077_v5 = vadd.f32 1.0, %v6861_v60  ;;  %v4171_v19 = vmul.f32 %v5627_v34, %v9815_v43 }
 0x83e   :  { %v6863_v54 = vpop.eup %6862  ;;  %v4282_v18 = vpack.c.bf16 %v4262_v55, %v4261_v42  ;;  %6872 = vrcp.f32 %v4204_v15  ;;  %v4172_v1 = vmul.f32 %v5628_v3, %v9821_v38  ;;  %v10196_v3 = vld [vmem:[#allocation5_spill] sm:$0xff] }
 0x83f   :  { %v4078_v56 = vadd.f32 1.0, %v6863_v54  ;;  %6874 = vrcp.f32 %v4203_v7  ;;  %v4109_v53 = vmul.f32 %v4077_v5, %v4077_v5  ;;  %v5111_v54 = vld [vmem:[%s10026_s19] sm:$0x3]  ;;  %s6911_s19 = smov [#allocation2]  }
 0x840   :  { %5681 = vmatmul.mubr.msk.bf16.gmra.mrb[140].mxu0 %vm3393_vm4, %v4282_v18  ;;  %v6865_v20 = vpop.eup %6864  ;;  %v9863_v18 = vrot.slane %v5111_v54, %v5115_v61  ;;  %s5416_s6 = sshll.u32 %s6911_s19, 4  ;;  %s5417_s6 = int_to_ptr.vmem [resolvable:$true] %s5416_s6 }
 0x841   :  { %5006 = vmatprep.mubr.bf16.mxu0 %v10121_v25  ;;  %v6867_v9 = vpop.eup %6866  ;;  %v4263_v59 = vmul.f32 %v6865_v20, %v4167_v8  ;;  %v4110_v63 = vmul.f32 %v4078_v56, %v4078_v56  ;;  %v4205_v39 = vadd.f32 1.0, %v4109_v53  ;;  %v5629_v40 = vadd.f32 -1.0, %v4109_v53  ;;  %s6886_s16 = scalar_lea.vmem %s5417_s6, 4096  ;;  %p6891_p1 = scmp.lt.s32.totalorder %s5417_s6, %s5417_s6 }
 0x842   :  { %v4264_v37 = vmul.f32 %v6867_v9, %v4168_v4  ;;  %p6887_p0 = scmp.ne.s32.totalorder %s5417_s6, %s6886_s16  ;;  %p6892_p2 = scmp.lt.s32.totalorder %s6886_s16, %s6886_s16 }
 0x843   :  { %v6869_v0 = vpop.eup %6868  ;;  %v4206_v44 = vadd.f32 1.0, %v4110_v63  ;;  %v5630_v62 = vadd.f32 -1.0, %v4110_v63  ;;  %v4173_v38 = vmul.f32 %v5629_v40, %v9828_v27 }
 0x844   :  { %v4283_v11 = vpack.c.bf16 %v4264_v37, %v4263_v59  ;;  %v6871_v32 = vpop.eup %6870  ;;  %v4266_v22 = vmul.f32 %v6869_v0, %v4170_v46  ;;  %v10194_v46 = vld [vmem:[#allocation13_spill] sm:$0xff]  ;;  %p6893_p3 = por %p6892_p2, %p6891_p1 }
 0x845   :  { %v4265_v16 = vmul.f32 %v6871_v32, %v4169_v12  ;;  %6876 = vrcp.f32 %v4206_v44  ;;  %v4174_v47 = vmul.f32 %v5630_v62, %v9835_v52  ;;  %v5119_v52 = vsub.s32 1, %v5114_v50  ;;  %v10195_v12 = vld [vmem:[#allocation14_spill] sm:$0xff] }
 0x846   :  { %6878 = vrcp.f32 %v4205_v39  ;;  %p6894_p4 = pnand %p6893_p3, %p6887_p0 }
 0x847   :  { %v4284_v2 = vpack.c.bf16 %v4266_v22, %v4265_v16  ;;  %v9865_v56 = vrot.slane %v5111_v54, %v5119_v52 }
 0x848   :  { %5682 = vmatmul.mubr.msk.bf16.gmra.mrb[144].mxu0 %vm3393_vm4, %v4283_v11  ;;  %v6873_v41 = vpop.eup %6872 }
 0x849   :  { %5016 = vmatprep.mubr.bf16.mxu0 %v10121_v25  ;;  %v6875_v57 = vpop.eup %6874  ;;  %v4268_v24 = vmul.f32 %v6873_v41, %v4172_v1 }
 0x84a   :  { %v4267_v31 = vmul.f32 %v6875_v57, %v4171_v19 }
 0x84c   :  { %v4285_v45 = vpack.c.bf16 %v4268_v24, %v4267_v31  ;;  %v10197_v24 = vld [vmem:[#allocation6_spill] sm:$0xff] }
 0x84f   :  { %v6877_v36 = vpop.eup %6876 }
 0x850   :  { %5683 = vmatmul.mubr.msk.bf16.gmra.mrb[148].mxu0 %vm3393_vm4, %v4284_v2  ;;  %v6879_v42 = vpop.eup %6878  ;;  %v4270_v55 = vmul.f32 %v6877_v36, %v4174_v47 }
 0x851   :  { %5026 = vmatprep.mubr.bf16.mxu0 %v10121_v25  ;;  %v4269_v60 = vmul.f32 %v6879_v42, %v4173_v38  ;;  %v10199_v42 = vld [vmem:[#allocation8_spill] sm:$0xff] }
 0x853   :  { %v4286_v43 = vpack.c.bf16 %v4270_v55, %v4269_v60 }
 0x858   :  { %5684 = vmatmul.mubr.msk.bf16.gmra.mrb[152].mxu0 %vm3393_vm4, %v4285_v45  ;;  %v10198_v45 = vld [vmem:[#allocation7_spill] sm:$0xff] }
 0x859   :  { %5036 = vmatprep.mubr.bf16.mxu0 %v10121_v25 }
 0x860   :  { %5685 = vmatmul.mubr.msk.bf16.gmra.mrb[156].mxu0 %vm3393_vm4, %v4286_v43  ;;  %v10200_v43 = vld [vmem:[#allocation9_spill] sm:$0xff] }
 0x883   :  { %v4888_v15 = vpop.f32.mrb[96].mxu0 }
 0x884   :  { %v6103_v27 = vadd.f32 %v4888_v15, %v9237_v35  ;;  %v4890_v25 = vpop.f32.mrb[97].mxu0 }
 0x885   :  { %v6104_v20 = vadd.f32 %v4890_v25, %v9248_v48  ;;  %v4892_v8 = vpop.f32.mrb[98].mxu0  ;;  %v10193_v48 = vld [vmem:[#allocation12_spill] sm:$0xff] }
 0x886   :  { %v5123_v4 = vadd.f32 %v6103_v27, %v9863_v18  ;;  %v6105_v7 = vadd.f32 %v4892_v8, %v9250_v21  ;;  %v4894_v5 = vpop.f32.mrb[99].mxu0  ;;  %v10201_v27 = vld [vmem:[#allocation10_spill] sm:$0xff]  ;;  %v10202_v8 = vld [vmem:[#allocation15_spill] sm:$0xff] }
 0x887   :  { %v5124_v9 = vadd.f32 %v6104_v20, %v9865_v56  ;;  %v6106_v59 = vadd.f32 %v4894_v5, %v10192_v26 }
 0x888   :  { %v5125_v37 = vadd.f32 %v6105_v7, %v9863_v18 }
 0x889   :  { %v5718_v63 = vpack.c.bf16 %v5124_v9, %v5123_v4  ;;  %v5126_v6 = vadd.f32 %v6106_v59, %v9865_v56  ;;  %v10203_v9 = vld [vmem:[#allocation16_spill] sm:$0xff] }
 0x88b   :  { %5379 = vst [vmem:[#allocation2] sm:$0xff] %v5718_v63  ;;  %v5719_v35 = vpack.c.bf16 %v5126_v6, %v5125_v37  ;;  %v10204_v63 = vld [vmem:[#allocation17_spill] sm:$0xff] }
 0x88d   :  { %5380 = vst [vmem:[#allocation2 + $0x8] sm:$0xff] %v5719_v35  ;;  %v4898_v0 = vpop.f32.mrb[100].mxu0 }
 0x88e   :  { %v6107_v11 = vadd.f32 %v4898_v0, %v10193_v48  ;;  %v4900_v53 = vpop.f32.mrb[101].mxu0 }
 0x88f   :  { %v6108_v32 = vadd.f32 %v4900_v53, %v10194_v46  ;;  %v4902_v21 = vpop.f32.mrb[102].mxu0  ;;  %v10205_v46 = vld [vmem:[#allocation18_spill] sm:$0xff] }
 0x890   :  { %v5127_v44 = vadd.f32 %v6107_v11, %v9863_v18  ;;  %v6109_v22 = vadd.f32 %v4902_v21, %v10195_v12  ;;  %v4904_v39 = vpop.f32.mrb[103].mxu0 }
 0x891   :  { %v5128_v16 = vadd.f32 %v6108_v32, %v9865_v56  ;;  %v6110_v2 = vadd.f32 %v4904_v39, %v10196_v3 }
 0x892   :  { %v5129_v34 = vadd.f32 %v6109_v22, %v9863_v18 }
 0x893   :  { %v5720_v41 = vpack.c.bf16 %v5128_v16, %v5127_v44  ;;  %v5130_v1 = vadd.f32 %v6110_v2, %v9865_v56  ;;  %v10206_v44 = vld [vmem:[#allocation19_spill] sm:$0xff]  ;;  %v10207_v16 = vld [vmem:[#allocation20_spill] sm:$0xff] }
 0x895   :  { %5381 = vst [vmem:[#allocation2 + $0x10] sm:$0xff] %v5720_v41  ;;  %v5721_v57 = vpack.c.bf16 %v5130_v1, %v5129_v34  ;;  %v10208_v41 = vld [vmem:[#allocation21_spill] sm:$0xff] }
 0x897   :  { %5382 = vst [vmem:[#allocation2 + $0x18] sm:$0xff] %v5721_v57 }
 0x8a1   :  { %v4908_v19 = vpop.f32.mrb[104].mxu0 }
 0x8a2   :  { %v6111_v31 = vadd.f32 %v4908_v19, %v10197_v24  ;;  %v4910_v62 = vpop.f32.mrb[105].mxu0 }
 0x8a3   :  { %v6112_v40 = vadd.f32 %v4910_v62, %v10198_v45  ;;  %v4912_v36 = vpop.f32.mrb[106].mxu0  ;;  %v10209_v45 = vld [vmem:[#allocation22_spill] sm:$0xff] }
 0x8a4   :  { %v5131_v47 = vadd.f32 %v6111_v31, %v9863_v18  ;;  %v6113_v38 = vadd.f32 %v4912_v36, %v10199_v42  ;;  %v4914_v55 = vpop.f32.mrb[107].mxu0 }
 0x8a5   :  { %v5132_v60 = vadd.f32 %v6112_v40, %v9865_v56  ;;  %v6114_v14 = vadd.f32 %v4914_v55, %v10200_v43 }
 0x8a6   :  { %v5133_v50 = vadd.f32 %v6113_v38, %v9863_v18 }
 0x8a7   :  { %v5722_v61 = vpack.c.bf16 %v5132_v60, %v5131_v47  ;;  %v5134_v54 = vadd.f32 %v6114_v14, %v9865_v56  ;;  %v10210_v47 = vld [vmem:[#allocation23_spill] sm:$0xff]  ;;  %v10211_v60 = vld [vmem:[#allocation24_spill] sm:$0xff] }
 0x8a9   :  { %5383 = vst [vmem:[#allocation2 + $0x20] sm:$0xff] %v5722_v61  ;;  %v5723_v52 = vpack.c.bf16 %v5134_v54, %v5133_v50  ;;  %v10212_v61 = vld [vmem:[#allocation25_spill] sm:$0xff] }
 0x8ab   :  { %5384 = vst [vmem:[#allocation2 + $0x28] sm:$0xff] %v5723_v52 }
 0x8ac   :  { %v4918_v15 = vpop.f32.mrb[108].mxu0 }
 0x8ad   :  { %v6115_v25 = vadd.f32 %v4918_v15, %v10201_v27  ;;  %v4920_v20 = vpop.f32.mrb[109].mxu0 }
 0x8ae   :  { %v6116_v4 = vadd.f32 %v4920_v20, %v10202_v8  ;;  %v4922_v7 = vpop.f32.mrb[110].mxu0  ;;  %v10213_v8 = vld [vmem:[#allocation26_spill] sm:$0xff] }
 0x8af   :  { %v5135_v5 = vadd.f32 %v6115_v25, %v9863_v18  ;;  %v6117_v26 = vadd.f32 %v4922_v7, %v10203_v9  ;;  %v4924_v59 = vpop.f32.mrb[111].mxu0 }
 0x8b0   :  { %v5136_v37 = vadd.f32 %v6116_v4, %v9865_v56  ;;  %v6118_v6 = vadd.f32 %v4924_v59, %v10204_v63 }
 0x8b1   :  { %v5137_v35 = vadd.f32 %v6117_v26, %v9863_v18 }
 0x8b2   :  { %v5724_v0 = vpack.c.bf16 %v5136_v37, %v5135_v5  ;;  %v5138_v48 = vadd.f32 %v6118_v6, %v9865_v56  ;;  %v10214_v5 = vld [vmem:[#allocation27_spill] sm:$0xff]  ;;  %v10215_v37 = vld [vmem:[#allocation28_spill] sm:$0xff] }
 0x8b4   :  { %5385 = vst [vmem:[#allocation2 + $0x30] sm:$0xff] %v5724_v0  ;;  %v5725_v11 = vpack.c.bf16 %v5138_v48, %v5137_v35  ;;  %v10216_v0 = vld [vmem:[#allocation29_spill] sm:$0xff] }
 0x8b6   :  { %5386 = vst [vmem:[#allocation2 + $0x38] sm:$0xff] %v5725_v11 }
 0x8c0   :  { %v4928_v53 = vpop.f32.mrb[112].mxu0 }
 0x8c1   :  { %v6119_v32 = vadd.f32 %v4928_v53, %v10205_v46  ;;  %v4930_v21 = vpop.f32.mrb[113].mxu0 }
 0x8c2   :  { %v6120_v12 = vadd.f32 %v4930_v21, %v10206_v44  ;;  %v4932_v22 = vpop.f32.mrb[114].mxu0  ;;  %v10217_v44 = vld [vmem:[#allocation30_spill] sm:$0xff] }
 0x8c3   :  { %v5139_v39 = vadd.f32 %v6119_v32, %v9863_v18  ;;  %v6121_v3 = vadd.f32 %v4932_v22, %v10207_v16  ;;  %v4934_v2 = vpop.f32.mrb[115].mxu0 }
 0x8c4   :  { %v5140_v34 = vadd.f32 %v6120_v12, %v9865_v56  ;;  %v6122_v1 = vadd.f32 %v4934_v2, %v10208_v41  ;;  %v10218_v2 = vld [vmem:[#allocation31_spill] sm:$0xff] }
 0x8c5   :  { %v5141_v57 = vadd.f32 %v6121_v3, %v9863_v18 }
 0x8c6   :  { %v5726_v19 = vpack.c.bf16 %v5140_v34, %v5139_v39  ;;  %v5142_v24 = vadd.f32 %v6122_v1, %v9865_v56 }
 0x8c8   :  { %5387 = vst [vmem:[#allocation2 + $0x40] sm:$0xff] %v5726_v19  ;;  %v5727_v31 = vpack.c.bf16 %v5142_v24, %v5141_v57  ;;  %v10219_v57 = vld [vmem:[#allocation32_spill] sm:$0xff] }
 0x8ca   :  { %5388 = vst [vmem:[#allocation2 + $0x48] sm:$0xff] %v5727_v31  ;;  %v4938_v62 = vpop.f32.mrb[116].mxu0 }
 0x8cb   :  { %v6123_v40 = vadd.f32 %v4938_v62, %v10209_v45  ;;  %v4940_v36 = vpop.f32.mrb[117].mxu0 }
 0x8cc   :  { %v6124_v42 = vadd.f32 %v4940_v36, %v10210_v47  ;;  %v4942_v38 = vpop.f32.mrb[118].mxu0 }
 0x8cd   :  { %v5143_v55 = vadd.f32 %v6123_v40, %v9863_v18  ;;  %v6125_v43 = vadd.f32 %v4942_v38, %v10211_v60  ;;  %v4944_v14 = vpop.f32.mrb[119].mxu0 }
 0x8ce   :  { %v5144_v50 = vadd.f32 %v6124_v42, %v9865_v56  ;;  %v6126_v54 = vadd.f32 %v4944_v14, %v10212_v61  ;;  %v10221_v42 = vld [vmem:[#allocation34_spill] sm:$0xff] }
 0x8cf   :  { %v5145_v52 = vadd.f32 %v6125_v43, %v9863_v18  ;;  %v10222_v43 = vld [vmem:[#allocation35_spill] sm:$0xff] }
 0x8d0   :  { %v5728_v15 = vpack.c.bf16 %v5144_v50, %v5143_v55  ;;  %v5146_v27 = vadd.f32 %v6126_v54, %v9865_v56  ;;  %v10223_v54 = vld [vmem:[#allocation36_spill] sm:$0xff] }
 0x8d2   :  { %5389 = vst [vmem:[#allocation2 + $0x50] sm:$0xff] %v5728_v15  ;;  %v5729_v25 = vpack.c.bf16 %v5146_v27, %v5145_v52 }
 0x8d4   :  { %5390 = vst [vmem:[#allocation2 + $0x58] sm:$0xff] %v5729_v25 }
 0x8da   :  { %v4948_v20 = vpop.f32.mrb[120].mxu0 }
 0x8db   :  { %v6127_v4 = vadd.f32 %v4948_v20, %v10213_v8  ;;  %v4950_v7 = vpop.f32.mrb[121].mxu0 }
 0x8dc   :  { %v6128_v9 = vadd.f32 %v4950_v7, %v10214_v5  ;;  %v4952_v26 = vpop.f32.mrb[122].mxu0 }
 0x8dd   :  { %v5147_v59 = vadd.f32 %v6127_v4, %v9863_v18  ;;  %v6129_v63 = vadd.f32 %v4952_v26, %v10215_v37  ;;  %v4954_v6 = vpop.f32.mrb[123].mxu0  ;;  %v10224_v4 = vld [vmem:[#allocation37_spill] sm:$0xff] }
 0x8de   :  { %v5148_v35 = vadd.f32 %v6128_v9, %v9865_v56  ;;  %v6130_v48 = vadd.f32 %v4954_v6, %v10216_v0  ;;  %v10225_v9 = vld [vmem:[#allocation38_spill] sm:$0xff] }
 0x8df   :  { %v5149_v11 = vadd.f32 %v6129_v63, %v9863_v18  ;;  %v10226_v63 = vld [vmem:[#allocation39_spill] sm:$0xff] }
 0x8e0   :  { %v5730_v53 = vpack.c.bf16 %v5148_v35, %v5147_v59  ;;  %v5150_v46 = vadd.f32 %v6130_v48, %v9865_v56  ;;  %v10227_v48 = vld [vmem:[#allocation40_spill] sm:$0xff] }
 0x8e2   :  { %5391 = vst [vmem:[#allocation2 + $0x60] sm:$0xff] %v5730_v53  ;;  %v5731_v32 = vpack.c.bf16 %v5150_v46, %v5149_v11 }
 0x8e3   :  { %v4958_v21 = vpop.f32.mrb[124].mxu0 }
 0x8e4   :  { %5392 = vst [vmem:[#allocation2 + $0x68] sm:$0xff] %v5731_v32  ;;  %v6131_v12 = vadd.f32 %v4958_v21, %v10217_v44  ;;  %v4960_v22 = vpop.f32.mrb[125].mxu0 }
 0x8e5   :  { %v6132_v39 = vadd.f32 %v4960_v22, %v9429_v28  ;;  %v4962_v16 = vpop.f32.mrb[126].mxu0  ;;  %v10220_v28 = vld [vmem:[#allocation33_spill] sm:$0xff] }
 0x8e6   :  { %v5151_v3 = vadd.f32 %v6131_v12, %v9863_v18  ;;  %v6133_v34 = vadd.f32 %v4962_v16, %v10218_v2  ;;  %v4964_v41 = vpop.f32.mrb[127].mxu0  ;;  %v10228_v12 = vld [vmem:[#allocation41_spill] sm:$0xff]  ;;  %v10229_v16 = vld [vmem:[#allocation42_spill] sm:$0xff] }
 0x8e7   :  { %v5152_v1 = vadd.f32 %v6132_v39, %v9865_v56  ;;  %v6134_v19 = vadd.f32 %v4964_v41, %v10219_v57 }
 0x8e8   :  { %v5153_v24 = vadd.f32 %v6133_v34, %v9863_v18 }
 0x8e9   :  { %v5732_v31 = vpack.c.bf16 %v5152_v1, %v5151_v3  ;;  %v5154_v62 = vadd.f32 %v6134_v19, %v9865_v56 }
 0x8eb   :  { %5393 = vst [vmem:[#allocation2 + $0x70] sm:$0xff] %v5732_v31  ;;  %v5733_v45 = vpack.c.bf16 %v5154_v62, %v5153_v24 }
 0x8ed   :  { %5394 = vst [vmem:[#allocation2 + $0x78] sm:$0xff] %v5733_v45 }
 0x8f7   :  { %v4968_v40 = vpop.f32.mrb[128].mxu0 }
 0x8f8   :  { %v6135_v36 = vadd.f32 %v4968_v40, %v10220_v28  ;;  %v4970_v47 = vpop.f32.mrb[129].mxu0 }
 0x8f9   :  { %v6136_v38 = vadd.f32 %v4970_v47, %v10221_v42  ;;  %v4972_v55 = vpop.f32.mrb[130].mxu0 }
 0x8fa   :  { %v5155_v60 = vadd.f32 %v6135_v36, %v9863_v18  ;;  %v6137_v14 = vadd.f32 %v4972_v55, %v10222_v43  ;;  %v4974_v50 = vpop.f32.mrb[131].mxu0 }
 0x8fb   :  { %v5156_v61 = vadd.f32 %v6136_v38, %v9865_v56  ;;  %v6138_v52 = vadd.f32 %v4974_v50, %v10223_v54  ;;  %v10230_v54 = vld [vmem:[#allocation43_spill] sm:$0xff] }
 0x8fc   :  { %v5157_v15 = vadd.f32 %v6137_v14, %v9863_v18 }
 0x8fd   :  { %v5734_v27 = vpack.c.bf16 %v5156_v61, %v5155_v60  ;;  %v5158_v25 = vadd.f32 %v6138_v52, %v9865_v56 }
 0x8ff   :  { %5395 = vst [vmem:[#allocation2 + $0x80] sm:$0xff] %v5734_v27  ;;  %v5735_v20 = vpack.c.bf16 %v5158_v25, %v5157_v15  ;;  %v4978_v8 = vpop.f32.mrb[132].mxu0  ;;  %v10231_v15 = vld [vmem:[#allocation44_spill] sm:$0xff] }
 0x900   :  { %v6139_v7 = vadd.f32 %v4978_v8, %v10224_v4  ;;  %v4980_v5 = vpop.f32.mrb[133].mxu0 }
 0x901   :  { %5396 = vst [vmem:[#allocation2 + $0x88] sm:$0xff] %v5735_v20  ;;  %v6140_v26 = vadd.f32 %v4980_v5, %v10225_v9  ;;  %v4982_v59 = vpop.f32.mrb[134].mxu0  ;;  %v10232_v20 = vld [vmem:[#allocation45_spill] sm:$0xff] }
 0x902   :  { %v5159_v37 = vadd.f32 %v6139_v7, %v9863_v18  ;;  %v6141_v6 = vadd.f32 %v4982_v59, %v10226_v63  ;;  %v4984_v35 = vpop.f32.mrb[135].mxu0  ;;  %v10233_v7 = vld [vmem:[#allocation46_spill] sm:$0xff] }
 0x903   :  { %v5160_v0 = vadd.f32 %v6140_v26, %v9865_v56  ;;  %v6142_v11 = vadd.f32 %v4984_v35, %v10227_v48  ;;  %v10235_v48 = vld [vmem:[#allocation48_spill] sm:$0xff] }
 0x904   :  { %v5161_v53 = vadd.f32 %v6141_v6, %v9863_v18  ;;  %v10234_v6 = vld [vmem:[#allocation47_spill] sm:$0xff] }
 0x905   :  { %v5736_v46 = vpack.c.bf16 %v5160_v0, %v5159_v37  ;;  %v5162_v32 = vadd.f32 %v6142_v11, %v9865_v56 }
 0x907   :  { %5397 = vst [vmem:[#allocation2 + $0x90] sm:$0xff] %v5736_v46  ;;  %v5737_v21 = vpack.c.bf16 %v5162_v32, %v5161_v53  ;;  %v4988_v44 = vpop.f32.mrb[136].mxu0  ;;  %v10236_v32 = vld [vmem:[#allocation49_spill] sm:$0xff] }
 0x908   :  { %v6143_v22 = vadd.f32 %v4988_v44, %v10228_v12  ;;  %v4990_v39 = vpop.f32.mrb[137].mxu0 }
 0x909   :  { %5398 = vst [vmem:[#allocation2 + $0x98] sm:$0xff] %v5737_v21  ;;  %v6144_v3 = vadd.f32 %v4990_v39, %v10229_v16  ;;  %v4992_v2 = vpop.f32.mrb[138].mxu0 }
 0x90a   :  { %v5163_v34 = vadd.f32 %v6143_v22, %v9863_v18  ;;  %v6145_v41 = vadd.f32 %v4992_v2, %v9505_v51  ;;  %v4994_v1 = vpop.f32.mrb[139].mxu0  ;;  %v10237_v22 = vld [vmem:[#allocation50_spill] sm:$0xff] }
 0x90b   :  { %v5164_v57 = vadd.f32 %v6144_v3, %v9865_v56  ;;  %v6146_v19 = vadd.f32 %v4994_v1, %v9509_v58  ;;  %v10238_v1 = vld [vmem:[#allocation51_spill] sm:$0xff] }
 0x90c   :  { %v5165_v24 = vadd.f32 %v6145_v41, %v9863_v18 }
 0x90d   :  { %v5738_v31 = vpack.c.bf16 %v5164_v57, %v5163_v34  ;;  %v5166_v62 = vadd.f32 %v6146_v19, %v9865_v56 }
 0x90f   :  { %5399 = vst [vmem:[#allocation2 + $0xa0] sm:$0xff] %v5738_v31  ;;  %v5739_v45 = vpack.c.bf16 %v5166_v62, %v5165_v24  ;;  %v10239_v24 = vld [vmem:[#allocation52_spill] sm:$0xff] }
 0x911   :  { %5400 = vst [vmem:[#allocation2 + $0xa8] sm:$0xff] %v5739_v45 }
 0x913   :  { %v4998_v40 = vpop.f32.mrb[140].mxu0 }
 0x914   :  { %v6147_v28 = vadd.f32 %v4998_v40, %v9521_v29  ;;  %v5000_v36 = vpop.f32.mrb[141].mxu0  ;;  %v10240_v40 = vld [vmem:[#allocation53_spill] sm:$0xff] }
 0x915   :  { %v6148_v47 = vadd.f32 %v5000_v36, %v9523_v10  ;;  %v5002_v51 = vpop.f32.mrb[142].mxu0 }
 0x916   :  { %v5167_v42 = vadd.f32 %v6147_v28, %v9863_v18  ;;  %v6149_v38 = vadd.f32 %v5002_v51, %v9531_v30  ;;  %v5004_v58 = vpop.f32.mrb[143].mxu0  ;;  %v10241_v51 = vld [vmem:[#allocation54_spill] sm:$0xff] }
 0x917   :  { %v5168_v55 = vadd.f32 %v6148_v47, %v9865_v56  ;;  %v6150_v60 = vadd.f32 %v5004_v58, %v9533_v33 }
 0x918   :  { %v5169_v43 = vadd.f32 %v6149_v38, %v9863_v18 }
 0x919   :  { %v5740_v14 = vpack.c.bf16 %v5168_v55, %v5167_v42  ;;  %v5170_v50 = vadd.f32 %v6150_v60, %v9865_v56 }
 0x91b   :  { %5401 = vst [vmem:[#allocation2 + $0xb0] sm:$0xff] %v5740_v14  ;;  %v5741_v29 = vpack.c.bf16 %v5170_v50, %v5169_v43  ;;  %v5008_v61 = vpop.f32.mrb[144].mxu0 }
 0x91c   :  { %v6151_v10 = vadd.f32 %v5008_v61, %v10230_v54  ;;  %v5010_v52 = vpop.f32.mrb[145].mxu0 }
 0x91d   :  { %5402 = vst [vmem:[#allocation2 + $0xb8] sm:$0xff] %v5741_v29  ;;  %v6152_v27 = vadd.f32 %v5010_v52, %v10231_v15  ;;  %v5012_v30 = vpop.f32.mrb[146].mxu0 }
 0x91e   :  { %v5171_v25 = vadd.f32 %v6151_v10, %v9863_v18  ;;  %v6153_v8 = vadd.f32 %v5012_v30, %v10232_v20  ;;  %v5014_v33 = vpop.f32.mrb[147].mxu0 }
 0x91f   :  { %v5172_v4 = vadd.f32 %v6152_v27, %v9865_v56  ;;  %v6154_v5 = vadd.f32 %v5014_v33, %v10233_v7 }
 0x920   :  { %v5173_v9 = vadd.f32 %v6153_v8, %v9863_v18 }
 0x921   :  { %v5742_v26 = vpack.c.bf16 %v5172_v4, %v5171_v25  ;;  %v5174_v59 = vadd.f32 %v6154_v5, %v9865_v56 }
 0x923   :  { %5403 = vst [vmem:[#allocation2 + $0xc0] sm:$0xff] %v5742_v26  ;;  %v5743_v37 = vpack.c.bf16 %v5174_v59, %v5173_v9  ;;  %v5018_v63 = vpop.f32.mrb[148].mxu0 }
 0x924   :  { %v6155_v35 = vadd.f32 %v5018_v63, %v10234_v6  ;;  %v5020_v0 = vpop.f32.mrb[149].mxu0 }
 0x925   :  { %5404 = vst [vmem:[#allocation2 + $0xc8] sm:$0xff] %v5743_v37  ;;  %v6156_v11 = vadd.f32 %v5020_v0, %v10235_v48  ;;  %v5022_v53 = vpop.f32.mrb[150].mxu0 }
 0x926   :  { %v5175_v46 = vadd.f32 %v6155_v35, %v9863_v18  ;;  %v6157_v21 = vadd.f32 %v5022_v53, %v10236_v32  ;;  %v5024_v44 = vpop.f32.mrb[151].mxu0 }
 0x927   :  { %v5176_v12 = vadd.f32 %v6156_v11, %v9865_v56  ;;  %v6158_v39 = vadd.f32 %v5024_v44, %v10237_v22 }
 0x928   :  { %v5177_v16 = vadd.f32 %v6157_v21, %v9863_v18 }
 0x929   :  { %v5744_v3 = vpack.c.bf16 %v5176_v12, %v5175_v46  ;;  %v5178_v2 = vadd.f32 %v6158_v39, %v9865_v56 }
 0x92b   :  { %5405 = vst [vmem:[#allocation2 + $0xd0] sm:$0xff] %v5744_v3  ;;  %v5745_v34 = vpack.c.bf16 %v5178_v2, %v5177_v16  ;;  %v5028_v41 = vpop.f32.mrb[152].mxu0 }
 0x92c   :  { %v6159_v57 = vadd.f32 %v5028_v41, %v10238_v1  ;;  %v5030_v19 = vpop.f32.mrb[153].mxu0 }
 0x92d   :  { %5406 = vst [vmem:[#allocation2 + $0xd8] sm:$0xff] %v5745_v34  ;;  %v6160_v31 = vadd.f32 %v5030_v19, %v10239_v24  ;;  %v5032_v62 = vpop.f32.mrb[154].mxu0 }
 0x92e   :  { %v5179_v45 = vadd.f32 %v6159_v57, %v9863_v18  ;;  %v6161_v28 = vadd.f32 %v5032_v62, %v10240_v40  ;;  %v5034_v36 = vpop.f32.mrb[155].mxu0 }
 0x92f   :  { %v5180_v47 = vadd.f32 %v6160_v31, %v9865_v56  ;;  %v6162_v42 = vadd.f32 %v5034_v36, %v10241_v51 }
 0x930   :  { %v5181_v38 = vadd.f32 %v6161_v28, %v9863_v18 }
 0x931   :  { %v5746_v58 = vpack.c.bf16 %v5180_v47, %v5179_v45  ;;  %v5182_v55 = vadd.f32 %v6162_v42, %v9865_v56 }
 0x933   :  { %5407 = vst [vmem:[#allocation2 + $0xe0] sm:$0xff] %v5746_v58  ;;  %v5747_v60 = vpack.c.bf16 %v5182_v55, %v5181_v38  ;;  %v5038_v43 = vpop.f32.mrb[156].mxu0 }
 0x934   :  { %v6163_v14 = vadd.f32 %v5038_v43, %v9621_v49  ;;  %v5040_v50 = vpop.f32.mrb[157].mxu0 }
 0x935   :  { %5408 = vst [vmem:[#allocation2 + $0xe8] sm:$0xff] %v5747_v60  ;;  %v6164_v29 = vadd.f32 %v5040_v50, %v9623_v13  ;;  %v5042_v61 = vpop.f32.mrb[158].mxu0 }
 0x936   :  { %v5183_v54 = vadd.f32 %v6163_v14, %v9863_v18  ;;  %v6165_v10 = vadd.f32 %v5042_v61, %v9630_v17  ;;  %v5044_v52 = vpop.f32.mrb[159].mxu0 }
 0x937   :  { %v5184_v15 = vadd.f32 %v6164_v29, %v9865_v56  ;;  %v6166_v27 = vadd.f32 %v5044_v52, %v9633_v23 }
 0x938   :  { %v5185_v30 = vadd.f32 %v6165_v10, %v9863_v18 }
 0x939   :  { %v5748_v25 = vpack.c.bf16 %v5184_v15, %v5183_v54  ;;  %v5186_v49 = vadd.f32 %v6166_v27, %v9865_v56 }
 0x93b   :  { %5409 = vst [vmem:[#allocation2 + $0xf0] sm:$0xff] %v5748_v25  ;;  %v5749_v20 = vpack.c.bf16 %v5186_v49, %v5185_v30 }
 0x93d   :  { %5410 = vst [vmem:[#allocation2 + $0xf8] sm:$0xff] %v5749_v20 }
 0x93e   :  { %6897 = shalt.err (!%p6894_p4)
}
 0x93f   :  { %s6898_s22 = scalar_lea.hbm %s10027_s20, 4096 }
 0x940   :  { %p6899_p5 = scmp.ne.s32.totalorder %s10027_s20, %s6898_s22  ;;  %p6902_p6 = scmp.lt.u32.totalorder %s6898_s22, %s10027_s20 }
 0x942   :  { %p6904_p7 = pnand %p6902_p6, %p6899_p5 }
 0x944   :  { %6907 = shalt.err (!%p6904_p7)
}
 0x945   :  { %s6912_s11 = smov 128   ;;  %s6913_s2 = smov 8  }
 0x946   :  { %5422 = dma.vmem_to_hbm [thread:$0]  %s5417_s6, 4096, %s10027_s20, [#allocation3], %s6912_s11, %s6912_s11, %s6913_s2  }
 0x947   :  { %6908 = dma.done.wait [#allocation3], 4096  }
 0x948   :  { %6909 = vsyncadd [#allocation3], 4294963200 }
 0x949   :  { %5426 = vsyncpa [#allocation3], 1 }

</bundles_post_ra>
